<compile_context>
chip_gen: v6e
topology: v6e:2x2x1
jax: 0.10.0
libtpu: 0.0.40
codegen_flags: <defaults>
</compile_context>

<pallas_src>
import functools

import jax
import jax.numpy as jnp
from jax.experimental import pallas as pl
from jax.experimental.pallas import tpu as pltpu


# ----------------------------------------------------------------------------
# Fused kernel: conv tower (at k==0) + K-blocked FC1 reduction + FC2 finalize.
# Grid = (hidden_splits, nk); the K axis streams fw1 blocks, the leading
# "parallel" axis splits the hidden dim across TensorCores on v7x.
# ----------------------------------------------------------------------------
def fused_net_kernel(x_ref, cw1_ref, cb1_ref, cw2_ref, cb2_ref, cw3_ref,
                     cb3_ref, fw1_ref, fb1_ref, fw2_ref, o_ref,
                     h_ref, acc_ref, *, ppb):
    k = pl.program_id(1)

    @pl.when(k == 0)
    def _():
        # --- conv tower: three 1x1 convs + ReLU --------------------------
        # Rows are (pixel-major, padded-batch-minor); a 1x1 conv is a
        # per-pixel channel matmul.  x.float()/255 is folded into cw1.
        h = x_ref[...]
        h = jnp.maximum(
            jnp.dot(h, cw1_ref[...], preferred_element_type=jnp.float32)
            + cb1_ref[...], 0.0)
        h = jnp.maximum(
            jnp.dot(h, cw2_ref[...], preferred_element_type=jnp.float32)
            + cb2_ref[...], 0.0)
        h = jnp.maximum(
            jnp.dot(h, cw3_ref[...], preferred_element_type=jnp.float32)
            + cb3_ref[...], 0.0)
        hw, b8, c3 = h_ref.shape
        # (HW*B8, C3) -> (HW, B8, C3): B8 is padded to the 8-sublane tile, so
        # this reshape splits the sublane dim exactly on tile boundaries — it
        # is layout-preserving (no scatter / relayout work).
        h_ref[...] = h.reshape(hw, b8, c3)
        acc_ref[...] = jnp.zeros_like(acc_ref)

    # --- FC1 partial for this K block ---------------------------------------
    # fw1_ref block is (ppb, C3, hh) bf16 (pixel, channel, hidden-half); the
    # matching conv rows are an aligned leading-dim slice of the 3-D scratch.
    start = pl.multiple_of(k * ppb, ppb)
    lhs = h_ref[pl.ds(start, ppb)].astype(jnp.bfloat16)        # (ppb, B8, C3)
    part = jnp.einsum("pbc,pch->pbh", lhs, fw1_ref[...],
                      preferred_element_type=jnp.float32)      # (ppb, B8, hh)
    acc_ref[...] += jnp.sum(part, axis=0)

    # --- finalize: bias + ReLU + FC2 (b2 added by the tiny combine outside,
    #     after summing the hidden-half partials) -----------------------------
    @pl.when(k == pl.num_programs(1) - 1)
    def _():
        h1 = jnp.maximum(acc_ref[...] + fb1_ref[...], 0.0)
        o_ref[...] = jnp.dot(h1, fw2_ref[...],
                             preferred_element_type=jnp.float32)


def fused_net(x_rows, kp, *, ppb=32, hidden_splits=1):
    """x_rows: (H*W*B8, Cin) f32, pixel-major / padded-batch-minor rows.

    Returns (hidden_splits, B8, n_actions) per-hidden-half FC2 partials
    (pre-b2); the caller sums over splits, adds b2 and drops padded rows.
    """
    rows, _ = x_rows.shape
    hw, c3, hid = kp["fw1p3"].shape
    act = kp["fw2"].shape[1]
    b8 = rows // hw
    assert rows == hw * b8 and b8 % 8 == 0
    assert hw % ppb == 0 and c3 % 8 == 0
    assert hid % hidden_splits == 0
    nk = hw // ppb
    hh = hid // hidden_splits

    def const(shape):
        return pl.BlockSpec(shape, lambda c, k: (0,) * len(shape))

    return pl.pallas_call(
        functools.partial(fused_net_kernel, ppb=ppb),
        out_shape=jax.ShapeDtypeStruct((hidden_splits, b8, act), jnp.float32),
        grid_spec=pltpu.PrefetchScalarGridSpec(
            num_scalar_prefetch=0,
            grid=(hidden_splits, nk),
            in_specs=[
                const(x_rows.shape),
                const(kp["cw1"].shape), const(kp["cb1"].shape),
                const(kp["cw2"].shape), const(kp["cb2"].shape),
                const(kp["cw3"].shape), const(kp["cb3"].shape),
                pl.BlockSpec((ppb, c3, hh), lambda c, k: (k, 0, c)),  # fw1 bf16
                pl.BlockSpec((1, hh), lambda c, k: (0, c)),           # fb1 half
                pl.BlockSpec((hh, act), lambda c, k: (c, 0)),         # fw2 half
            ],
            out_specs=pl.BlockSpec((None, b8, act), lambda c, k: (c, 0, 0)),
            scratch_shapes=[
                pltpu.VMEM((hw, b8, c3), jnp.float32),   # conv output (p, b, c)
                pltpu.VMEM((b8, hh), jnp.float32),       # FC1 accumulator
            ],
        ),
        compiler_params=pltpu.CompilerParams(
            dimension_semantics=("parallel", "arbitrary"),
            vmem_limit_bytes=32 * 1024 * 1024),
    )(x_rows, kp["cw1"], kp["cb1"], kp["cw2"], kp["cb2"],
      kp["cw3"], kp["cb3"], kp["fw1p3"], kp["fb1"], kp["fw2"])


# ----------------------------------------------------------------------------
# Full forward: tiny layout glue + single fused kernel + tiny combine.
# ----------------------------------------------------------------------------
@functools.partial(jax.jit, static_argnames=("hidden_splits",))
def net_forward(x_nchw, kparams, hidden_splits=1):
    N, C, H, W = x_nchw.shape
    b8 = ((N + 7) // 8) * 8          # pad batch to one sublane tile
    xp = jnp.zeros((b8, C, H, W), x_nchw.dtype).at[:N].set(x_nchw)
    # NCHW -> (H, W, B8, C) -> (H*W*B8, C): pixel-major, batch-minor rows
    # (8 KiB move; the 8/16 MiB fw1 re-layout is done once at prep time).
    x_rows = jnp.transpose(xp, (2, 3, 0, 1)).reshape(H * W * b8, C)
    partials = fused_net(x_rows, kparams, hidden_splits=hidden_splits)
    out = jnp.sum(partials, axis=0) + kparams["fb2"]
    return out[:N]


def pick_hidden_splits():
    """2-way hidden split only where two TensorCores share the kernel (v7x)."""
    try:
        kind = jax.devices()[0].device_kind.lower()
    except Exception:
        return 1
    return 2 if "7" in kind else 1


# Plain-JAX f32 reference for verification (original, unpermuted params).
def net_forward_ref(x_nchw, params):
    N = x_nchw.shape[0]
    fx = x_nchw.astype(jnp.float32) / 255.0
    h = jnp.transpose(fx, (0, 2, 3, 1))
    h = jax.nn.relu(h @ params["cw1"] + params["cb1"])
    h = jax.nn.relu(h @ params["cw2"] + params["cb2"])
    h = jax.nn.relu(h @ params["cw3"] + params["cb3"])
    h = jnp.transpose(h, (0, 3, 1, 2)).reshape(N, -1)
    h = jax.nn.relu(h @ params["fw1"] + params["fb1"])
    return h @ params["fw2"] + params["fb2"]


def init_params(key, channels, grid_size, n_actions, hs=512):
    out_size = 128 * grid_size * grid_size
    ks = jax.random.split(key, 10)

    def uni(k, shape, fan_in):
        bound = 1.0 / jnp.sqrt(jnp.float32(fan_in))
        return jax.random.uniform(k, shape, jnp.float32, -bound, bound)

    return {
        # 1x1 conv weights stored as (Cin, Cout); biases as (1, Cout).
        "cw1": uni(ks[0], (channels, 64), channels),
        "cb1": uni(ks[1], (1, 64), channels),
        "cw2": uni(ks[2], (64, 128), 64),
        "cb2": uni(ks[3], (1, 128), 64),
        "cw3": uni(ks[4], (128, 128), 128),
        "cb3": uni(ks[5], (1, 128), 128),
        # FC weights stored as (in, out) with rows in PyTorch (C,H,W) flatten
        # order; biases as (1, out).
        "fw1": uni(ks[6], (out_size, hs), out_size),
        "fb1": uni(ks[7], (1, hs), out_size),
        "fw2": uni(ks[8], (hs, n_actions), hs),
        "fb2": uni(ks[9], (1, n_actions), hs),
    }


def prepare_kernel_params(params, grid_size):
    """One-time re-layout of the math parameters for the fused kernel."""
    c3 = params["cw3"].shape[1]
    hs = params["fw1"].shape[1]
    hw = grid_size * grid_size
    # fw1 rows: PyTorch (C,H,W) flatten order -> (pixel, channel, hidden) so
    # block k of the kernel contracts pixels [k*ppb, (k+1)*ppb).  Cast to bf16
    # once: the FC1 stream is the only large HBM traffic of the kernel.
    fw1p3 = (params["fw1"].reshape(c3, grid_size, grid_size, hs)
             .transpose(1, 2, 0, 3).reshape(hw, c3, hs)).astype(jnp.bfloat16)
    kp = {k: v for k, v in params.items() if k != "fw1"}
    kp["cw1"] = params["cw1"] / 255.0   # fold x.float()/255 into conv1 weight
    kp["fw1p3"] = fw1p3
    return kp


if __name__ == "__main__":
    batch, channels, grid_size, n_actions = 2, 4, 8, 4

    key = jax.random.PRNGKey(0)
    kx, kp_key = jax.random.split(key)
    # Pixel-like input in [0, 255), NCHW as in PyTorch.
    x = jax.random.uniform(kx, (batch, channels, grid_size, grid_size),
                           jnp.float32, 0.0, 255.0)
    params = init_params(kp_key, channels, grid_size, n_actions)
    kparams = prepare_kernel_params(params, grid_size)

    hidden_splits = pick_hidden_splits()
    out = net_forward(x, kparams, hidden_splits=hidden_splits)
    out = jax.block_until_ready(out)

    ref = net_forward_ref(x, params)
    assert out.shape == (batch, n_actions), out.shape
    max_err = float(jnp.max(jnp.abs(out - ref)))
    # bf16 fw1 / bf16 conv-output cast with f32 accumulation: error ~1e-4.
    assert jnp.allclose(out, ref, atol=2e-3, rtol=2e-3), max_err

    print("KERNEL_OK")
</pallas_src>

<mosaic_0001>
module attributes {stable_mosaic.version = 11 : i64} {
  func.func @fused_net_kernel(%arg0: i32, %arg1: i32, %arg2: memref<512x4xf32, #tpu.memory_space<vmem>>, %arg3: memref<4x64xf32, #tpu.memory_space<vmem>>, %arg4: memref<1x64xf32, #tpu.memory_space<vmem>>, %arg5: memref<64x128xf32, #tpu.memory_space<vmem>>, %arg6: memref<1x128xf32, #tpu.memory_space<vmem>>, %arg7: memref<128x128xf32, #tpu.memory_space<vmem>>, %arg8: memref<1x128xf32, #tpu.memory_space<vmem>>, %arg9: memref<32x128x512xbf16, #tpu.memory_space<vmem>>, %arg10: memref<1x512xf32, #tpu.memory_space<vmem>>, %arg11: memref<512x4xf32, #tpu.memory_space<vmem>>, %arg12: memref<1x8x4xf32, #tpu.memory_space<vmem>>, %arg13: memref<64x8x128xf32, #tpu.memory_space<vmem>>, %arg14: memref<8x512xf32, #tpu.memory_space<vmem>>) attributes {dimension_semantics = [#tpu.dimension_semantics<parallel>, #tpu.dimension_semantics<arbitrary>], iteration_bounds = array<i64: 1, 2>, scalar_prefetch = 0 : i64, scratch_operands = 2 : i64, tpu.core_type = #tpu.core_type<tc>, window_params = [{pipeline_mode = #tpu.pipeline_mode<synchronous>, transform_indices = @transform_0, window_bounds = array<i64: 512, 4>}, {pipeline_mode = #tpu.pipeline_mode<synchronous>, transform_indices = @transform_1, window_bounds = array<i64: 4, 64>}, {pipeline_mode = #tpu.pipeline_mode<synchronous>, transform_indices = @transform_2, window_bounds = array<i64: 1, 64>}, {pipeline_mode = #tpu.pipeline_mode<synchronous>, transform_indices = @transform_3, window_bounds = array<i64: 64, 128>}, {pipeline_mode = #tpu.pipeline_mode<synchronous>, transform_indices = @transform_4, window_bounds = array<i64: 1, 128>}, {pipeline_mode = #tpu.pipeline_mode<synchronous>, transform_indices = @transform_5, window_bounds = array<i64: 128, 128>}, {pipeline_mode = #tpu.pipeline_mode<synchronous>, transform_indices = @transform_6, window_bounds = array<i64: 1, 128>}, {transform_indices = @transform_7, window_bounds = array<i64: 32, 128, 512>}, {transform_indices = @transform_8, window_bounds = array<i64: 1, 512>}, {transform_indices = @transform_9, window_bounds = array<i64: 512, 4>}, {transform_indices = @transform_10, window_bounds = array<i64: 1, 8, 4>}]} {
    %c0_i32 = arith.constant 0 : i32
    %0 = arith.cmpi eq, %arg1, %c0_i32 : i32
    %1 = arith.extui %0 : i1 to i32
    %c0_i32_0 = arith.constant 0 : i32
    %2 = arith.cmpi ne, %1, %c0_i32_0 : i32
    scf.if %2 {
      %c0_11 = arith.constant 0 : index
      %c0_12 = arith.constant 0 : index
      %17 = vector.load %arg2[%c0_11, %c0_12] : memref<512x4xf32, #tpu.memory_space<vmem>>, vector<512x4xf32>
      %c0_13 = arith.constant 0 : index
      %c0_14 = arith.constant 0 : index
      %18 = vector.load %arg3[%c0_13, %c0_14] : memref<4x64xf32, #tpu.memory_space<vmem>>, vector<4x64xf32>
      %cst_15 = arith.constant dense<0.000000e+00> : vector<512x64xf32>
      %19 = tpu.matmul %17, %18, %cst_15 {dimension_numbers = #tpu.dot_dimension_numbers<[1], [0], [0], [1], [0, 0, 1, 1], [], []>} : vector<512x4xf32>, vector<4x64xf32>, vector<512x64xf32> -> vector<512x64xf32>
      %c0_16 = arith.constant 0 : index
      %c0_17 = arith.constant 0 : index
      %20 = vector.load %arg4[%c0_16, %c0_17] : memref<1x64xf32, #tpu.memory_space<vmem>>, vector<1x64xf32>
      %21 = vector.broadcast %20 : vector<1x64xf32> to vector<512x64xf32>
      %22 = arith.addf %19, %21 : vector<512x64xf32>
      %cst_18 = arith.constant 0.000000e+00 : f32
      %23 = vector.broadcast %cst_18 : f32 to vector<512x64xf32>
      %24 = arith.maximumf %22, %23 : vector<512x64xf32>
      %c0_19 = arith.constant 0 : index
      %c0_20 = arith.constant 0 : index
      %25 = vector.load %arg5[%c0_19, %c0_20] : memref<64x128xf32, #tpu.memory_space<vmem>>, vector<64x128xf32>
      %cst_21 = arith.constant dense<0.000000e+00> : vector<512x128xf32>
      %26 = tpu.matmul %24, %25, %cst_21 {dimension_numbers = #tpu.dot_dimension_numbers<[1], [0], [0], [1], [0, 0, 1, 1], [], []>} : vector<512x64xf32>, vector<64x128xf32>, vector<512x128xf32> -> vector<512x128xf32>
      %c0_22 = arith.constant 0 : index
      %c0_23 = arith.constant 0 : index
      %27 = vector.load %arg6[%c0_22, %c0_23] : memref<1x128xf32, #tpu.memory_space<vmem>>, vector<1x128xf32>
      %28 = vector.broadcast %27 : vector<1x128xf32> to vector<512x128xf32>
      %29 = arith.addf %26, %28 : vector<512x128xf32>
      %cst_24 = arith.constant 0.000000e+00 : f32
      %30 = vector.broadcast %cst_24 : f32 to vector<512x128xf32>
      %31 = arith.maximumf %29, %30 : vector<512x128xf32>
      %c0_25 = arith.constant 0 : index
      %c0_26 = arith.constant 0 : index
      %32 = vector.load %arg7[%c0_25, %c0_26] : memref<128x128xf32, #tpu.memory_space<vmem>>, vector<128x128xf32>
      %cst_27 = arith.constant dense<0.000000e+00> : vector<512x128xf32>
      %33 = tpu.matmul %31, %32, %cst_27 {dimension_numbers = #tpu.dot_dimension_numbers<[1], [0], [0], [1], [0, 0, 1, 1], [], []>} : vector<512x128xf32>, vector<128x128xf32>, vector<512x128xf32> -> vector<512x128xf32>
      %c0_28 = arith.constant 0 : index
      %c0_29 = arith.constant 0 : index
      %34 = vector.load %arg8[%c0_28, %c0_29] : memref<1x128xf32, #tpu.memory_space<vmem>>, vector<1x128xf32>
      %35 = vector.broadcast %34 : vector<1x128xf32> to vector<512x128xf32>
      %36 = arith.addf %33, %35 : vector<512x128xf32>
      %cst_30 = arith.constant 0.000000e+00 : f32
      %37 = vector.broadcast %cst_30 : f32 to vector<512x128xf32>
      %38 = arith.maximumf %36, %37 : vector<512x128xf32>
      %39 = vector.shape_cast %38 : vector<512x128xf32> to vector<64x8x128xf32>
      %c0_31 = arith.constant 0 : index
      %c0_32 = arith.constant 0 : index
      %c0_33 = arith.constant 0 : index
      %40 = vector.load %arg13[%c0_31, %c0_32, %c0_33] : memref<64x8x128xf32, #tpu.memory_space<vmem>>, vector<64x8x128xf32>
      tpu.vector_store %arg13[%c0_31, %c0_32, %c0_33], %39 {strides = array<i32>} : memref<64x8x128xf32, #tpu.memory_space<vmem>>, vector<64x8x128xf32>,
      %cst_34 = arith.constant 0.000000e+00 : f32
      %41 = vector.broadcast %cst_34 : f32 to vector<8x512xf32>
      %c0_35 = arith.constant 0 : index
      %c0_36 = arith.constant 0 : index
      %42 = vector.load %arg14[%c0_35, %c0_36] : memref<8x512xf32, #tpu.memory_space<vmem>>, vector<8x512xf32>
      tpu.vector_store %arg14[%c0_35, %c0_36], %41 {strides = array<i32>} : memref<8x512xf32, #tpu.memory_space<vmem>>, vector<8x512xf32>,
    } else {
    }
    %c32_i32 = arith.constant 32 : i32
    %3 = arith.muli %arg1, %c32_i32 : i32
    %4 = tpu.assume_multiple %3, 32 : i32
    %5 = arith.index_cast %4 : i32 to index
    %c0 = arith.constant 0 : index
    %c0_1 = arith.constant 0 : index
    %6 = vector.load %arg13[%5, %c0, %c0_1] : memref<64x8x128xf32, #tpu.memory_space<vmem>>, vector<32x8x128xf32>
    %7 = arith.truncf %6 : vector<32x8x128xf32> to vector<32x8x128xbf16>
    %c0_2 = arith.constant 0 : index
    %c0_3 = arith.constant 0 : index
    %c0_4 = arith.constant 0 : index
    %8 = vector.load %arg9[%c0_2, %c0_3, %c0_4] : memref<32x128x512xbf16, #tpu.memory_space<vmem>>, vector<32x128x512xbf16>
    "tpu.trace_start"() <{level = 10 : i32, message = "pbc,pch->pbh"}> : () -> ()
    %cst = arith.constant dense<0.000000e+00> : vector<32x8x512xf32>
    %9 = tpu.matmul %7, %8, %cst {dimension_numbers = #tpu.dot_dimension_numbers<[2], [1], [1], [2], [0, 0, 0, 1, 1, 2], [0], [0]>} : vector<32x8x128xbf16>, vector<32x128x512xbf16>, vector<32x8x512xf32> -> vector<32x8x512xf32>
    "tpu.trace_stop"() : () -> ()
    %c0_5 = arith.constant 0 : index
    %c0_6 = arith.constant 0 : index
    %10 = vector.load %arg14[%c0_5, %c0_6] : memref<8x512xf32, #tpu.memory_space<vmem>>, vector<8x512xf32>
    %cst_7 = arith.constant dense<0.000000e+00> : vector<8x512xf32>
    %11 = vector.multi_reduction <add>, %9, %cst_7 [0] : vector<32x8x512xf32> to vector<8x512xf32>
    %12 = arith.addf %10, %11 : vector<8x512xf32>
    %c0_8 = arith.constant 0 : index
    %c0_9 = arith.constant 0 : index
    %13 = vector.load %arg14[%c0_8, %c0_9] : memref<8x512xf32, #tpu.memory_space<vmem>>, vector<8x512xf32>
    tpu.vector_store %arg14[%c0_8, %c0_9], %12 {strides = array<i32>} : memref<8x512xf32, #tpu.memory_space<vmem>>, vector<8x512xf32>,
    %c1_i32 = arith.constant 1 : i32
    %14 = arith.cmpi eq, %arg1, %c1_i32 : i32
    %15 = arith.extui %14 : i1 to i32
    %c0_i32_10 = arith.constant 0 : i32
    %16 = arith.cmpi ne, %15, %c0_i32_10 : i32
    scf.if %16 {
      %c0_11 = arith.constant 0 : index
      %c0_12 = arith.constant 0 : index
      %17 = vector.load %arg14[%c0_11, %c0_12] : memref<8x512xf32, #tpu.memory_space<vmem>>, vector<8x512xf32>
      %c0_13 = arith.constant 0 : index
      %c0_14 = arith.constant 0 : index
      %18 = vector.load %arg10[%c0_13, %c0_14] : memref<1x512xf32, #tpu.memory_space<vmem>>, vector<1x512xf32>
      %19 = vector.broadcast %18 : vector<1x512xf32> to vector<8x512xf32>
      %20 = arith.addf %17, %19 : vector<8x512xf32>
      %cst_15 = arith.constant 0.000000e+00 : f32
      %21 = vector.broadcast %cst_15 : f32 to vector<8x512xf32>
      %22 = arith.maximumf %20, %21 : vector<8x512xf32>
      %c0_16 = arith.constant 0 : index
      %c0_17 = arith.constant 0 : index
      %23 = vector.load %arg11[%c0_16, %c0_17] : memref<512x4xf32, #tpu.memory_space<vmem>>, vector<512x4xf32>
      %cst_18 = arith.constant dense<0.000000e+00> : vector<8x4xf32>
      %24 = tpu.matmul %22, %23, %cst_18 {dimension_numbers = #tpu.dot_dimension_numbers<[1], [0], [0], [1], [0, 0, 1, 1], [], []>} : vector<8x512xf32>, vector<512x4xf32>, vector<8x4xf32> -> vector<8x4xf32>
      %c0_19 = arith.constant 0 : index
      %c0_20 = arith.constant 0 : index
      %c0_21 = arith.constant 0 : index
      %25 = vector.load %arg12[%c0_19, %c0_20, %c0_21] : memref<1x8x4xf32, #tpu.memory_space<vmem>>, vector<1x8x4xf32>
      %26 = vector.shape_cast %25 : vector<1x8x4xf32> to vector<8x4xf32>
      %27 = vector.shape_cast %24 : vector<8x4xf32> to vector<1x8x4xf32>
      tpu.vector_store %arg12[%c0_19, %c0_20, %c0_21], %27 {strides = array<i32>} : memref<1x8x4xf32, #tpu.memory_space<vmem>>, vector<1x8x4xf32>,
    } else {
    }
    return
  }
  func.func @transform_0(%arg0: i32, %arg1: i32) -> (i32, i32) {
    %c0_i32 = arith.constant 0 : i32
    %c0_i32_0 = arith.constant 0 : i32
    %c0_i32_1 = arith.constant 0 : i32
    return %c0_i32, %c0_i32_0 : i32, i32
  }
  func.func @transform_1(%arg0: i32, %arg1: i32) -> (i32, i32) {
    %c0_i32 = arith.constant 0 : i32
    %c0_i32_0 = arith.constant 0 : i32
    %c0_i32_1 = arith.constant 0 : i32
    return %c0_i32, %c0_i32_0 : i32, i32
  }
  func.func @transform_2(%arg0: i32, %arg1: i32) -> (i32, i32) {
    %c0_i32 = arith.constant 0 : i32
    %c0_i32_0 = arith.constant 0 : i32
    %c0_i32_1 = arith.constant 0 : i32
    return %c0_i32, %c0_i32_0 : i32, i32
  }
  func.func @transform_3(%arg0: i32, %arg1: i32) -> (i32, i32) {
    %c0_i32 = arith.constant 0 : i32
    %c0_i32_0 = arith.constant 0 : i32
    %c0_i32_1 = arith.constant 0 : i32
    return %c0_i32, %c0_i32_0 : i32, i32
  }
  func.func @transform_4(%arg0: i32, %arg1: i32) -> (i32, i32) {
    %c0_i32 = arith.constant 0 : i32
    %c0_i32_0 = arith.constant 0 : i32
    %c0_i32_1 = arith.constant 0 : i32
    return %c0_i32, %c0_i32_0 : i32, i32
  }
  func.func @transform_5(%arg0: i32, %arg1: i32) -> (i32, i32) {
    %c0_i32 = arith.constant 0 : i32
    %c0_i32_0 = arith.constant 0 : i32
    %c0_i32_1 = arith.constant 0 : i32
    return %c0_i32, %c0_i32_0 : i32, i32
  }
  func.func @transform_6(%arg0: i32, %arg1: i32) -> (i32, i32) {
    %c0_i32 = arith.constant 0 : i32
    %c0_i32_0 = arith.constant 0 : i32
    %c0_i32_1 = arith.constant 0 : i32
    return %c0_i32, %c0_i32_0 : i32, i32
  }
  func.func @transform_7(%arg0: i32, %arg1: i32) -> (i32, i32, i32) {
    %c0_i32 = arith.constant 0 : i32
    %c0_i32_0 = arith.constant 0 : i32
    return %arg1, %c0_i32, %arg0 : i32, i32, i32
  }
  func.func @transform_8(%arg0: i32, %arg1: i32) -> (i32, i32) {
    %c0_i32 = arith.constant 0 : i32
    %c0_i32_0 = arith.constant 0 : i32
    return %c0_i32, %arg0 : i32, i32
  }
  func.func @transform_9(%arg0: i32, %arg1: i32) -> (i32, i32) {
    %c0_i32 = arith.constant 0 : i32
    %c0_i32_0 = arith.constant 0 : i32
    return %arg0, %c0_i32 : i32, i32
  }
  func.func @transform_10(%arg0: i32, %arg1: i32) -> (i32, i32, i32) {
    %c0_i32 = arith.constant 0 : i32
    %c0_i32_0 = arith.constant 0 : i32
    %c0_i32_1 = arith.constant 0 : i32
    return %arg0, %c0_i32, %c0_i32_0 : i32, i32, i32
  }
}

</mosaic_0001>

<bundles_post_ra>
// kernel: net_forward.1
= control target key start
LH: loop header
LB: loop body
LE: loop exit
PB: predicated region body
PF: predicated region fallthrough
CT: control target
= control target key end

     0   :  { %s18047_s0 = inlined_call_operand.vmem [shape: f32[512,4], index: 0, kind: input, shape index: {}]   ;;  %s18048_s1 = inlined_call_operand.hbm [shape: f32[4,64], index: 1, kind: input, shape index: {}]   ;;  %s18049_s2 = inlined_call_operand.hbm [shape: f32[1,64], index: 2, kind: input, shape index: {}]   ;;  %s18050_s3 = inlined_call_operand.hbm [shape: f32[64,128], index: 3, kind: input, shape index: {}]   ;;  %s18051_s4 = inlined_call_operand.hbm [shape: f32[1,128], index: 4, kind: input, shape index: {}]   ;;  %s18052_s5 = inlined_call_operand.hbm [shape: f32[128,128], index: 5, kind: input, shape index: {}]   ;;  %s18053_s6 = inlined_call_operand.hbm [shape: f32[1,128], index: 6, kind: input, shape index: {}]   ;;  %s18054_s7 = inlined_call_operand.hbm [shape: bf16[64,128,512], index: 7, kind: input, shape index: {}]   ;;  %s18055_s8 = inlined_call_operand.hbm [shape: f32[1,512], index: 8, kind: input, shape index: {}]   ;;  %s18056_s9 = inlined_call_operand.vmem [shape: f32[512,4], index: 9, kind: input, shape index: {}]   ;;  %s18057_s10 = inlined_call_operand.vmem [shape: f32[1,8,4], index: 10, kind: output, shape index: {}]  }
   0x1   :  { %18062 = sst [smem:[#allocation22_spill]] %s18048_s1 }
   0x2   :  { %18063 = sst [smem:[#allocation23_spill]] %s18049_s2 }
   0x3   :  { %18064 = sst [smem:[#allocation24_spill]] %s18050_s3 }
   0x4   :  { %18065 = sst [smem:[#allocation25_spill]] %s18051_s4 }
   0x5   :  { %15 = vsyncpa [#allocation5], 0 }
   0x6   :  { %16 = vsyncpa [#allocation7], 0 }
   0x7   :  { %17 = vsyncpa [#allocation10], 0 }
   0x8   :  { %18 = vsyncpa [#allocation13], 0  ;;  %s15646_s13 = smov 0   ;;  %s15648_s14 = smov 0  }
   0x9   :  { %s15650_s15 = smov 0   ;;  %s15652_s16 = smov 0  }
   0xa   :  { %s15654_s17 = smov 0   ;;  %s15656_s18 = smov 0  }
   0xb LB: > { %s15577_s19 = smov [#allocation6]   ;;  %s18061_s21 = sadd.s32 4294967295, %s15575_s18   ;;  %s15575_s18 = sphi %s15656_s18, %s24_s18   ;;  %s15571_s17 = sphi %s15654_s17, %s18085_s17   ;;  %s15567_s16 = sphi %s15652_s16, %s18084_s16   ;;  %s15563_s15 = sphi %s15650_s15, %s18083_s15   ;;  %s15559_s14 = sphi %s15648_s14, %s18082_s14   ;;  %s15555_s13 = sphi %s15646_s13, %s18081_s13  }
   0xc   : > { %s321_s20 = sshll.u32 %s15577_s19, 4  ;;  %p11811_p0 = scmp.ge.s32.totalorder %s15575_s18, 1  ;;  %s322_s20 = int_to_ptr.vmem [resolvable:$true] %s321_s20 }
   0xd   : > { %p15680_p1 = scmp.eq.s32.totalorder %s18061_s21, 0  ;;  %p294_p2 = scmp.lt.s32.totalorder %s15575_s18, 3 }
   0xe   : > { %s15578_s24 = smov [#allocation4]   ;;  %s15579_s27 = smov [#allocation8]  }
   0xf   : > { %s18066_s22 = scalar_select %p15680_p1, 1, 0 }
  0x10   : > { %p15685_p3 = pnand %p11811_p0, %p294_p2  ;;  %s310_s25 = sshll.u32 %s15578_s24, 4  ;;  %s311_s25 = int_to_ptr.vmem [resolvable:$true] %s310_s25 }
  0x11   : > { %s331_s28 = sshll.u32 %s15579_s27, 4  ;;  %s15306_s30 = scalar_lea.vmem %s322_s20, 16  ;;  %s15697_s28 = int_to_ptr.vmem [resolvable:$true] %s331_s28 }
  0x12   : > { %s18067_s23 = scalar_select %p15685_p3, 1, 0 }
  0x13   : > { %p13657_p4 = pneg %p15685_p3  ;;  %p15307_p7 = scmp.ne.s32.totalorder %s322_s20, %s15306_s30 }
  0x14   : > { %s15313_s11 = scalar_lea.vmem %s322_s20, 32  ;;  %p15314_p10 = scmp.lt.s32.totalorder %s322_s20, %s322_s20 }
  0x15   : > { %p15693_p5 = pnand %p13657_p4, %p15680_p1  ;;  %p15315_p11 = scmp.lt.s32.totalorder %s15313_s11, %s15306_s30 }
  0x17   : > { %p15701_p6 = pneg %p15693_p5  ;;  %p15316_p12 = por %p15315_p11, %p15314_p10 }
  0x19   : > { %p15309_p8 = pnand %p15307_p7, %p15701_p6 }
  0x1b   : > { %p15310_p9 = pneg %p15309_p8 }
  0x1d   : > { %p15317_p13 = pnand %p15316_p12, %p15310_p9 }
  0x1f   : > { %15320 = shalt.err (!%p15317_p13)
}
  0x20   : > { %s18070_s2 = sld [smem:[#allocation23_spill]]  ;;  %s15332_s24 = scalar_lea.vmem %s311_s25, 64 }
  0x21   : > { %p15333_p0 = scmp.ne.s32.totalorder %s311_s25, %s15332_s24  ;;  %p15340_p7 = scmp.lt.s32.totalorder %s311_s25, %s311_s25 }
  0x22   : > { %p15341_p8 = scmp.lt.s32.totalorder %s15332_s24, %s15332_s24 }
  0x23   : > { %p15335_p2 = pnand %p15333_p0, %p15701_p6 }
  0x24   : > { %p15342_p3 = por %p15341_p8, %p15340_p7 }
  0x25   : > { %p15336_p4 = pneg %p15335_p2 }
  0x26   : > { %13663 = dma.hbm_to_vmem [thread:$0]  (!%p15693_p5), %s18070_s2, 16, %s322_s20, [#allocation7]  }
  0x27   : > { %p15343_p1 = pnand %p15342_p3, %p15336_p4 }
  0x29   : > { %15346 = shalt.err (!%p15343_p1)
}
  0x2a   : > { %s18071_s1 = sld [smem:[#allocation22_spill]]  ;;  %s15358_s20 = scalar_lea.vmem %s15697_s28, 1024 }
  0x2b   : > { %p15359_p9 = scmp.ne.s32.totalorder %s15697_s28, %s15358_s20  ;;  %p15366_p12 = scmp.lt.s32.totalorder %s15697_s28, %s15697_s28 }
  0x2c   : > { %p15367_p13 = scmp.lt.s32.totalorder %s15358_s20, %s15358_s20 }
  0x2d   : > { %p15361_p10 = pnand %p15359_p9, %p15701_p6 }
  0x2e   : > { %p15368_p3 = por %p15367_p13, %p15366_p12 }
  0x2f   : > { %p15362_p11 = pneg %p15361_p10 }
  0x30   : > { %13660 = dma.hbm_to_vmem [thread:$0]  (!%p15693_p5), %s18071_s1, 64, %s311_s25, [#allocation5]  }
  0x31   : > { %p15369_p1 = pnand %p15368_p3, %p15362_p11 }
  0x33   : > { %15372 = shalt.err (!%p15369_p1)
}
  0x34   : > { %s15580_s11 = smov 128   ;;  %s15581_s12 = smov 8  }
  0x35   : > { %s18072_s3 = sld [smem:[#allocation24_spill]]  ;;  %s15582_s24 = smov [#allocation9]  }
  0x36   : > { %s345_s27 = sshll.u32 %s15582_s24, 4  ;;  %s15583_s30 = smov [#allocation11]   ;;  %s346_s27 = int_to_ptr.vmem [resolvable:$true] %s345_s27 }
  0x37   : > { %s355_s20 = sshll.u32 %s15583_s30, 4  ;;  %s15384_s21 = scalar_lea.vmem %s346_s27, 16  ;;  %s356_s20 = int_to_ptr.vmem [resolvable:$true] %s355_s20 }
  0x38   : > { %p15385_p0 = scmp.ne.s32.totalorder %s346_s27, %s15384_s21  ;;  %s15391_s1 = scalar_lea.vmem %s346_s27, 32 }
  0x39   : > { %p15392_p7 = scmp.lt.s32.totalorder %s346_s27, %s346_s27  ;;  %p15393_p8 = scmp.lt.s32.totalorder %s15391_s1, %s15384_s21 }
  0x3a   : > { %p15387_p2 = pnand %p15385_p0, %p15701_p6 }
  0x3b   : > { %13666 = dma.hbm_to_vmem [thread:$0]  (!%p15693_p5), %s18072_s3, 1024, %s15697_s28, [#allocation7], %s15580_s11, %s15580_s11, %s15581_s12  }
  0x3c   : > { %p15388_p4 = pneg %p15387_p2  ;;  %p15394_p9 = por %p15393_p8, %p15392_p7 }
  0x3e   : > { %p15395_p10 = pnand %p15394_p9, %p15388_p4 }
  0x40   : > { %15398 = shalt.err (!%p15395_p10)
}
  0x41   : > { %s18073_s4 = sld [smem:[#allocation25_spill]]  ;;  %s15410_s19 = scalar_lea.vmem %s356_s20, 2048 }
  0x42   : > { %p15411_p11 = scmp.ne.s32.totalorder %s356_s20, %s15410_s19  ;;  %p15418_p3 = scmp.lt.s32.totalorder %s356_s20, %s356_s20 }
  0x43   : > { %p15419_p1 = scmp.lt.s32.totalorder %s15410_s19, %s15410_s19 }
  0x44   : > { %p15413_p12 = pnand %p15411_p11, %p15701_p6 }
  0x45   : > { %p15420_p0 = por %p15419_p1, %p15418_p3 }
  0x46   : > { %p15414_p13 = pneg %p15413_p12 }
  0x47   : > { %13669 = dma.hbm_to_vmem [thread:$0]  (!%p15693_p5), %s18073_s4, 16, %s346_s27, [#allocation10]  }
  0x48   : > { %p15421_p2 = pnand %p15420_p0, %p15414_p13 }
  0x4a   : > { %15424 = shalt.err (!%p15421_p2)
}
  0x4b   : > { %13672 = dma.hbm_to_vmem [thread:$0]  (!%p15693_p5), %s18052_s5, 2048, %s356_s20, [#allocation10], %s15580_s11, %s15580_s11, %s15581_s12  }
  0x4c   : > { %s15584_s24 = smov [#allocation12]   ;;  %s15585_s30 = smov [#allocation15]  }
  0x4d   : > { %s369_s27 = sshll.u32 %s15584_s24, 4  ;;  %s383_s25 = sshll.u32 %s15585_s30, 4  ;;  %s370_s27 = int_to_ptr.vmem [resolvable:$true] %s369_s27  ;;  %s384_s25 = int_to_ptr.vmem [resolvable:$true] %s383_s25 }
  0x4e   : > { %s15436_s28 = scalar_lea.vmem %s370_s27, 16  ;;  %s15443_s19 = scalar_lea.vmem %s370_s27, 32 }
  0x4f   : > { %p15437_p4 = scmp.ne.s32.totalorder %s370_s27, %s15436_s28  ;;  %p15444_p9 = scmp.lt.s32.totalorder %s370_s27, %s370_s27 }
  0x50   : > { %p15445_p10 = scmp.lt.s32.totalorder %s15443_s19, %s15436_s28 }
  0x51   : > { %p15439_p7 = pnand %p15437_p4, %p15701_p6 }
  0x52   : > { %p15446_p11 = por %p15445_p10, %p15444_p9 }
  0x53   : > { %p15440_p8 = pneg %p15439_p7 }
  0x55   : > { %p15447_p12 = pnand %p15446_p11, %p15440_p8 }
  0x57   : > { %15450 = shalt.err (!%p15447_p12)
}
  0x58   : > { %13675 = dma.hbm_to_vmem [thread:$0]  (!%p15693_p5), %s18053_s6, 16, %s370_s27, [#allocation13]  }
  0x59   : > { %s15462_s12 = scalar_lea.vmem %s384_s25, 64  ;;  %p15470_p0 = scmp.lt.s32.totalorder %s384_s25, %s384_s25 }
  0x5a   : > { %p15463_p13 = scmp.ne.s32.totalorder %s384_s25, %s15462_s12  ;;  %p15471_p2 = scmp.lt.s32.totalorder %s15462_s12, %s15462_s12 }
  0x5c   : > { %p15465_p3 = pnand %p15463_p13, %p15701_p6  ;;  %p15472_p4 = por %p15471_p2, %p15470_p0 }
  0x5e   : > { %p15466_p1 = pneg %p15465_p3 }
  0x60   : > { %p15473_p7 = pnand %p15472_p4, %p15466_p1 }
  0x62   : > { %15476 = shalt.err (!%p15473_p7)
}
  0x63   : > { %13678 = dma.hbm_to_vmem [thread:$0]  (!%p15693_p5), %s18055_s8, 64, %s384_s25, [#allocation7]  }
  0x64   : > { %s33_s29 = sadd.s32 1, %s15571_s17  ;;  %s192_s26 = sadd.s32 1, %s15563_s15 }
  0x65   : > { %p34_p6 = scmp.ge.s32.totalorder %s33_s29, 2  ;;  %p199_p8 = scmp.ne.s32.totalorder %s15563_s15, %s15559_s14 }
  0x66   : > { %p200_p9 = scmp.eq.s32.totalorder %s15575_s18, 0  ;;  %p205_p11 = scmp.ne.s32.totalorder %s15559_s14, %s15555_s13 }
  0x67   : > { %s18087_s29 = smov (%p34_p6, %s33_s29), 0  ;;  %p13690_p12 = scmp.lt.s32.totalorder %s15575_s18, 2 }
  0x68   : > { %p15772_p10 = por %p200_p9, %p199_p8  ;;  %s187_s27 = ssub.s32 %s15571_s17, %s18087_s29 }
  0x69   : > { %p190_p13 = scmp.eq.s32.totalorder %s187_s27, 0  ;;  %p18075_p3 = scmp.ne.s32.totalorder %s18066_s22, 0 }
  0x6a   : > { %s403_s25 = sand.u32 1, %s15575_s18   ;;  %s405_s28 = sand.u32 1, %s15563_s15  }
  0x6b   : > { %p15783_p5 = por %p18075_p3, %p205_p11  ;;  %s11821_s1 = sshll.u32 %s405_s28, 13 }
  0x6c   : > { %s15790_s19 = scalar_select %p190_p13, %s15563_s15, %s192_s26  }
  0x6d   : > { %s12998_s11 = sshll.u32 %s15571_s17, 17  ;;  %s407_s2 = scalar_lea.vmem [#allocation14], %s11821_s1 }
  0x6e   : > { %s416_s21 = scalar_lea.hbm %s18054_s7, %s12998_s11  ;;  %s417_s13 = sshll.u32 %s407_s2, 4  ;;  %s418_s13 = int_to_ptr.vmem [resolvable:$true] %s417_s13 }
  0x6f   : > { %p15798_p1 = pnand %p13690_p12, %p15772_p10  ;;  %s404_s3 = scalar_lea.sflag [#allocation5], %s403_s25 }
  0x70   : > { %s15490_s26 = scalar_lea.vmem %s418_s13, 131072  ;;  %s15586_s28 = smov [#allocation14]  }
  0x71   : > { %p15479_p0 = pneg %p15798_p1  ;;  %p15491_p2 = scmp.ne.s32.totalorder %s418_s13, %s15490_s26 }
  0x72   : > { %s15495_s4 = sshll.u32 %s15586_s28, 4  ;;  %s15496_s4 = int_to_ptr.vmem [resolvable:$false] %s15495_s4 }
  0x73   : > { %p15493_p4 = pnand %p15491_p2, %p15479_p0  ;;  %s15497_s11 = scalar_lea.vmem %s15496_s4, 262144 }
  0x74   : > { %p15498_p6 = scmp.lt.s32.totalorder %s418_s13, %s15496_s4  ;;  %p15499_p8 = scmp.lt.s32.totalorder %s15497_s11, %s15490_s26 }
  0x75   : > { %p15494_p7 = pneg %p15493_p4 }
  0x76   : > { %p15500_p9 = por %p15499_p8, %p15498_p6 }
  0x78   : > { %p15501_p11 = pnand %p15500_p9, %p15494_p7 }
  0x7a   : > { %15504 = shalt.err (!%p15501_p11)
}
  0x7b   : > { %s15587_s2 = smov 256   ;;  %s15588_s24 = smov 16  }
  0x7c   : > { %13682 = dma.hbm_to_vmem [thread:$0]  (!%p15798_p1), %s416_s21, 131072, %s418_s13, %s404_s3, %s15587_s2, %s15587_s2, %s15588_s24  }
  0x7d   : > { %p18078_p10 = scmp.ne.s32.totalorder %s18067_s23, 0 }
  0x7e   : > { %p18079_p12 = scmp.ne.s32.totalorder (!%p18078_p10), %s18066_s22, 0 }
  0x7f   : > { %429 = sbr.rel (%p18078_p10) target bundleno = 2341 (0x925), region = 60 }
  0x84   : > { %15530 = dma.done.wait (%p18079_p12), [#allocation5], 64  }
  0x85   : > { %15532 = vsyncadd (%p18079_p12), [#allocation5], 4294967232 }
  0x86   : > { %15534 = dma.done.wait (%p18079_p12), [#allocation7], 1040  }
  0x87   : > { %15536 = vsyncadd (%p18079_p12), [#allocation7], 4294966256 }
  0x88   : > { %15538 = dma.done.wait (%p18079_p12), [#allocation10], 2064  }
  0x89   : > { %15540 = vsyncadd (%p18079_p12), [#allocation10], 4294965232 }
  0x8a   : > { %15542 = dma.done.wait (%p18079_p12), [#allocation13], 16  }
  0x8b   : > { %15544 = vsyncadd (%p18079_p12), [#allocation13], 4294967280  ;;  %s18080_s3 = sadd.s32 4294967295, %s15575_s18   ;;  %s457_s23 = sand.u32 1, %s15559_s14  }
  0x8c   : > { %s455_s4 = sand.u32 1, %s18080_s3   ;;  %s11832_s25 = sshll.u32 %s457_s23, 13 }
  0x8d   : > { %s456_s1 = scalar_lea.sflag [#allocation5], %s455_s4  ;;  %s15827_s12 = scalar_lea.vmem [#allocation14], %s11832_s25 }
  0x8e   : > { %15546 = dma.done.wait (%p15783_p5), %s456_s1, 131072  }
  0x8f   : > { %15548 = vsyncadd (%p15783_p5), %s456_s1, 4294836224 }
  0x90   : > { %15550 = dma.done.wait (%p18079_p12), [#allocation7], 64  }
  0x91   : > { %15552 = vsyncadd (%p18079_p12), [#allocation7], 4294967232  ;;  %p11834_p13 = scmp.ne.s32.totalorder %s15567_s16, 0 }
  0x93   : > { %521 = sbr.rel (%p11834_p13) target bundleno = 879 (0x36f), region = 96 }
  0x98   : > { %v586_v0 = vld [vmem:[#allocation4] sm:$0xf]  ;;  %vm787_vm0 = vcmask 1043456   ;;  %vm594_vm1 = vcmask 31744   ;;  %v523_v2 = vld [vmem:[%s18047_s0 + $0x8] sm:$0xff]  ;;  %v524_v3 = vld [vmem:[%s18047_s0 + $0x10] sm:$0xff] }
  0x99   : > { %v522_v1 = vld [vmem:[%s18047_s0] sm:$0xff]  ;;  %13287 = vmatprep.subr.msk.mxu0 %vm787_vm0, %v586_v0  ;;  %13625 = vmatprep.subr.msk.mxu1 %vm787_vm0, %v586_v0  ;;  %v525_v4 = vld [vmem:[%s18047_s0 + $0x18] sm:$0xff]  ;;  %v527_v6 = vld [vmem:[%s18047_s0 + $0x28] sm:$0xff]  ;;  %vm1255_vm2 = vcmask 523264  }
  0x9a   : > { %13289 = vmatprep.mubr.msk.f32.mxu0 %vm594_vm1, %v522_v1  ;;  %13288 = vmatpush3.msk.msra.mxu0 %vm787_vm0, %v586_v0  ;;  %v526_v5 = vld [vmem:[%s18047_s0 + $0x20] sm:$0xff]  ;;  %v528_v7 = vld [vmem:[%s18047_s0 + $0x30] sm:$0xff]  ;;  %v555_v9 = vld [vmem:[%s18047_s0 + $0x108] sm:$0xff] }
  0x9b   : > { %13290 = vmatmul.mubr.msk.f32.vlgmr.msra.gmra.mxu0 %vm594_vm1, %v523_v2  ;;  %13626 = vmatpush3.msk.msra.mxu1 %vm787_vm0, %v586_v0  ;;  %v554_v8 = vld [vmem:[%s18047_s0 + $0x100] sm:$0xff]  ;;  %v556_v10 = vld [vmem:[%s18047_s0 + $0x110] sm:$0xff]  ;;  %v529_v11 = vld [vmem:[%s18047_s0 + $0x38] sm:$0xff] }
  0x9c   : > { %13292 = vmatprep.mubr.msk.f32.mxu0 %vm594_vm1, %v524_v3  ;;  %13337 = vmatprep.mubr.msk.f32.mxu1 %vm594_vm1, %v554_v8  ;;  %v530_v12 = vld [vmem:[%s18047_s0 + $0x40] sm:$0xff]  ;;  %v557_v13 = vld [vmem:[%s18047_s0 + $0x118] sm:$0xff]  ;;  %v531_v15 = vld [vmem:[%s18047_s0 + $0x48] sm:$0xff] }
  0x9d   : > { %13338 = vmatmul.mubr.msk.f32.vlgmr.msra.gmra.mxu1 %vm594_vm1, %v555_v9  ;;  %v558_v14 = vld [vmem:[%s18047_s0 + $0x120] sm:$0xff]  ;;  %v532_v16 = vld [vmem:[%s18047_s0 + $0x50] sm:$0xff]  ;;  %v559_v17 = vld [vmem:[%s18047_s0 + $0x128] sm:$0xff] }
  0x9e   : > { %13340 = vmatprep.mubr.msk.f32.mxu1 %vm594_vm1, %v556_v10  ;;  %v560_v18 = vld [vmem:[%s18047_s0 + $0x130] sm:$0xff]  ;;  %v533_v19 = vld [vmem:[%s18047_s0 + $0x58] sm:$0xff]  ;;  %v534_v20 = vld [vmem:[%s18047_s0 + $0x60] sm:$0xff] }
  0x9f   : > { %13293 = vmatmul.mubr.msk.f32.gmra.mxu0 %vm594_vm1, %v525_v4  ;;  %v1247_v21 = vld [vmem:[#allocation8 + $0x38] sm:$0xff]  ;;  %v1246_v23 = vld [vmem:[#allocation8 + $0x30] sm:$0xff]  ;;  %v535_v25 = vld [vmem:[%s18047_s0 + $0x68] sm:$0xff] }
  0xa0   : > { %13295 = vmatprep.mubr.msk.f32.mxu0 %vm594_vm1, %v526_v5  ;;  %v561_v22 = vld [vmem:[%s18047_s0 + $0x138] sm:$0xff]  ;;  %13385 = vmatprep.subr.mxu1 %v1247_v21  ;;  %v562_v24 = vld [vmem:[%s18047_s0 + $0x140] sm:$0xff]  ;;  %v1245_v26 = vld [vmem:[#allocation8 + $0x28] sm:$0xff] }
  0xa1   : > { %13341 = vmatmul.mubr.msk.f32.gmra.mxu1 %vm594_vm1, %v557_v13  ;;  %v536_v27 = vld [vmem:[%s18047_s0 + $0x70] sm:$0xff]  ;;  %v563_v28 = vld [vmem:[%s18047_s0 + $0x148] sm:$0xff]  ;;  %v537_v31 = vld [vmem:[%s18047_s0 + $0x78] sm:$0xff] }
  0xa2   : > { %13343 = vmatprep.mubr.msk.f32.mxu1 %vm594_vm1, %v558_v14  ;;  %13386 = vmatpush3.msra.mxu1 %v1247_v21  ;;  %v1244_v29 = vld [vmem:[#allocation8 + $0x20] sm:$0xff]  ;;  %v564_v30 = vld [vmem:[%s18047_s0 + $0x150] sm:$0xff]  ;;  %v1243_v32 = vld [vmem:[#allocation8 + $0x18] sm:$0xff] }
  0xa3   : > { %13296 = vmatmul.mubr.msk.f32.gmra.mxu0 %vm594_vm1, %v527_v6  ;;  %13387 = vmatprep.subr.mxu1 %v1246_v23  ;;  %v538_v33 = vld [vmem:[%s18047_s0 + $0x80] sm:$0xff]  ;;  %v565_v34 = vld [vmem:[%s18047_s0 + $0x158] sm:$0xff]  ;;  %v539_v37 = vld [vmem:[%s18047_s0 + $0x88] sm:$0xff] }
  0xa4   : > { %13298 = vmatprep.mubr.msk.f32.mxu0 %vm594_vm1, %v528_v7  ;;  %13388 = vmatpush3.msra.mxu1 %v1246_v23  ;;  %v1242_v35 = vld [vmem:[#allocation8 + $0x10] sm:$0xff]  ;;  %v566_v36 = vld [vmem:[%s18047_s0 + $0x160] sm:$0xff]  ;;  %v1241_v38 = vld [vmem:[#allocation8 + $0x8] sm:$0xff] }
  0xa5   : > { %13344 = vmatmul.mubr.msk.f32.gmra.mxu1 %vm594_vm1, %v559_v17  ;;  %13389 = vmatprep.subr.mxu1 %v1245_v26  ;;  %v540_v39 = vld [vmem:[%s18047_s0 + $0x90] sm:$0xff]  ;;  %v567_v40 = vld [vmem:[%s18047_s0 + $0x168] sm:$0xff]  ;;  %v541_v43 = vld [vmem:[%s18047_s0 + $0x98] sm:$0xff] }
  0xa6   : > { %13346 = vmatprep.mubr.msk.f32.mxu1 %vm594_vm1, %v560_v18  ;;  %13390 = vmatpush3.msra.mxu1 %v1245_v26  ;;  %v1240_v41 = vld [vmem:[#allocation8] sm:$0xff]  ;;  %v568_v42 = vld [vmem:[%s18047_s0 + $0x170] sm:$0xff]  ;;  %v569_v45 = vld [vmem:[%s18047_s0 + $0x178] sm:$0xff] }
  0xa7   : > { %13299 = vmatmul.mubr.msk.f32.gmra.mxu0 %vm594_vm1, %v529_v11  ;;  %13391 = vmatprep.subr.mxu1 %v1244_v29  ;;  %v542_v44 = vld [vmem:[%s18047_s0 + $0xa0] sm:$0xff]  ;;  %v543_v47 = vld [vmem:[%s18047_s0 + $0xa8] sm:$0xff]  ;;  %v544_v48 = vld [vmem:[%s18047_s0 + $0xb0] sm:$0xff] }
  0xa8   : > { %13301 = vmatprep.mubr.msk.f32.mxu0 %vm594_vm1, %v530_v12  ;;  %13392 = vmatpush3.msra.mxu1 %v1244_v29  ;;  %v570_v46 = vld [vmem:[%s18047_s0 + $0x180] sm:$0xff]  ;;  %v571_v49 = vld [vmem:[%s18047_s0 + $0x188] sm:$0xff]  ;;  %v572_v50 = vld [vmem:[%s18047_s0 + $0x190] sm:$0xff] }
  0xa9   : > { %13347 = vmatmul.mubr.msk.f32.gmra.mxu1 %vm594_vm1, %v561_v22  ;;  %13393 = vmatprep.subr.mxu1 %v1243_v32  ;;  %v545_v51 = vld [vmem:[%s18047_s0 + $0xb8] sm:$0xff]  ;;  %v546_v52 = vld [vmem:[%s18047_s0 + $0xc0] sm:$0xff]  ;;  %v547_v55 = vld [vmem:[%s18047_s0 + $0xc8] sm:$0xff] }
  0xaa   : > { %13349 = vmatprep.mubr.msk.f32.mxu1 %vm594_vm1, %v562_v24  ;;  %13394 = vmatpush3.msra.mxu1 %v1243_v32  ;;  %v573_v53 = vld [vmem:[%s18047_s0 + $0x198] sm:$0xff]  ;;  %v574_v54 = vld [vmem:[%s18047_s0 + $0x1a0] sm:$0xff]  ;;  %v548_v56 = vld [vmem:[%s18047_s0 + $0xd0] sm:$0xff] }
  0xab   : > { %13302 = vmatmul.mubr.msk.f32.gmra.mxu0 %vm594_vm1, %v531_v15  ;;  %13395 = vmatprep.subr.mxu1 %v1242_v35  ;;  %v575_v57 = vld [vmem:[%s18047_s0 + $0x1a8] sm:$0xff]  ;;  %v576_v58 = vld [vmem:[%s18047_s0 + $0x1b0] sm:$0xff]  ;;  %v549_v59 = vld [vmem:[%s18047_s0 + $0xd8] sm:$0xff] }
  0xac   : > { %13304 = vmatprep.mubr.msk.f32.mxu0 %vm594_vm1, %v532_v16  ;;  %13396 = vmatpush3.msra.mxu1 %v1242_v35  ;;  %v550_v60 = vld [vmem:[%s18047_s0 + $0xe0] sm:$0xff]  ;;  %v577_v61 = vld [vmem:[%s18047_s0 + $0x1b8] sm:$0xff]  ;;  %v551_v63 = vld [vmem:[%s18047_s0 + $0xe8] sm:$0xff] }
  0xad   : > { %13350 = vmatmul.mubr.msk.f32.gmra.mxu1 %vm594_vm1, %v563_v28  ;;  %13397 = vmatprep.subr.mxu1 %v1241_v38  ;;  %v578_v62 = vld [vmem:[%s18047_s0 + $0x1c0] sm:$0xff]  ;;  %v552_v0 = vld [vmem:[%s18047_s0 + $0xf0] sm:$0xff]  ;;  %v579_v1 = vld [vmem:[%s18047_s0 + $0x1c8] sm:$0xff] }
  0xae   : > { %13352 = vmatprep.mubr.msk.f32.mxu1 %vm594_vm1, %v564_v30  ;;  %13398 = vmatpush3.msra.mxu1 %v1241_v38  ;;  %v580_v2 = vld [vmem:[%s18047_s0 + $0x1d0] sm:$0xff]  ;;  %v553_v3 = vld [vmem:[%s18047_s0 + $0xf8] sm:$0xff]  ;;  %v582_v5 = vld [vmem:[%s18047_s0 + $0x1e0] sm:$0xff] }
  0xaf   : > { %13305 = vmatmul.mubr.msk.f32.gmra.mxu0 %vm594_vm1, %v533_v19  ;;  %13399 = vmatprep.subr.mxu1 %v1240_v41  ;;  %v581_v4 = vld [vmem:[%s18047_s0 + $0x1d8] sm:$0xff]  ;;  %v583_v6 = vld [vmem:[%s18047_s0 + $0x1e8] sm:$0xff]  ;;  %v584_v7 = vld [vmem:[%s18047_s0 + $0x1f0] sm:$0xff] }
  0xb0   : > { %13307 = vmatprep.mubr.msk.f32.mxu0 %vm594_vm1, %v534_v20  ;;  %13400 = vmatpush3.msra.mxu1 %v1240_v41  ;;  %v585_v8 = vld [vmem:[%s18047_s0 + $0x1f8] sm:$0xff]  ;;  %v16094_v9 = vld [vmem:[#allocation6] ss:$0 sm:$0xff]  ;;  %v1910_v21 = vld [vmem:[#allocation11 + $0x68] sm:$0xff] }
  0xb1   : > { %13353 = vmatmul.mubr.msk.f32.gmra.mxu1 %vm594_vm1, %v565_v34  ;;  %v1912_v15 = vld [vmem:[#allocation11 + $0x78] sm:$0xff]  ;;  %v1911_v16 = vld [vmem:[#allocation11 + $0x70] sm:$0xff]  ;;  %v1909_v24 = vld [vmem:[#allocation11 + $0x60] sm:$0xff] }
  0xb2   : > { %13355 = vmatprep.mubr.msk.f32.mxu1 %vm594_vm1, %v566_v36  ;;  %13497 = vmatprep.subr.mxu0 %v1912_v15  ;;  %v1908_v30 = vld [vmem:[#allocation11 + $0x58] sm:$0xff]  ;;  %v1907_v34 = vld [vmem:[#allocation11 + $0x50] sm:$0xff] }
  0xb3   : > { %13308 = vmatmul.mubr.msk.f32.gmra.mxu0 %vm594_vm1, %v535_v25 }
  0xb4   : > { %13310 = vmatprep.mubr.msk.f32.mxu0 %vm594_vm1, %v536_v27  ;;  %13498 = vmatpush3.msra.mxu0 %v1912_v15 }
  0xb5   : > { %13356 = vmatmul.mubr.msk.f32.gmra.mxu1 %vm594_vm1, %v567_v40  ;;  %13499 = vmatprep.subr.mxu0 %v1911_v16  ;;  %v1906_v40 = vld [vmem:[#allocation11 + $0x48] sm:$0xff] }
  0xb6   : > { %13358 = vmatprep.mubr.msk.f32.mxu1 %vm594_vm1, %v568_v42  ;;  %13500 = vmatpush3.msra.mxu0 %v1911_v16  ;;  %v1898_v16 = vld [vmem:[#allocation11 + $0x8] sm:$0xff] }
  0xb7   : > { %13311 = vmatmul.mubr.msk.f32.gmra.mxu0 %vm594_vm1, %v537_v31  ;;  %13501 = vmatprep.subr.mxu0 %v1910_v21 }
  0xb8   : > { %13313 = vmatprep.mubr.msk.f32.mxu0 %vm594_vm1, %v538_v33  ;;  %13502 = vmatpush3.msra.mxu0 %v1910_v21 }
  0xb9   : > { %13359 = vmatmul.mubr.msk.f32.gmra.mxu1 %vm594_vm1, %v569_v45  ;;  %13503 = vmatprep.subr.mxu0 %v1909_v24 }
  0xba   : > { %13361 = vmatprep.mubr.msk.f32.mxu1 %vm594_vm1, %v570_v46  ;;  %13504 = vmatpush3.msra.mxu0 %v1909_v24 }
  0xbb   : > { %13314 = vmatmul.mubr.msk.f32.gmra.mxu0 %vm594_vm1, %v539_v37  ;;  %13505 = vmatprep.subr.mxu0 %v1908_v30 }
  0xbc   : > { %13316 = vmatprep.mubr.msk.f32.mxu0 %vm594_vm1, %v540_v39  ;;  %13506 = vmatpush3.msra.mxu0 %v1908_v30 }
  0xbd   : > { %13362 = vmatmul.mubr.msk.f32.gmra.mxu1 %vm594_vm1, %v571_v49  ;;  %13507 = vmatprep.subr.mxu0 %v1907_v34 }
  0xbe   : > { %13364 = vmatprep.mubr.msk.f32.mxu1 %vm594_vm1, %v572_v50  ;;  %13508 = vmatpush3.msra.mxu0 %v1907_v34  ;;  %v1904_v50 = vld [vmem:[#allocation11 + $0x38] sm:$0xff] }
  0xbf   : > { %13317 = vmatmul.mubr.msk.f32.gmra.mxu0 %vm594_vm1, %v541_v43  ;;  %13509 = vmatprep.subr.mxu0 %v1906_v40 }
  0xc0   : > { %13319 = vmatprep.mubr.msk.f32.mxu0 %vm594_vm1, %v542_v44  ;;  %v1905_v44 = vld [vmem:[#allocation11 + $0x40] sm:$0xff]  ;;  %13510 = vmatpush3.msra.mxu0 %v1906_v40 }
  0xc1   : > { %13365 = vmatmul.mubr.msk.f32.gmra.mxu1 %vm594_vm1, %v573_v53  ;;  %13511 = vmatprep.subr.mxu0 %v1905_v44 }
  0xc2   : > { %13367 = vmatprep.mubr.msk.f32.mxu1 %vm594_vm1, %v574_v54  ;;  %13512 = vmatpush3.msra.mxu0 %v1905_v44  ;;  %v1903_v54 = vld [vmem:[#allocation11 + $0x30] sm:$0xff] }
  0xc3   : > { %13320 = vmatmul.mubr.msk.f32.gmra.mxu0 %vm594_vm1, %v543_v47  ;;  %13513 = vmatprep.subr.mxu0 %v1904_v50 }
  0xc4   : > { %13322 = vmatprep.mubr.msk.f32.mxu0 %vm594_vm1, %v544_v48  ;;  %13514 = vmatpush3.msra.mxu0 %v1904_v50 }
  0xc5   : > { %13368 = vmatmul.mubr.msk.f32.gmra.mxu1 %vm594_vm1, %v575_v57  ;;  %13515 = vmatprep.subr.mxu0 %v1903_v54 }
  0xc6   : > { %13370 = vmatprep.mubr.msk.f32.mxu1 %vm594_vm1, %v576_v58  ;;  %13516 = vmatpush3.msra.mxu0 %v1903_v54 }
  0xc7   : > { %13323 = vmatmul.mubr.msk.f32.gmra.mxu0 %vm594_vm1, %v545_v51 }
  0xc8   : > { %13325 = vmatprep.mubr.msk.f32.mxu0 %vm594_vm1, %v546_v52 }
  0xc9   : > { %13371 = vmatmul.mubr.msk.f32.gmra.mxu1 %vm594_vm1, %v577_v61 }
  0xca   : > { %13373 = vmatprep.mubr.msk.f32.mxu1 %vm594_vm1, %v578_v62 }
  0xcb   : > { %13326 = vmatmul.mubr.msk.f32.gmra.mxu0 %vm594_vm1, %v547_v55 }
  0xcc   : > { %13328 = vmatprep.mubr.msk.f32.mxu0 %vm594_vm1, %v548_v56 }
  0xcd   : > { %13374 = vmatmul.mubr.msk.f32.gmra.mxu1 %vm594_vm1, %v579_v1 }
  0xce   : > { %13376 = vmatprep.mubr.msk.f32.mxu1 %vm594_vm1, %v580_v2 }
  0xcf   : > { %13329 = vmatmul.mubr.msk.f32.gmra.mxu0 %vm594_vm1, %v549_v59 }
  0xd0   : > { %13331 = vmatprep.mubr.msk.f32.mxu0 %vm594_vm1, %v550_v60  ;;  %v1902_v60 = vld [vmem:[#allocation11 + $0x28] sm:$0xff] }
  0xd1   : > { %13377 = vmatmul.mubr.msk.f32.gmra.mxu1 %vm594_vm1, %v581_v4  ;;  %13517 = vmatprep.subr.mxu0 %v1902_v60 }
  0xd2   : > { %13379 = vmatprep.mubr.msk.f32.mxu1 %vm594_vm1, %v582_v5  ;;  %13518 = vmatpush3.msra.mxu0 %v1902_v60 }
  0xd3   : > { %13332 = vmatmul.mubr.msk.f32.gmra.mxu0 %vm594_vm1, %v551_v63 }
  0xd4   : > { %13334 = vmatprep.mubr.msk.f32.mxu0 %vm594_vm1, %v552_v0  ;;  %v1901_v0 = vld [vmem:[#allocation11 + $0x20] sm:$0xff] }
  0xd5   : > { %13380 = vmatmul.mubr.msk.f32.gmra.mxu1 %vm594_vm1, %v583_v6  ;;  %v1900_v6 = vld [vmem:[#allocation11 + $0x18] sm:$0xff]  ;;  %13519 = vmatprep.subr.mxu0 %v1901_v0 }
  0xd6   : > { %13382 = vmatprep.mubr.msk.f32.mxu1 %vm594_vm1, %v584_v7  ;;  %13520 = vmatpush3.msra.mxu0 %v1901_v0 }
  0xd7   : > { %13335 = vmatmul.mubr.msk.f32.gmra.mxu0 %vm594_vm1, %v553_v3  ;;  %13521 = vmatprep.subr.mxu0 %v1900_v6 }
  0xd8   : > { %13522 = vmatpush3.msra.mxu0 %v1900_v6 }
  0xd9   : > { %13383 = vmatmul.mubr.msk.f32.gmra.mxu1 %vm594_vm1, %v585_v8 }
 0x15b   : > { %v13291_v10 = vpop.f32.mrf.mxu0 }
 0x15c   : > { %v863_v11 = vadd.f32 %v13291_v10, %v16094_v9  ;;  %v1899_v10 = vld [vmem:[#allocation11 + $0x10] sm:$0xff] }
 0x15d   : > { %v857_v12 = vpop.f32.mrf.mxu0  ;;  %v16103_v29 = vpop.f32.mrf.mxu1  ;;  %13523 = vmatprep.subr.mxu0 %v1899_v10 }
 0x15e   : > { %v858_v13 = vadd.f32 %v16094_v9, %v857_v12  ;;  %v1177_v18 = vmax.f32 %v863_v11, 0.0  ;;  %13524 = vmatpush3.msra.mxu0 %v1899_v10 }
 0x15f   : > { %v13294_v14 = vpop.f32.mrf.mxu0  ;;  %v16108_v33 = vpop.f32.mrf.mxu1  ;;  %13525 = vmatprep.subr.mxu0 %v1898_v16 }
 0x160   : > { %v1176_v17 = vmax.f32 %v858_v13, 0.0  ;;  %v873_v19 = vadd.f32 %v13294_v14, %v16094_v9  ;;  %13526 = vmatpush3.msra.mxu0 %v1898_v16  ;;  %v1018_v16 = vadd.f32 %v16094_v9, %v16108_v33  ;;  %v1023_v33 = vadd.f32 %v16103_v29, %v16094_v9 }
 0x161   : > { %v867_v20 = vpop.f32.mrf.mxu0  ;;  %v16111_v39 = vpop.f32.mrf.mxu1 }
 0x162   : > { %v868_v22 = vadd.f32 %v16094_v9, %v867_v20  ;;  %13401 = vmatprep.mubr.msk.f32.mxu1 %vm1255_vm2, %v1176_v17  ;;  %v1179_v26 = vmax.f32 %v873_v19, 0.0 }
 0x163   : > { %v13297_v23 = vpop.f32.mrf.mxu0  ;;  %13402 = vmatmul.mubr.msk.f32.vlgmr.msra.gmra.mxu1 %vm1255_vm2, %v1177_v18  ;;  %v16116_v43 = vpop.f32.mrf.mxu1 }
 0x164   : > { %v1178_v25 = vmax.f32 %v868_v22, 0.0  ;;  %v883_v27 = vadd.f32 %v13297_v23, %v16094_v9 }
 0x165   : > { %v877_v28 = vpop.f32.mrf.mxu0  ;;  %v16119_v49 = vpop.f32.mrf.mxu1 }
 0x166   : > { %v878_v31 = vadd.f32 %v16094_v9, %v877_v28  ;;  %13404 = vmatprep.mubr.msk.f32.mxu1 %vm1255_vm2, %v1178_v25  ;;  %v1181_v36 = vmax.f32 %v883_v27, 0.0 }
 0x167   : > { %v13300_v32 = vpop.f32.mrf.mxu0  ;;  %13405 = vmatmul.mubr.msk.f32.gmra.mxu1 %vm1255_vm2, %v1179_v26  ;;  %v16124_v53 = vpop.f32.mrf.mxu1 }
 0x168   : > { %v1180_v35 = vmax.f32 %v878_v31, 0.0  ;;  %v893_v37 = vadd.f32 %v13300_v32, %v16094_v9 }
 0x169   : > { %v887_v38 = vpop.f32.mrf.mxu0  ;;  %v16127_v59 = vpop.f32.mrf.mxu1 }
 0x16a   : > { %v888_v41 = vadd.f32 %v16094_v9, %v887_v38  ;;  %13407 = vmatprep.mubr.msk.f32.mxu1 %vm1255_vm2, %v1180_v35  ;;  %v1183_v46 = vmax.f32 %v893_v37, 0.0 }
 0x16b   : > { %v13303_v42 = vpop.f32.mrf.mxu0  ;;  %13408 = vmatmul.mubr.msk.f32.gmra.mxu1 %vm1255_vm2, %v1181_v36  ;;  %v16132_v63 = vpop.f32.mrf.mxu1 }
 0x16c   : > { %v1182_v45 = vmax.f32 %v888_v41, 0.0  ;;  %v903_v47 = vadd.f32 %v13303_v42, %v16094_v9 }
 0x16d   : > { %v897_v48 = vpop.f32.mrf.mxu0  ;;  %v16135_v5 = vpop.f32.mrf.mxu1 }
 0x16e   : > { %v898_v51 = vadd.f32 %v16094_v9, %v897_v48  ;;  %13410 = vmatprep.mubr.msk.f32.mxu1 %vm1255_vm2, %v1182_v45  ;;  %v1185_v56 = vmax.f32 %v903_v47, 0.0 }
 0x16f   : > { %v13306_v52 = vpop.f32.mrf.mxu0  ;;  %13411 = vmatmul.mubr.msk.f32.gmra.mxu1 %vm1255_vm2, %v1183_v46  ;;  %v16141_v15 = vpop.f32.mrf.mxu1 }
 0x170   : > { %v1184_v55 = vmax.f32 %v898_v51, 0.0  ;;  %v913_v57 = vadd.f32 %v13306_v52, %v16094_v9 }
 0x171   : > { %v907_v58 = vpop.f32.mrf.mxu0  ;;  %v16147_v23 = vpop.f32.mrf.mxu1 }
 0x172   : > { %v908_v61 = vadd.f32 %v16094_v9, %v907_v58  ;;  %13413 = vmatprep.mubr.msk.f32.mxu1 %vm1255_vm2, %v1184_v55  ;;  %v1187_v2 = vmax.f32 %v913_v57, 0.0 }
 0x173   : > { %v13309_v62 = vpop.f32.mrf.mxu0  ;;  %13414 = vmatmul.mubr.msk.f32.gmra.mxu1 %vm1255_vm2, %v1185_v56  ;;  %v16153_v31 = vpop.f32.mrf.mxu1 }
 0x174   : > { %v1186_v1 = vmax.f32 %v908_v61, 0.0  ;;  %v923_v3 = vadd.f32 %v13309_v62, %v16094_v9 }
 0x175   : > { %v917_v4 = vpop.f32.mrf.mxu0  ;;  %v16159_v40 = vpop.f32.mrf.mxu1 }
 0x176   : > { %v918_v7 = vadd.f32 %v16094_v9, %v917_v4  ;;  %13416 = vmatprep.mubr.msk.f32.mxu1 %vm1255_vm2, %v1186_v1  ;;  %v1189_v12 = vmax.f32 %v923_v3, 0.0 }
 0x177   : > { %v13312_v8 = vpop.f32.mrf.mxu0  ;;  %13417 = vmatmul.mubr.msk.f32.gmra.mxu1 %vm1255_vm2, %v1187_v2  ;;  %v16165_v48 = vpop.f32.mrf.mxu1 }
 0x178   : > { %v1188_v11 = vmax.f32 %v918_v7, 0.0  ;;  %v933_v13 = vadd.f32 %v13312_v8, %v16094_v9 }
 0x179   : > { %v927_v14 = vpop.f32.mrf.mxu0  ;;  %v16171_v57 = vpop.f32.mrf.mxu1 }
 0x17a   : > { %v928_v17 = vadd.f32 %v16094_v9, %v927_v14  ;;  %13419 = vmatprep.mubr.msk.f32.mxu1 %vm1255_vm2, %v1188_v11  ;;  %v1191_v20 = vmax.f32 %v933_v13, 0.0 }
 0x17b   : > { %v13315_v18 = vpop.f32.mrf.mxu0  ;;  %13420 = vmatmul.mubr.msk.f32.gmra.mxu1 %vm1255_vm2, %v1189_v12  ;;  %v16177_v2 = vpop.f32.mrf.mxu1 }
 0x17c   : > { %v1190_v19 = vmax.f32 %v928_v17, 0.0  ;;  %v943_v21 = vadd.f32 %v13315_v18, %v16094_v9 }
 0x17d   : > { %v937_v22 = vpop.f32.mrf.mxu0  ;;  %v16183_v11 = vpop.f32.mrf.mxu1 }
 0x17e   : > { %v938_v24 = vadd.f32 %v16094_v9, %v937_v22  ;;  %13422 = vmatprep.mubr.msk.f32.mxu1 %vm1255_vm2, %v1190_v19  ;;  %v1193_v27 = vmax.f32 %v943_v21, 0.0 }
 0x17f   : > { %v13318_v25 = vpop.f32.mrf.mxu0  ;;  %13423 = vmatmul.mubr.msk.f32.gmra.mxu1 %vm1255_vm2, %v1191_v20  ;;  %v1097_v20 = vpop.f32.mrf.mxu1 }
 0x180   : > { %v1192_v26 = vmax.f32 %v938_v24, 0.0  ;;  %v953_v28 = vadd.f32 %v13318_v25, %v16094_v9  ;;  %v1208_v24 = vmax.f32 %v1018_v16, 0.0  ;;  %v1028_v25 = vadd.f32 %v16094_v9, %v16116_v43 }
 0x181   : > { %v947_v30 = vpop.f32.mrf.mxu0  ;;  %v1033_v43 = vadd.f32 %v16111_v39, %v16094_v9  ;;  %v1058_v39 = vadd.f32 %v16094_v9, %v16141_v15  ;;  %v1063_v15 = vadd.f32 %v16135_v5, %v16094_v9  ;;  %v1088_v5 = vadd.f32 %v16094_v9, %v16177_v2 }
 0x182   : > { %v948_v32 = vadd.f32 %v16094_v9, %v947_v30  ;;  %13425 = vmatprep.mubr.msk.f32.mxu1 %vm1255_vm2, %v1192_v26  ;;  %v1195_v36 = vmax.f32 %v953_v28, 0.0  ;;  %v1210_v28 = vmax.f32 %v1028_v25, 0.0  ;;  %v1038_v30 = vadd.f32 %v16094_v9, %v16124_v53 }
 0x183   : > { %v13321_v34 = vpop.f32.mrf.mxu0  ;;  %13426 = vmatmul.mubr.msk.f32.gmra.mxu1 %vm1255_vm2, %v1193_v27  ;;  %v16198_v27 = vpop.f32.mrf.mxu1  ;;  %v1103_v2 = vadd.f32 %v16183_v11, %v16094_v9 }
 0x184   : > { %v1194_v35 = vmax.f32 %v948_v32, 0.0  ;;  %v963_v37 = vadd.f32 %v13321_v34, %v16094_v9  ;;  %v1209_v32 = vmax.f32 %v1023_v33, 0.0  ;;  %v1212_v29 = vmax.f32 %v1038_v30, 0.0 }
 0x185   : > { %v957_v38 = vpop.f32.mrf.mxu0  ;;  %v1107_v34 = vpop.f32.mrf.mxu1 }
 0x186   : > { %v958_v41 = vadd.f32 %v16094_v9, %v957_v38  ;;  %13428 = vmatprep.mubr.msk.f32.mxu1 %vm1255_vm2, %v1194_v35  ;;  %v1197_v45 = vmax.f32 %v963_v37, 0.0  ;;  %v1048_v35 = vadd.f32 %v16094_v9, %v16132_v63  ;;  %v1043_v37 = vadd.f32 %v16119_v49, %v16094_v9 }
 0x187   : > { %v13324_v42 = vpop.f32.mrf.mxu0  ;;  %13429 = vmatmul.mubr.msk.f32.gmra.mxu1 %vm1255_vm2, %v1195_v36  ;;  %v1211_v36 = vmax.f32 %v1033_v43, 0.0  ;;  %v13369_v38 = vpop.f32.mrf.mxu1  ;;  %v1216_v49 = vmax.f32 %v1058_v39, 0.0  ;;  %v1068_v63 = vadd.f32 %v16094_v9, %v16153_v31  ;;  %v16278_v39 = vld [vmem:[#allocation9] ss:$0 sm:$0xff] }
 0x188   : > { %v1196_v44 = vmax.f32 %v958_v41, 0.0  ;;  %v973_v46 = vadd.f32 %v13324_v42, %v16094_v9  ;;  %v1214_v53 = vmax.f32 %v1048_v35, 0.0  ;;  %v1897_v41 = vld [vmem:[#allocation11] sm:$0xff]  ;;  %v1213_v42 = vmax.f32 %v1043_v37, 0.0 }
 0x189   : > { %v967_v47 = vpop.f32.mrf.mxu0  ;;  %13527 = vmatprep.subr.mxu0 %v1897_v41 }
 0x18a   : > { %v968_v50 = vadd.f32 %v16094_v9, %v967_v47  ;;  %13431 = vmatprep.mubr.msk.f32.mxu1 %vm1255_vm2, %v1196_v44  ;;  %v1199_v54 = vmax.f32 %v973_v46, 0.0  ;;  %v1053_v44 = vadd.f32 %v16127_v59, %v16094_v9  ;;  %13528 = vmatpush3.msra.mxu0 %v1897_v41  ;;  %v1078_v59 = vadd.f32 %v16094_v9, %v16165_v48 }
 0x18b   : > { %v13327_v51 = vpop.f32.mrf.mxu0  ;;  %13432 = vmatmul.mubr.msk.f32.gmra.mxu1 %vm1255_vm2, %v1197_v45  ;;  %v1117_v45 = vpop.f32.mrf.mxu1  ;;  %v1222_v48 = vmax.f32 %v1088_v5, 0.0 }
 0x18c   : > { %v1198_v52 = vmax.f32 %v968_v50, 0.0  ;;  %v983_v55 = vadd.f32 %v13327_v51, %v16094_v9  ;;  %v1215_v46 = vmax.f32 %v1053_v44, 0.0  ;;  %v1218_v50 = vmax.f32 %v1068_v63, 0.0 }
 0x18d   : > { %v977_v56 = vpop.f32.mrf.mxu0  ;;  %v13372_v47 = vpop.f32.mrf.mxu1  ;;  %v1217_v51 = vmax.f32 %v1063_v15, 0.0  ;;  %v1220_v31 = vmax.f32 %v1078_v59, 0.0 }
 0x18e   : > { %v978_v58 = vadd.f32 %v16094_v9, %v977_v56  ;;  %13434 = vmatprep.mubr.msk.f32.mxu1 %vm1255_vm2, %v1198_v52  ;;  %v1201_v62 = vmax.f32 %v983_v55, 0.0  ;;  %v1073_v52 = vadd.f32 %v16147_v23, %v16094_v9  ;;  %v1083_v56 = vadd.f32 %v16159_v40, %v16094_v9 }
 0x18f   : > { %v13330_v60 = vpop.f32.mrf.mxu0  ;;  %13435 = vmatmul.mubr.msk.f32.gmra.mxu1 %vm1255_vm2, %v1199_v54  ;;  %v1127_v54 = vpop.f32.mrf.mxu1  ;;  %v1098_v23 = vadd.f32 %v16094_v9, %v1097_v20  ;;  %v1108_v40 = vadd.f32 %v16094_v9, %v1107_v34 }
 0x190   : > { %v1200_v61 = vmax.f32 %v978_v58, 0.0  ;;  %v993_v0 = vadd.f32 %v13330_v60, %v16094_v9  ;;  %v1219_v55 = vmax.f32 %v1073_v52, 0.0  ;;  %v1221_v60 = vmax.f32 %v1083_v56, 0.0 }
 0x191   : > { %v987_v1 = vpop.f32.mrf.mxu0  ;;  %v13375_v58 = vpop.f32.mrf.mxu1  ;;  %v1128_v11 = vadd.f32 %v16094_v9, %v1127_v54 }
 0x192   : > { %v988_v3 = vadd.f32 %v16094_v9, %v987_v1  ;;  %13437 = vmatprep.mubr.msk.f32.mxu1 %vm1255_vm2, %v1200_v61  ;;  %v1203_v7 = vmax.f32 %v993_v0, 0.0  ;;  %v1093_v61 = vadd.f32 %v16171_v57, %v16094_v9  ;;  %v1224_v0 = vmax.f32 %v1098_v23, 0.0 }
 0x193   : > { %v13333_v4 = vpop.f32.mrf.mxu0  ;;  %13438 = vmatmul.mubr.msk.f32.gmra.mxu1 %vm1255_vm2, %v1201_v62  ;;  %v1137_v62 = vpop.f32.mrf.mxu1  ;;  %v1118_v57 = vadd.f32 %v16094_v9, %v1117_v45  ;;  %v1230_v16 = vmax.f32 %v1128_v11, 0.0  ;;  %v1143_v25 = vadd.f32 %v13375_v58, %v16094_v9 }
 0x194   : > { %v1202_v6 = vmax.f32 %v988_v3, 0.0  ;;  %v1003_v8 = vadd.f32 %v13333_v4, %v16094_v9  ;;  %v1223_v1 = vmax.f32 %v1093_v61, 0.0  ;;  %v1226_v4 = vmax.f32 %v1108_v40, 0.0 }
 0x195   : > { %v997_v10 = vpop.f32.mrf.mxu0  ;;  %v13378_v3 = vpop.f32.mrf.mxu1 }
 0x196   : > { %v998_v12 = vadd.f32 %v16094_v9, %v997_v10  ;;  %13440 = vmatprep.mubr.msk.f32.mxu1 %vm1255_vm2, %v1202_v6  ;;  %v1205_v17 = vmax.f32 %v1003_v8, 0.0  ;;  %v1225_v6 = vmax.f32 %v1103_v2, 0.0  ;;  %v1228_v10 = vmax.f32 %v1118_v57, 0.0 }
 0x197   : > { %v13336_v13 = vpop.f32.mrf.mxu0  ;;  %13441 = vmatmul.mubr.msk.f32.gmra.mxu1 %vm1255_vm2, %v1203_v7  ;;  %v1113_v7 = vadd.f32 %v16198_v27, %v16094_v9  ;;  %v1147_v8 = vpop.f32.mrf.mxu1  ;;  %v1153_v30 = vadd.f32 %v13378_v3, %v16094_v9 }
 0x198   : > { %v1204_v14 = vmax.f32 %v998_v12, 0.0  ;;  %v1013_v18 = vadd.f32 %v13336_v13, %v16094_v9  ;;  %v1123_v13 = vadd.f32 %v13369_v38, %v16094_v9 }
 0x199   : > { %v1007_v19 = vpop.f32.mrf.mxu0  ;;  %v1227_v12 = vmax.f32 %v1113_v7, 0.0 }
 0x19a   : > { %v1008_v21 = vadd.f32 %v16094_v9, %v1007_v19  ;;  %13443 = vmatprep.mubr.msk.f32.mxu1 %vm1255_vm2, %v1204_v14  ;;  %v1207_v26 = vmax.f32 %v1013_v18, 0.0  ;;  %v13381_v14 = vpop.f32.mrf.mxu1  ;;  %v1229_v18 = vmax.f32 %v1123_v13, 0.0  ;;  %v1133_v19 = vadd.f32 %v13372_v47, %v16094_v9 }
 0x19b   : > { %13444 = vmatmul.mubr.msk.f32.gmra.mxu1 %vm1255_vm2, %v1205_v17  ;;  %v1138_v17 = vadd.f32 %v16094_v9, %v1137_v62  ;;  %v1163_v35 = vadd.f32 %v13381_v14, %v16094_v9 }
 0x19c   : > { %v1206_v22 = vmax.f32 %v1008_v21, 0.0  ;;  %v1157_v20 = vpop.f32.mrf.mxu1 }
 0x19d   : > { %v1232_v21 = vmax.f32 %v1138_v17, 0.0  ;;  %v1158_v27 = vadd.f32 %v16094_v9, %v1157_v20  ;;  %v1237_v37 = vmax.f32 %v1163_v35, 0.0 }
 0x19e   : > { %13446 = vmatprep.mubr.msk.f32.mxu1 %vm1255_vm2, %v1206_v22  ;;  %v1148_v22 = vadd.f32 %v16094_v9, %v1147_v8 }
 0x19f   : > { %13447 = vmatmul.mubr.msk.f32.gmra.mxu1 %vm1255_vm2, %v1207_v26  ;;  %v13384_v26 = vpop.f32.mrf.mxu1  ;;  %v1236_v43 = vmax.f32 %v1158_v27, 0.0 }
 0x1a0   : > { %13449 = vmatprep.mubr.msk.f32.mxu1 %vm1255_vm2, %v1208_v24  ;;  %v1231_v24 = vmax.f32 %v1133_v19, 0.0  ;;  %v1234_v33 = vmax.f32 %v1148_v22, 0.0  ;;  %v1173_v38 = vadd.f32 %v13384_v26, %v16094_v9 }
 0x1a3   : > { %13450 = vmatmul.mubr.msk.f32.gmra.mxu1 %vm1255_vm2, %v1209_v32  ;;  %v1167_v32 = vpop.f32.mrf.mxu1 }
 0x1a4   : > { %13452 = vmatprep.mubr.msk.f32.mxu1 %vm1255_vm2, %v1210_v28  ;;  %v1233_v28 = vmax.f32 %v1143_v25, 0.0  ;;  %v1168_v34 = vadd.f32 %v16094_v9, %v1167_v32 }
 0x1a7   : > { %13453 = vmatmul.mubr.msk.f32.gmra.mxu1 %vm1255_vm2, %v1211_v36  ;;  %v1238_v36 = vmax.f32 %v1168_v34, 0.0 }
 0x1a8   : > { %13455 = vmatprep.mubr.msk.f32.mxu1 %vm1255_vm2, %v1212_v29  ;;  %v1235_v29 = vmax.f32 %v1153_v30, 0.0 }
 0x1ab   : > { %13456 = vmatmul.mubr.msk.f32.gmra.mxu1 %vm1255_vm2, %v1213_v42 }
 0x1ac   : > { %13458 = vmatprep.mubr.msk.f32.mxu1 %vm1255_vm2, %v1214_v53  ;;  %v1239_v53 = vmax.f32 %v1173_v38, 0.0 }
 0x1af   : > { %13459 = vmatmul.mubr.msk.f32.gmra.mxu1 %vm1255_vm2, %v1215_v46 }
 0x1b0   : > { %13461 = vmatprep.mubr.msk.f32.mxu1 %vm1255_vm2, %v1216_v49 }
 0x1b3   : > { %13462 = vmatmul.mubr.msk.f32.gmra.mxu1 %vm1255_vm2, %v1217_v51 }
 0x1b4   : > { %13464 = vmatprep.mubr.msk.f32.mxu1 %vm1255_vm2, %v1218_v50 }
 0x1b7   : > { %13465 = vmatmul.mubr.msk.f32.gmra.mxu1 %vm1255_vm2, %v1219_v55 }
 0x1b8   : > { %13467 = vmatprep.mubr.msk.f32.mxu1 %vm1255_vm2, %v1220_v31 }
 0x1bb   : > { %13468 = vmatmul.mubr.msk.f32.gmra.mxu1 %vm1255_vm2, %v1221_v60 }
 0x1bc   : > { %13470 = vmatprep.mubr.msk.f32.mxu1 %vm1255_vm2, %v1222_v48 }
 0x1bf   : > { %13471 = vmatmul.mubr.msk.f32.gmra.mxu1 %vm1255_vm2, %v1223_v1 }
 0x1c0   : > { %13473 = vmatprep.mubr.msk.f32.mxu1 %vm1255_vm2, %v1224_v0 }
 0x1c3   : > { %13474 = vmatmul.mubr.msk.f32.gmra.mxu1 %vm1255_vm2, %v1225_v6 }
 0x1c4   : > { %13476 = vmatprep.mubr.msk.f32.mxu1 %vm1255_vm2, %v1226_v4 }
 0x1c7   : > { %13477 = vmatmul.mubr.msk.f32.gmra.mxu1 %vm1255_vm2, %v1227_v12 }
 0x1c8   : > { %13479 = vmatprep.mubr.msk.f32.mxu1 %vm1255_vm2, %v1228_v10 }
 0x1cb   : > { %13480 = vmatmul.mubr.msk.f32.gmra.mxu1 %vm1255_vm2, %v1229_v18 }
 0x1cc   : > { %13482 = vmatprep.mubr.msk.f32.mxu1 %vm1255_vm2, %v1230_v16 }
 0x1cf   : > { %13483 = vmatmul.mubr.msk.f32.gmra.mxu1 %vm1255_vm2, %v1231_v24 }
 0x1d0   : > { %13485 = vmatprep.mubr.msk.f32.mxu1 %vm1255_vm2, %v1232_v21 }
 0x1d3   : > { %13486 = vmatmul.mubr.msk.f32.gmra.mxu1 %vm1255_vm2, %v1233_v28 }
 0x1d4   : > { %13488 = vmatprep.mubr.msk.f32.mxu1 %vm1255_vm2, %v1234_v33 }
 0x1d7   : > { %13489 = vmatmul.mubr.msk.f32.gmra.mxu1 %vm1255_vm2, %v1235_v29 }
 0x1d8   : > { %13491 = vmatprep.mubr.msk.f32.mxu1 %vm1255_vm2, %v1236_v43 }
 0x1db   : > { %13492 = vmatmul.mubr.msk.f32.gmra.mxu1 %vm1255_vm2, %v1237_v37 }
 0x1dc   : > { %13494 = vmatprep.mubr.msk.f32.mxu1 %vm1255_vm2, %v1238_v36 }
 0x1df   : > { %13495 = vmatmul.mubr.msk.f32.gmra.mxu1 %vm1255_vm2, %v1239_v53 }
 0x223   : > { %v13403_v41 = vpop.f32.mrf.mxu1 }
 0x224   : > { %v1520_v42 = vadd.f32 %v13403_v41, %v16278_v39 }
 0x225   : > { %v1514_v44 = vpop.f32.mrf.mxu1 }
 0x226   : > { %v1515_v45 = vadd.f32 %v16278_v39, %v1514_v44  ;;  %v1834_v46 = vmax.f32 %v1520_v42, 0.0 }
 0x227   : > { %v13406_v49 = vpop.f32.mrf.mxu1 }
 0x228   : > { %v1833_v63 = vmax.f32 %v1515_v45, 0.0  ;;  %v1530_v9 = vadd.f32 %v13406_v49, %v16278_v39 }
 0x229   : > { %v1524_v15 = vpop.f32.mrf.mxu1 }
 0x22a   : > { %v1525_v47 = vadd.f32 %v16278_v39, %v1524_v15  ;;  %13529 = vmatprep.mubr.f32.mxu0 %v1833_v63  ;;  %v1836_v51 = vmax.f32 %v1530_v9, 0.0 }
 0x22b   : > { %v13409_v50 = vpop.f32.mrf.mxu1  ;;  %13530 = vmatmul.mubr.f32.vlgmr.msra.gmra.mxu0 %v1834_v46 }
 0x22c   : > { %v1835_v59 = vmax.f32 %v1525_v47, 0.0  ;;  %v1540_v52 = vadd.f32 %v13409_v50, %v16278_v39 }
 0x22d   : > { %v1534_v54 = vpop.f32.mrf.mxu1 }
 0x22e   : > { %v1535_v31 = vadd.f32 %v16278_v39, %v1534_v54  ;;  %13532 = vmatprep.mubr.f32.mxu0 %v1835_v59  ;;  %v1838_v56 = vmax.f32 %v1540_v52, 0.0 }
 0x22f   : > { %v13412_v5 = vpop.f32.mrf.mxu1  ;;  %13533 = vmatmul.mubr.f32.gmra.mxu0 %v1836_v51 }
 0x230   : > { %v1837_v55 = vmax.f32 %v1535_v31, 0.0  ;;  %v1550_v58 = vadd.f32 %v13412_v5, %v16278_v39 }
 0x231   : > { %v1544_v48 = vpop.f32.mrf.mxu1 }
 0x232   : > { %v1545_v23 = vadd.f32 %v16278_v39, %v1544_v48  ;;  %13535 = vmatprep.mubr.f32.mxu0 %v1837_v55  ;;  %v1840_v62 = vmax.f32 %v1550_v58, 0.0 }
 0x233   : > { %v13415_v60 = vpop.f32.mrf.mxu1  ;;  %13536 = vmatmul.mubr.f32.gmra.mxu0 %v1838_v56 }
 0x234   : > { %v1839_v61 = vmax.f32 %v1545_v23, 0.0  ;;  %v1560_v0 = vadd.f32 %v13415_v60, %v16278_v39 }
 0x235   : > { %v1554_v40 = vpop.f32.mrf.mxu1 }
 0x236   : > { %v1555_v1 = vadd.f32 %v16278_v39, %v1554_v40  ;;  %13538 = vmatprep.mubr.f32.mxu0 %v1839_v61  ;;  %v1842_v4 = vmax.f32 %v1560_v0, 0.0 }
 0x237   : > { %v13418_v2 = vpop.f32.mrf.mxu1  ;;  %13539 = vmatmul.mubr.f32.gmra.mxu0 %v1840_v62 }
 0x238   : > { %v1841_v3 = vmax.f32 %v1555_v1, 0.0  ;;  %v1570_v57 = vadd.f32 %v13418_v2, %v16278_v39 }
 0x239   : > { %v1564_v6 = vpop.f32.mrf.mxu1 }
 0x23a   : > { %v1565_v7 = vadd.f32 %v16278_v39, %v1564_v6  ;;  %13541 = vmatprep.mubr.f32.mxu0 %v1841_v3  ;;  %v1844_v11 = vmax.f32 %v1570_v57, 0.0 }
 0x23b   : > { %v13421_v8 = vpop.f32.mrf.mxu1  ;;  %13542 = vmatmul.mubr.f32.gmra.mxu0 %v1842_v4 }
 0x23c   : > { %v1843_v10 = vmax.f32 %v1565_v7, 0.0  ;;  %v1580_v12 = vadd.f32 %v13421_v8, %v16278_v39 }
 0x23d   : > { %v1574_v13 = vpop.f32.mrf.mxu1 }
 0x23e   : > { %v1575_v14 = vadd.f32 %v16278_v39, %v1574_v13  ;;  %13544 = vmatprep.mubr.f32.mxu0 %v1843_v10  ;;  %v1846_v18 = vmax.f32 %v1580_v12, 0.0 }
 0x23f   : > { %v13424_v16 = vpop.f32.mrf.mxu1  ;;  %13545 = vmatmul.mubr.f32.gmra.mxu0 %v1844_v11 }
 0x240   : > { %v1845_v17 = vmax.f32 %v1575_v14, 0.0  ;;  %v1590_v19 = vadd.f32 %v13424_v16, %v16278_v39 }
 0x241   : > { %v1584_v20 = vpop.f32.mrf.mxu1 }
 0x242   : > { %v1585_v21 = vadd.f32 %v16278_v39, %v1584_v20  ;;  %13547 = vmatprep.mubr.f32.mxu0 %v1845_v17  ;;  %v1848_v25 = vmax.f32 %v1590_v19, 0.0 }
 0x243   : > { %v13427_v22 = vpop.f32.mrf.mxu1  ;;  %13548 = vmatmul.mubr.f32.gmra.mxu0 %v1846_v18 }
 0x244   : > { %v1847_v24 = vmax.f32 %v1585_v21, 0.0  ;;  %v1600_v26 = vadd.f32 %v13427_v22, %v16278_v39 }
 0x245   : > { %v1594_v33 = vpop.f32.mrf.mxu1 }
 0x246   : > { %v1595_v27 = vadd.f32 %v16278_v39, %v1594_v33  ;;  %13550 = vmatprep.mubr.f32.mxu0 %v1847_v24  ;;  %v1850_v32 = vmax.f32 %v1600_v26, 0.0 }
 0x247   : > { %v13430_v28 = vpop.f32.mrf.mxu1  ;;  %13551 = vmatmul.mubr.f32.gmra.mxu0 %v1848_v25 }
 0x248   : > { %v1849_v30 = vmax.f32 %v1595_v27, 0.0  ;;  %v1610_v43 = vadd.f32 %v13430_v28, %v16278_v39 }
 0x249   : > { %v1604_v34 = vpop.f32.mrf.mxu1 }
 0x24a   : > { %v1605_v29 = vadd.f32 %v16278_v39, %v1604_v34  ;;  %13553 = vmatprep.mubr.f32.mxu0 %v1849_v30  ;;  %v1852_v37 = vmax.f32 %v1610_v43, 0.0 }
 0x24b   : > { %v13433_v35 = vpop.f32.mrf.mxu1  ;;  %13554 = vmatmul.mubr.f32.gmra.mxu0 %v1850_v32 }
 0x24c   : > { %v1851_v36 = vmax.f32 %v1605_v29, 0.0  ;;  %v1620_v38 = vadd.f32 %v13433_v35, %v16278_v39 }
 0x24d   : > { %v1614_v53 = vpop.f32.mrf.mxu1 }
 0x24e   : > { %v1615_v41 = vadd.f32 %v16278_v39, %v1614_v53  ;;  %13556 = vmatprep.mubr.f32.mxu0 %v1851_v36  ;;  %v1854_v45 = vmax.f32 %v1620_v38, 0.0 }
 0x24f   : > { %v13436_v42 = vpop.f32.mrf.mxu1  ;;  %13557 = vmatmul.mubr.f32.gmra.mxu0 %v1852_v37 }
 0x250   : > { %v1853_v44 = vmax.f32 %v1615_v41, 0.0  ;;  %v1630_v49 = vadd.f32 %v13436_v42, %v16278_v39 }
 0x251   : > { %v1624_v63 = vpop.f32.mrf.mxu1 }
 0x252   : > { %v1625_v46 = vadd.f32 %v16278_v39, %v1624_v63  ;;  %13559 = vmatprep.mubr.f32.mxu0 %v1853_v44  ;;  %v1856_v47 = vmax.f32 %v1630_v49, 0.0 }
 0x253   : > { %v13439_v9 = vpop.f32.mrf.mxu1  ;;  %13560 = vmatmul.mubr.f32.gmra.mxu0 %v1854_v45 }
 0x254   : > { %v1855_v15 = vmax.f32 %v1625_v46, 0.0  ;;  %v1640_v50 = vadd.f32 %v13439_v9, %v16278_v39 }
 0x255   : > { %v1634_v59 = vpop.f32.mrf.mxu1 }
 0x256   : > { %v1635_v51 = vadd.f32 %v16278_v39, %v1634_v59  ;;  %13562 = vmatprep.mubr.f32.mxu0 %v1855_v15  ;;  %v1858_v31 = vmax.f32 %v1640_v50, 0.0 }
 0x257   : > { %v13442_v52 = vpop.f32.mrf.mxu1  ;;  %13563 = vmatmul.mubr.f32.gmra.mxu0 %v1856_v47 }
 0x258   : > { %v1857_v54 = vmax.f32 %v1635_v51, 0.0  ;;  %v1650_v5 = vadd.f32 %v13442_v52, %v16278_v39 }
 0x259   : > { %v1644_v55 = vpop.f32.mrf.mxu1 }
 0x25a   : > { %v1645_v56 = vadd.f32 %v16278_v39, %v1644_v55  ;;  %13565 = vmatprep.mubr.f32.mxu0 %v1857_v54  ;;  %v1860_v23 = vmax.f32 %v1650_v5, 0.0 }
 0x25b   : > { %v13445_v58 = vpop.f32.mrf.mxu1  ;;  %13566 = vmatmul.mubr.f32.gmra.mxu0 %v1858_v31 }
 0x25c   : > { %v1859_v48 = vmax.f32 %v1645_v56, 0.0  ;;  %v1660_v60 = vadd.f32 %v13445_v58, %v16278_v39 }
 0x25d   : > { %v1654_v61 = vpop.f32.mrf.mxu1 }
 0x25e   : > { %v1655_v62 = vadd.f32 %v16278_v39, %v1654_v61  ;;  %13568 = vmatprep.mubr.f32.mxu0 %v1859_v48  ;;  %v1862_v1 = vmax.f32 %v1660_v60, 0.0 }
 0x25f   : > { %v13448_v0 = vpop.f32.mrf.mxu1  ;;  %13569 = vmatmul.mubr.f32.gmra.mxu0 %v1860_v23 }
 0x260   : > { %v1861_v40 = vmax.f32 %v1655_v62, 0.0  ;;  %v1670_v2 = vadd.f32 %v13448_v0, %v16278_v39 }
 0x261   : > { %v1664_v3 = vpop.f32.mrf.mxu1 }
 0x262   : > { %v1665_v4 = vadd.f32 %v16278_v39, %v1664_v3  ;;  %13571 = vmatprep.mubr.f32.mxu0 %v1861_v40  ;;  %v1864_v7 = vmax.f32 %v1670_v2, 0.0 }
 0x263   : > { %v13451_v57 = vpop.f32.mrf.mxu1  ;;  %13572 = vmatmul.mubr.f32.gmra.mxu0 %v1862_v1 }
 0x264   : > { %v1863_v6 = vmax.f32 %v1665_v4, 0.0  ;;  %v1680_v8 = vadd.f32 %v13451_v57, %v16278_v39 }
 0x265   : > { %v1674_v10 = vpop.f32.mrf.mxu1 }
 0x266   : > { %v1675_v11 = vadd.f32 %v16278_v39, %v1674_v10  ;;  %13574 = vmatprep.mubr.f32.mxu0 %v1863_v6  ;;  %v1866_v14 = vmax.f32 %v1680_v8, 0.0 }
 0x267   : > { %v13454_v12 = vpop.f32.mrf.mxu1  ;;  %13575 = vmatmul.mubr.f32.gmra.mxu0 %v1864_v7 }
 0x268   : > { %v1865_v13 = vmax.f32 %v1675_v11, 0.0  ;;  %v1690_v16 = vadd.f32 %v13454_v12, %v16278_v39 }
 0x269   : > { %v1684_v17 = vpop.f32.mrf.mxu1 }
 0x26a   : > { %v1685_v18 = vadd.f32 %v16278_v39, %v1684_v17  ;;  %13577 = vmatprep.mubr.f32.mxu0 %v1865_v13  ;;  %v1868_v21 = vmax.f32 %v1690_v16, 0.0 }
 0x26b   : > { %v13457_v19 = vpop.f32.mrf.mxu1  ;;  %13578 = vmatmul.mubr.f32.gmra.mxu0 %v1866_v14 }
 0x26c   : > { %v1867_v20 = vmax.f32 %v1685_v18, 0.0  ;;  %v1700_v22 = vadd.f32 %v13457_v19, %v16278_v39 }
 0x26d   : > { %v1694_v24 = vpop.f32.mrf.mxu1 }
 0x26e   : > { %v1695_v25 = vadd.f32 %v16278_v39, %v1694_v24  ;;  %13580 = vmatprep.mubr.f32.mxu0 %v1867_v20  ;;  %v1870_v27 = vmax.f32 %v1700_v22, 0.0 }
 0x26f   : > { %v13460_v26 = vpop.f32.mrf.mxu1  ;;  %13581 = vmatmul.mubr.f32.gmra.mxu0 %v1868_v21 }
 0x270   : > { %v1869_v33 = vmax.f32 %v1695_v25, 0.0  ;;  %v1710_v28 = vadd.f32 %v13460_v26, %v16278_v39 }
 0x271   : > { %v1704_v30 = vpop.f32.mrf.mxu1 }
 0x272   : > { %v1705_v32 = vadd.f32 %v16278_v39, %v1704_v30  ;;  %13583 = vmatprep.mubr.f32.mxu0 %v1869_v33  ;;  %v1872_v29 = vmax.f32 %v1710_v28, 0.0 }
 0x273   : > { %v13463_v43 = vpop.f32.mrf.mxu1  ;;  %13584 = vmatmul.mubr.f32.gmra.mxu0 %v1870_v27 }
 0x274   : > { %v1871_v34 = vmax.f32 %v1705_v32, 0.0  ;;  %v1720_v35 = vadd.f32 %v13463_v43, %v16278_v39 }
 0x275   : > { %v1714_v36 = vpop.f32.mrf.mxu1 }
 0x276   : > { %v1715_v37 = vadd.f32 %v16278_v39, %v1714_v36  ;;  %13586 = vmatprep.mubr.f32.mxu0 %v1871_v34  ;;  %v1874_v41 = vmax.f32 %v1720_v35, 0.0 }
 0x277   : > { %v13466_v38 = vpop.f32.mrf.mxu1  ;;  %13587 = vmatmul.mubr.f32.gmra.mxu0 %v1872_v29 }
 0x278   : > { %v1873_v53 = vmax.f32 %v1715_v37, 0.0  ;;  %v1730_v42 = vadd.f32 %v13466_v38, %v16278_v39 }
 0x279   : > { %v1724_v44 = vpop.f32.mrf.mxu1 }
 0x27a   : > { %v1725_v45 = vadd.f32 %v16278_v39, %v1724_v44  ;;  %13589 = vmatprep.mubr.f32.mxu0 %v1873_v53  ;;  %v1876_v46 = vmax.f32 %v1730_v42, 0.0 }
 0x27b   : > { %v13469_v49 = vpop.f32.mrf.mxu1  ;;  %13590 = vmatmul.mubr.f32.gmra.mxu0 %v1874_v41 }
 0x27c   : > { %v1875_v63 = vmax.f32 %v1725_v45, 0.0  ;;  %v1740_v9 = vadd.f32 %v13469_v49, %v16278_v39  ;;  %v16344_v45 = vld [vmem:[#allocation12] ss:$0 sm:$0xff] }
 0x27d   : > { %v1734_v15 = vpop.f32.mrf.mxu1 }
 0x27e   : > { %v1735_v47 = vadd.f32 %v16278_v39, %v1734_v15  ;;  %13592 = vmatprep.mubr.f32.mxu0 %v1875_v63  ;;  %v1878_v51 = vmax.f32 %v1740_v9, 0.0 }
 0x27f   : > { %v13472_v50 = vpop.f32.mrf.mxu1  ;;  %13593 = vmatmul.mubr.f32.gmra.mxu0 %v1876_v46 }
 0x280   : > { %v1877_v59 = vmax.f32 %v1735_v47, 0.0  ;;  %v1750_v52 = vadd.f32 %v13472_v50, %v16278_v39  ;;  %v15589_v47 = vmov 0.0  }
 0x281   : > { %v1744_v54 = vpop.f32.mrf.mxu1  ;;  %2433 = vst [vmem:[#allocation3 + $0x10] sm:$0xff] %v15589_v47  ;;  %2434 = vst [vmem:[#allocation3] sm:$0xff] %v15589_v47 }
 0x282   : > { %v1745_v31 = vadd.f32 %v16278_v39, %v1744_v54  ;;  %13595 = vmatprep.mubr.f32.mxu0 %v1877_v59  ;;  %v1880_v56 = vmax.f32 %v1750_v52, 0.0  ;;  %2435 = vst [vmem:[#allocation3 + $0x18] sm:$0xff] %v15589_v47  ;;  %2436 = vst [vmem:[#allocation3 + $0x8] sm:$0xff] %v15589_v47 }
 0x283   : > { %v13475_v5 = vpop.f32.mrf.mxu1  ;;  %13596 = vmatmul.mubr.f32.gmra.mxu0 %v1878_v51 }
 0x284   : > { %v1879_v55 = vmax.f32 %v1745_v31, 0.0  ;;  %v1760_v58 = vadd.f32 %v13475_v5, %v16278_v39 }
 0x285   : > { %v1754_v48 = vpop.f32.mrf.mxu1 }
 0x286   : > { %v1755_v23 = vadd.f32 %v16278_v39, %v1754_v48  ;;  %13598 = vmatprep.mubr.f32.mxu0 %v1879_v55  ;;  %v1882_v62 = vmax.f32 %v1760_v58, 0.0 }
 0x287   : > { %v13478_v60 = vpop.f32.mrf.mxu1  ;;  %13599 = vmatmul.mubr.f32.gmra.mxu0 %v1880_v56 }
 0x288   : > { %v1881_v61 = vmax.f32 %v1755_v23, 0.0  ;;  %v1770_v0 = vadd.f32 %v13478_v60, %v16278_v39 }
 0x289   : > { %v1764_v40 = vpop.f32.mrf.mxu1 }
 0x28a   : > { %v1765_v1 = vadd.f32 %v16278_v39, %v1764_v40  ;;  %13601 = vmatprep.mubr.f32.mxu0 %v1881_v61  ;;  %v1884_v4 = vmax.f32 %v1770_v0, 0.0 }
 0x28b   : > { %v13481_v2 = vpop.f32.mrf.mxu1  ;;  %13602 = vmatmul.mubr.f32.gmra.mxu0 %v1882_v62 }
 0x28c   : > { %v1883_v3 = vmax.f32 %v1765_v1, 0.0  ;;  %v1780_v57 = vadd.f32 %v13481_v2, %v16278_v39 }
 0x28d   : > { %v1774_v6 = vpop.f32.mrf.mxu1 }
 0x28e   : > { %v1775_v7 = vadd.f32 %v16278_v39, %v1774_v6  ;;  %13604 = vmatprep.mubr.f32.mxu0 %v1883_v3  ;;  %v1886_v11 = vmax.f32 %v1780_v57, 0.0 }
 0x28f   : > { %v13484_v8 = vpop.f32.mrf.mxu1  ;;  %13605 = vmatmul.mubr.f32.gmra.mxu0 %v1884_v4 }
 0x290   : > { %v1885_v10 = vmax.f32 %v1775_v7, 0.0  ;;  %v1790_v12 = vadd.f32 %v13484_v8, %v16278_v39 }
 0x291   : > { %v1784_v13 = vpop.f32.mrf.mxu1 }
 0x292   : > { %v1785_v14 = vadd.f32 %v16278_v39, %v1784_v13  ;;  %13607 = vmatprep.mubr.f32.mxu0 %v1885_v10  ;;  %v1888_v18 = vmax.f32 %v1790_v12, 0.0 }
 0x293   : > { %v13487_v16 = vpop.f32.mrf.mxu1  ;;  %13608 = vmatmul.mubr.f32.gmra.mxu0 %v1886_v11 }
 0x294   : > { %v1887_v17 = vmax.f32 %v1785_v14, 0.0  ;;  %v1800_v19 = vadd.f32 %v13487_v16, %v16278_v39 }
 0x295   : > { %v1794_v20 = vpop.f32.mrf.mxu1 }
 0x296   : > { %v1795_v21 = vadd.f32 %v16278_v39, %v1794_v20  ;;  %13610 = vmatprep.mubr.f32.mxu0 %v1887_v17  ;;  %v1890_v25 = vmax.f32 %v1800_v19, 0.0 }
 0x297   : > { %v13490_v22 = vpop.f32.mrf.mxu1  ;;  %13611 = vmatmul.mubr.f32.gmra.mxu0 %v1888_v18 }
 0x298   : > { %v1889_v24 = vmax.f32 %v1795_v21, 0.0  ;;  %v1810_v26 = vadd.f32 %v13490_v22, %v16278_v39 }
 0x299   : > { %v1804_v33 = vpop.f32.mrf.mxu1 }
 0x29a   : > { %v1805_v27 = vadd.f32 %v16278_v39, %v1804_v33  ;;  %13613 = vmatprep.mubr.f32.mxu0 %v1889_v24  ;;  %v1892_v32 = vmax.f32 %v1810_v26, 0.0 }
 0x29b   : > { %v13493_v28 = vpop.f32.mrf.mxu1  ;;  %13614 = vmatmul.mubr.f32.gmra.mxu0 %v1890_v25 }
 0x29c   : > { %v1891_v30 = vmax.f32 %v1805_v27, 0.0  ;;  %v1820_v43 = vadd.f32 %v13493_v28, %v16278_v39 }
 0x29d   : > { %v1814_v34 = vpop.f32.mrf.mxu1 }
 0x29e   : > { %v1815_v29 = vadd.f32 %v16278_v39, %v1814_v34  ;;  %13616 = vmatprep.mubr.f32.mxu0 %v1891_v30  ;;  %v1894_v37 = vmax.f32 %v1820_v43, 0.0 }
 0x29f   : > { %v13496_v35 = vpop.f32.mrf.mxu1  ;;  %13617 = vmatmul.mubr.f32.gmra.mxu0 %v1892_v32 }
 0x2a0   : > { %v1893_v36 = vmax.f32 %v1815_v29, 0.0  ;;  %v1830_v38 = vadd.f32 %v13496_v35, %v16278_v39 }
 0x2a1   : > { %v1824_v53 = vpop.f32.mrf.mxu1 }
 0x2a2   : > { %v1825_v41 = vadd.f32 %v16278_v39, %v1824_v53  ;;  %13619 = vmatprep.mubr.f32.mxu0 %v1893_v36  ;;  %v1896_v44 = vmax.f32 %v1830_v38, 0.0 }
 0x2a3   : > { %13620 = vmatmul.mubr.f32.gmra.mxu0 %v1894_v37 }
 0x2a4   : > { %v1895_v42 = vmax.f32 %v1825_v41, 0.0 }
 0x2a6   : > { %13622 = vmatprep.mubr.f32.mxu0 %v1895_v42 }
 0x2a7   : > { %13623 = vmatmul.mubr.f32.gmra.mxu0 %v1896_v44 }
 0x2eb   : > { %v13531_v49 = vpop.f32.mrf.mxu0 }
 0x2ec   : > { %v1992_v63 = vadd.f32 %v13531_v49, %v16344_v45 }
 0x2ed   : > { %v1986_v46 = vpop.f32.mrf.mxu0 }
 0x2ee   : > { %v2306_v9 = vmax.f32 %v1992_v63, 0.0  ;;  %v1987_v15 = vadd.f32 %v16344_v45, %v1986_v46 }
 0x2ef   : > { %v13534_v39 = vpop.f32.mrf.mxu0 }
 0x2f0   : > { %2370 = vst [vmem:[#allocation2 + $0x8] sm:$0xff] %v2306_v9  ;;  %v2305_v50 = vmax.f32 %v1987_v15, 0.0  ;;  %v2002_v59 = vadd.f32 %v13534_v39, %v16344_v45 }
 0x2f1   : > { %v1996_v51 = vpop.f32.mrf.mxu0 }
 0x2f2   : > { %2369 = vst [vmem:[#allocation2] sm:$0xff] %v2305_v50  ;;  %v2308_v52 = vmax.f32 %v2002_v59, 0.0  ;;  %v1997_v54 = vadd.f32 %v16344_v45, %v1996_v51 }
 0x2f3   : > { %v13537_v31 = vpop.f32.mrf.mxu0 }
 0x2f4   : > { %2372 = vst [vmem:[#allocation2 + $0x18] sm:$0xff] %v2308_v52  ;;  %v2307_v5 = vmax.f32 %v1997_v54, 0.0  ;;  %v2012_v55 = vadd.f32 %v13537_v31, %v16344_v45 }
 0x2f5   : > { %v2006_v56 = vpop.f32.mrf.mxu0 }
 0x2f6   : > { %2371 = vst [vmem:[#allocation2 + $0x10] sm:$0xff] %v2307_v5  ;;  %v2310_v58 = vmax.f32 %v2012_v55, 0.0  ;;  %v2007_v48 = vadd.f32 %v16344_v45, %v2006_v56 }
 0x2f7   : > { %v13540_v23 = vpop.f32.mrf.mxu0 }
 0x2f8   : > { %2374 = vst [vmem:[#allocation2 + $0x28] sm:$0xff] %v2310_v58  ;;  %v2309_v60 = vmax.f32 %v2007_v48, 0.0  ;;  %v2022_v61 = vadd.f32 %v13540_v23, %v16344_v45 }
 0x2f9   : > { %v2016_v62 = vpop.f32.mrf.mxu0 }
 0x2fa   : > { %2373 = vst [vmem:[#allocation2 + $0x20] sm:$0xff] %v2309_v60  ;;  %v2312_v0 = vmax.f32 %v2022_v61, 0.0  ;;  %v2017_v40 = vadd.f32 %v16344_v45, %v2016_v62 }
 0x2fb   : > { %v13543_v1 = vpop.f32.mrf.mxu0 }
 0x2fc   : > { %2376 = vst [vmem:[#allocation2 + $0x38] sm:$0xff] %v2312_v0  ;;  %v2311_v2 = vmax.f32 %v2017_v40, 0.0  ;;  %v2032_v3 = vadd.f32 %v13543_v1, %v16344_v45 }
 0x2fd   : > { %v2026_v4 = vpop.f32.mrf.mxu0 }
 0x2fe   : > { %2375 = vst [vmem:[#allocation2 + $0x30] sm:$0xff] %v2311_v2  ;;  %v2314_v57 = vmax.f32 %v2032_v3, 0.0  ;;  %v2027_v6 = vadd.f32 %v16344_v45, %v2026_v4 }
 0x2ff   : > { %v13546_v7 = vpop.f32.mrf.mxu0 }
 0x300   : > { %2378 = vst [vmem:[#allocation2 + $0x48] sm:$0xff] %v2314_v57  ;;  %v2313_v8 = vmax.f32 %v2027_v6, 0.0  ;;  %v2042_v10 = vadd.f32 %v13546_v7, %v16344_v45 }
 0x301   : > { %v2036_v11 = vpop.f32.mrf.mxu0 }
 0x302   : > { %2377 = vst [vmem:[#allocation2 + $0x40] sm:$0xff] %v2313_v8  ;;  %v2316_v12 = vmax.f32 %v2042_v10, 0.0  ;;  %v2037_v13 = vadd.f32 %v16344_v45, %v2036_v11 }
 0x303   : > { %v13549_v14 = vpop.f32.mrf.mxu0 }
 0x304   : > { %2380 = vst [vmem:[#allocation2 + $0x58] sm:$0xff] %v2316_v12  ;;  %v2315_v16 = vmax.f32 %v2037_v13, 0.0  ;;  %v2052_v17 = vadd.f32 %v13549_v14, %v16344_v45 }
 0x305   : > { %v2046_v18 = vpop.f32.mrf.mxu0 }
 0x306   : > { %2379 = vst [vmem:[#allocation2 + $0x50] sm:$0xff] %v2315_v16  ;;  %v2318_v19 = vmax.f32 %v2052_v17, 0.0  ;;  %v2047_v20 = vadd.f32 %v16344_v45, %v2046_v18 }
 0x307   : > { %v13552_v21 = vpop.f32.mrf.mxu0 }
 0x308   : > { %2382 = vst [vmem:[#allocation2 + $0x68] sm:$0xff] %v2318_v19  ;;  %v2317_v22 = vmax.f32 %v2047_v20, 0.0  ;;  %v2062_v24 = vadd.f32 %v13552_v21, %v16344_v45 }
 0x309   : > { %v2056_v25 = vpop.f32.mrf.mxu0 }
 0x30a   : > { %2381 = vst [vmem:[#allocation2 + $0x60] sm:$0xff] %v2317_v22  ;;  %v2320_v26 = vmax.f32 %v2062_v24, 0.0  ;;  %v2057_v33 = vadd.f32 %v16344_v45, %v2056_v25 }
 0x30b   : > { %v13555_v27 = vpop.f32.mrf.mxu0 }
 0x30c   : > { %2384 = vst [vmem:[#allocation2 + $0x78] sm:$0xff] %v2320_v26  ;;  %v2319_v28 = vmax.f32 %v2057_v33, 0.0  ;;  %v2072_v30 = vadd.f32 %v13555_v27, %v16344_v45 }
 0x30d   : > { %v2066_v32 = vpop.f32.mrf.mxu0 }
 0x30e   : > { %2383 = vst [vmem:[#allocation2 + $0x70] sm:$0xff] %v2319_v28  ;;  %v2322_v43 = vmax.f32 %v2072_v30, 0.0  ;;  %v2067_v34 = vadd.f32 %v16344_v45, %v2066_v32 }
 0x30f   : > { %v13558_v29 = vpop.f32.mrf.mxu0 }
 0x310   : > { %2386 = vst [vmem:[#allocation2 + $0x88] sm:$0xff] %v2322_v43  ;;  %v2321_v35 = vmax.f32 %v2067_v34, 0.0  ;;  %v2082_v36 = vadd.f32 %v13558_v29, %v16344_v45 }
 0x311   : > { %v2076_v37 = vpop.f32.mrf.mxu0 }
 0x312   : > { %2385 = vst [vmem:[#allocation2 + $0x80] sm:$0xff] %v2321_v35  ;;  %v2324_v38 = vmax.f32 %v2082_v36, 0.0  ;;  %v2077_v53 = vadd.f32 %v16344_v45, %v2076_v37 }
 0x313   : > { %v13561_v41 = vpop.f32.mrf.mxu0 }
 0x314   : > { %2388 = vst [vmem:[#allocation2 + $0x98] sm:$0xff] %v2324_v38  ;;  %v2323_v42 = vmax.f32 %v2077_v53, 0.0  ;;  %v2092_v44 = vadd.f32 %v13561_v41, %v16344_v45 }
 0x315   : > { %v2086_v49 = vpop.f32.mrf.mxu0 }
 0x316   : > { %2387 = vst [vmem:[#allocation2 + $0x90] sm:$0xff] %v2323_v42  ;;  %v2326_v63 = vmax.f32 %v2092_v44, 0.0  ;;  %v2087_v46 = vadd.f32 %v16344_v45, %v2086_v49 }
 0x317   : > { %v13564_v9 = vpop.f32.mrf.mxu0 }
 0x318   : > { %2390 = vst [vmem:[#allocation2 + $0xa8] sm:$0xff] %v2326_v63  ;;  %v2325_v15 = vmax.f32 %v2087_v46, 0.0  ;;  %v2102_v47 = vadd.f32 %v13564_v9, %v16344_v45 }
 0x319   : > { %v2096_v39 = vpop.f32.mrf.mxu0 }
 0x31a   : > { %2389 = vst [vmem:[#allocation2 + $0xa0] sm:$0xff] %v2325_v15  ;;  %v2328_v50 = vmax.f32 %v2102_v47, 0.0  ;;  %v2097_v59 = vadd.f32 %v16344_v45, %v2096_v39 }
 0x31b   : > { %v13567_v51 = vpop.f32.mrf.mxu0 }
 0x31c   : > { %2392 = vst [vmem:[#allocation2 + $0xb8] sm:$0xff] %v2328_v50  ;;  %v2327_v52 = vmax.f32 %v2097_v59, 0.0  ;;  %v2112_v54 = vadd.f32 %v13567_v51, %v16344_v45 }
 0x31d   : > { %v2106_v31 = vpop.f32.mrf.mxu0 }
 0x31e   : > { %2391 = vst [vmem:[#allocation2 + $0xb0] sm:$0xff] %v2327_v52  ;;  %v2330_v5 = vmax.f32 %v2112_v54, 0.0  ;;  %v2107_v55 = vadd.f32 %v16344_v45, %v2106_v31 }
 0x31f   : > { %v13570_v56 = vpop.f32.mrf.mxu0 }
 0x320   : > { %2394 = vst [vmem:[#allocation2 + $0xc8] sm:$0xff] %v2330_v5  ;;  %v2329_v58 = vmax.f32 %v2107_v55, 0.0  ;;  %v2122_v48 = vadd.f32 %v13570_v56, %v16344_v45 }
 0x321   : > { %v2116_v23 = vpop.f32.mrf.mxu0 }
 0x322   : > { %2393 = vst [vmem:[#allocation2 + $0xc0] sm:$0xff] %v2329_v58  ;;  %v2332_v60 = vmax.f32 %v2122_v48, 0.0  ;;  %v2117_v61 = vadd.f32 %v16344_v45, %v2116_v23 }
 0x323   : > { %v13573_v62 = vpop.f32.mrf.mxu0 }
 0x324   : > { %2396 = vst [vmem:[#allocation2 + $0xd8] sm:$0xff] %v2332_v60  ;;  %v2331_v0 = vmax.f32 %v2117_v61, 0.0  ;;  %v2132_v40 = vadd.f32 %v13573_v62, %v16344_v45 }
 0x325   : > { %v2126_v1 = vpop.f32.mrf.mxu0 }
 0x326   : > { %2395 = vst [vmem:[#allocation2 + $0xd0] sm:$0xff] %v2331_v0  ;;  %v2334_v2 = vmax.f32 %v2132_v40, 0.0  ;;  %v2127_v3 = vadd.f32 %v16344_v45, %v2126_v1 }
 0x327   : > { %v13576_v4 = vpop.f32.mrf.mxu0 }
 0x328   : > { %2398 = vst [vmem:[#allocation2 + $0xe8] sm:$0xff] %v2334_v2  ;;  %v2333_v57 = vmax.f32 %v2127_v3, 0.0  ;;  %v2142_v6 = vadd.f32 %v13576_v4, %v16344_v45 }
 0x329   : > { %v2136_v7 = vpop.f32.mrf.mxu0 }
 0x32a   : > { %2397 = vst [vmem:[#allocation2 + $0xe0] sm:$0xff] %v2333_v57  ;;  %v2336_v8 = vmax.f32 %v2142_v6, 0.0  ;;  %v2137_v10 = vadd.f32 %v16344_v45, %v2136_v7 }
 0x32b   : > { %v13579_v11 = vpop.f32.mrf.mxu0 }
 0x32c   : > { %2400 = vst [vmem:[#allocation2 + $0xf8] sm:$0xff] %v2336_v8  ;;  %v2335_v12 = vmax.f32 %v2137_v10, 0.0  ;;  %v2152_v13 = vadd.f32 %v13579_v11, %v16344_v45 }
 0x32d   : > { %v2146_v14 = vpop.f32.mrf.mxu0 }
 0x32e   : > { %2399 = vst [vmem:[#allocation2 + $0xf0] sm:$0xff] %v2335_v12  ;;  %v2338_v16 = vmax.f32 %v2152_v13, 0.0  ;;  %v2147_v17 = vadd.f32 %v16344_v45, %v2146_v14 }
 0x32f   : > { %v13582_v18 = vpop.f32.mrf.mxu0 }
 0x330   : > { %2402 = vst [vmem:[#allocation2 + $0x108] sm:$0xff] %v2338_v16  ;;  %v2337_v19 = vmax.f32 %v2147_v17, 0.0  ;;  %v2162_v20 = vadd.f32 %v13582_v18, %v16344_v45 }
 0x331   : > { %v2156_v21 = vpop.f32.mrf.mxu0 }
 0x332   : > { %2401 = vst [vmem:[#allocation2 + $0x100] sm:$0xff] %v2337_v19  ;;  %v2340_v22 = vmax.f32 %v2162_v20, 0.0  ;;  %v2157_v24 = vadd.f32 %v16344_v45, %v2156_v21 }
 0x333   : > { %v13585_v25 = vpop.f32.mrf.mxu0 }
 0x334   : > { %2404 = vst [vmem:[#allocation2 + $0x118] sm:$0xff] %v2340_v22  ;;  %v2339_v26 = vmax.f32 %v2157_v24, 0.0  ;;  %v2172_v33 = vadd.f32 %v13585_v25, %v16344_v45 }
 0x335   : > { %v2166_v27 = vpop.f32.mrf.mxu0 }
 0x336   : > { %2403 = vst [vmem:[#allocation2 + $0x110] sm:$0xff] %v2339_v26  ;;  %v2342_v28 = vmax.f32 %v2172_v33, 0.0  ;;  %v2167_v30 = vadd.f32 %v16344_v45, %v2166_v27 }
 0x337   : > { %v13588_v32 = vpop.f32.mrf.mxu0 }
 0x338   : > { %2406 = vst [vmem:[#allocation2 + $0x128] sm:$0xff] %v2342_v28  ;;  %v2341_v43 = vmax.f32 %v2167_v30, 0.0  ;;  %v2182_v34 = vadd.f32 %v13588_v32, %v16344_v45 }
 0x339   : > { %v2176_v29 = vpop.f32.mrf.mxu0 }
 0x33a   : > { %2405 = vst [vmem:[#allocation2 + $0x120] sm:$0xff] %v2341_v43  ;;  %v2344_v35 = vmax.f32 %v2182_v34, 0.0  ;;  %v2177_v36 = vadd.f32 %v16344_v45, %v2176_v29 }
 0x33b   : > { %v13591_v37 = vpop.f32.mrf.mxu0 }
 0x33c   : > { %2408 = vst [vmem:[#allocation2 + $0x138] sm:$0xff] %v2344_v35  ;;  %v2343_v38 = vmax.f32 %v2177_v36, 0.0  ;;  %v2192_v53 = vadd.f32 %v13591_v37, %v16344_v45 }
 0x33d   : > { %v2186_v41 = vpop.f32.mrf.mxu0 }
 0x33e   : > { %2407 = vst [vmem:[#allocation2 + $0x130] sm:$0xff] %v2343_v38  ;;  %v2346_v42 = vmax.f32 %v2192_v53, 0.0  ;;  %v2187_v44 = vadd.f32 %v16344_v45, %v2186_v41 }
 0x33f   : > { %v13594_v49 = vpop.f32.mrf.mxu0 }
 0x340   : > { %2410 = vst [vmem:[#allocation2 + $0x148] sm:$0xff] %v2346_v42  ;;  %v2345_v63 = vmax.f32 %v2187_v44, 0.0  ;;  %v2202_v46 = vadd.f32 %v13594_v49, %v16344_v45 }
 0x341   : > { %v2196_v9 = vpop.f32.mrf.mxu0 }
 0x342   : > { %2409 = vst [vmem:[#allocation2 + $0x140] sm:$0xff] %v2345_v63  ;;  %v2348_v15 = vmax.f32 %v2202_v46, 0.0  ;;  %v2197_v47 = vadd.f32 %v16344_v45, %v2196_v9 }
 0x343   : > { %v13597_v39 = vpop.f32.mrf.mxu0 }
 0x344   : > { %2412 = vst [vmem:[#allocation2 + $0x158] sm:$0xff] %v2348_v15  ;;  %v2347_v50 = vmax.f32 %v2197_v47, 0.0  ;;  %v2212_v59 = vadd.f32 %v13597_v39, %v16344_v45 }
 0x345   : > { %v2206_v51 = vpop.f32.mrf.mxu0 }
 0x346   : > { %2411 = vst [vmem:[#allocation2 + $0x150] sm:$0xff] %v2347_v50  ;;  %v2350_v52 = vmax.f32 %v2212_v59, 0.0  ;;  %v2207_v54 = vadd.f32 %v16344_v45, %v2206_v51 }
 0x347   : > { %v13600_v31 = vpop.f32.mrf.mxu0 }
 0x348   : > { %2414 = vst [vmem:[#allocation2 + $0x168] sm:$0xff] %v2350_v52  ;;  %v2349_v5 = vmax.f32 %v2207_v54, 0.0  ;;  %v2222_v55 = vadd.f32 %v13600_v31, %v16344_v45 }
 0x349   : > { %v2216_v56 = vpop.f32.mrf.mxu0 }
 0x34a   : > { %2413 = vst [vmem:[#allocation2 + $0x160] sm:$0xff] %v2349_v5  ;;  %v2352_v58 = vmax.f32 %v2222_v55, 0.0  ;;  %v2217_v48 = vadd.f32 %v16344_v45, %v2216_v56 }
 0x34b   : > { %v13603_v23 = vpop.f32.mrf.mxu0 }
 0x34c   : > { %2416 = vst [vmem:[#allocation2 + $0x178] sm:$0xff] %v2352_v58  ;;  %v2351_v60 = vmax.f32 %v2217_v48, 0.0  ;;  %v2232_v61 = vadd.f32 %v13603_v23, %v16344_v45 }
 0x34d   : > { %v2226_v62 = vpop.f32.mrf.mxu0 }
 0x34e   : > { %2415 = vst [vmem:[#allocation2 + $0x170] sm:$0xff] %v2351_v60  ;;  %v2354_v0 = vmax.f32 %v2232_v61, 0.0  ;;  %v2227_v40 = vadd.f32 %v16344_v45, %v2226_v62 }
 0x34f   : > { %v13606_v1 = vpop.f32.mrf.mxu0 }
 0x350   : > { %2418 = vst [vmem:[#allocation2 + $0x188] sm:$0xff] %v2354_v0  ;;  %v2353_v2 = vmax.f32 %v2227_v40, 0.0  ;;  %v2242_v3 = vadd.f32 %v13606_v1, %v16344_v45 }
 0x351   : > { %v2236_v4 = vpop.f32.mrf.mxu0 }
 0x352   : > { %2417 = vst [vmem:[#allocation2 + $0x180] sm:$0xff] %v2353_v2  ;;  %v2356_v57 = vmax.f32 %v2242_v3, 0.0  ;;  %v2237_v6 = vadd.f32 %v16344_v45, %v2236_v4 }
 0x353   : > { %v13609_v7 = vpop.f32.mrf.mxu0 }
 0x354   : > { %2420 = vst [vmem:[#allocation2 + $0x198] sm:$0xff] %v2356_v57  ;;  %v2355_v8 = vmax.f32 %v2237_v6, 0.0  ;;  %v2252_v10 = vadd.f32 %v13609_v7, %v16344_v45 }
 0x355   : > { %v2246_v11 = vpop.f32.mrf.mxu0 }
 0x356   : > { %2419 = vst [vmem:[#allocation2 + $0x190] sm:$0xff] %v2355_v8  ;;  %v2358_v12 = vmax.f32 %v2252_v10, 0.0  ;;  %v2247_v13 = vadd.f32 %v16344_v45, %v2246_v11 }
 0x357   : > { %v13612_v14 = vpop.f32.mrf.mxu0 }
 0x358   : > { %2422 = vst [vmem:[#allocation2 + $0x1a8] sm:$0xff] %v2358_v12  ;;  %v2357_v16 = vmax.f32 %v2247_v13, 0.0  ;;  %v2262_v17 = vadd.f32 %v13612_v14, %v16344_v45 }
 0x359   : > { %v2256_v18 = vpop.f32.mrf.mxu0 }
 0x35a   : > { %2421 = vst [vmem:[#allocation2 + $0x1a0] sm:$0xff] %v2357_v16  ;;  %v2360_v19 = vmax.f32 %v2262_v17, 0.0  ;;  %v2257_v20 = vadd.f32 %v16344_v45, %v2256_v18 }
 0x35b   : > { %v13615_v21 = vpop.f32.mrf.mxu0 }
 0x35c   : > { %2424 = vst [vmem:[#allocation2 + $0x1b8] sm:$0xff] %v2360_v19  ;;  %v2359_v22 = vmax.f32 %v2257_v20, 0.0  ;;  %v2272_v24 = vadd.f32 %v13615_v21, %v16344_v45 }
 0x35d   : > { %v2266_v25 = vpop.f32.mrf.mxu0 }
 0x35e   : > { %2423 = vst [vmem:[#allocation2 + $0x1b0] sm:$0xff] %v2359_v22  ;;  %v2362_v26 = vmax.f32 %v2272_v24, 0.0  ;;  %v2267_v33 = vadd.f32 %v16344_v45, %v2266_v25 }
 0x35f   : > { %v13618_v27 = vpop.f32.mrf.mxu0 }
 0x360   : > { %2426 = vst [vmem:[#allocation2 + $0x1c8] sm:$0xff] %v2362_v26  ;;  %v2361_v28 = vmax.f32 %v2267_v33, 0.0  ;;  %v2282_v30 = vadd.f32 %v13618_v27, %v16344_v45 }
 0x361   : > { %v2276_v32 = vpop.f32.mrf.mxu0 }
 0x362   : > { %2425 = vst [vmem:[#allocation2 + $0x1c0] sm:$0xff] %v2361_v28  ;;  %v2364_v43 = vmax.f32 %v2282_v30, 0.0  ;;  %v2277_v34 = vadd.f32 %v16344_v45, %v2276_v32 }
 0x363   : > { %v13621_v29 = vpop.f32.mrf.mxu0 }
 0x364   : > { %2428 = vst [vmem:[#allocation2 + $0x1d8] sm:$0xff] %v2364_v43  ;;  %v2363_v35 = vmax.f32 %v2277_v34, 0.0  ;;  %v2292_v36 = vadd.f32 %v13621_v29, %v16344_v45 }
 0x365   : > { %v2286_v37 = vpop.f32.mrf.mxu0 }
 0x366   : > { %2427 = vst [vmem:[#allocation2 + $0x1d0] sm:$0xff] %v2363_v35  ;;  %v2366_v38 = vmax.f32 %v2292_v36, 0.0  ;;  %v2287_v53 = vadd.f32 %v16344_v45, %v2286_v37 }
 0x367   : > { %v13624_v41 = vpop.f32.mrf.mxu0 }
 0x368   : > { %2430 = vst [vmem:[#allocation2 + $0x1e8] sm:$0xff] %v2366_v38  ;;  %v2365_v42 = vmax.f32 %v2287_v53, 0.0  ;;  %v2302_v44 = vadd.f32 %v13624_v41, %v16344_v45 }
 0x369   : > { %v2296_v49 = vpop.f32.mrf.mxu0 }
 0x36a   : > { %2429 = vst [vmem:[#allocation2 + $0x1e0] sm:$0xff] %v2365_v42  ;;  %v2368_v63 = vmax.f32 %v2302_v44, 0.0  ;;  %v2297_v46 = vadd.f32 %v16344_v45, %v2296_v49 }
 0x36c   : > { %2432 = vst [vmem:[#allocation2 + $0x1f8] sm:$0xff] %v2368_v63  ;;  %v2367_v9 = vmax.f32 %v2297_v46, 0.0 }
 0x36e   : > { %2431 = vst [vmem:[#allocation2 + $0x1f0] sm:$0xff] %v2367_v9 }
 0x36f PF: > { %v13759_v15 = vld [vmem:[%s15827_s12 + $0xe4] ss:$16 sps:$4 sm:$0xff]   ;;  %v13761_v47 = vld [vmem:[%s15827_s12 + $0xec] ss:$16 sps:$4 sm:$0xff]   ;;  %v15590_v39 = vmov 0   ;;  %s12999_s20 = sshll.u32 %s15567_s16, 8 }
 0x370   : > { %3720 = vmatprep.mubr.bf16.mxu0 %v15590_v39  ;;  %3761 = vmatprep.mubr.bf16.mxu1 %v15590_v39  ;;  %v13763_v45 = vld [vmem:[%s15827_s12 + $0xe0] ss:$16 sps:$4 sm:$0xff]   ;;  %v13764_v50 = vld [vmem:[%s15827_s12 + $0xe8] ss:$16 sps:$4 sm:$0xff]   ;;  %v13765_v59 = vld [vmem:[%s15827_s12 + $0xc4] ss:$16 sps:$4 sm:$0xff]  }
 0x371   : > { %3688 = vmatprep.subr.bf16.mxu0 %v13759_v15  ;;  %3729 = vmatprep.subr.bf16.mxu1 %v13761_v47  ;;  %v13767_v51 = vld [vmem:[%s15827_s12 + $0xcc] ss:$16 sps:$4 sm:$0xff]   ;;  %v13769_v52 = vld [vmem:[%s15827_s12 + $0xc0] ss:$16 sps:$4 sm:$0xff]   ;;  %v13770_v54 = vld [vmem:[%s15827_s12 + $0xc8] ss:$16 sps:$4 sm:$0xff]  }
 0x372   : > { %3689 = vmatpush1.bf16.msra.mxu0 %v13763_v45  ;;  %3730 = vmatpush1.bf16.msra.mxu1 %v13764_v50  ;;  %v13771_v31 = vld [vmem:[%s15827_s12 + $0xa4] ss:$16 sps:$4 sm:$0xff]   ;;  %v13773_v5 = vld [vmem:[%s15827_s12 + $0xac] ss:$16 sps:$4 sm:$0xff]   ;;  %v13775_v55 = vld [vmem:[%s15827_s12 + $0xa0] ss:$16 sps:$4 sm:$0xff]  }
 0x373   : > { %3690 = vmatprep.subr.bf16.mxu0 %v13765_v59  ;;  %3731 = vmatprep.subr.bf16.mxu1 %v13767_v51  ;;  %v13776_v56 = vld [vmem:[%s15827_s12 + $0xa8] ss:$16 sps:$4 sm:$0xff]   ;;  %v13777_v58 = vld [vmem:[%s15827_s12 + $0x84] ss:$16 sps:$4 sm:$0xff]   ;;  %v13779_v48 = vld [vmem:[%s15827_s12 + $0x8c] ss:$16 sps:$4 sm:$0xff]  }
 0x374   : > { %v13781_v23 = vld [vmem:[%s15827_s12 + $0x80] ss:$16 sps:$4 sm:$0xff]   ;;  %v13782_v60 = vld [vmem:[%s15827_s12 + $0x88] ss:$16 sps:$4 sm:$0xff]   ;;  %v13783_v61 = vld [vmem:[%s15827_s12 + $0x64] ss:$16 sps:$4 sm:$0xff]  }
 0x375   : > { %v13785_v62 = vld [vmem:[%s15827_s12 + $0x6c] ss:$16 sps:$4 sm:$0xff]   ;;  %v13787_v0 = vld [vmem:[%s15827_s12 + $0x60] ss:$16 sps:$4 sm:$0xff]   ;;  %v13788_v40 = vld [vmem:[%s15827_s12 + $0x68] ss:$16 sps:$4 sm:$0xff]  }
 0x376   : > { %3691 = vmatpush1.bf16.msra.mxu0 %v13769_v52  ;;  %3732 = vmatpush1.bf16.msra.mxu1 %v13770_v54  ;;  %v13789_v1 = vld [vmem:[%s15827_s12 + $0x44] ss:$16 sps:$4 sm:$0xff]   ;;  %v13791_v2 = vld [vmem:[%s15827_s12 + $0x4c] ss:$16 sps:$4 sm:$0xff]   ;;  %v13793_v3 = vld [vmem:[%s15827_s12 + $0x40] ss:$16 sps:$4 sm:$0xff]  }
 0x377   : > { %3692 = vmatprep.subr.bf16.mxu0 %v13771_v31  ;;  %3733 = vmatprep.subr.bf16.mxu1 %v13773_v5  ;;  %v13794_v4 = vld [vmem:[%s15827_s12 + $0x48] ss:$16 sps:$4 sm:$0xff]   ;;  %v13795_v57 = vld [vmem:[%s15827_s12 + $0x24] ss:$16 sps:$4 sm:$0xff]   ;;  %v13797_v6 = vld [vmem:[%s15827_s12 + $0x2c] ss:$16 sps:$4 sm:$0xff]  }
 0x378   : > { %v13799_v7 = vld [vmem:[%s15827_s12 + $0x20] ss:$16 sps:$4 sm:$0xff]   ;;  %v13800_v8 = vld [vmem:[%s15827_s12 + $0x28] ss:$16 sps:$4 sm:$0xff]   ;;  %v13801_v10 = vld [vmem:[%s15827_s12 + $0x4] ss:$16 sps:$4 sm:$0xff]  }
 0x379   : > { %v13803_v11 = vld [vmem:[%s15827_s12 + $0xc] ss:$16 sps:$4 sm:$0xff]   ;;  %v13805_v12 = vld [vmem:[%s15827_s12] ss:$16 sps:$4 sm:$0xff]   ;;  %v13806_v13 = vld [vmem:[%s15827_s12 + $0x8] ss:$16 sps:$4 sm:$0xff]  }
 0x37a   : > { %3693 = vmatpush1.bf16.msra.mxu0 %v13775_v55  ;;  %3734 = vmatpush1.bf16.msra.mxu1 %v13776_v56  ;;  %s16445_s21 = scalar_lea.vmem [#allocation2], %s12999_s20  ;;  %v13809_v16 = vld [vmem:[%s15827_s12 + $0x1e4] ss:$16 sps:$4 sm:$0xff]   ;;  %v13812_v17 = vld [vmem:[%s15827_s12 + $0x1ec] ss:$16 sps:$4 sm:$0xff]   ;;  %p12993_p3 = scmp.ne.s32.totalorder %s15567_s16, 1 }
 0x37b   : > { %3694 = vmatprep.subr.bf16.mxu0 %v13777_v58  ;;  %3735 = vmatprep.subr.bf16.mxu1 %v13779_v48  ;;  %v2440_v14 = vld [vmem:[%s16445_s21] sm:$0xff]  ;;  %v13807_v19 = vld [vmem:[%s15827_s12 + $0x1e0] ss:$16 sps:$4 sm:$0xff]  }
 0x37c   : > { %v2472_v18 = vpack.c.bf16 %v2440_v14, %v2440_v14  ;;  %v13810_v20 = vld [vmem:[%s15827_s12 + $0x1e8] ss:$16 sps:$4 sm:$0xff]   ;;  %v13815_v21 = vld [vmem:[%s15827_s12 + $0x1c4] ss:$16 sps:$4 sm:$0xff]   ;;  %v13818_v22 = vld [vmem:[%s15827_s12 + $0x1cc] ss:$16 sps:$4 sm:$0xff]  }
 0x37d   : > { %v13813_v24 = vld [vmem:[%s15827_s12 + $0x1c0] ss:$16 sps:$4 sm:$0xff]   ;;  %v13816_v25 = vld [vmem:[%s15827_s12 + $0x1c8] ss:$16 sps:$4 sm:$0xff]   ;;  %v13821_v26 = vld [vmem:[%s15827_s12 + $0x1a4] ss:$16 sps:$4 sm:$0xff]  }
 0x37e   : > { %3695 = vmatpush1.bf16.msra.mxu0 %v13781_v23  ;;  %3736 = vmatpush1.bf16.msra.mxu1 %v13782_v60  ;;  %v13824_v33 = vld [vmem:[%s15827_s12 + $0x1ac] ss:$16 sps:$4 sm:$0xff]   ;;  %v13819_v27 = vld [vmem:[%s15827_s12 + $0x1a0] ss:$16 sps:$4 sm:$0xff]   ;;  %v13822_v28 = vld [vmem:[%s15827_s12 + $0x1a8] ss:$16 sps:$4 sm:$0xff]  }
 0x37f   : > { %3696 = vmatprep.subr.bf16.mxu0 %v13783_v61  ;;  %3737 = vmatprep.subr.bf16.mxu1 %v13785_v62  ;;  %v13827_v30 = vld [vmem:[%s15827_s12 + $0x184] ss:$16 sps:$4 sm:$0xff]   ;;  %v13830_v32 = vld [vmem:[%s15827_s12 + $0x18c] ss:$16 sps:$4 sm:$0xff]   ;;  %v13825_v43 = vld [vmem:[%s15827_s12 + $0x180] ss:$16 sps:$4 sm:$0xff]  }
 0x380   : > { %v13828_v34 = vld [vmem:[%s15827_s12 + $0x188] ss:$16 sps:$4 sm:$0xff]   ;;  %v13833_v29 = vld [vmem:[%s15827_s12 + $0x164] ss:$16 sps:$4 sm:$0xff]   ;;  %v13836_v35 = vld [vmem:[%s15827_s12 + $0x16c] ss:$16 sps:$4 sm:$0xff]  }
 0x381   : > { %v13831_v36 = vld [vmem:[%s15827_s12 + $0x160] ss:$16 sps:$4 sm:$0xff]   ;;  %v13834_v37 = vld [vmem:[%s15827_s12 + $0x168] ss:$16 sps:$4 sm:$0xff]   ;;  %v13839_v38 = vld [vmem:[%s15827_s12 + $0x144] ss:$16 sps:$4 sm:$0xff]  }
 0x382   : > { %3697 = vmatpush1.bf16.msra.mxu0 %v13787_v0  ;;  %3738 = vmatpush1.bf16.msra.mxu1 %v13788_v40  ;;  %v13842_v53 = vld [vmem:[%s15827_s12 + $0x14c] ss:$16 sps:$4 sm:$0xff]   ;;  %v13837_v41 = vld [vmem:[%s15827_s12 + $0x140] ss:$16 sps:$4 sm:$0xff]   ;;  %v13840_v42 = vld [vmem:[%s15827_s12 + $0x148] ss:$16 sps:$4 sm:$0xff]  }
 0x383   : > { %3698 = vmatprep.subr.bf16.mxu0 %v13789_v1  ;;  %3739 = vmatprep.subr.bf16.mxu1 %v13791_v2  ;;  %v13845_v44 = vld [vmem:[%s15827_s12 + $0x124] ss:$16 sps:$4 sm:$0xff]   ;;  %v13848_v49 = vld [vmem:[%s15827_s12 + $0x12c] ss:$16 sps:$4 sm:$0xff]   ;;  %v13843_v63 = vld [vmem:[%s15827_s12 + $0x120] ss:$16 sps:$4 sm:$0xff]  }
 0x384   : > { %v13846_v46 = vld [vmem:[%s15827_s12 + $0x128] ss:$16 sps:$4 sm:$0xff]   ;;  %v13851_v9 = vld [vmem:[%s15827_s12 + $0x104] ss:$16 sps:$4 sm:$0xff]   ;;  %v13854_v15 = vld [vmem:[%s15827_s12 + $0x10c] ss:$16 sps:$4 sm:$0xff]  }
 0x385   : > { %v13849_v47 = vld [vmem:[%s15827_s12 + $0x100] ss:$16 sps:$4 sm:$0xff]   ;;  %v13852_v45 = vld [vmem:[%s15827_s12 + $0x108] ss:$16 sps:$4 sm:$0xff]   ;;  %v13857_v59 = vld [vmem:[%s15827_s12 + $0x2e4] ss:$16 sps:$4 sm:$0xff]  }
 0x386   : > { %3699 = vmatpush1.bf16.msra.mxu0 %v13793_v3  ;;  %3740 = vmatpush1.bf16.msra.mxu1 %v13794_v4  ;;  %v2441_v50 = vld [vmem:[%s16445_s21 + $0x8] sm:$0xff]  ;;  %v13858_v31 = vld [vmem:[%s15827_s12 + $0x2e8] ss:$16 sps:$4 sm:$0xff]  }
 0x387   : > { %3700 = vmatprep.subr.bf16.mxu0 %v13795_v57  ;;  %3741 = vmatprep.subr.bf16.mxu1 %v13797_v6  ;;  %v13860_v51 = vld [vmem:[%s15827_s12 + $0x2ec] ss:$16 sps:$4 sm:$0xff]   ;;  %v2473_v52 = vpack.c.bf16 %v2441_v50, %v2441_v50  ;;  %v13855_v54 = vld [vmem:[%s15827_s12 + $0x2e0] ss:$16 sps:$4 sm:$0xff]   ;;  %v13863_v5 = vld [vmem:[%s15827_s12 + $0x2c4] ss:$16 sps:$4 sm:$0xff]  }
 0x388   : > { %v13866_v55 = vld [vmem:[%s15827_s12 + $0x2cc] ss:$16 sps:$4 sm:$0xff]   ;;  %v13861_v56 = vld [vmem:[%s15827_s12 + $0x2c0] ss:$16 sps:$4 sm:$0xff]   ;;  %v13864_v58 = vld [vmem:[%s15827_s12 + $0x2c8] ss:$16 sps:$4 sm:$0xff]  }
 0x389   : > { %v13869_v48 = vld [vmem:[%s15827_s12 + $0x2a4] ss:$16 sps:$4 sm:$0xff]   ;;  %v13872_v23 = vld [vmem:[%s15827_s12 + $0x2ac] ss:$16 sps:$4 sm:$0xff]   ;;  %v13867_v60 = vld [vmem:[%s15827_s12 + $0x2a0] ss:$16 sps:$4 sm:$0xff]  }
 0x38a   : > { %3701 = vmatpush1.bf16.msra.mxu0 %v13799_v7  ;;  %3742 = vmatpush1.bf16.msra.mxu1 %v13800_v8  ;;  %v13870_v61 = vld [vmem:[%s15827_s12 + $0x2a8] ss:$16 sps:$4 sm:$0xff]   ;;  %v13875_v62 = vld [vmem:[%s15827_s12 + $0x284] ss:$16 sps:$4 sm:$0xff]   ;;  %v13878_v0 = vld [vmem:[%s15827_s12 + $0x28c] ss:$16 sps:$4 sm:$0xff]  }
 0x38b   : > { %3702 = vmatprep.subr.bf16.mxu0 %v13801_v10  ;;  %3743 = vmatprep.subr.bf16.mxu1 %v13803_v11  ;;  %v13873_v40 = vld [vmem:[%s15827_s12 + $0x280] ss:$16 sps:$4 sm:$0xff]   ;;  %v13876_v1 = vld [vmem:[%s15827_s12 + $0x288] ss:$16 sps:$4 sm:$0xff]   ;;  %v13881_v2 = vld [vmem:[%s15827_s12 + $0x264] ss:$16 sps:$4 sm:$0xff]  }
 0x38c   : > { %v13884_v3 = vld [vmem:[%s15827_s12 + $0x26c] ss:$16 sps:$4 sm:$0xff]   ;;  %v13879_v4 = vld [vmem:[%s15827_s12 + $0x260] ss:$16 sps:$4 sm:$0xff]   ;;  %v13882_v57 = vld [vmem:[%s15827_s12 + $0x268] ss:$16 sps:$4 sm:$0xff]  }
 0x38d   : > { %v13887_v6 = vld [vmem:[%s15827_s12 + $0x244] ss:$16 sps:$4 sm:$0xff]   ;;  %v13890_v7 = vld [vmem:[%s15827_s12 + $0x24c] ss:$16 sps:$4 sm:$0xff]   ;;  %v13885_v8 = vld [vmem:[%s15827_s12 + $0x240] ss:$16 sps:$4 sm:$0xff]  }
 0x38e   : > { %3703 = vmatpush1.bf16.msra.mxu0 %v13805_v12  ;;  %3744 = vmatpush1.bf16.msra.mxu1 %v13806_v13  ;;  %v13888_v10 = vld [vmem:[%s15827_s12 + $0x248] ss:$16 sps:$4 sm:$0xff]   ;;  %v13893_v11 = vld [vmem:[%s15827_s12 + $0x224] ss:$16 sps:$4 sm:$0xff]   ;;  %v13896_v12 = vld [vmem:[%s15827_s12 + $0x22c] ss:$16 sps:$4 sm:$0xff]  }
 0x38f   : > { %3930 = vmatprep.subr.bf16.mxu0 %v13809_v16  ;;  %3971 = vmatprep.subr.bf16.mxu1 %v13812_v17  ;;  %v13891_v13 = vld [vmem:[%s15827_s12 + $0x220] ss:$16 sps:$4 sm:$0xff]   ;;  %v13894_v14 = vld [vmem:[%s15827_s12 + $0x228] ss:$16 sps:$4 sm:$0xff]   ;;  %v13899_v16 = vld [vmem:[%s15827_s12 + $0x204] ss:$16 sps:$4 sm:$0xff]  }
 0x390   : > { %v13902_v17 = vld [vmem:[%s15827_s12 + $0x20c] ss:$16 sps:$4 sm:$0xff]   ;;  %v13942_v50 = vld [vmem:[%s15827_s12 + $0x328] ss:$16 sps:$4 sm:$0xff]  }
 0x391   : > { %3721 = vmatmul.mubr.bf16.vlgmr.msra.gmra.mxu0 %v2472_v18  ;;  %3762 = vmatmul.mubr.bf16.vlgmr.msra.gmra.mxu1 %v2472_v18  ;;  %v13897_v18 = vld [vmem:[%s15827_s12 + $0x200] ss:$16 sps:$4 sm:$0xff]  }
 0x392   : > { %3931 = vmatpush1.bf16.msra.mxu0 %v13807_v19  ;;  %3972 = vmatpush1.bf16.msra.mxu1 %v13810_v20  ;;  %v13900_v19 = vld [vmem:[%s15827_s12 + $0x208] ss:$16 sps:$4 sm:$0xff]  }
 0x393   : > { %3932 = vmatprep.subr.bf16.mxu0 %v13815_v21  ;;  %3973 = vmatprep.subr.bf16.mxu1 %v13818_v22  ;;  %v2442_v20 = vld [vmem:[%s16445_s21 + $0x10] sm:$0xff] }
 0x394   : > { %3962 = vmatprep.mubr.bf16.mxu0 %v15590_v39  ;;  %4003 = vmatprep.mubr.bf16.mxu1 %v15590_v39  ;;  %v13905_v21 = vld [vmem:[%s15827_s12 + $0x3e4] ss:$16 sps:$4 sm:$0xff]   ;;  %v13908_v22 = vld [vmem:[%s15827_s12 + $0x3ec] ss:$16 sps:$4 sm:$0xff]  }
 0x396   : > { %3933 = vmatpush1.bf16.msra.mxu0 %v13813_v24  ;;  %3974 = vmatpush1.bf16.msra.mxu1 %v13816_v25  ;;  %v2474_v24 = vpack.c.bf16 %v2442_v20, %v2442_v20  ;;  %v13903_v25 = vld [vmem:[%s15827_s12 + $0x3e0] ss:$16 sps:$4 sm:$0xff]   ;;  %v13990_v20 = vld [vmem:[%s15827_s12 + $0x428] ss:$16 sps:$4 sm:$0xff]  }
 0x397   : > { %3934 = vmatprep.subr.bf16.mxu0 %v13821_v26  ;;  %3975 = vmatprep.subr.bf16.mxu1 %v13824_v33  ;;  %v13906_v26 = vld [vmem:[%s15827_s12 + $0x3e8] ss:$16 sps:$4 sm:$0xff]   ;;  %v13911_v33 = vld [vmem:[%s15827_s12 + $0x3c4] ss:$16 sps:$4 sm:$0xff]  }
 0x39a   : > { %3935 = vmatpush1.bf16.msra.mxu0 %v13819_v27  ;;  %3976 = vmatpush1.bf16.msra.mxu1 %v13822_v28  ;;  %v13914_v27 = vld [vmem:[%s15827_s12 + $0x3cc] ss:$16 sps:$4 sm:$0xff]   ;;  %v13909_v28 = vld [vmem:[%s15827_s12 + $0x3c0] ss:$16 sps:$4 sm:$0xff]  }
 0x39b   : > { %3936 = vmatprep.subr.bf16.mxu0 %v13827_v30  ;;  %3977 = vmatprep.subr.bf16.mxu1 %v13830_v32  ;;  %v13912_v30 = vld [vmem:[%s15827_s12 + $0x3c8] ss:$16 sps:$4 sm:$0xff]   ;;  %v13917_v32 = vld [vmem:[%s15827_s12 + $0x3a4] ss:$16 sps:$4 sm:$0xff]  }
 0x39e   : > { %3937 = vmatpush1.bf16.msra.mxu0 %v13825_v43  ;;  %3978 = vmatpush1.bf16.msra.mxu1 %v13828_v34  ;;  %v13920_v43 = vld [vmem:[%s15827_s12 + $0x3ac] ss:$16 sps:$4 sm:$0xff]   ;;  %v13915_v34 = vld [vmem:[%s15827_s12 + $0x3a0] ss:$16 sps:$4 sm:$0xff]  }
 0x39f   : > { %3938 = vmatprep.subr.bf16.mxu0 %v13833_v29  ;;  %3979 = vmatprep.subr.bf16.mxu1 %v13836_v35  ;;  %v13918_v29 = vld [vmem:[%s15827_s12 + $0x3a8] ss:$16 sps:$4 sm:$0xff]   ;;  %v13923_v35 = vld [vmem:[%s15827_s12 + $0x384] ss:$16 sps:$4 sm:$0xff]  }
 0x3a2   : > { %3939 = vmatpush1.bf16.msra.mxu0 %v13831_v36  ;;  %3980 = vmatpush1.bf16.msra.mxu1 %v13834_v37  ;;  %v13926_v36 = vld [vmem:[%s15827_s12 + $0x38c] ss:$16 sps:$4 sm:$0xff]   ;;  %v13921_v37 = vld [vmem:[%s15827_s12 + $0x380] ss:$16 sps:$4 sm:$0xff]  }
 0x3a3   : > { %3940 = vmatprep.subr.bf16.mxu0 %v13839_v38  ;;  %3981 = vmatprep.subr.bf16.mxu1 %v13842_v53  ;;  %v13924_v38 = vld [vmem:[%s15827_s12 + $0x388] ss:$16 sps:$4 sm:$0xff]   ;;  %v13929_v53 = vld [vmem:[%s15827_s12 + $0x364] ss:$16 sps:$4 sm:$0xff]  }
 0x3a6   : > { %3941 = vmatpush1.bf16.msra.mxu0 %v13837_v41  ;;  %3982 = vmatpush1.bf16.msra.mxu1 %v13840_v42  ;;  %v13932_v41 = vld [vmem:[%s15827_s12 + $0x36c] ss:$16 sps:$4 sm:$0xff]   ;;  %v13927_v42 = vld [vmem:[%s15827_s12 + $0x360] ss:$16 sps:$4 sm:$0xff]  }
 0x3a7   : > { %3942 = vmatprep.subr.bf16.mxu0 %v13845_v44  ;;  %3983 = vmatprep.subr.bf16.mxu1 %v13848_v49  ;;  %v13930_v44 = vld [vmem:[%s15827_s12 + $0x368] ss:$16 sps:$4 sm:$0xff]   ;;  %v13935_v49 = vld [vmem:[%s15827_s12 + $0x344] ss:$16 sps:$4 sm:$0xff]  }
 0x3aa   : > { %3943 = vmatpush1.bf16.msra.mxu0 %v13843_v63  ;;  %3984 = vmatpush1.bf16.msra.mxu1 %v13846_v46  ;;  %v13938_v63 = vld [vmem:[%s15827_s12 + $0x34c] ss:$16 sps:$4 sm:$0xff]   ;;  %v13933_v46 = vld [vmem:[%s15827_s12 + $0x340] ss:$16 sps:$4 sm:$0xff]  }
 0x3ab   : > { %3944 = vmatprep.subr.bf16.mxu0 %v13851_v9  ;;  %3985 = vmatprep.subr.bf16.mxu1 %v13854_v15  ;;  %v13936_v9 = vld [vmem:[%s15827_s12 + $0x348] ss:$16 sps:$4 sm:$0xff]   ;;  %v13941_v15 = vld [vmem:[%s15827_s12 + $0x324] ss:$16 sps:$4 sm:$0xff]  }
 0x3ae   : > { %3945 = vmatpush1.bf16.msra.mxu0 %v13849_v47  ;;  %3986 = vmatpush1.bf16.msra.mxu1 %v13852_v45  ;;  %v13944_v47 = vld [vmem:[%s15827_s12 + $0x32c] ss:$16 sps:$4 sm:$0xff]   ;;  %v13939_v45 = vld [vmem:[%s15827_s12 + $0x320] ss:$16 sps:$4 sm:$0xff]  }
 0x3af   : > { %4172 = vmatprep.subr.bf16.mxu0 %v13857_v59  ;;  %4213 = vmatprep.subr.bf16.mxu1 %v13860_v51  ;;  %v13947_v59 = vld [vmem:[%s15827_s12 + $0x304] ss:$16 sps:$4 sm:$0xff]   ;;  %v13950_v51 = vld [vmem:[%s15827_s12 + $0x30c] ss:$16 sps:$4 sm:$0xff]  }
 0x3b1   : > { %3963 = vmatmul.mubr.bf16.vlgmr.msra.gmra.mxu0 %v2473_v52  ;;  %4004 = vmatmul.mubr.bf16.vlgmr.msra.gmra.mxu1 %v2473_v52  ;;  %v13945_v52 = vld [vmem:[%s15827_s12 + $0x300] ss:$16 sps:$4 sm:$0xff]  }
 0x3b2   : > { %4173 = vmatpush1.bf16.msra.mxu0 %v13855_v54  ;;  %4214 = vmatpush1.bf16.msra.mxu1 %v13858_v31  ;;  %v13948_v54 = vld [vmem:[%s15827_s12 + $0x308] ss:$16 sps:$4 sm:$0xff]   ;;  %v2443_v31 = vld [vmem:[%s16445_s21 + $0x18] sm:$0xff] }
 0x3b3   : > { %4174 = vmatprep.subr.bf16.mxu0 %v13863_v5  ;;  %4215 = vmatprep.subr.bf16.mxu1 %v13866_v55  ;;  %v13953_v5 = vld [vmem:[%s15827_s12 + $0x4e4] ss:$16 sps:$4 sm:$0xff]   ;;  %v13956_v55 = vld [vmem:[%s15827_s12 + $0x4ec] ss:$16 sps:$4 sm:$0xff]  }
 0x3b4   : > { %4204 = vmatprep.mubr.bf16.mxu0 %v15590_v39  ;;  %4245 = vmatprep.mubr.bf16.mxu1 %v15590_v39 }
 0x3b6   : > { %4175 = vmatpush1.bf16.msra.mxu0 %v13861_v56  ;;  %4216 = vmatpush1.bf16.msra.mxu1 %v13864_v58  ;;  %v2475_v56 = vpack.c.bf16 %v2443_v31, %v2443_v31  ;;  %v13951_v58 = vld [vmem:[%s15827_s12 + $0x4e0] ss:$16 sps:$4 sm:$0xff]   ;;  %v14038_v31 = vld [vmem:[%s15827_s12 + $0x528] ss:$16 sps:$4 sm:$0xff]  }
 0x3b7   : > { %4176 = vmatprep.subr.bf16.mxu0 %v13869_v48  ;;  %4217 = vmatprep.subr.bf16.mxu1 %v13872_v23  ;;  %v13954_v48 = vld [vmem:[%s15827_s12 + $0x4e8] ss:$16 sps:$4 sm:$0xff]   ;;  %v13959_v23 = vld [vmem:[%s15827_s12 + $0x4c4] ss:$16 sps:$4 sm:$0xff]  }
 0x3ba   : > { %4177 = vmatpush1.bf16.msra.mxu0 %v13867_v60  ;;  %4218 = vmatpush1.bf16.msra.mxu1 %v13870_v61  ;;  %v13962_v60 = vld [vmem:[%s15827_s12 + $0x4cc] ss:$16 sps:$4 sm:$0xff]   ;;  %v13957_v61 = vld [vmem:[%s15827_s12 + $0x4c0] ss:$16 sps:$4 sm:$0xff]  }
 0x3bb   : > { %4178 = vmatprep.subr.bf16.mxu0 %v13875_v62  ;;  %4219 = vmatprep.subr.bf16.mxu1 %v13878_v0  ;;  %v13960_v62 = vld [vmem:[%s15827_s12 + $0x4c8] ss:$16 sps:$4 sm:$0xff]   ;;  %v13965_v0 = vld [vmem:[%s15827_s12 + $0x4a4] ss:$16 sps:$4 sm:$0xff]  }
 0x3be   : > { %4179 = vmatpush1.bf16.msra.mxu0 %v13873_v40  ;;  %4220 = vmatpush1.bf16.msra.mxu1 %v13876_v1  ;;  %v13968_v40 = vld [vmem:[%s15827_s12 + $0x4ac] ss:$16 sps:$4 sm:$0xff]   ;;  %v13963_v1 = vld [vmem:[%s15827_s12 + $0x4a0] ss:$16 sps:$4 sm:$0xff]  }
 0x3bf   : > { %4180 = vmatprep.subr.bf16.mxu0 %v13881_v2  ;;  %4221 = vmatprep.subr.bf16.mxu1 %v13884_v3  ;;  %v13966_v2 = vld [vmem:[%s15827_s12 + $0x4a8] ss:$16 sps:$4 sm:$0xff]   ;;  %v13971_v3 = vld [vmem:[%s15827_s12 + $0x484] ss:$16 sps:$4 sm:$0xff]  }
 0x3c2   : > { %4181 = vmatpush1.bf16.msra.mxu0 %v13879_v4  ;;  %4222 = vmatpush1.bf16.msra.mxu1 %v13882_v57  ;;  %v13974_v4 = vld [vmem:[%s15827_s12 + $0x48c] ss:$16 sps:$4 sm:$0xff]   ;;  %v13969_v57 = vld [vmem:[%s15827_s12 + $0x480] ss:$16 sps:$4 sm:$0xff]  }
 0x3c3   : > { %4182 = vmatprep.subr.bf16.mxu0 %v13887_v6  ;;  %4223 = vmatprep.subr.bf16.mxu1 %v13890_v7  ;;  %v13972_v6 = vld [vmem:[%s15827_s12 + $0x488] ss:$16 sps:$4 sm:$0xff]   ;;  %v13977_v7 = vld [vmem:[%s15827_s12 + $0x464] ss:$16 sps:$4 sm:$0xff]  }
 0x3c6   : > { %4183 = vmatpush1.bf16.msra.mxu0 %v13885_v8  ;;  %4224 = vmatpush1.bf16.msra.mxu1 %v13888_v10  ;;  %v13980_v8 = vld [vmem:[%s15827_s12 + $0x46c] ss:$16 sps:$4 sm:$0xff]   ;;  %v13975_v10 = vld [vmem:[%s15827_s12 + $0x460] ss:$16 sps:$4 sm:$0xff]  }
 0x3c7   : > { %4184 = vmatprep.subr.bf16.mxu0 %v13893_v11  ;;  %4225 = vmatprep.subr.bf16.mxu1 %v13896_v12  ;;  %v13978_v11 = vld [vmem:[%s15827_s12 + $0x468] ss:$16 sps:$4 sm:$0xff]   ;;  %v13983_v12 = vld [vmem:[%s15827_s12 + $0x444] ss:$16 sps:$4 sm:$0xff]  }
 0x3ca   : > { %4185 = vmatpush1.bf16.msra.mxu0 %v13891_v13  ;;  %4226 = vmatpush1.bf16.msra.mxu1 %v13894_v14  ;;  %v13986_v13 = vld [vmem:[%s15827_s12 + $0x44c] ss:$16 sps:$4 sm:$0xff]   ;;  %v13981_v14 = vld [vmem:[%s15827_s12 + $0x440] ss:$16 sps:$4 sm:$0xff]  }
 0x3cb   : > { %4186 = vmatprep.subr.bf16.mxu0 %v13899_v16  ;;  %4227 = vmatprep.subr.bf16.mxu1 %v13902_v17  ;;  %v13984_v16 = vld [vmem:[%s15827_s12 + $0x448] ss:$16 sps:$4 sm:$0xff]   ;;  %v13989_v17 = vld [vmem:[%s15827_s12 + $0x424] ss:$16 sps:$4 sm:$0xff]  }
 0x3ce   : > { %4187 = vmatpush1.bf16.msra.mxu0 %v13897_v18  ;;  %4228 = vmatpush1.bf16.msra.mxu1 %v13900_v19  ;;  %v13992_v18 = vld [vmem:[%s15827_s12 + $0x42c] ss:$16 sps:$4 sm:$0xff]   ;;  %v13987_v19 = vld [vmem:[%s15827_s12 + $0x420] ss:$16 sps:$4 sm:$0xff]  }
 0x3cf   : > { %4414 = vmatprep.subr.bf16.mxu0 %v13905_v21  ;;  %4455 = vmatprep.subr.bf16.mxu1 %v13908_v22  ;;  %v13995_v21 = vld [vmem:[%s15827_s12 + $0x404] ss:$16 sps:$4 sm:$0xff]   ;;  %v13998_v22 = vld [vmem:[%s15827_s12 + $0x40c] ss:$16 sps:$4 sm:$0xff]  }
 0x3d1   : > { %4205 = vmatmul.mubr.bf16.vlgmr.msra.gmra.mxu0 %v2474_v24  ;;  %4246 = vmatmul.mubr.bf16.vlgmr.msra.gmra.mxu1 %v2474_v24  ;;  %v13993_v24 = vld [vmem:[%s15827_s12 + $0x400] ss:$16 sps:$4 sm:$0xff]  }
 0x3d2   : > { %4415 = vmatpush1.bf16.msra.mxu0 %v13903_v25  ;;  %4456 = vmatpush1.bf16.msra.mxu1 %v13906_v26  ;;  %v13996_v25 = vld [vmem:[%s15827_s12 + $0x408] ss:$16 sps:$4 sm:$0xff]  }
 0x3d3   : > { %4416 = vmatprep.subr.bf16.mxu0 %v13911_v33  ;;  %4457 = vmatprep.subr.bf16.mxu1 %v13914_v27  ;;  %v2444_v26 = vld [vmem:[%s16445_s21 + $0x20] sm:$0xff] }
 0x3d4   : > { %4446 = vmatprep.mubr.bf16.mxu0 %v15590_v39  ;;  %4487 = vmatprep.mubr.bf16.mxu1 %v15590_v39  ;;  %v14001_v33 = vld [vmem:[%s15827_s12 + $0x5e4] ss:$16 sps:$4 sm:$0xff]   ;;  %v14004_v27 = vld [vmem:[%s15827_s12 + $0x5ec] ss:$16 sps:$4 sm:$0xff]  }
 0x3d6   : > { %4417 = vmatpush1.bf16.msra.mxu0 %v13909_v28  ;;  %4458 = vmatpush1.bf16.msra.mxu1 %v13912_v30  ;;  %v2476_v28 = vpack.c.bf16 %v2444_v26, %v2444_v26  ;;  %v13999_v30 = vld [vmem:[%s15827_s12 + $0x5e0] ss:$16 sps:$4 sm:$0xff]   ;;  %v14086_v26 = vld [vmem:[%s15827_s12 + $0x628] ss:$16 sps:$4 sm:$0xff]  }
 0x3d7   : > { %4418 = vmatprep.subr.bf16.mxu0 %v13917_v32  ;;  %4459 = vmatprep.subr.bf16.mxu1 %v13920_v43  ;;  %v14002_v32 = vld [vmem:[%s15827_s12 + $0x5e8] ss:$16 sps:$4 sm:$0xff]   ;;  %v14007_v43 = vld [vmem:[%s15827_s12 + $0x5c4] ss:$16 sps:$4 sm:$0xff]  }
 0x3da   : > { %4419 = vmatpush1.bf16.msra.mxu0 %v13915_v34  ;;  %4460 = vmatpush1.bf16.msra.mxu1 %v13918_v29  ;;  %v14010_v34 = vld [vmem:[%s15827_s12 + $0x5cc] ss:$16 sps:$4 sm:$0xff]   ;;  %v14005_v29 = vld [vmem:[%s15827_s12 + $0x5c0] ss:$16 sps:$4 sm:$0xff]  }
 0x3db   : > { %4420 = vmatprep.subr.bf16.mxu0 %v13923_v35  ;;  %4461 = vmatprep.subr.bf16.mxu1 %v13926_v36  ;;  %v14008_v35 = vld [vmem:[%s15827_s12 + $0x5c8] ss:$16 sps:$4 sm:$0xff]   ;;  %v14013_v36 = vld [vmem:[%s15827_s12 + $0x5a4] ss:$16 sps:$4 sm:$0xff]  }
 0x3de   : > { %4421 = vmatpush1.bf16.msra.mxu0 %v13921_v37  ;;  %4462 = vmatpush1.bf16.msra.mxu1 %v13924_v38  ;;  %v14016_v37 = vld [vmem:[%s15827_s12 + $0x5ac] ss:$16 sps:$4 sm:$0xff]   ;;  %v14011_v38 = vld [vmem:[%s15827_s12 + $0x5a0] ss:$16 sps:$4 sm:$0xff]  }
 0x3df   : > { %4422 = vmatprep.subr.bf16.mxu0 %v13929_v53  ;;  %4463 = vmatprep.subr.bf16.mxu1 %v13932_v41  ;;  %v14014_v53 = vld [vmem:[%s15827_s12 + $0x5a8] ss:$16 sps:$4 sm:$0xff]   ;;  %v14019_v41 = vld [vmem:[%s15827_s12 + $0x584] ss:$16 sps:$4 sm:$0xff]  }
 0x3e2   : > { %4423 = vmatpush1.bf16.msra.mxu0 %v13927_v42  ;;  %4464 = vmatpush1.bf16.msra.mxu1 %v13930_v44  ;;  %v14022_v42 = vld [vmem:[%s15827_s12 + $0x58c] ss:$16 sps:$4 sm:$0xff]   ;;  %v14017_v44 = vld [vmem:[%s15827_s12 + $0x580] ss:$16 sps:$4 sm:$0xff]  }
 0x3e3   : > { %4424 = vmatprep.subr.bf16.mxu0 %v13935_v49  ;;  %4465 = vmatprep.subr.bf16.mxu1 %v13938_v63  ;;  %v14020_v49 = vld [vmem:[%s15827_s12 + $0x588] ss:$16 sps:$4 sm:$0xff]   ;;  %v14025_v63 = vld [vmem:[%s15827_s12 + $0x564] ss:$16 sps:$4 sm:$0xff]  }
 0x3e6   : > { %4425 = vmatpush1.bf16.msra.mxu0 %v13933_v46  ;;  %4466 = vmatpush1.bf16.msra.mxu1 %v13936_v9  ;;  %v14028_v46 = vld [vmem:[%s15827_s12 + $0x56c] ss:$16 sps:$4 sm:$0xff]   ;;  %v14023_v9 = vld [vmem:[%s15827_s12 + $0x560] ss:$16 sps:$4 sm:$0xff]  }
 0x3e7   : > { %4426 = vmatprep.subr.bf16.mxu0 %v13941_v15  ;;  %4467 = vmatprep.subr.bf16.mxu1 %v13944_v47  ;;  %v14026_v15 = vld [vmem:[%s15827_s12 + $0x568] ss:$16 sps:$4 sm:$0xff]   ;;  %v14031_v47 = vld [vmem:[%s15827_s12 + $0x544] ss:$16 sps:$4 sm:$0xff]  }
 0x3ea   : > { %4427 = vmatpush1.bf16.msra.mxu0 %v13939_v45  ;;  %4468 = vmatpush1.bf16.msra.mxu1 %v13942_v50  ;;  %v14034_v45 = vld [vmem:[%s15827_s12 + $0x54c] ss:$16 sps:$4 sm:$0xff]   ;;  %v14029_v50 = vld [vmem:[%s15827_s12 + $0x540] ss:$16 sps:$4 sm:$0xff]  }
 0x3eb   : > { %4428 = vmatprep.subr.bf16.mxu0 %v13947_v59  ;;  %4469 = vmatprep.subr.bf16.mxu1 %v13950_v51  ;;  %v14032_v59 = vld [vmem:[%s15827_s12 + $0x548] ss:$16 sps:$4 sm:$0xff]   ;;  %v14037_v51 = vld [vmem:[%s15827_s12 + $0x524] ss:$16 sps:$4 sm:$0xff]  }
 0x3ee   : > { %4429 = vmatpush1.bf16.msra.mxu0 %v13945_v52  ;;  %4470 = vmatpush1.bf16.msra.mxu1 %v13948_v54  ;;  %v14040_v52 = vld [vmem:[%s15827_s12 + $0x52c] ss:$16 sps:$4 sm:$0xff]   ;;  %v14035_v54 = vld [vmem:[%s15827_s12 + $0x520] ss:$16 sps:$4 sm:$0xff]  }
 0x3ef   : > { %4656 = vmatprep.subr.bf16.mxu0 %v13953_v5  ;;  %4697 = vmatprep.subr.bf16.mxu1 %v13956_v55  ;;  %v14043_v5 = vld [vmem:[%s15827_s12 + $0x504] ss:$16 sps:$4 sm:$0xff]   ;;  %v14046_v55 = vld [vmem:[%s15827_s12 + $0x50c] ss:$16 sps:$4 sm:$0xff]  }
 0x3f1   : > { %4447 = vmatmul.mubr.bf16.vlgmr.msra.gmra.mxu0 %v2475_v56  ;;  %4488 = vmatmul.mubr.bf16.vlgmr.msra.gmra.mxu1 %v2475_v56  ;;  %v14041_v56 = vld [vmem:[%s15827_s12 + $0x500] ss:$16 sps:$4 sm:$0xff]  }
 0x3f2   : > { %4657 = vmatpush1.bf16.msra.mxu0 %v13951_v58  ;;  %4698 = vmatpush1.bf16.msra.mxu1 %v13954_v48  ;;  %v14044_v58 = vld [vmem:[%s15827_s12 + $0x508] ss:$16 sps:$4 sm:$0xff]   ;;  %v2445_v48 = vld [vmem:[%s16445_s21 + $0x28] sm:$0xff] }
 0x3f3   : > { %4658 = vmatprep.subr.bf16.mxu0 %v13959_v23  ;;  %4699 = vmatprep.subr.bf16.mxu1 %v13962_v60  ;;  %v14049_v23 = vld [vmem:[%s15827_s12 + $0x6e4] ss:$16 sps:$4 sm:$0xff]   ;;  %v14052_v60 = vld [vmem:[%s15827_s12 + $0x6ec] ss:$16 sps:$4 sm:$0xff]  }
 0x3f4   : > { %4688 = vmatprep.mubr.bf16.mxu0 %v15590_v39  ;;  %4729 = vmatprep.mubr.bf16.mxu1 %v15590_v39 }
 0x3f6   : > { %4659 = vmatpush1.bf16.msra.mxu0 %v13957_v61  ;;  %4700 = vmatpush1.bf16.msra.mxu1 %v13960_v62  ;;  %v2477_v61 = vpack.c.bf16 %v2445_v48, %v2445_v48  ;;  %v14047_v62 = vld [vmem:[%s15827_s12 + $0x6e0] ss:$16 sps:$4 sm:$0xff]   ;;  %v14122_v48 = vld [vmem:[%s15827_s12 + $0x768] ss:$16 sps:$4 sm:$0xff]  }
 0x3f7   : > { %4660 = vmatprep.subr.bf16.mxu0 %v13965_v0  ;;  %4701 = vmatprep.subr.bf16.mxu1 %v13968_v40  ;;  %v14050_v0 = vld [vmem:[%s15827_s12 + $0x6e8] ss:$16 sps:$4 sm:$0xff]   ;;  %v14055_v40 = vld [vmem:[%s15827_s12 + $0x6c4] ss:$16 sps:$4 sm:$0xff]  }
 0x3fa   : > { %4661 = vmatpush1.bf16.msra.mxu0 %v13963_v1  ;;  %4702 = vmatpush1.bf16.msra.mxu1 %v13966_v2  ;;  %v14058_v1 = vld [vmem:[%s15827_s12 + $0x6cc] ss:$16 sps:$4 sm:$0xff]   ;;  %v14053_v2 = vld [vmem:[%s15827_s12 + $0x6c0] ss:$16 sps:$4 sm:$0xff]  }
 0x3fb   : > { %4662 = vmatprep.subr.bf16.mxu0 %v13971_v3  ;;  %4703 = vmatprep.subr.bf16.mxu1 %v13974_v4  ;;  %v14056_v3 = vld [vmem:[%s15827_s12 + $0x6c8] ss:$16 sps:$4 sm:$0xff]   ;;  %v14061_v4 = vld [vmem:[%s15827_s12 + $0x6a4] ss:$16 sps:$4 sm:$0xff]  }
 0x3fe   : > { %4663 = vmatpush1.bf16.msra.mxu0 %v13969_v57  ;;  %4704 = vmatpush1.bf16.msra.mxu1 %v13972_v6  ;;  %v14064_v57 = vld [vmem:[%s15827_s12 + $0x6ac] ss:$16 sps:$4 sm:$0xff]   ;;  %v14059_v6 = vld [vmem:[%s15827_s12 + $0x6a0] ss:$16 sps:$4 sm:$0xff]  }
 0x3ff   : > { %4664 = vmatprep.subr.bf16.mxu0 %v13977_v7  ;;  %4705 = vmatprep.subr.bf16.mxu1 %v13980_v8  ;;  %v14062_v7 = vld [vmem:[%s15827_s12 + $0x6a8] ss:$16 sps:$4 sm:$0xff]   ;;  %v14067_v8 = vld [vmem:[%s15827_s12 + $0x684] ss:$16 sps:$4 sm:$0xff]  }
 0x402   : > { %4665 = vmatpush1.bf16.msra.mxu0 %v13975_v10  ;;  %4706 = vmatpush1.bf16.msra.mxu1 %v13978_v11  ;;  %v14070_v10 = vld [vmem:[%s15827_s12 + $0x68c] ss:$16 sps:$4 sm:$0xff]   ;;  %v14065_v11 = vld [vmem:[%s15827_s12 + $0x680] ss:$16 sps:$4 sm:$0xff]  }
 0x403   : > { %4666 = vmatprep.subr.bf16.mxu0 %v13983_v12  ;;  %4707 = vmatprep.subr.bf16.mxu1 %v13986_v13  ;;  %v14068_v12 = vld [vmem:[%s15827_s12 + $0x688] ss:$16 sps:$4 sm:$0xff]   ;;  %v14073_v13 = vld [vmem:[%s15827_s12 + $0x664] ss:$16 sps:$4 sm:$0xff]  }
 0x406   : > { %4667 = vmatpush1.bf16.msra.mxu0 %v13981_v14  ;;  %4708 = vmatpush1.bf16.msra.mxu1 %v13984_v16  ;;  %v14076_v14 = vld [vmem:[%s15827_s12 + $0x66c] ss:$16 sps:$4 sm:$0xff]   ;;  %v14071_v16 = vld [vmem:[%s15827_s12 + $0x660] ss:$16 sps:$4 sm:$0xff]  }
 0x407   : > { %4668 = vmatprep.subr.bf16.mxu0 %v13989_v17  ;;  %4709 = vmatprep.subr.bf16.mxu1 %v13992_v18  ;;  %v14074_v17 = vld [vmem:[%s15827_s12 + $0x668] ss:$16 sps:$4 sm:$0xff]   ;;  %v14079_v18 = vld [vmem:[%s15827_s12 + $0x644] ss:$16 sps:$4 sm:$0xff]  }
 0x40a   : > { %4669 = vmatpush1.bf16.msra.mxu0 %v13987_v19  ;;  %4710 = vmatpush1.bf16.msra.mxu1 %v13990_v20  ;;  %v14082_v19 = vld [vmem:[%s15827_s12 + $0x64c] ss:$16 sps:$4 sm:$0xff]   ;;  %v14077_v20 = vld [vmem:[%s15827_s12 + $0x640] ss:$16 sps:$4 sm:$0xff]  }
 0x40b   : > { %4670 = vmatprep.subr.bf16.mxu0 %v13995_v21  ;;  %4711 = vmatprep.subr.bf16.mxu1 %v13998_v22  ;;  %v14080_v21 = vld [vmem:[%s15827_s12 + $0x648] ss:$16 sps:$4 sm:$0xff]   ;;  %v14085_v22 = vld [vmem:[%s15827_s12 + $0x624] ss:$16 sps:$4 sm:$0xff]  }
 0x40e   : > { %4671 = vmatpush1.bf16.msra.mxu0 %v13993_v24  ;;  %4712 = vmatpush1.bf16.msra.mxu1 %v13996_v25  ;;  %v14088_v24 = vld [vmem:[%s15827_s12 + $0x62c] ss:$16 sps:$4 sm:$0xff]   ;;  %v14083_v25 = vld [vmem:[%s15827_s12 + $0x620] ss:$16 sps:$4 sm:$0xff]  }
 0x40f   : > { %4898 = vmatprep.subr.bf16.mxu0 %v14001_v33  ;;  %4939 = vmatprep.subr.bf16.mxu1 %v14004_v27  ;;  %v14091_v33 = vld [vmem:[%s15827_s12 + $0x604] ss:$16 sps:$4 sm:$0xff]   ;;  %v14094_v27 = vld [vmem:[%s15827_s12 + $0x60c] ss:$16 sps:$4 sm:$0xff]  }
 0x411   : > { %4689 = vmatmul.mubr.bf16.vlgmr.msra.gmra.mxu0 %v2476_v28  ;;  %4730 = vmatmul.mubr.bf16.vlgmr.msra.gmra.mxu1 %v2476_v28  ;;  %v14089_v28 = vld [vmem:[%s15827_s12 + $0x600] ss:$16 sps:$4 sm:$0xff]  }
 0x412   : > { %4899 = vmatpush1.bf16.msra.mxu0 %v13999_v30  ;;  %4940 = vmatpush1.bf16.msra.mxu1 %v14002_v32  ;;  %v14092_v30 = vld [vmem:[%s15827_s12 + $0x608] ss:$16 sps:$4 sm:$0xff]  }
 0x413   : > { %4900 = vmatprep.subr.bf16.mxu0 %v14007_v43  ;;  %4941 = vmatprep.subr.bf16.mxu1 %v14010_v34  ;;  %v2446_v32 = vld [vmem:[%s16445_s21 + $0x30] sm:$0xff] }
 0x414   : > { %4930 = vmatprep.mubr.bf16.mxu0 %v15590_v39  ;;  %4971 = vmatprep.mubr.bf16.mxu1 %v15590_v39  ;;  %v14097_v43 = vld [vmem:[%s15827_s12 + $0x7e4] ss:$16 sps:$4 sm:$0xff]   ;;  %v14100_v34 = vld [vmem:[%s15827_s12 + $0x7ec] ss:$16 sps:$4 sm:$0xff]  }
 0x416   : > { %4901 = vmatpush1.bf16.msra.mxu0 %v14005_v29  ;;  %4942 = vmatpush1.bf16.msra.mxu1 %v14008_v35  ;;  %v2478_v29 = vpack.c.bf16 %v2446_v32, %v2446_v32  ;;  %v14095_v35 = vld [vmem:[%s15827_s12 + $0x7e0] ss:$16 sps:$4 sm:$0xff]  }
 0x417   : > { %4902 = vmatprep.subr.bf16.mxu0 %v14013_v36  ;;  %4943 = vmatprep.subr.bf16.mxu1 %v14016_v37  ;;  %v14098_v36 = vld [vmem:[%s15827_s12 + $0x7e8] ss:$16 sps:$4 sm:$0xff]   ;;  %v14103_v37 = vld [vmem:[%s15827_s12 + $0x7c4] ss:$16 sps:$4 sm:$0xff]  }
 0x41a   : > { %4903 = vmatpush1.bf16.msra.mxu0 %v14011_v38  ;;  %4944 = vmatpush1.bf16.msra.mxu1 %v14014_v53  ;;  %v14106_v38 = vld [vmem:[%s15827_s12 + $0x7cc] ss:$16 sps:$4 sm:$0xff]  }
 0x41b   : > { %4904 = vmatprep.subr.bf16.mxu0 %v14019_v41  ;;  %4945 = vmatprep.subr.bf16.mxu1 %v14022_v42  ;;  %v14101_v42 = vld [vmem:[%s15827_s12 + $0x7c0] ss:$16 sps:$4 sm:$0xff]  }
 0x41e   : > { %4905 = vmatpush1.bf16.msra.mxu0 %v14017_v44  ;;  %4946 = vmatpush1.bf16.msra.mxu1 %v14020_v49  ;;  %v14104_v44 = vld [vmem:[%s15827_s12 + $0x7c8] ss:$16 sps:$4 sm:$0xff]  }
 0x41f   : > { %4906 = vmatprep.subr.bf16.mxu0 %v14025_v63  ;;  %4947 = vmatprep.subr.bf16.mxu1 %v14028_v46  ;;  %v14109_v46 = vld [vmem:[%s15827_s12 + $0x7a4] ss:$16 sps:$4 sm:$0xff]  }
 0x422   : > { %4907 = vmatpush1.bf16.msra.mxu0 %v14023_v9  ;;  %4948 = vmatpush1.bf16.msra.mxu1 %v14026_v15  ;;  %v14112_v9 = vld [vmem:[%s15827_s12 + $0x7ac] ss:$16 sps:$4 sm:$0xff]  }
 0x423   : > { %4908 = vmatprep.subr.bf16.mxu0 %v14031_v47  ;;  %4949 = vmatprep.subr.bf16.mxu1 %v14034_v45  ;;  %v14107_v45 = vld [vmem:[%s15827_s12 + $0x7a0] ss:$16 sps:$4 sm:$0xff]  }
 0x426   : > { %4909 = vmatpush1.bf16.msra.mxu0 %v14029_v50  ;;  %4950 = vmatpush1.bf16.msra.mxu1 %v14032_v59  ;;  %v14110_v50 = vld [vmem:[%s15827_s12 + $0x7a8] ss:$16 sps:$4 sm:$0xff]  }
 0x427   : > { %4910 = vmatprep.subr.bf16.mxu0 %v14037_v51  ;;  %4951 = vmatprep.subr.bf16.mxu1 %v14040_v52  ;;  %v14115_v52 = vld [vmem:[%s15827_s12 + $0x784] ss:$16 sps:$4 sm:$0xff]  }
 0x42a   : > { %4911 = vmatpush1.bf16.msra.mxu0 %v14035_v54  ;;  %4952 = vmatpush1.bf16.msra.mxu1 %v14038_v31  ;;  %v14118_v54 = vld [vmem:[%s15827_s12 + $0x78c] ss:$16 sps:$4 sm:$0xff]   ;;  %v14113_v31 = vld [vmem:[%s15827_s12 + $0x780] ss:$16 sps:$4 sm:$0xff]  }
 0x42b   : > { %4912 = vmatprep.subr.bf16.mxu0 %v14043_v5  ;;  %4953 = vmatprep.subr.bf16.mxu1 %v14046_v55  ;;  %v14116_v5 = vld [vmem:[%s15827_s12 + $0x788] ss:$16 sps:$4 sm:$0xff]   ;;  %v14121_v55 = vld [vmem:[%s15827_s12 + $0x764] ss:$16 sps:$4 sm:$0xff]  }
 0x42e   : > { %4913 = vmatpush1.bf16.msra.mxu0 %v14041_v56  ;;  %4954 = vmatpush1.bf16.msra.mxu1 %v14044_v58  ;;  %v14124_v56 = vld [vmem:[%s15827_s12 + $0x76c] ss:$16 sps:$4 sm:$0xff]   ;;  %v14119_v58 = vld [vmem:[%s15827_s12 + $0x760] ss:$16 sps:$4 sm:$0xff]  }
 0x42f   : > { %5140 = vmatprep.subr.bf16.mxu0 %v14049_v23  ;;  %5181 = vmatprep.subr.bf16.mxu1 %v14052_v60  ;;  %v14127_v23 = vld [vmem:[%s15827_s12 + $0x744] ss:$16 sps:$4 sm:$0xff]   ;;  %v14130_v60 = vld [vmem:[%s15827_s12 + $0x74c] ss:$16 sps:$4 sm:$0xff]  }
 0x431   : > { %4931 = vmatmul.mubr.bf16.vlgmr.msra.gmra.mxu0 %v2477_v61  ;;  %4972 = vmatmul.mubr.bf16.vlgmr.msra.gmra.mxu1 %v2477_v61  ;;  %v14125_v61 = vld [vmem:[%s15827_s12 + $0x740] ss:$16 sps:$4 sm:$0xff]  }
 0x432   : > { %5141 = vmatpush1.bf16.msra.mxu0 %v14047_v62  ;;  %5182 = vmatpush1.bf16.msra.mxu1 %v14050_v0  ;;  %v14128_v62 = vld [vmem:[%s15827_s12 + $0x748] ss:$16 sps:$4 sm:$0xff]   ;;  %v14133_v0 = vld [vmem:[%s15827_s12 + $0x724] ss:$16 sps:$4 sm:$0xff]  }
 0x433   : > { %5142 = vmatprep.subr.bf16.mxu0 %v14055_v40  ;;  %5183 = vmatprep.subr.bf16.mxu1 %v14058_v1  ;;  %v14136_v40 = vld [vmem:[%s15827_s12 + $0x72c] ss:$16 sps:$4 sm:$0xff]   ;;  %v14131_v1 = vld [vmem:[%s15827_s12 + $0x720] ss:$16 sps:$4 sm:$0xff]  }
 0x434   : > { %5172 = vmatprep.mubr.bf16.mxu0 %v15590_v39  ;;  %5213 = vmatprep.mubr.bf16.mxu1 %v15590_v39 }
 0x436   : > { %5143 = vmatpush1.bf16.msra.mxu0 %v14053_v2  ;;  %5184 = vmatpush1.bf16.msra.mxu1 %v14056_v3  ;;  %v14134_v2 = vld [vmem:[%s15827_s12 + $0x728] ss:$16 sps:$4 sm:$0xff]   ;;  %v14139_v3 = vld [vmem:[%s15827_s12 + $0x704] ss:$16 sps:$4 sm:$0xff]  }
 0x437   : > { %5144 = vmatprep.subr.bf16.mxu0 %v14061_v4  ;;  %5185 = vmatprep.subr.bf16.mxu1 %v14064_v57  ;;  %v14142_v4 = vld [vmem:[%s15827_s12 + $0x70c] ss:$16 sps:$4 sm:$0xff]   ;;  %v14137_v57 = vld [vmem:[%s15827_s12 + $0x700] ss:$16 sps:$4 sm:$0xff]  }
 0x43a   : > { %5145 = vmatpush1.bf16.msra.mxu0 %v14059_v6  ;;  %5186 = vmatpush1.bf16.msra.mxu1 %v14062_v7  ;;  %v14140_v6 = vld [vmem:[%s15827_s12 + $0x708] ss:$16 sps:$4 sm:$0xff]   ;;  %v2447_v7 = vld [vmem:[%s16445_s21 + $0x38] sm:$0xff] }
 0x43b   : > { %5146 = vmatprep.subr.bf16.mxu0 %v14067_v8  ;;  %5187 = vmatprep.subr.bf16.mxu1 %v14070_v10  ;;  %v14145_v8 = vld [vmem:[%s15827_s12 + $0x8e4] ss:$16 sps:$4 sm:$0xff]   ;;  %v14148_v10 = vld [vmem:[%s15827_s12 + $0x8ec] ss:$16 sps:$4 sm:$0xff]  }
 0x43e   : > { %5147 = vmatpush1.bf16.msra.mxu0 %v14065_v11  ;;  %5188 = vmatpush1.bf16.msra.mxu1 %v14068_v12  ;;  %v2479_v11 = vpack.c.bf16 %v2447_v7, %v2447_v7  ;;  %v14143_v12 = vld [vmem:[%s15827_s12 + $0x8e0] ss:$16 sps:$4 sm:$0xff]   ;;  %v14208_v7 = vld [vmem:[%s15827_s12 + $0x9ac] ss:$16 sps:$4 sm:$0xff]  }
 0x43f   : > { %5148 = vmatprep.subr.bf16.mxu0 %v14073_v13  ;;  %5189 = vmatprep.subr.bf16.mxu1 %v14076_v14  ;;  %v14146_v13 = vld [vmem:[%s15827_s12 + $0x8e8] ss:$16 sps:$4 sm:$0xff]   ;;  %v14151_v14 = vld [vmem:[%s15827_s12 + $0x8c4] ss:$16 sps:$4 sm:$0xff]  }
 0x442   : > { %5149 = vmatpush1.bf16.msra.mxu0 %v14071_v16  ;;  %5190 = vmatpush1.bf16.msra.mxu1 %v14074_v17  ;;  %v14154_v16 = vld [vmem:[%s15827_s12 + $0x8cc] ss:$16 sps:$4 sm:$0xff]  }
 0x443   : > { %5150 = vmatprep.subr.bf16.mxu0 %v14079_v18  ;;  %5191 = vmatprep.subr.bf16.mxu1 %v14082_v19  ;;  %v14149_v19 = vld [vmem:[%s15827_s12 + $0x8c0] ss:$16 sps:$4 sm:$0xff]  }
 0x446   : > { %5151 = vmatpush1.bf16.msra.mxu0 %v14077_v20  ;;  %5192 = vmatpush1.bf16.msra.mxu1 %v14080_v21  ;;  %v14152_v20 = vld [vmem:[%s15827_s12 + $0x8c8] ss:$16 sps:$4 sm:$0xff]  }
 0x447   : > { %5152 = vmatprep.subr.bf16.mxu0 %v14085_v22  ;;  %5193 = vmatprep.subr.bf16.mxu1 %v14088_v24  ;;  %v14157_v24 = vld [vmem:[%s15827_s12 + $0x8a4] ss:$16 sps:$4 sm:$0xff]  }
 0x44a   : > { %5153 = vmatpush1.bf16.msra.mxu0 %v14083_v25  ;;  %5194 = vmatpush1.bf16.msra.mxu1 %v14086_v26 }
 0x44b   : > { %5154 = vmatprep.subr.bf16.mxu0 %v14091_v33  ;;  %5195 = vmatprep.subr.bf16.mxu1 %v14094_v27  ;;  %v14160_v33 = vld [vmem:[%s15827_s12 + $0x8ac] ss:$16 sps:$4 sm:$0xff]  }
 0x44e   : > { %5155 = vmatpush1.bf16.msra.mxu0 %v14089_v28  ;;  %5196 = vmatpush1.bf16.msra.mxu1 %v14092_v30 }
 0x44f   : > { %5382 = vmatprep.subr.bf16.mxu0 %v14097_v43  ;;  %5423 = vmatprep.subr.bf16.mxu1 %v14100_v34  ;;  %v14155_v43 = vld [vmem:[%s15827_s12 + $0x8a0] ss:$16 sps:$4 sm:$0xff]   ;;  %v14158_v34 = vld [vmem:[%s15827_s12 + $0x8a8] ss:$16 sps:$4 sm:$0xff]  }
 0x451   : > { %v16664_v53 = vpop.f32.mrf.mxu0  ;;  %v16666_v41 = vpop.f32.mrf.mxu1  ;;  %5173 = vmatmul.mubr.bf16.vlgmr.msra.gmra.mxu0 %v2478_v29  ;;  %5214 = vmatmul.mubr.bf16.vlgmr.msra.gmra.mxu1 %v2478_v29  ;;  %v14163_v29 = vld [vmem:[%s15827_s12 + $0x884] ss:$16 sps:$4 sm:$0xff]  }
 0x452   : > { %5383 = vmatpush1.bf16.msra.mxu0 %v14095_v35  ;;  %5424 = vmatpush1.bf16.msra.mxu1 %v14098_v36 }
 0x453   : > { %v16670_v49 = vpop.f32.mrf.mxu0  ;;  %v16672_v63 = vpop.f32.mrf.mxu1  ;;  %5384 = vmatprep.subr.bf16.mxu0 %v14103_v37  ;;  %5425 = vmatprep.subr.bf16.mxu1 %v14106_v38  ;;  %v14166_v37 = vld [vmem:[%s15827_s12 + $0x88c] ss:$16 sps:$4 sm:$0xff]   ;;  %v14161_v38 = vld [vmem:[%s15827_s12 + $0x880] ss:$16 sps:$4 sm:$0xff]  }
 0x454   : > { %5414 = vmatprep.mubr.bf16.mxu0 %v15590_v39  ;;  %5455 = vmatprep.mubr.bf16.mxu1 %v15590_v39 }
 0x455   : > { %v3726_v15 = vpop.f32.mrf.mxu0  ;;  %v3767_v47 = vpop.f32.mrf.mxu1 }
 0x456   : > { %5385 = vmatpush1.bf16.msra.mxu0 %v14101_v42  ;;  %5426 = vmatpush1.bf16.msra.mxu1 %v14104_v44  ;;  %v14172_v42 = vld [vmem:[%s15827_s12 + $0x86c] ss:$16 sps:$4 sm:$0xff]   ;;  %v14167_v44 = vld [vmem:[%s15827_s12 + $0x860] ss:$16 sps:$4 sm:$0xff]   ;;  %v14176_v15 = vld [vmem:[%s15827_s12 + $0x848] ss:$16 sps:$4 sm:$0xff]  }
 0x457   : > { %v3727_v59 = vpop.f32.mrf.mxu0  ;;  %v3768_v51 = vpop.f32.mrf.mxu1  ;;  %5386 = vmatprep.subr.bf16.mxu0 %v14109_v46  ;;  %5427 = vmatprep.subr.bf16.mxu1 %v14112_v9  ;;  %v14178_v46 = vld [vmem:[%s15827_s12 + $0x84c] ss:$16 sps:$4 sm:$0xff]   ;;  %v14173_v9 = vld [vmem:[%s15827_s12 + $0x840] ss:$16 sps:$4 sm:$0xff]   ;;  %v14181_v47 = vld [vmem:[%s15827_s12 + $0x824] ss:$16 sps:$4 sm:$0xff]  }
 0x458   : > { %v14182_v59 = vld [vmem:[%s15827_s12 + $0x828] ss:$16 sps:$4 sm:$0xff]   ;;  %v14187_v51 = vld [vmem:[%s15827_s12 + $0x804] ss:$16 sps:$4 sm:$0xff]  }
 0x45a   : > { %5387 = vmatpush1.bf16.msra.mxu0 %v14107_v45  ;;  %5428 = vmatpush1.bf16.msra.mxu1 %v14110_v50  ;;  %v14184_v45 = vld [vmem:[%s15827_s12 + $0x82c] ss:$16 sps:$4 sm:$0xff]   ;;  %v14179_v50 = vld [vmem:[%s15827_s12 + $0x820] ss:$16 sps:$4 sm:$0xff]  }
 0x45b   : > { %5388 = vmatprep.subr.bf16.mxu0 %v14115_v52  ;;  %5429 = vmatprep.subr.bf16.mxu1 %v14118_v54  ;;  %v14190_v52 = vld [vmem:[%s15827_s12 + $0x80c] ss:$16 sps:$4 sm:$0xff]   ;;  %v14185_v54 = vld [vmem:[%s15827_s12 + $0x800] ss:$16 sps:$4 sm:$0xff]  }
 0x45e   : > { %5389 = vmatpush1.bf16.msra.mxu0 %v14113_v31  ;;  %5430 = vmatpush1.bf16.msra.mxu1 %v14116_v5  ;;  %v14188_v31 = vld [vmem:[%s15827_s12 + $0x808] ss:$16 sps:$4 sm:$0xff]  }
 0x45f   : > { %5390 = vmatprep.subr.bf16.mxu0 %v14121_v55  ;;  %5431 = vmatprep.subr.bf16.mxu1 %v14124_v56  ;;  %v2448_v5 = vld [vmem:[%s16445_s21 + $0x40] sm:$0xff] }
 0x460   : > { %v14193_v55 = vld [vmem:[%s15827_s12 + $0x9e4] ss:$16 sps:$4 sm:$0xff]   ;;  %v14196_v56 = vld [vmem:[%s15827_s12 + $0x9ec] ss:$16 sps:$4 sm:$0xff]  }
 0x462   : > { %5391 = vmatpush1.bf16.msra.mxu0 %v14119_v58  ;;  %5432 = vmatpush1.bf16.msra.mxu1 %v14122_v48  ;;  %v14191_v58 = vld [vmem:[%s15827_s12 + $0x9e0] ss:$16 sps:$4 sm:$0xff]   ;;  %v2480_v48 = vpack.c.bf16 %v2448_v5, %v2448_v5  ;;  %v14256_v5 = vld [vmem:[%s15827_s12 + $0xaac] ss:$16 sps:$4 sm:$0xff]  }
 0x463   : > { %5392 = vmatprep.subr.bf16.mxu0 %v14127_v23  ;;  %5433 = vmatprep.subr.bf16.mxu1 %v14130_v60  ;;  %v14194_v23 = vld [vmem:[%s15827_s12 + $0x9e8] ss:$16 sps:$4 sm:$0xff]   ;;  %v14199_v60 = vld [vmem:[%s15827_s12 + $0x9c4] ss:$16 sps:$4 sm:$0xff]  }
 0x466   : > { %5393 = vmatpush1.bf16.msra.mxu0 %v14125_v61  ;;  %5434 = vmatpush1.bf16.msra.mxu1 %v14128_v62  ;;  %v14202_v61 = vld [vmem:[%s15827_s12 + $0x9cc] ss:$16 sps:$4 sm:$0xff]   ;;  %v14197_v62 = vld [vmem:[%s15827_s12 + $0x9c0] ss:$16 sps:$4 sm:$0xff]  }
 0x467   : > { %5394 = vmatprep.subr.bf16.mxu0 %v14133_v0  ;;  %5435 = vmatprep.subr.bf16.mxu1 %v14136_v40  ;;  %v14200_v0 = vld [vmem:[%s15827_s12 + $0x9c8] ss:$16 sps:$4 sm:$0xff]  }
 0x46a   : > { %5395 = vmatpush1.bf16.msra.mxu0 %v14131_v1  ;;  %5436 = vmatpush1.bf16.msra.mxu1 %v14134_v2 }
 0x46b   : > { %5396 = vmatprep.subr.bf16.mxu0 %v14139_v3  ;;  %5437 = vmatprep.subr.bf16.mxu1 %v14142_v4 }
 0x46e   : > { %5397 = vmatpush1.bf16.msra.mxu0 %v14137_v57  ;;  %5438 = vmatpush1.bf16.msra.mxu1 %v14140_v6  ;;  %v14205_v6 = vld [vmem:[%s15827_s12 + $0x9a4] ss:$16 sps:$4 sm:$0xff]  }
 0x46f   : > { %5624 = vmatprep.subr.bf16.mxu0 %v14145_v8  ;;  %5665 = vmatprep.subr.bf16.mxu1 %v14148_v10 }
 0x471   : > { %v3964_v17 = vpop.f32.mrf.mxu0  ;;  %v4005_v18 = vpop.f32.mrf.mxu1  ;;  %5415 = vmatmul.mubr.bf16.vlgmr.msra.gmra.mxu0 %v2479_v11  ;;  %5456 = vmatmul.mubr.bf16.vlgmr.msra.gmra.mxu1 %v2479_v11  ;;  %v14203_v11 = vld [vmem:[%s15827_s12 + $0x9a0] ss:$16 sps:$4 sm:$0xff]  }
 0x472   : > { %v16710_v21 = vadd.f32 %v3964_v17, %v16664_v53  ;;  %v16713_v22 = vadd.f32 %v4005_v18, %v16666_v41  ;;  %5625 = vmatpush1.bf16.msra.mxu0 %v14143_v12  ;;  %5666 = vmatpush1.bf16.msra.mxu1 %v14146_v13  ;;  %v14164_v53 = vld [vmem:[%s15827_s12 + $0x888] ss:$16 sps:$4 sm:$0xff]   ;;  %v14169_v41 = vld [vmem:[%s15827_s12 + $0x864] ss:$16 sps:$4 sm:$0xff]  }
 0x473   : > { %v3966_v25 = vpop.f32.mrf.mxu0  ;;  %v4007_v26 = vpop.f32.mrf.mxu1  ;;  %5626 = vmatprep.subr.bf16.mxu0 %v14151_v14  ;;  %5667 = vmatprep.subr.bf16.mxu1 %v14154_v16  ;;  %v14206_v12 = vld [vmem:[%s15827_s12 + $0x9a8] ss:$16 sps:$4 sm:$0xff]   ;;  %v14211_v18 = vld [vmem:[%s15827_s12 + $0x984] ss:$16 sps:$4 sm:$0xff]  }
 0x474   : > { %v16718_v27 = vadd.f32 %v3966_v25, %v16670_v49  ;;  %v16721_v28 = vadd.f32 %v4007_v26, %v16672_v63  ;;  %5656 = vmatprep.mubr.bf16.mxu0 %v15590_v39  ;;  %5697 = vmatprep.mubr.bf16.mxu1 %v15590_v39  ;;  %v14170_v49 = vld [vmem:[%s15827_s12 + $0x868] ss:$16 sps:$4 sm:$0xff]   ;;  %v14175_v63 = vld [vmem:[%s15827_s12 + $0x844] ss:$16 sps:$4 sm:$0xff]   ;;  %v14215_v25 = vld [vmem:[%s15827_s12 + $0x960] ss:$16 sps:$4 sm:$0xff]  }
 0x475   : > { %v3968_v30 = vpop.f32.mrf.mxu0  ;;  %v4009_v32 = vpop.f32.mrf.mxu1  ;;  %v14218_v26 = vld [vmem:[%s15827_s12 + $0x968] ss:$16 sps:$4 sm:$0xff]  }
 0x476   : > { %5627 = vmatpush1.bf16.msra.mxu0 %v14149_v19  ;;  %5668 = vmatpush1.bf16.msra.mxu1 %v14152_v20  ;;  %v14214_v19 = vld [vmem:[%s15827_s12 + $0x98c] ss:$16 sps:$4 sm:$0xff]   ;;  %v14209_v20 = vld [vmem:[%s15827_s12 + $0x980] ss:$16 sps:$4 sm:$0xff]   ;;  %v14224_v30 = vld [vmem:[%s15827_s12 + $0x948] ss:$16 sps:$4 sm:$0xff]  }
 0x477   : > { %v3969_v35 = vpop.f32.mrf.mxu0  ;;  %v4010_v36 = vpop.f32.mrf.mxu1  ;;  %5628 = vmatprep.subr.bf16.mxu0 %v14157_v24  ;;  %5669 = vmatprep.subr.bf16.mxu1 %v14160_v33  ;;  %v14220_v24 = vld [vmem:[%s15827_s12 + $0x96c] ss:$16 sps:$4 sm:$0xff]   ;;  %v14223_v33 = vld [vmem:[%s15827_s12 + $0x944] ss:$16 sps:$4 sm:$0xff]  }
 0x478   : > { %v14229_v32 = vld [vmem:[%s15827_s12 + $0x924] ss:$16 sps:$4 sm:$0xff]   ;;  %v14238_v36 = vld [vmem:[%s15827_s12 + $0x90c] ss:$16 sps:$4 sm:$0xff]  }
 0x479   : > { %v14235_v35 = vld [vmem:[%s15827_s12 + $0x904] ss:$16 sps:$4 sm:$0xff]  }
 0x47a   : > { %5629 = vmatpush1.bf16.msra.mxu0 %v14155_v43  ;;  %5670 = vmatpush1.bf16.msra.mxu1 %v14158_v34  ;;  %v14232_v43 = vld [vmem:[%s15827_s12 + $0x92c] ss:$16 sps:$4 sm:$0xff]   ;;  %v14227_v34 = vld [vmem:[%s15827_s12 + $0x920] ss:$16 sps:$4 sm:$0xff]  }
 0x47b   : > { %5630 = vmatprep.subr.bf16.mxu0 %v14163_v29  ;;  %5671 = vmatprep.subr.bf16.mxu1 %v14166_v37  ;;  %v14230_v29 = vld [vmem:[%s15827_s12 + $0x928] ss:$16 sps:$4 sm:$0xff]   ;;  %v14233_v37 = vld [vmem:[%s15827_s12 + $0x900] ss:$16 sps:$4 sm:$0xff]  }
 0x47e   : > { %5631 = vmatpush1.bf16.msra.mxu0 %v14161_v38  ;;  %5672 = vmatpush1.bf16.msra.mxu1 %v14164_v53  ;;  %v14236_v38 = vld [vmem:[%s15827_s12 + $0x908] ss:$16 sps:$4 sm:$0xff]   ;;  %v2449_v53 = vld [vmem:[%s16445_s21 + $0x48] sm:$0xff] }
 0x47f   : > { %5632 = vmatprep.subr.bf16.mxu0 %v14169_v41  ;;  %5673 = vmatprep.subr.bf16.mxu1 %v14172_v42  ;;  %v14241_v41 = vld [vmem:[%s15827_s12 + $0xae4] ss:$16 sps:$4 sm:$0xff]   ;;  %v14244_v42 = vld [vmem:[%s15827_s12 + $0xaec] ss:$16 sps:$4 sm:$0xff]  }
 0x482   : > { %5633 = vmatpush1.bf16.msra.mxu0 %v14167_v44  ;;  %5674 = vmatpush1.bf16.msra.mxu1 %v14170_v49  ;;  %v14239_v44 = vld [vmem:[%s15827_s12 + $0xae0] ss:$16 sps:$4 sm:$0xff]   ;;  %v2481_v49 = vpack.c.bf16 %v2449_v53, %v2449_v53  ;;  %v14304_v53 = vld [vmem:[%s15827_s12 + $0xbac] ss:$16 sps:$4 sm:$0xff]  }
 0x483   : > { %5634 = vmatprep.subr.bf16.mxu0 %v14175_v63  ;;  %5675 = vmatprep.subr.bf16.mxu1 %v14178_v46  ;;  %v14242_v63 = vld [vmem:[%s15827_s12 + $0xae8] ss:$16 sps:$4 sm:$0xff]   ;;  %v14247_v46 = vld [vmem:[%s15827_s12 + $0xac4] ss:$16 sps:$4 sm:$0xff]  }
 0x486   : > { %5635 = vmatpush1.bf16.msra.mxu0 %v14173_v9  ;;  %5676 = vmatpush1.bf16.msra.mxu1 %v14176_v15  ;;  %v14250_v9 = vld [vmem:[%s15827_s12 + $0xacc] ss:$16 sps:$4 sm:$0xff]   ;;  %v14245_v15 = vld [vmem:[%s15827_s12 + $0xac0] ss:$16 sps:$4 sm:$0xff]  }
 0x487   : > { %5636 = vmatprep.subr.bf16.mxu0 %v14181_v47  ;;  %5677 = vmatprep.subr.bf16.mxu1 %v14184_v45  ;;  %v14248_v47 = vld [vmem:[%s15827_s12 + $0xac8] ss:$16 sps:$4 sm:$0xff]  }
 0x48a   : > { %5637 = vmatpush1.bf16.msra.mxu0 %v14179_v50  ;;  %5678 = vmatpush1.bf16.msra.mxu1 %v14182_v59 }
 0x48b   : > { %5638 = vmatprep.subr.bf16.mxu0 %v14187_v51  ;;  %5679 = vmatprep.subr.bf16.mxu1 %v14190_v52 }
 0x48e   : > { %5639 = vmatpush1.bf16.msra.mxu0 %v14185_v54  ;;  %5680 = vmatpush1.bf16.msra.mxu1 %v14188_v31  ;;  %v14253_v31 = vld [vmem:[%s15827_s12 + $0xaa4] ss:$16 sps:$4 sm:$0xff]  }
 0x48f   : > { %5866 = vmatprep.subr.bf16.mxu0 %v14193_v55  ;;  %5907 = vmatprep.subr.bf16.mxu1 %v14196_v56 }
 0x491   : > { %v4206_v40 = vpop.f32.mrf.mxu0  ;;  %v4247_v1 = vpop.f32.mrf.mxu1  ;;  %5657 = vmatmul.mubr.bf16.vlgmr.msra.gmra.mxu0 %v2480_v48  ;;  %5698 = vmatmul.mubr.bf16.vlgmr.msra.gmra.mxu1 %v2480_v48  ;;  %v14254_v48 = vld [vmem:[%s15827_s12 + $0xaa8] ss:$16 sps:$4 sm:$0xff]  }
 0x492   : > { %v16757_v2 = vadd.f32 %v16710_v21, %v4206_v40  ;;  %v16760_v3 = vadd.f32 %v16713_v22, %v4247_v1  ;;  %5867 = vmatpush1.bf16.msra.mxu0 %v14191_v58  ;;  %5908 = vmatpush1.bf16.msra.mxu1 %v14194_v23  ;;  %v14212_v21 = vld [vmem:[%s15827_s12 + $0x988] ss:$16 sps:$4 sm:$0xff]   ;;  %v14217_v22 = vld [vmem:[%s15827_s12 + $0x964] ss:$16 sps:$4 sm:$0xff]   ;;  %v14251_v58 = vld [vmem:[%s15827_s12 + $0xaa0] ss:$16 sps:$4 sm:$0xff]  }
 0x493   : > { %v4208_v4 = vpop.f32.mrf.mxu0  ;;  %v4249_v57 = vpop.f32.mrf.mxu1  ;;  %5868 = vmatprep.subr.bf16.mxu0 %v14199_v60  ;;  %5909 = vmatprep.subr.bf16.mxu1 %v14202_v61  ;;  %v14262_v40 = vld [vmem:[%s15827_s12 + $0xa8c] ss:$16 sps:$4 sm:$0xff]   ;;  %v14257_v1 = vld [vmem:[%s15827_s12 + $0xa80] ss:$16 sps:$4 sm:$0xff]  }
 0x494   : > { %v16765_v8 = vadd.f32 %v16718_v27, %v4208_v4  ;;  %v16768_v10 = vadd.f32 %v16721_v28, %v4249_v57  ;;  %5898 = vmatprep.mubr.bf16.mxu0 %v15590_v39  ;;  %5939 = vmatprep.mubr.bf16.mxu1 %v15590_v39  ;;  %v14226_v27 = vld [vmem:[%s15827_s12 + $0x94c] ss:$16 sps:$4 sm:$0xff]   ;;  %v14221_v28 = vld [vmem:[%s15827_s12 + $0x940] ss:$16 sps:$4 sm:$0xff]  }
 0x495   : > { %v4210_v13 = vpop.f32.mrf.mxu0  ;;  %v4251_v14 = vpop.f32.mrf.mxu1  ;;  %v14268_v4 = vld [vmem:[%s15827_s12 + $0xa6c] ss:$16 sps:$4 sm:$0xff]   ;;  %v14263_v57 = vld [vmem:[%s15827_s12 + $0xa60] ss:$16 sps:$4 sm:$0xff]  }
 0x496   : > { %5869 = vmatpush1.bf16.msra.mxu0 %v14197_v62  ;;  %5910 = vmatpush1.bf16.msra.mxu1 %v14200_v0  ;;  %v14259_v0 = vld [vmem:[%s15827_s12 + $0xa84] ss:$16 sps:$4 sm:$0xff]   ;;  %v14280_v13 = vld [vmem:[%s15827_s12 + $0xa2c] ss:$16 sps:$4 sm:$0xff]   ;;  %v14275_v14 = vld [vmem:[%s15827_s12 + $0xa20] ss:$16 sps:$4 sm:$0xff]  }
 0x497   : > { %v4211_v16 = vpop.f32.mrf.mxu0  ;;  %v4252_v17 = vpop.f32.mrf.mxu1  ;;  %5870 = vmatprep.subr.bf16.mxu0 %v14205_v6  ;;  %5911 = vmatprep.subr.bf16.mxu1 %v14208_v7  ;;  %v14266_v6 = vld [vmem:[%s15827_s12 + $0xa68] ss:$16 sps:$4 sm:$0xff]   ;;  %v14271_v7 = vld [vmem:[%s15827_s12 + $0xa44] ss:$16 sps:$4 sm:$0xff]  }
 0x498   : > { %v14278_v16 = vld [vmem:[%s15827_s12 + $0xa28] ss:$16 sps:$4 sm:$0xff]   ;;  %v14283_v17 = vld [vmem:[%s15827_s12 + $0xa04] ss:$16 sps:$4 sm:$0xff]  }
 0x49a   : > { %5871 = vmatpush1.bf16.msra.mxu0 %v14203_v11  ;;  %5912 = vmatpush1.bf16.msra.mxu1 %v14206_v12  ;;  %v14272_v11 = vld [vmem:[%s15827_s12 + $0xa48] ss:$16 sps:$4 sm:$0xff]   ;;  %v14277_v12 = vld [vmem:[%s15827_s12 + $0xa24] ss:$16 sps:$4 sm:$0xff]  }
 0x49b   : > { %5872 = vmatprep.subr.bf16.mxu0 %v14211_v18  ;;  %5913 = vmatprep.subr.bf16.mxu1 %v14214_v19  ;;  %v14286_v18 = vld [vmem:[%s15827_s12 + $0xa0c] ss:$16 sps:$4 sm:$0xff]   ;;  %v14281_v19 = vld [vmem:[%s15827_s12 + $0xa00] ss:$16 sps:$4 sm:$0xff]  }
 0x49e   : > { %5873 = vmatpush1.bf16.msra.mxu0 %v14209_v20  ;;  %5914 = vmatpush1.bf16.msra.mxu1 %v14212_v21  ;;  %v14284_v20 = vld [vmem:[%s15827_s12 + $0xa08] ss:$16 sps:$4 sm:$0xff]  }
 0x49f   : > { %5874 = vmatprep.subr.bf16.mxu0 %v14217_v22  ;;  %5915 = vmatprep.subr.bf16.mxu1 %v14220_v24  ;;  %v2450_v21 = vld [vmem:[%s16445_s21 + $0x50] sm:$0xff] }
 0x4a0   : > { %v14289_v22 = vld [vmem:[%s15827_s12 + $0xbe4] ss:$16 sps:$4 sm:$0xff]   ;;  %v14292_v24 = vld [vmem:[%s15827_s12 + $0xbec] ss:$16 sps:$4 sm:$0xff]  }
 0x4a2   : > { %5875 = vmatpush1.bf16.msra.mxu0 %v14215_v25  ;;  %5916 = vmatpush1.bf16.msra.mxu1 %v14218_v26  ;;  %v14287_v25 = vld [vmem:[%s15827_s12 + $0xbe0] ss:$16 sps:$4 sm:$0xff]   ;;  %v2482_v26 = vpack.c.bf16 %v2450_v21, %v2450_v21  ;;  %v14352_v21 = vld [vmem:[%s15827_s12 + $0xcac] ss:$16 sps:$4 sm:$0xff]  }
 0x4a3   : > { %5876 = vmatprep.subr.bf16.mxu0 %v14223_v33  ;;  %5917 = vmatprep.subr.bf16.mxu1 %v14226_v27  ;;  %v14290_v33 = vld [vmem:[%s15827_s12 + $0xbe8] ss:$16 sps:$4 sm:$0xff]   ;;  %v14295_v27 = vld [vmem:[%s15827_s12 + $0xbc4] ss:$16 sps:$4 sm:$0xff]  }
 0x4a6   : > { %5877 = vmatpush1.bf16.msra.mxu0 %v14221_v28  ;;  %5918 = vmatpush1.bf16.msra.mxu1 %v14224_v30  ;;  %v14298_v28 = vld [vmem:[%s15827_s12 + $0xbcc] ss:$16 sps:$4 sm:$0xff]   ;;  %v14293_v30 = vld [vmem:[%s15827_s12 + $0xbc0] ss:$16 sps:$4 sm:$0xff]  }
 0x4a7   : > { %5878 = vmatprep.subr.bf16.mxu0 %v14229_v32  ;;  %5919 = vmatprep.subr.bf16.mxu1 %v14232_v43  ;;  %v14296_v32 = vld [vmem:[%s15827_s12 + $0xbc8] ss:$16 sps:$4 sm:$0xff]  }
 0x4aa   : > { %5879 = vmatpush1.bf16.msra.mxu0 %v14227_v34  ;;  %5920 = vmatpush1.bf16.msra.mxu1 %v14230_v29 }
 0x4ab   : > { %5880 = vmatprep.subr.bf16.mxu0 %v14235_v35  ;;  %5921 = vmatprep.subr.bf16.mxu1 %v14238_v36 }
 0x4ae   : > { %5881 = vmatpush1.bf16.msra.mxu0 %v14233_v37  ;;  %5922 = vmatpush1.bf16.msra.mxu1 %v14236_v38  ;;  %v14301_v38 = vld [vmem:[%s15827_s12 + $0xba4] ss:$16 sps:$4 sm:$0xff]  }
 0x4af   : > { %6108 = vmatprep.subr.bf16.mxu0 %v14241_v41  ;;  %6149 = vmatprep.subr.bf16.mxu1 %v14244_v42 }
 0x4b1   : > { %v4448_v45 = vpop.f32.mrf.mxu0  ;;  %v4489_v50 = vpop.f32.mrf.mxu1  ;;  %5899 = vmatmul.mubr.bf16.vlgmr.msra.gmra.mxu0 %v2481_v49  ;;  %5940 = vmatmul.mubr.bf16.vlgmr.msra.gmra.mxu1 %v2481_v49  ;;  %v14302_v49 = vld [vmem:[%s15827_s12 + $0xba8] ss:$16 sps:$4 sm:$0xff]  }
 0x4b2   : > { %v16804_v59 = vadd.f32 %v16757_v2, %v4448_v45  ;;  %v16807_v51 = vadd.f32 %v16760_v3, %v4489_v50  ;;  %6109 = vmatpush1.bf16.msra.mxu0 %v14239_v44  ;;  %6150 = vmatpush1.bf16.msra.mxu1 %v14242_v63  ;;  %v14260_v2 = vld [vmem:[%s15827_s12 + $0xa88] ss:$16 sps:$4 sm:$0xff]   ;;  %v14265_v3 = vld [vmem:[%s15827_s12 + $0xa64] ss:$16 sps:$4 sm:$0xff]   ;;  %v14299_v44 = vld [vmem:[%s15827_s12 + $0xba0] ss:$16 sps:$4 sm:$0xff]  }
 0x4b3   : > { %v4450_v52 = vpop.f32.mrf.mxu0  ;;  %v4491_v54 = vpop.f32.mrf.mxu1  ;;  %6110 = vmatprep.subr.bf16.mxu0 %v14247_v46  ;;  %6151 = vmatprep.subr.bf16.mxu1 %v14250_v9  ;;  %v14310_v45 = vld [vmem:[%s15827_s12 + $0xb8c] ss:$16 sps:$4 sm:$0xff]   ;;  %v14305_v50 = vld [vmem:[%s15827_s12 + $0xb80] ss:$16 sps:$4 sm:$0xff]  }
 0x4b4   : > { %v16812_v55 = vadd.f32 %v16765_v8, %v4450_v52  ;;  %v16815_v56 = vadd.f32 %v16768_v10, %v4491_v54  ;;  %6140 = vmatprep.mubr.bf16.mxu0 %v15590_v39  ;;  %6181 = vmatprep.mubr.bf16.mxu1 %v15590_v39  ;;  %v14274_v8 = vld [vmem:[%s15827_s12 + $0xa4c] ss:$16 sps:$4 sm:$0xff]   ;;  %v14269_v10 = vld [vmem:[%s15827_s12 + $0xa40] ss:$16 sps:$4 sm:$0xff]  }
 0x4b5   : > { %v4452_v23 = vpop.f32.mrf.mxu0  ;;  %v4493_v60 = vpop.f32.mrf.mxu1  ;;  %v14316_v52 = vld [vmem:[%s15827_s12 + $0xb6c] ss:$16 sps:$4 sm:$0xff]   ;;  %v14311_v54 = vld [vmem:[%s15827_s12 + $0xb60] ss:$16 sps:$4 sm:$0xff]  }
 0x4b6   : > { %6111 = vmatpush1.bf16.msra.mxu0 %v14245_v15  ;;  %6152 = vmatpush1.bf16.msra.mxu1 %v14248_v47  ;;  %v14307_v47 = vld [vmem:[%s15827_s12 + $0xb84] ss:$16 sps:$4 sm:$0xff]   ;;  %v14328_v23 = vld [vmem:[%s15827_s12 + $0xb2c] ss:$16 sps:$4 sm:$0xff]   ;;  %v14323_v60 = vld [vmem:[%s15827_s12 + $0xb20] ss:$16 sps:$4 sm:$0xff]  }
 0x4b7   : > { %v4453_v61 = vpop.f32.mrf.mxu0  ;;  %v4494_v62 = vpop.f32.mrf.mxu1  ;;  %6112 = vmatprep.subr.bf16.mxu0 %v14253_v31  ;;  %6153 = vmatprep.subr.bf16.mxu1 %v14256_v5  ;;  %v14314_v31 = vld [vmem:[%s15827_s12 + $0xb68] ss:$16 sps:$4 sm:$0xff]   ;;  %v14319_v5 = vld [vmem:[%s15827_s12 + $0xb44] ss:$16 sps:$4 sm:$0xff]  }
 0x4b8   : > { %v14326_v61 = vld [vmem:[%s15827_s12 + $0xb28] ss:$16 sps:$4 sm:$0xff]   ;;  %v14331_v62 = vld [vmem:[%s15827_s12 + $0xb04] ss:$16 sps:$4 sm:$0xff]  }
 0x4ba   : > { %6113 = vmatpush1.bf16.msra.mxu0 %v14251_v58  ;;  %6154 = vmatpush1.bf16.msra.mxu1 %v14254_v48  ;;  %v14320_v58 = vld [vmem:[%s15827_s12 + $0xb48] ss:$16 sps:$4 sm:$0xff]   ;;  %v14325_v48 = vld [vmem:[%s15827_s12 + $0xb24] ss:$16 sps:$4 sm:$0xff]  }
 0x4bb   : > { %6114 = vmatprep.subr.bf16.mxu0 %v14259_v0  ;;  %6155 = vmatprep.subr.bf16.mxu1 %v14262_v40  ;;  %v14334_v0 = vld [vmem:[%s15827_s12 + $0xb0c] ss:$16 sps:$4 sm:$0xff]   ;;  %v14329_v40 = vld [vmem:[%s15827_s12 + $0xb00] ss:$16 sps:$4 sm:$0xff]  }
 0x4be   : > { %6115 = vmatpush1.bf16.msra.mxu0 %v14257_v1  ;;  %6156 = vmatpush1.bf16.msra.mxu1 %v14260_v2  ;;  %v14332_v1 = vld [vmem:[%s15827_s12 + $0xb08] ss:$16 sps:$4 sm:$0xff]   ;;  %v2451_v2 = vld [vmem:[%s16445_s21 + $0x58] sm:$0xff] }
 0x4bf   : > { %6116 = vmatprep.subr.bf16.mxu0 %v14265_v3  ;;  %6157 = vmatprep.subr.bf16.mxu1 %v14268_v4  ;;  %v14337_v3 = vld [vmem:[%s15827_s12 + $0xce4] ss:$16 sps:$4 sm:$0xff]   ;;  %v14340_v4 = vld [vmem:[%s15827_s12 + $0xcec] ss:$16 sps:$4 sm:$0xff]  }
 0x4c2   : > { %6117 = vmatpush1.bf16.msra.mxu0 %v14263_v57  ;;  %6158 = vmatpush1.bf16.msra.mxu1 %v14266_v6  ;;  %v14335_v57 = vld [vmem:[%s15827_s12 + $0xce0] ss:$16 sps:$4 sm:$0xff]   ;;  %v2483_v6 = vpack.c.bf16 %v2451_v2, %v2451_v2  ;;  %v14400_v2 = vld [vmem:[%s15827_s12 + $0xdac] ss:$16 sps:$4 sm:$0xff]  }
 0x4c3   : > { %6118 = vmatprep.subr.bf16.mxu0 %v14271_v7  ;;  %6159 = vmatprep.subr.bf16.mxu1 %v14274_v8  ;;  %v14338_v7 = vld [vmem:[%s15827_s12 + $0xce8] ss:$16 sps:$4 sm:$0xff]   ;;  %v14343_v8 = vld [vmem:[%s15827_s12 + $0xcc4] ss:$16 sps:$4 sm:$0xff]  }
 0x4c6   : > { %6119 = vmatpush1.bf16.msra.mxu0 %v14269_v10  ;;  %6160 = vmatpush1.bf16.msra.mxu1 %v14272_v11  ;;  %v14346_v10 = vld [vmem:[%s15827_s12 + $0xccc] ss:$16 sps:$4 sm:$0xff]   ;;  %v14341_v11 = vld [vmem:[%s15827_s12 + $0xcc0] ss:$16 sps:$4 sm:$0xff]  }
 0x4c7   : > { %6120 = vmatprep.subr.bf16.mxu0 %v14277_v12  ;;  %6161 = vmatprep.subr.bf16.mxu1 %v14280_v13  ;;  %v14344_v12 = vld [vmem:[%s15827_s12 + $0xcc8] ss:$16 sps:$4 sm:$0xff]  }
 0x4ca   : > { %6121 = vmatpush1.bf16.msra.mxu0 %v14275_v14  ;;  %6162 = vmatpush1.bf16.msra.mxu1 %v14278_v16 }
 0x4cb   : > { %6122 = vmatprep.subr.bf16.mxu0 %v14283_v17  ;;  %6163 = vmatprep.subr.bf16.mxu1 %v14286_v18 }
 0x4ce   : > { %6123 = vmatpush1.bf16.msra.mxu0 %v14281_v19  ;;  %6164 = vmatpush1.bf16.msra.mxu1 %v14284_v20  ;;  %v14349_v20 = vld [vmem:[%s15827_s12 + $0xca4] ss:$16 sps:$4 sm:$0xff]  }
 0x4cf   : > { %6350 = vmatprep.subr.bf16.mxu0 %v14289_v22  ;;  %6391 = vmatprep.subr.bf16.mxu1 %v14292_v24 }
 0x4d1   : > { %v4690_v43 = vpop.f32.mrf.mxu0  ;;  %v4731_v34 = vpop.f32.mrf.mxu1  ;;  %6141 = vmatmul.mubr.bf16.vlgmr.msra.gmra.mxu0 %v2482_v26  ;;  %6182 = vmatmul.mubr.bf16.vlgmr.msra.gmra.mxu1 %v2482_v26  ;;  %v14350_v26 = vld [vmem:[%s15827_s12 + $0xca8] ss:$16 sps:$4 sm:$0xff]  }
 0x4d2   : > { %v16851_v29 = vadd.f32 %v16804_v59, %v4690_v43  ;;  %v16854_v35 = vadd.f32 %v16807_v51, %v4731_v34  ;;  %6351 = vmatpush1.bf16.msra.mxu0 %v14287_v25  ;;  %6392 = vmatpush1.bf16.msra.mxu1 %v14290_v33  ;;  %v14308_v59 = vld [vmem:[%s15827_s12 + $0xb88] ss:$16 sps:$4 sm:$0xff]   ;;  %v14313_v51 = vld [vmem:[%s15827_s12 + $0xb64] ss:$16 sps:$4 sm:$0xff]   ;;  %v14347_v25 = vld [vmem:[%s15827_s12 + $0xca0] ss:$16 sps:$4 sm:$0xff]  }
 0x4d3   : > { %v4692_v36 = vpop.f32.mrf.mxu0  ;;  %v4733_v37 = vpop.f32.mrf.mxu1  ;;  %6352 = vmatprep.subr.bf16.mxu0 %v14295_v27  ;;  %6393 = vmatprep.subr.bf16.mxu1 %v14298_v28  ;;  %v14358_v43 = vld [vmem:[%s15827_s12 + $0xc8c] ss:$16 sps:$4 sm:$0xff]   ;;  %v14353_v34 = vld [vmem:[%s15827_s12 + $0xc80] ss:$16 sps:$4 sm:$0xff]  }
 0x4d4   : > { %v16859_v41 = vadd.f32 %v16812_v55, %v4692_v36  ;;  %v16862_v42 = vadd.f32 %v16815_v56, %v4733_v37  ;;  %6382 = vmatprep.mubr.bf16.mxu0 %v15590_v39  ;;  %6423 = vmatprep.mubr.bf16.mxu1 %v15590_v39  ;;  %v14322_v55 = vld [vmem:[%s15827_s12 + $0xb4c] ss:$16 sps:$4 sm:$0xff]   ;;  %v14317_v56 = vld [vmem:[%s15827_s12 + $0xb40] ss:$16 sps:$4 sm:$0xff]  }
 0x4d5   : > { %v4694_v63 = vpop.f32.mrf.mxu0  ;;  %v4735_v46 = vpop.f32.mrf.mxu1  ;;  %v14364_v36 = vld [vmem:[%s15827_s12 + $0xc6c] ss:$16 sps:$4 sm:$0xff]   ;;  %v14359_v37 = vld [vmem:[%s15827_s12 + $0xc60] ss:$16 sps:$4 sm:$0xff]  }
 0x4d6   : > { %6353 = vmatpush1.bf16.msra.mxu0 %v14293_v30  ;;  %6394 = vmatpush1.bf16.msra.mxu1 %v14296_v32  ;;  %v14355_v32 = vld [vmem:[%s15827_s12 + $0xc84] ss:$16 sps:$4 sm:$0xff]   ;;  %v14376_v63 = vld [vmem:[%s15827_s12 + $0xc2c] ss:$16 sps:$4 sm:$0xff]   ;;  %v14371_v46 = vld [vmem:[%s15827_s12 + $0xc20] ss:$16 sps:$4 sm:$0xff]  }
 0x4d7   : > { %v4695_v9 = vpop.f32.mrf.mxu0  ;;  %v4736_v15 = vpop.f32.mrf.mxu1  ;;  %6354 = vmatprep.subr.bf16.mxu0 %v14301_v38  ;;  %6395 = vmatprep.subr.bf16.mxu1 %v14304_v53  ;;  %v14362_v38 = vld [vmem:[%s15827_s12 + $0xc68] ss:$16 sps:$4 sm:$0xff]   ;;  %v14367_v53 = vld [vmem:[%s15827_s12 + $0xc44] ss:$16 sps:$4 sm:$0xff]  }
 0x4d8   : > { %v14374_v9 = vld [vmem:[%s15827_s12 + $0xc28] ss:$16 sps:$4 sm:$0xff]   ;;  %v14379_v15 = vld [vmem:[%s15827_s12 + $0xc04] ss:$16 sps:$4 sm:$0xff]  }
 0x4da   : > { %6355 = vmatpush1.bf16.msra.mxu0 %v14299_v44  ;;  %6396 = vmatpush1.bf16.msra.mxu1 %v14302_v49  ;;  %v14368_v44 = vld [vmem:[%s15827_s12 + $0xc48] ss:$16 sps:$4 sm:$0xff]   ;;  %v14373_v49 = vld [vmem:[%s15827_s12 + $0xc24] ss:$16 sps:$4 sm:$0xff]  }
 0x4db   : > { %6356 = vmatprep.subr.bf16.mxu0 %v14307_v47  ;;  %6397 = vmatprep.subr.bf16.mxu1 %v14310_v45  ;;  %v14382_v47 = vld [vmem:[%s15827_s12 + $0xc0c] ss:$16 sps:$4 sm:$0xff]   ;;  %v14377_v45 = vld [vmem:[%s15827_s12 + $0xc00] ss:$16 sps:$4 sm:$0xff]  }
 0x4de   : > { %6357 = vmatpush1.bf16.msra.mxu0 %v14305_v50  ;;  %6398 = vmatpush1.bf16.msra.mxu1 %v14308_v59  ;;  %v14380_v50 = vld [vmem:[%s15827_s12 + $0xc08] ss:$16 sps:$4 sm:$0xff]  }
 0x4df   : > { %6358 = vmatprep.subr.bf16.mxu0 %v14313_v51  ;;  %6399 = vmatprep.subr.bf16.mxu1 %v14316_v52  ;;  %v2452_v59 = vld [vmem:[%s16445_s21 + $0x60] sm:$0xff] }
 0x4e0   : > { %v14385_v51 = vld [vmem:[%s15827_s12 + $0xde4] ss:$16 sps:$4 sm:$0xff]   ;;  %v14388_v52 = vld [vmem:[%s15827_s12 + $0xdec] ss:$16 sps:$4 sm:$0xff]  }
 0x4e2   : > { %6359 = vmatpush1.bf16.msra.mxu0 %v14311_v54  ;;  %6400 = vmatpush1.bf16.msra.mxu1 %v14314_v31  ;;  %v14383_v54 = vld [vmem:[%s15827_s12 + $0xde0] ss:$16 sps:$4 sm:$0xff]   ;;  %v2484_v31 = vpack.c.bf16 %v2452_v59, %v2452_v59  ;;  %v14448_v59 = vld [vmem:[%s15827_s12 + $0xeac] ss:$16 sps:$4 sm:$0xff]  }
 0x4e3   : > { %6360 = vmatprep.subr.bf16.mxu0 %v14319_v5  ;;  %6401 = vmatprep.subr.bf16.mxu1 %v14322_v55  ;;  %v14386_v5 = vld [vmem:[%s15827_s12 + $0xde8] ss:$16 sps:$4 sm:$0xff]   ;;  %v14391_v55 = vld [vmem:[%s15827_s12 + $0xdc4] ss:$16 sps:$4 sm:$0xff]  }
 0x4e6   : > { %6361 = vmatpush1.bf16.msra.mxu0 %v14317_v56  ;;  %6402 = vmatpush1.bf16.msra.mxu1 %v14320_v58  ;;  %v14394_v56 = vld [vmem:[%s15827_s12 + $0xdcc] ss:$16 sps:$4 sm:$0xff]   ;;  %v14389_v58 = vld [vmem:[%s15827_s12 + $0xdc0] ss:$16 sps:$4 sm:$0xff]  }
 0x4e7   : > { %6362 = vmatprep.subr.bf16.mxu0 %v14325_v48  ;;  %6403 = vmatprep.subr.bf16.mxu1 %v14328_v23  ;;  %v14392_v48 = vld [vmem:[%s15827_s12 + $0xdc8] ss:$16 sps:$4 sm:$0xff]  }
 0x4ea   : > { %6363 = vmatpush1.bf16.msra.mxu0 %v14323_v60  ;;  %6404 = vmatpush1.bf16.msra.mxu1 %v14326_v61 }
 0x4eb   : > { %6364 = vmatprep.subr.bf16.mxu0 %v14331_v62  ;;  %6405 = vmatprep.subr.bf16.mxu1 %v14334_v0 }
 0x4ee   : > { %6365 = vmatpush1.bf16.msra.mxu0 %v14329_v40  ;;  %6406 = vmatpush1.bf16.msra.mxu1 %v14332_v1  ;;  %v14397_v1 = vld [vmem:[%s15827_s12 + $0xda4] ss:$16 sps:$4 sm:$0xff]  }
 0x4ef   : > { %6592 = vmatprep.subr.bf16.mxu0 %v14337_v3  ;;  %6633 = vmatprep.subr.bf16.mxu1 %v14340_v4 }
 0x4f1   : > { %v4932_v13 = vpop.f32.mrf.mxu0  ;;  %v4973_v14 = vpop.f32.mrf.mxu1  ;;  %6383 = vmatmul.mubr.bf16.vlgmr.msra.gmra.mxu0 %v2483_v6  ;;  %6424 = vmatmul.mubr.bf16.vlgmr.msra.gmra.mxu1 %v2483_v6  ;;  %v14398_v6 = vld [vmem:[%s15827_s12 + $0xda8] ss:$16 sps:$4 sm:$0xff]  }
 0x4f2   : > { %v16898_v16 = vadd.f32 %v16851_v29, %v4932_v13  ;;  %v16901_v17 = vadd.f32 %v16854_v35, %v4973_v14  ;;  %6593 = vmatpush1.bf16.msra.mxu0 %v14335_v57  ;;  %6634 = vmatpush1.bf16.msra.mxu1 %v14338_v7  ;;  %v14356_v29 = vld [vmem:[%s15827_s12 + $0xc88] ss:$16 sps:$4 sm:$0xff]   ;;  %v14361_v35 = vld [vmem:[%s15827_s12 + $0xc64] ss:$16 sps:$4 sm:$0xff]   ;;  %v14395_v57 = vld [vmem:[%s15827_s12 + $0xda0] ss:$16 sps:$4 sm:$0xff]  }
 0x4f3   : > { %v4934_v18 = vpop.f32.mrf.mxu0  ;;  %v4975_v19 = vpop.f32.mrf.mxu1  ;;  %6594 = vmatprep.subr.bf16.mxu0 %v14343_v8  ;;  %6635 = vmatprep.subr.bf16.mxu1 %v14346_v10  ;;  %v14406_v13 = vld [vmem:[%s15827_s12 + $0xd8c] ss:$16 sps:$4 sm:$0xff]   ;;  %v14401_v14 = vld [vmem:[%s15827_s12 + $0xd80] ss:$16 sps:$4 sm:$0xff]  }
 0x4f4   : > { %v16906_v22 = vadd.f32 %v16859_v41, %v4934_v18  ;;  %v16909_v24 = vadd.f32 %v16862_v42, %v4975_v19  ;;  %6624 = vmatprep.mubr.bf16.mxu0 %v15590_v39  ;;  %6665 = vmatprep.mubr.bf16.mxu1 %v15590_v39  ;;  %v14370_v41 = vld [vmem:[%s15827_s12 + $0xc4c] ss:$16 sps:$4 sm:$0xff]   ;;  %v14365_v42 = vld [vmem:[%s15827_s12 + $0xc40] ss:$16 sps:$4 sm:$0xff]  }
 0x4f5   : > { %v4936_v33 = vpop.f32.mrf.mxu0  ;;  %v4977_v27 = vpop.f32.mrf.mxu1  ;;  %v14412_v18 = vld [vmem:[%s15827_s12 + $0xd6c] ss:$16 sps:$4 sm:$0xff]   ;;  %v14407_v19 = vld [vmem:[%s15827_s12 + $0xd60] ss:$16 sps:$4 sm:$0xff]  }
 0x4f6   : > { %6595 = vmatpush1.bf16.msra.mxu0 %v14341_v11  ;;  %6636 = vmatpush1.bf16.msra.mxu1 %v14344_v12  ;;  %v14403_v12 = vld [vmem:[%s15827_s12 + $0xd84] ss:$16 sps:$4 sm:$0xff]   ;;  %v14424_v33 = vld [vmem:[%s15827_s12 + $0xd2c] ss:$16 sps:$4 sm:$0xff]   ;;  %v14419_v27 = vld [vmem:[%s15827_s12 + $0xd20] ss:$16 sps:$4 sm:$0xff]  }
 0x4f7   : > { %v4937_v28 = vpop.f32.mrf.mxu0  ;;  %v4978_v30 = vpop.f32.mrf.mxu1  ;;  %6596 = vmatprep.subr.bf16.mxu0 %v14349_v20  ;;  %6637 = vmatprep.subr.bf16.mxu1 %v14352_v21  ;;  %v14410_v20 = vld [vmem:[%s15827_s12 + $0xd68] ss:$16 sps:$4 sm:$0xff]   ;;  %v14415_v21 = vld [vmem:[%s15827_s12 + $0xd44] ss:$16 sps:$4 sm:$0xff]  }
 0x4f8   : > { %v14422_v28 = vld [vmem:[%s15827_s12 + $0xd28] ss:$16 sps:$4 sm:$0xff]   ;;  %v14427_v30 = vld [vmem:[%s15827_s12 + $0xd04] ss:$16 sps:$4 sm:$0xff]  }
 0x4fa   : > { %6597 = vmatpush1.bf16.msra.mxu0 %v14347_v25  ;;  %6638 = vmatpush1.bf16.msra.mxu1 %v14350_v26  ;;  %v14416_v25 = vld [vmem:[%s15827_s12 + $0xd48] ss:$16 sps:$4 sm:$0xff]   ;;  %v14421_v26 = vld [vmem:[%s15827_s12 + $0xd24] ss:$16 sps:$4 sm:$0xff]  }
 0x4fb   : > { %6598 = vmatprep.subr.bf16.mxu0 %v14355_v32  ;;  %6639 = vmatprep.subr.bf16.mxu1 %v14358_v43  ;;  %v14430_v32 = vld [vmem:[%s15827_s12 + $0xd0c] ss:$16 sps:$4 sm:$0xff]   ;;  %v14425_v43 = vld [vmem:[%s15827_s12 + $0xd00] ss:$16 sps:$4 sm:$0xff]  }
 0x4fe   : > { %6599 = vmatpush1.bf16.msra.mxu0 %v14353_v34  ;;  %6640 = vmatpush1.bf16.msra.mxu1 %v14356_v29  ;;  %v14428_v34 = vld [vmem:[%s15827_s12 + $0xd08] ss:$16 sps:$4 sm:$0xff]   ;;  %v2453_v29 = vld [vmem:[%s16445_s21 + $0x68] sm:$0xff] }
 0x4ff   : > { %6600 = vmatprep.subr.bf16.mxu0 %v14361_v35  ;;  %6641 = vmatprep.subr.bf16.mxu1 %v14364_v36  ;;  %v14433_v35 = vld [vmem:[%s15827_s12 + $0xee4] ss:$16 sps:$4 sm:$0xff]   ;;  %v14436_v36 = vld [vmem:[%s15827_s12 + $0xeec] ss:$16 sps:$4 sm:$0xff]  }
 0x502   : > { %6601 = vmatpush1.bf16.msra.mxu0 %v14359_v37  ;;  %6642 = vmatpush1.bf16.msra.mxu1 %v14362_v38  ;;  %v14431_v37 = vld [vmem:[%s15827_s12 + $0xee0] ss:$16 sps:$4 sm:$0xff]   ;;  %v2485_v38 = vpack.c.bf16 %v2453_v29, %v2453_v29  ;;  %v14496_v29 = vld [vmem:[%s15827_s12 + $0xfac] ss:$16 sps:$4 sm:$0xff]  }
 0x503   : > { %6602 = vmatprep.subr.bf16.mxu0 %v14367_v53  ;;  %6643 = vmatprep.subr.bf16.mxu1 %v14370_v41  ;;  %v14434_v53 = vld [vmem:[%s15827_s12 + $0xee8] ss:$16 sps:$4 sm:$0xff]   ;;  %v14439_v41 = vld [vmem:[%s15827_s12 + $0xec4] ss:$16 sps:$4 sm:$0xff]  }
 0x506   : > { %6603 = vmatpush1.bf16.msra.mxu0 %v14365_v42  ;;  %6644 = vmatpush1.bf16.msra.mxu1 %v14368_v44  ;;  %v14442_v42 = vld [vmem:[%s15827_s12 + $0xecc] ss:$16 sps:$4 sm:$0xff]   ;;  %v14437_v44 = vld [vmem:[%s15827_s12 + $0xec0] ss:$16 sps:$4 sm:$0xff]  }
 0x507   : > { %6604 = vmatprep.subr.bf16.mxu0 %v14373_v49  ;;  %6645 = vmatprep.subr.bf16.mxu1 %v14376_v63  ;;  %v14440_v49 = vld [vmem:[%s15827_s12 + $0xec8] ss:$16 sps:$4 sm:$0xff]  }
 0x50a   : > { %6605 = vmatpush1.bf16.msra.mxu0 %v14371_v46  ;;  %6646 = vmatpush1.bf16.msra.mxu1 %v14374_v9 }
 0x50b   : > { %6606 = vmatprep.subr.bf16.mxu0 %v14379_v15  ;;  %6647 = vmatprep.subr.bf16.mxu1 %v14382_v47 }
 0x50e   : > { %6607 = vmatpush1.bf16.msra.mxu0 %v14377_v45  ;;  %6648 = vmatpush1.bf16.msra.mxu1 %v14380_v50  ;;  %v14445_v50 = vld [vmem:[%s15827_s12 + $0xea4] ss:$16 sps:$4 sm:$0xff]  }
 0x50f   : > { %6834 = vmatprep.subr.bf16.mxu0 %v14385_v51  ;;  %6875 = vmatprep.subr.bf16.mxu1 %v14388_v52 }
 0x511   : > { %v5174_v23 = vpop.f32.mrf.mxu0  ;;  %v5215_v60 = vpop.f32.mrf.mxu1  ;;  %6625 = vmatmul.mubr.bf16.vlgmr.msra.gmra.mxu0 %v2484_v31  ;;  %6666 = vmatmul.mubr.bf16.vlgmr.msra.gmra.mxu1 %v2484_v31  ;;  %v14446_v31 = vld [vmem:[%s15827_s12 + $0xea8] ss:$16 sps:$4 sm:$0xff]  }
 0x512   : > { %v16945_v61 = vadd.f32 %v16898_v16, %v5174_v23  ;;  %v16948_v62 = vadd.f32 %v16901_v17, %v5215_v60  ;;  %6835 = vmatpush1.bf16.msra.mxu0 %v14383_v54  ;;  %6876 = vmatpush1.bf16.msra.mxu1 %v14386_v5  ;;  %v14404_v16 = vld [vmem:[%s15827_s12 + $0xd88] ss:$16 sps:$4 sm:$0xff]   ;;  %v14409_v17 = vld [vmem:[%s15827_s12 + $0xd64] ss:$16 sps:$4 sm:$0xff]   ;;  %v14443_v54 = vld [vmem:[%s15827_s12 + $0xea0] ss:$16 sps:$4 sm:$0xff]  }
 0x513   : > { %v5176_v0 = vpop.f32.mrf.mxu0  ;;  %v5217_v40 = vpop.f32.mrf.mxu1  ;;  %6836 = vmatprep.subr.bf16.mxu0 %v14391_v55  ;;  %6877 = vmatprep.subr.bf16.mxu1 %v14394_v56  ;;  %v14454_v23 = vld [vmem:[%s15827_s12 + $0xe8c] ss:$16 sps:$4 sm:$0xff]   ;;  %v14449_v60 = vld [vmem:[%s15827_s12 + $0xe80] ss:$16 sps:$4 sm:$0xff]  }
 0x514   : > { %v16953_v3 = vadd.f32 %v16906_v22, %v5176_v0  ;;  %v16956_v4 = vadd.f32 %v16909_v24, %v5217_v40  ;;  %6866 = vmatprep.mubr.bf16.mxu0 %v15590_v39  ;;  %6907 = vmatprep.mubr.bf16.mxu1 %v15590_v39  ;;  %v14418_v22 = vld [vmem:[%s15827_s12 + $0xd4c] ss:$16 sps:$4 sm:$0xff]   ;;  %v14413_v24 = vld [vmem:[%s15827_s12 + $0xd40] ss:$16 sps:$4 sm:$0xff]  }
 0x515   : > { %v5178_v7 = vpop.f32.mrf.mxu0  ;;  %v5219_v8 = vpop.f32.mrf.mxu1  ;;  %v14460_v0 = vld [vmem:[%s15827_s12 + $0xe6c] ss:$16 sps:$4 sm:$0xff]   ;;  %v14455_v40 = vld [vmem:[%s15827_s12 + $0xe60] ss:$16 sps:$4 sm:$0xff]  }
 0x516   : > { %6837 = vmatpush1.bf16.msra.mxu0 %v14389_v58  ;;  %6878 = vmatpush1.bf16.msra.mxu1 %v14392_v48  ;;  %v14451_v48 = vld [vmem:[%s15827_s12 + $0xe84] ss:$16 sps:$4 sm:$0xff]   ;;  %v14472_v7 = vld [vmem:[%s15827_s12 + $0xe2c] ss:$16 sps:$4 sm:$0xff]   ;;  %v14467_v8 = vld [vmem:[%s15827_s12 + $0xe20] ss:$16 sps:$4 sm:$0xff]  }
 0x517   : > { %v5179_v10 = vpop.f32.mrf.mxu0  ;;  %v5220_v11 = vpop.f32.mrf.mxu1  ;;  %6838 = vmatprep.subr.bf16.mxu0 %v14397_v1  ;;  %6879 = vmatprep.subr.bf16.mxu1 %v14400_v2  ;;  %v14458_v1 = vld [vmem:[%s15827_s12 + $0xe68] ss:$16 sps:$4 sm:$0xff]   ;;  %v14463_v2 = vld [vmem:[%s15827_s12 + $0xe44] ss:$16 sps:$4 sm:$0xff]  }
 0x518   : > { %v14470_v10 = vld [vmem:[%s15827_s12 + $0xe28] ss:$16 sps:$4 sm:$0xff]   ;;  %v14475_v11 = vld [vmem:[%s15827_s12 + $0xe04] ss:$16 sps:$4 sm:$0xff]  }
 0x51a   : > { %6839 = vmatpush1.bf16.msra.mxu0 %v14395_v57  ;;  %6880 = vmatpush1.bf16.msra.mxu1 %v14398_v6  ;;  %v14464_v57 = vld [vmem:[%s15827_s12 + $0xe48] ss:$16 sps:$4 sm:$0xff]   ;;  %v14469_v6 = vld [vmem:[%s15827_s12 + $0xe24] ss:$16 sps:$4 sm:$0xff]  }
 0x51b   : > { %6840 = vmatprep.subr.bf16.mxu0 %v14403_v12  ;;  %6881 = vmatprep.subr.bf16.mxu1 %v14406_v13  ;;  %v14478_v12 = vld [vmem:[%s15827_s12 + $0xe0c] ss:$16 sps:$4 sm:$0xff]   ;;  %v14473_v13 = vld [vmem:[%s15827_s12 + $0xe00] ss:$16 sps:$4 sm:$0xff]  }
 0x51e   : > { %6841 = vmatpush1.bf16.msra.mxu0 %v14401_v14  ;;  %6882 = vmatpush1.bf16.msra.mxu1 %v14404_v16  ;;  %v14476_v14 = vld [vmem:[%s15827_s12 + $0xe08] ss:$16 sps:$4 sm:$0xff]  }
 0x51f   : > { %6842 = vmatprep.subr.bf16.mxu0 %v14409_v17  ;;  %6883 = vmatprep.subr.bf16.mxu1 %v14412_v18  ;;  %v2454_v16 = vld [vmem:[%s16445_s21 + $0x70] sm:$0xff] }
 0x520   : > { %v14481_v17 = vld [vmem:[%s15827_s12 + $0xfe4] ss:$16 sps:$4 sm:$0xff]   ;;  %v14484_v18 = vld [vmem:[%s15827_s12 + $0xfec] ss:$16 sps:$4 sm:$0xff]  }
 0x522   : > { %6843 = vmatpush1.bf16.msra.mxu0 %v14407_v19  ;;  %6884 = vmatpush1.bf16.msra.mxu1 %v14410_v20  ;;  %v14479_v19 = vld [vmem:[%s15827_s12 + $0xfe0] ss:$16 sps:$4 sm:$0xff]   ;;  %v2486_v20 = vpack.c.bf16 %v2454_v16, %v2454_v16  ;;  %v14544_v16 = vld [vmem:[%s15827_s12 + $0x10ac] ss:$16 sps:$4 sm:$0xff]  }
 0x523   : > { %6844 = vmatprep.subr.bf16.mxu0 %v14415_v21  ;;  %6885 = vmatprep.subr.bf16.mxu1 %v14418_v22  ;;  %v14482_v21 = vld [vmem:[%s15827_s12 + $0xfe8] ss:$16 sps:$4 sm:$0xff]   ;;  %v14487_v22 = vld [vmem:[%s15827_s12 + $0xfc4] ss:$16 sps:$4 sm:$0xff]  }
 0x526   : > { %6845 = vmatpush1.bf16.msra.mxu0 %v14413_v24  ;;  %6886 = vmatpush1.bf16.msra.mxu1 %v14416_v25  ;;  %v14490_v24 = vld [vmem:[%s15827_s12 + $0xfcc] ss:$16 sps:$4 sm:$0xff]   ;;  %v14485_v25 = vld [vmem:[%s15827_s12 + $0xfc0] ss:$16 sps:$4 sm:$0xff]  }
 0x527   : > { %6846 = vmatprep.subr.bf16.mxu0 %v14421_v26  ;;  %6887 = vmatprep.subr.bf16.mxu1 %v14424_v33  ;;  %v14488_v26 = vld [vmem:[%s15827_s12 + $0xfc8] ss:$16 sps:$4 sm:$0xff]  }
 0x52a   : > { %6847 = vmatpush1.bf16.msra.mxu0 %v14419_v27  ;;  %6888 = vmatpush1.bf16.msra.mxu1 %v14422_v28 }
 0x52b   : > { %6848 = vmatprep.subr.bf16.mxu0 %v14427_v30  ;;  %6889 = vmatprep.subr.bf16.mxu1 %v14430_v32 }
 0x52e   : > { %6849 = vmatpush1.bf16.msra.mxu0 %v14425_v43  ;;  %6890 = vmatpush1.bf16.msra.mxu1 %v14428_v34  ;;  %v14493_v34 = vld [vmem:[%s15827_s12 + $0xfa4] ss:$16 sps:$4 sm:$0xff]  }
 0x52f   : > { %7076 = vmatprep.subr.bf16.mxu0 %v14433_v35  ;;  %7117 = vmatprep.subr.bf16.mxu1 %v14436_v36 }
 0x531   : > { %v5416_v63 = vpop.f32.mrf.mxu0  ;;  %v5457_v46 = vpop.f32.mrf.mxu1  ;;  %6867 = vmatmul.mubr.bf16.vlgmr.msra.gmra.mxu0 %v2485_v38  ;;  %6908 = vmatmul.mubr.bf16.vlgmr.msra.gmra.mxu1 %v2485_v38  ;;  %v14494_v38 = vld [vmem:[%s15827_s12 + $0xfa8] ss:$16 sps:$4 sm:$0xff]  }
 0x532   : > { %v16992_v9 = vadd.f32 %v16945_v61, %v5416_v63  ;;  %v16995_v15 = vadd.f32 %v16948_v62, %v5457_v46  ;;  %7077 = vmatpush1.bf16.msra.mxu0 %v14431_v37  ;;  %7118 = vmatpush1.bf16.msra.mxu1 %v14434_v53  ;;  %v14452_v61 = vld [vmem:[%s15827_s12 + $0xe88] ss:$16 sps:$4 sm:$0xff]   ;;  %v14457_v62 = vld [vmem:[%s15827_s12 + $0xe64] ss:$16 sps:$4 sm:$0xff]   ;;  %v14491_v37 = vld [vmem:[%s15827_s12 + $0xfa0] ss:$16 sps:$4 sm:$0xff]  }
 0x533   : > { %v5418_v47 = vpop.f32.mrf.mxu0  ;;  %v5459_v45 = vpop.f32.mrf.mxu1  ;;  %7078 = vmatprep.subr.bf16.mxu0 %v14439_v41  ;;  %7119 = vmatprep.subr.bf16.mxu1 %v14442_v42  ;;  %v14502_v63 = vld [vmem:[%s15827_s12 + $0xf8c] ss:$16 sps:$4 sm:$0xff]   ;;  %v14497_v46 = vld [vmem:[%s15827_s12 + $0xf80] ss:$16 sps:$4 sm:$0xff]  }
 0x534   : > { %v17000_v51 = vadd.f32 %v16953_v3, %v5418_v47  ;;  %v17003_v52 = vadd.f32 %v16956_v4, %v5459_v45  ;;  %7108 = vmatprep.mubr.bf16.mxu0 %v15590_v39  ;;  %7149 = vmatprep.mubr.bf16.mxu1 %v15590_v39  ;;  %v14466_v3 = vld [vmem:[%s15827_s12 + $0xe4c] ss:$16 sps:$4 sm:$0xff]   ;;  %v14461_v4 = vld [vmem:[%s15827_s12 + $0xe40] ss:$16 sps:$4 sm:$0xff]  }
 0x535   : > { %v5420_v5 = vpop.f32.mrf.mxu0  ;;  %v5461_v55 = vpop.f32.mrf.mxu1  ;;  %v14508_v47 = vld [vmem:[%s15827_s12 + $0xf6c] ss:$16 sps:$4 sm:$0xff]   ;;  %v14503_v45 = vld [vmem:[%s15827_s12 + $0xf60] ss:$16 sps:$4 sm:$0xff]  }
 0x536   : > { %7079 = vmatpush1.bf16.msra.mxu0 %v14437_v44  ;;  %7120 = vmatpush1.bf16.msra.mxu1 %v14440_v49  ;;  %v14499_v49 = vld [vmem:[%s15827_s12 + $0xf84] ss:$16 sps:$4 sm:$0xff]   ;;  %v14520_v5 = vld [vmem:[%s15827_s12 + $0xf2c] ss:$16 sps:$4 sm:$0xff]   ;;  %v14515_v55 = vld [vmem:[%s15827_s12 + $0xf20] ss:$16 sps:$4 sm:$0xff]  }
 0x537   : > { %v5421_v56 = vpop.f32.mrf.mxu0  ;;  %v5462_v58 = vpop.f32.mrf.mxu1  ;;  %7080 = vmatprep.subr.bf16.mxu0 %v14445_v50  ;;  %7121 = vmatprep.subr.bf16.mxu1 %v14448_v59  ;;  %v14506_v50 = vld [vmem:[%s15827_s12 + $0xf68] ss:$16 sps:$4 sm:$0xff]   ;;  %v14511_v59 = vld [vmem:[%s15827_s12 + $0xf44] ss:$16 sps:$4 sm:$0xff]  }
 0x538   : > { %v14518_v56 = vld [vmem:[%s15827_s12 + $0xf28] ss:$16 sps:$4 sm:$0xff]   ;;  %v14523_v58 = vld [vmem:[%s15827_s12 + $0xf04] ss:$16 sps:$4 sm:$0xff]  }
 0x53a   : > { %7081 = vmatpush1.bf16.msra.mxu0 %v14443_v54  ;;  %7122 = vmatpush1.bf16.msra.mxu1 %v14446_v31  ;;  %v14512_v54 = vld [vmem:[%s15827_s12 + $0xf48] ss:$16 sps:$4 sm:$0xff]   ;;  %v14517_v31 = vld [vmem:[%s15827_s12 + $0xf24] ss:$16 sps:$4 sm:$0xff]  }
 0x53b   : > { %7082 = vmatprep.subr.bf16.mxu0 %v14451_v48  ;;  %7123 = vmatprep.subr.bf16.mxu1 %v14454_v23  ;;  %v14526_v48 = vld [vmem:[%s15827_s12 + $0xf0c] ss:$16 sps:$4 sm:$0xff]   ;;  %v14521_v23 = vld [vmem:[%s15827_s12 + $0xf00] ss:$16 sps:$4 sm:$0xff]  }
 0x53e   : > { %7083 = vmatpush1.bf16.msra.mxu0 %v14449_v60  ;;  %7124 = vmatpush1.bf16.msra.mxu1 %v14452_v61  ;;  %v14524_v60 = vld [vmem:[%s15827_s12 + $0xf08] ss:$16 sps:$4 sm:$0xff]   ;;  %v2455_v61 = vld [vmem:[%s16445_s21 + $0x78] sm:$0xff] }
 0x53f   : > { %7084 = vmatprep.subr.bf16.mxu0 %v14457_v62  ;;  %7125 = vmatprep.subr.bf16.mxu1 %v14460_v0  ;;  %v14529_v62 = vld [vmem:[%s15827_s12 + $0x10e4] ss:$16 sps:$4 sm:$0xff]   ;;  %v14532_v0 = vld [vmem:[%s15827_s12 + $0x10ec] ss:$16 sps:$4 sm:$0xff]  }
 0x542   : > { %7085 = vmatpush1.bf16.msra.mxu0 %v14455_v40  ;;  %7126 = vmatpush1.bf16.msra.mxu1 %v14458_v1  ;;  %v14527_v40 = vld [vmem:[%s15827_s12 + $0x10e0] ss:$16 sps:$4 sm:$0xff]   ;;  %v2487_v1 = vpack.c.bf16 %v2455_v61, %v2455_v61  ;;  %v14592_v61 = vld [vmem:[%s15827_s12 + $0x11ac] ss:$16 sps:$4 sm:$0xff]  }
 0x543   : > { %7086 = vmatprep.subr.bf16.mxu0 %v14463_v2  ;;  %7127 = vmatprep.subr.bf16.mxu1 %v14466_v3  ;;  %v14530_v2 = vld [vmem:[%s15827_s12 + $0x10e8] ss:$16 sps:$4 sm:$0xff]   ;;  %v14535_v3 = vld [vmem:[%s15827_s12 + $0x10c4] ss:$16 sps:$4 sm:$0xff]  }
 0x546   : > { %7087 = vmatpush1.bf16.msra.mxu0 %v14461_v4  ;;  %7128 = vmatpush1.bf16.msra.mxu1 %v14464_v57  ;;  %v14538_v4 = vld [vmem:[%s15827_s12 + $0x10cc] ss:$16 sps:$4 sm:$0xff]   ;;  %v14533_v57 = vld [vmem:[%s15827_s12 + $0x10c0] ss:$16 sps:$4 sm:$0xff]  }
 0x547   : > { %7088 = vmatprep.subr.bf16.mxu0 %v14469_v6  ;;  %7129 = vmatprep.subr.bf16.mxu1 %v14472_v7  ;;  %v14536_v6 = vld [vmem:[%s15827_s12 + $0x10c8] ss:$16 sps:$4 sm:$0xff]  }
 0x54a   : > { %7089 = vmatpush1.bf16.msra.mxu0 %v14467_v8  ;;  %7130 = vmatpush1.bf16.msra.mxu1 %v14470_v10 }
 0x54b   : > { %7090 = vmatprep.subr.bf16.mxu0 %v14475_v11  ;;  %7131 = vmatprep.subr.bf16.mxu1 %v14478_v12 }
 0x54e   : > { %7091 = vmatpush1.bf16.msra.mxu0 %v14473_v13  ;;  %7132 = vmatpush1.bf16.msra.mxu1 %v14476_v14  ;;  %v14541_v14 = vld [vmem:[%s15827_s12 + $0x10a4] ss:$16 sps:$4 sm:$0xff]  }
 0x54f   : > { %7318 = vmatprep.subr.bf16.mxu0 %v14481_v17  ;;  %7359 = vmatprep.subr.bf16.mxu1 %v14484_v18 }
 0x551   : > { %v5658_v33 = vpop.f32.mrf.mxu0  ;;  %v5699_v27 = vpop.f32.mrf.mxu1  ;;  %7109 = vmatmul.mubr.bf16.vlgmr.msra.gmra.mxu0 %v2486_v20  ;;  %7150 = vmatmul.mubr.bf16.vlgmr.msra.gmra.mxu1 %v2486_v20  ;;  %v14542_v20 = vld [vmem:[%s15827_s12 + $0x10a8] ss:$16 sps:$4 sm:$0xff]  }
 0x552   : > { %v17039_v28 = vadd.f32 %v16992_v9, %v5658_v33  ;;  %v17042_v30 = vadd.f32 %v16995_v15, %v5699_v27  ;;  %7319 = vmatpush1.bf16.msra.mxu0 %v14479_v19  ;;  %7360 = vmatpush1.bf16.msra.mxu1 %v14482_v21  ;;  %v14500_v9 = vld [vmem:[%s15827_s12 + $0xf88] ss:$16 sps:$4 sm:$0xff]   ;;  %v14505_v15 = vld [vmem:[%s15827_s12 + $0xf64] ss:$16 sps:$4 sm:$0xff]   ;;  %v14539_v19 = vld [vmem:[%s15827_s12 + $0x10a0] ss:$16 sps:$4 sm:$0xff]  }
 0x553   : > { %v5660_v32 = vpop.f32.mrf.mxu0  ;;  %v5701_v43 = vpop.f32.mrf.mxu1  ;;  %7320 = vmatprep.subr.bf16.mxu0 %v14487_v22  ;;  %7361 = vmatprep.subr.bf16.mxu1 %v14490_v24  ;;  %v14550_v33 = vld [vmem:[%s15827_s12 + $0x108c] ss:$16 sps:$4 sm:$0xff]   ;;  %v14545_v27 = vld [vmem:[%s15827_s12 + $0x1080] ss:$16 sps:$4 sm:$0xff]  }
 0x554   : > { %v17047_v35 = vadd.f32 %v17000_v51, %v5660_v32  ;;  %v17050_v36 = vadd.f32 %v17003_v52, %v5701_v43  ;;  %7350 = vmatprep.mubr.bf16.mxu0 %v15590_v39  ;;  %7391 = vmatprep.mubr.bf16.mxu1 %v15590_v39  ;;  %v14514_v51 = vld [vmem:[%s15827_s12 + $0xf4c] ss:$16 sps:$4 sm:$0xff]   ;;  %v14509_v52 = vld [vmem:[%s15827_s12 + $0xf40] ss:$16 sps:$4 sm:$0xff]  }
 0x555   : > { %v5662_v53 = vpop.f32.mrf.mxu0  ;;  %v5703_v41 = vpop.f32.mrf.mxu1  ;;  %v14556_v32 = vld [vmem:[%s15827_s12 + $0x106c] ss:$16 sps:$4 sm:$0xff]   ;;  %v14551_v43 = vld [vmem:[%s15827_s12 + $0x1060] ss:$16 sps:$4 sm:$0xff]  }
 0x556   : > { %7321 = vmatpush1.bf16.msra.mxu0 %v14485_v25  ;;  %7362 = vmatpush1.bf16.msra.mxu1 %v14488_v26  ;;  %v14547_v26 = vld [vmem:[%s15827_s12 + $0x1084] ss:$16 sps:$4 sm:$0xff]   ;;  %v14568_v53 = vld [vmem:[%s15827_s12 + $0x102c] ss:$16 sps:$4 sm:$0xff]   ;;  %v14563_v41 = vld [vmem:[%s15827_s12 + $0x1020] ss:$16 sps:$4 sm:$0xff]  }
 0x557   : > { %v5663_v42 = vpop.f32.mrf.mxu0  ;;  %v5704_v44 = vpop.f32.mrf.mxu1  ;;  %7322 = vmatprep.subr.bf16.mxu0 %v14493_v34  ;;  %7363 = vmatprep.subr.bf16.mxu1 %v14496_v29  ;;  %v14554_v34 = vld [vmem:[%s15827_s12 + $0x1068] ss:$16 sps:$4 sm:$0xff]   ;;  %v14559_v29 = vld [vmem:[%s15827_s12 + $0x1044] ss:$16 sps:$4 sm:$0xff]  }
 0x558   : > { %v14566_v42 = vld [vmem:[%s15827_s12 + $0x1028] ss:$16 sps:$4 sm:$0xff]   ;;  %v14571_v44 = vld [vmem:[%s15827_s12 + $0x1004] ss:$16 sps:$4 sm:$0xff]  }
 0x55a   : > { %7323 = vmatpush1.bf16.msra.mxu0 %v14491_v37  ;;  %7364 = vmatpush1.bf16.msra.mxu1 %v14494_v38  ;;  %v14560_v37 = vld [vmem:[%s15827_s12 + $0x1048] ss:$16 sps:$4 sm:$0xff]   ;;  %v14565_v38 = vld [vmem:[%s15827_s12 + $0x1024] ss:$16 sps:$4 sm:$0xff]  }
 0x55b   : > { %7324 = vmatprep.subr.bf16.mxu0 %v14499_v49  ;;  %7365 = vmatprep.subr.bf16.mxu1 %v14502_v63  ;;  %v14574_v49 = vld [vmem:[%s15827_s12 + $0x100c] ss:$16 sps:$4 sm:$0xff]   ;;  %v14569_v63 = vld [vmem:[%s15827_s12 + $0x1000] ss:$16 sps:$4 sm:$0xff]  }
 0x55e   : > { %7325 = vmatpush1.bf16.msra.mxu0 %v14497_v46  ;;  %7366 = vmatpush1.bf16.msra.mxu1 %v14500_v9  ;;  %v14572_v46 = vld [vmem:[%s15827_s12 + $0x1008] ss:$16 sps:$4 sm:$0xff]  }
 0x55f   : > { %7326 = vmatprep.subr.bf16.mxu0 %v14505_v15  ;;  %7367 = vmatprep.subr.bf16.mxu1 %v14508_v47  ;;  %v2456_v9 = vld [vmem:[%s16445_s21 + $0x80] sm:$0xff] }
 0x560   : > { %v14577_v15 = vld [vmem:[%s15827_s12 + $0x11e4] ss:$16 sps:$4 sm:$0xff]   ;;  %v14580_v47 = vld [vmem:[%s15827_s12 + $0x11ec] ss:$16 sps:$4 sm:$0xff]  }
 0x562   : > { %7327 = vmatpush1.bf16.msra.mxu0 %v14503_v45  ;;  %7368 = vmatpush1.bf16.msra.mxu1 %v14506_v50  ;;  %v14575_v45 = vld [vmem:[%s15827_s12 + $0x11e0] ss:$16 sps:$4 sm:$0xff]   ;;  %v2488_v50 = vpack.c.bf16 %v2456_v9, %v2456_v9  ;;  %v14640_v9 = vld [vmem:[%s15827_s12 + $0x12ac] ss:$16 sps:$4 sm:$0xff]  }
 0x563   : > { %7328 = vmatprep.subr.bf16.mxu0 %v14511_v59  ;;  %7369 = vmatprep.subr.bf16.mxu1 %v14514_v51  ;;  %v14578_v59 = vld [vmem:[%s15827_s12 + $0x11e8] ss:$16 sps:$4 sm:$0xff]   ;;  %v14583_v51 = vld [vmem:[%s15827_s12 + $0x11c4] ss:$16 sps:$4 sm:$0xff]  }
 0x566   : > { %7329 = vmatpush1.bf16.msra.mxu0 %v14509_v52  ;;  %7370 = vmatpush1.bf16.msra.mxu1 %v14512_v54  ;;  %v14586_v52 = vld [vmem:[%s15827_s12 + $0x11cc] ss:$16 sps:$4 sm:$0xff]   ;;  %v14581_v54 = vld [vmem:[%s15827_s12 + $0x11c0] ss:$16 sps:$4 sm:$0xff]  }
 0x567   : > { %7330 = vmatprep.subr.bf16.mxu0 %v14517_v31  ;;  %7371 = vmatprep.subr.bf16.mxu1 %v14520_v5  ;;  %v14584_v31 = vld [vmem:[%s15827_s12 + $0x11c8] ss:$16 sps:$4 sm:$0xff]  }
 0x56a   : > { %7331 = vmatpush1.bf16.msra.mxu0 %v14515_v55  ;;  %7372 = vmatpush1.bf16.msra.mxu1 %v14518_v56 }
 0x56b   : > { %7332 = vmatprep.subr.bf16.mxu0 %v14523_v58  ;;  %7373 = vmatprep.subr.bf16.mxu1 %v14526_v48 }
 0x56e   : > { %7333 = vmatpush1.bf16.msra.mxu0 %v14521_v23  ;;  %7374 = vmatpush1.bf16.msra.mxu1 %v14524_v60  ;;  %v14589_v60 = vld [vmem:[%s15827_s12 + $0x11a4] ss:$16 sps:$4 sm:$0xff]  }
 0x56f   : > { %7560 = vmatprep.subr.bf16.mxu0 %v14529_v62  ;;  %7601 = vmatprep.subr.bf16.mxu1 %v14532_v0 }
 0x571   : > { %v5900_v7 = vpop.f32.mrf.mxu0  ;;  %v5941_v8 = vpop.f32.mrf.mxu1  ;;  %7351 = vmatmul.mubr.bf16.vlgmr.msra.gmra.mxu0 %v2487_v1  ;;  %7392 = vmatmul.mubr.bf16.vlgmr.msra.gmra.mxu1 %v2487_v1  ;;  %v14590_v1 = vld [vmem:[%s15827_s12 + $0x11a8] ss:$16 sps:$4 sm:$0xff]  }
 0x572   : > { %v17086_v10 = vadd.f32 %v17039_v28, %v5900_v7  ;;  %v17089_v11 = vadd.f32 %v17042_v30, %v5941_v8  ;;  %7561 = vmatpush1.bf16.msra.mxu0 %v14527_v40  ;;  %7602 = vmatpush1.bf16.msra.mxu1 %v14530_v2  ;;  %v14548_v28 = vld [vmem:[%s15827_s12 + $0x1088] ss:$16 sps:$4 sm:$0xff]   ;;  %v14553_v30 = vld [vmem:[%s15827_s12 + $0x1064] ss:$16 sps:$4 sm:$0xff]   ;;  %v14587_v40 = vld [vmem:[%s15827_s12 + $0x11a0] ss:$16 sps:$4 sm:$0xff]  }
 0x573   : > { %v5902_v12 = vpop.f32.mrf.mxu0  ;;  %v5943_v13 = vpop.f32.mrf.mxu1  ;;  %7562 = vmatprep.subr.bf16.mxu0 %v14535_v3  ;;  %7603 = vmatprep.subr.bf16.mxu1 %v14538_v4  ;;  %v14598_v7 = vld [vmem:[%s15827_s12 + $0x118c] ss:$16 sps:$4 sm:$0xff]   ;;  %v14593_v8 = vld [vmem:[%s15827_s12 + $0x1180] ss:$16 sps:$4 sm:$0xff]  }
 0x574   : > { %v17094_v17 = vadd.f32 %v17047_v35, %v5902_v12  ;;  %v17097_v18 = vadd.f32 %v17050_v36, %v5943_v13  ;;  %7592 = vmatprep.mubr.bf16.mxu0 %v15590_v39  ;;  %7633 = vmatprep.mubr.bf16.mxu1 %v15590_v39  ;;  %v14562_v35 = vld [vmem:[%s15827_s12 + $0x104c] ss:$16 sps:$4 sm:$0xff]   ;;  %v14557_v36 = vld [vmem:[%s15827_s12 + $0x1040] ss:$16 sps:$4 sm:$0xff]  }
 0x575   : > { %v5904_v21 = vpop.f32.mrf.mxu0  ;;  %v5945_v22 = vpop.f32.mrf.mxu1  ;;  %v14604_v12 = vld [vmem:[%s15827_s12 + $0x116c] ss:$16 sps:$4 sm:$0xff]   ;;  %v14599_v13 = vld [vmem:[%s15827_s12 + $0x1160] ss:$16 sps:$4 sm:$0xff]  }
 0x576   : > { %7563 = vmatpush1.bf16.msra.mxu0 %v14533_v57  ;;  %7604 = vmatpush1.bf16.msra.mxu1 %v14536_v6  ;;  %v14595_v6 = vld [vmem:[%s15827_s12 + $0x1184] ss:$16 sps:$4 sm:$0xff]   ;;  %v14616_v21 = vld [vmem:[%s15827_s12 + $0x112c] ss:$16 sps:$4 sm:$0xff]   ;;  %v14611_v22 = vld [vmem:[%s15827_s12 + $0x1120] ss:$16 sps:$4 sm:$0xff]  }
 0x577   : > { %v5905_v24 = vpop.f32.mrf.mxu0  ;;  %v5946_v25 = vpop.f32.mrf.mxu1  ;;  %7564 = vmatprep.subr.bf16.mxu0 %v14541_v14  ;;  %7605 = vmatprep.subr.bf16.mxu1 %v14544_v16  ;;  %v14602_v14 = vld [vmem:[%s15827_s12 + $0x1168] ss:$16 sps:$4 sm:$0xff]   ;;  %v14607_v16 = vld [vmem:[%s15827_s12 + $0x1144] ss:$16 sps:$4 sm:$0xff]  }
 0x578   : > { %v14614_v24 = vld [vmem:[%s15827_s12 + $0x1128] ss:$16 sps:$4 sm:$0xff]   ;;  %v14619_v25 = vld [vmem:[%s15827_s12 + $0x1104] ss:$16 sps:$4 sm:$0xff]  }
 0x57a   : > { %7565 = vmatpush1.bf16.msra.mxu0 %v14539_v19  ;;  %7606 = vmatpush1.bf16.msra.mxu1 %v14542_v20  ;;  %v14608_v19 = vld [vmem:[%s15827_s12 + $0x1148] ss:$16 sps:$4 sm:$0xff]   ;;  %v14613_v20 = vld [vmem:[%s15827_s12 + $0x1124] ss:$16 sps:$4 sm:$0xff]  }
 0x57b   : > { %7566 = vmatprep.subr.bf16.mxu0 %v14547_v26  ;;  %7607 = vmatprep.subr.bf16.mxu1 %v14550_v33  ;;  %v14622_v26 = vld [vmem:[%s15827_s12 + $0x110c] ss:$16 sps:$4 sm:$0xff]   ;;  %v14617_v33 = vld [vmem:[%s15827_s12 + $0x1100] ss:$16 sps:$4 sm:$0xff]  }
 0x57e   : > { %7567 = vmatpush1.bf16.msra.mxu0 %v14545_v27  ;;  %7608 = vmatpush1.bf16.msra.mxu1 %v14548_v28  ;;  %v14620_v27 = vld [vmem:[%s15827_s12 + $0x1108] ss:$16 sps:$4 sm:$0xff]   ;;  %v2457_v28 = vld [vmem:[%s16445_s21 + $0x88] sm:$0xff] }
 0x57f   : > { %7568 = vmatprep.subr.bf16.mxu0 %v14553_v30  ;;  %7609 = vmatprep.subr.bf16.mxu1 %v14556_v32  ;;  %v14625_v30 = vld [vmem:[%s15827_s12 + $0x12e4] ss:$16 sps:$4 sm:$0xff]   ;;  %v14628_v32 = vld [vmem:[%s15827_s12 + $0x12ec] ss:$16 sps:$4 sm:$0xff]  }
 0x582   : > { %7569 = vmatpush1.bf16.msra.mxu0 %v14551_v43  ;;  %7610 = vmatpush1.bf16.msra.mxu1 %v14554_v34  ;;  %v14623_v43 = vld [vmem:[%s15827_s12 + $0x12e0] ss:$16 sps:$4 sm:$0xff]   ;;  %v2489_v34 = vpack.c.bf16 %v2457_v28, %v2457_v28  ;;  %v14688_v28 = vld [vmem:[%s15827_s12 + $0x13ac] ss:$16 sps:$4 sm:$0xff]  }
 0x583   : > { %7570 = vmatprep.subr.bf16.mxu0 %v14559_v29  ;;  %7611 = vmatprep.subr.bf16.mxu1 %v14562_v35  ;;  %v14626_v29 = vld [vmem:[%s15827_s12 + $0x12e8] ss:$16 sps:$4 sm:$0xff]   ;;  %v14631_v35 = vld [vmem:[%s15827_s12 + $0x12c4] ss:$16 sps:$4 sm:$0xff]  }
 0x586   : > { %7571 = vmatpush1.bf16.msra.mxu0 %v14557_v36  ;;  %7612 = vmatpush1.bf16.msra.mxu1 %v14560_v37  ;;  %v14634_v36 = vld [vmem:[%s15827_s12 + $0x12cc] ss:$16 sps:$4 sm:$0xff]   ;;  %v14629_v37 = vld [vmem:[%s15827_s12 + $0x12c0] ss:$16 sps:$4 sm:$0xff]  }
 0x587   : > { %7572 = vmatprep.subr.bf16.mxu0 %v14565_v38  ;;  %7613 = vmatprep.subr.bf16.mxu1 %v14568_v53  ;;  %v14632_v38 = vld [vmem:[%s15827_s12 + $0x12c8] ss:$16 sps:$4 sm:$0xff]  }
 0x58a   : > { %7573 = vmatpush1.bf16.msra.mxu0 %v14563_v41  ;;  %7614 = vmatpush1.bf16.msra.mxu1 %v14566_v42 }
 0x58b   : > { %7574 = vmatprep.subr.bf16.mxu0 %v14571_v44  ;;  %7615 = vmatprep.subr.bf16.mxu1 %v14574_v49 }
 0x58e   : > { %7575 = vmatpush1.bf16.msra.mxu0 %v14569_v63  ;;  %7616 = vmatpush1.bf16.msra.mxu1 %v14572_v46  ;;  %v14637_v46 = vld [vmem:[%s15827_s12 + $0x12a4] ss:$16 sps:$4 sm:$0xff]  }
 0x58f   : > { %7802 = vmatprep.subr.bf16.mxu0 %v14577_v15  ;;  %7843 = vmatprep.subr.bf16.mxu1 %v14580_v47 }
 0x591   : > { %v6142_v5 = vpop.f32.mrf.mxu0  ;;  %v6183_v55 = vpop.f32.mrf.mxu1  ;;  %7593 = vmatmul.mubr.bf16.vlgmr.msra.gmra.mxu0 %v2488_v50  ;;  %7634 = vmatmul.mubr.bf16.vlgmr.msra.gmra.mxu1 %v2488_v50  ;;  %v14638_v50 = vld [vmem:[%s15827_s12 + $0x12a8] ss:$16 sps:$4 sm:$0xff]  }
 0x592   : > { %v17133_v56 = vadd.f32 %v17086_v10, %v6142_v5  ;;  %v17136_v58 = vadd.f32 %v17089_v11, %v6183_v55  ;;  %7803 = vmatpush1.bf16.msra.mxu0 %v14575_v45  ;;  %7844 = vmatpush1.bf16.msra.mxu1 %v14578_v59  ;;  %v14596_v10 = vld [vmem:[%s15827_s12 + $0x1188] ss:$16 sps:$4 sm:$0xff]   ;;  %v14601_v11 = vld [vmem:[%s15827_s12 + $0x1164] ss:$16 sps:$4 sm:$0xff]   ;;  %v14635_v45 = vld [vmem:[%s15827_s12 + $0x12a0] ss:$16 sps:$4 sm:$0xff]  }
 0x593   : > { %v6144_v48 = vpop.f32.mrf.mxu0  ;;  %v6185_v23 = vpop.f32.mrf.mxu1  ;;  %7804 = vmatprep.subr.bf16.mxu0 %v14583_v51  ;;  %7845 = vmatprep.subr.bf16.mxu1 %v14586_v52  ;;  %v14646_v5 = vld [vmem:[%s15827_s12 + $0x128c] ss:$16 sps:$4 sm:$0xff]   ;;  %v14641_v55 = vld [vmem:[%s15827_s12 + $0x1280] ss:$16 sps:$4 sm:$0xff]  }
 0x594   : > { %v17141_v62 = vadd.f32 %v17094_v17, %v6144_v48  ;;  %v17144_v0 = vadd.f32 %v17097_v18, %v6185_v23  ;;  %7834 = vmatprep.mubr.bf16.mxu0 %v15590_v39  ;;  %7875 = vmatprep.mubr.bf16.mxu1 %v15590_v39  ;;  %v14610_v17 = vld [vmem:[%s15827_s12 + $0x114c] ss:$16 sps:$4 sm:$0xff]   ;;  %v14605_v18 = vld [vmem:[%s15827_s12 + $0x1140] ss:$16 sps:$4 sm:$0xff]  }
 0x595   : > { %v6146_v2 = vpop.f32.mrf.mxu0  ;;  %v6187_v3 = vpop.f32.mrf.mxu1  ;;  %v14652_v48 = vld [vmem:[%s15827_s12 + $0x126c] ss:$16 sps:$4 sm:$0xff]   ;;  %v14647_v23 = vld [vmem:[%s15827_s12 + $0x1260] ss:$16 sps:$4 sm:$0xff]  }
 0x596   : > { %7805 = vmatpush1.bf16.msra.mxu0 %v14581_v54  ;;  %7846 = vmatpush1.bf16.msra.mxu1 %v14584_v31  ;;  %v14643_v31 = vld [vmem:[%s15827_s12 + $0x1284] ss:$16 sps:$4 sm:$0xff]   ;;  %v14664_v2 = vld [vmem:[%s15827_s12 + $0x122c] ss:$16 sps:$4 sm:$0xff]   ;;  %v14659_v3 = vld [vmem:[%s15827_s12 + $0x1220] ss:$16 sps:$4 sm:$0xff]  }
 0x597   : > { %v6147_v4 = vpop.f32.mrf.mxu0  ;;  %v6188_v57 = vpop.f32.mrf.mxu1  ;;  %7806 = vmatprep.subr.bf16.mxu0 %v14589_v60  ;;  %7847 = vmatprep.subr.bf16.mxu1 %v14592_v61  ;;  %v14650_v60 = vld [vmem:[%s15827_s12 + $0x1268] ss:$16 sps:$4 sm:$0xff]   ;;  %v14655_v61 = vld [vmem:[%s15827_s12 + $0x1244] ss:$16 sps:$4 sm:$0xff]  }
 0x598   : > { %v14662_v4 = vld [vmem:[%s15827_s12 + $0x1228] ss:$16 sps:$4 sm:$0xff]   ;;  %v14667_v57 = vld [vmem:[%s15827_s12 + $0x1204] ss:$16 sps:$4 sm:$0xff]  }
 0x59a   : > { %7807 = vmatpush1.bf16.msra.mxu0 %v14587_v40  ;;  %7848 = vmatpush1.bf16.msra.mxu1 %v14590_v1  ;;  %v14656_v40 = vld [vmem:[%s15827_s12 + $0x1248] ss:$16 sps:$4 sm:$0xff]   ;;  %v14661_v1 = vld [vmem:[%s15827_s12 + $0x1224] ss:$16 sps:$4 sm:$0xff]  }
 0x59b   : > { %7808 = vmatprep.subr.bf16.mxu0 %v14595_v6  ;;  %7849 = vmatprep.subr.bf16.mxu1 %v14598_v7  ;;  %v14670_v6 = vld [vmem:[%s15827_s12 + $0x120c] ss:$16 sps:$4 sm:$0xff]   ;;  %v14665_v7 = vld [vmem:[%s15827_s12 + $0x1200] ss:$16 sps:$4 sm:$0xff]  }
 0x59e   : > { %7809 = vmatpush1.bf16.msra.mxu0 %v14593_v8  ;;  %7850 = vmatpush1.bf16.msra.mxu1 %v14596_v10  ;;  %v14668_v8 = vld [vmem:[%s15827_s12 + $0x1208] ss:$16 sps:$4 sm:$0xff]  }
 0x59f   : > { %7810 = vmatprep.subr.bf16.mxu0 %v14601_v11  ;;  %7851 = vmatprep.subr.bf16.mxu1 %v14604_v12  ;;  %v2458_v10 = vld [vmem:[%s16445_s21 + $0x90] sm:$0xff] }
 0x5a0   : > { %v14673_v11 = vld [vmem:[%s15827_s12 + $0x13e4] ss:$16 sps:$4 sm:$0xff]   ;;  %v14676_v12 = vld [vmem:[%s15827_s12 + $0x13ec] ss:$16 sps:$4 sm:$0xff]  }
 0x5a2   : > { %7811 = vmatpush1.bf16.msra.mxu0 %v14599_v13  ;;  %7852 = vmatpush1.bf16.msra.mxu1 %v14602_v14  ;;  %v2490_v13 = vpack.c.bf16 %v2458_v10, %v2458_v10  ;;  %v14671_v14 = vld [vmem:[%s15827_s12 + $0x13e0] ss:$16 sps:$4 sm:$0xff]   ;;  %v14736_v10 = vld [vmem:[%s15827_s12 + $0x14ac] ss:$16 sps:$4 sm:$0xff]  }
 0x5a3   : > { %7812 = vmatprep.subr.bf16.mxu0 %v14607_v16  ;;  %7853 = vmatprep.subr.bf16.mxu1 %v14610_v17  ;;  %v14674_v16 = vld [vmem:[%s15827_s12 + $0x13e8] ss:$16 sps:$4 sm:$0xff]   ;;  %v14679_v17 = vld [vmem:[%s15827_s12 + $0x13c4] ss:$16 sps:$4 sm:$0xff]  }
 0x5a6   : > { %7813 = vmatpush1.bf16.msra.mxu0 %v14605_v18  ;;  %7854 = vmatpush1.bf16.msra.mxu1 %v14608_v19  ;;  %v14682_v18 = vld [vmem:[%s15827_s12 + $0x13cc] ss:$16 sps:$4 sm:$0xff]  }
 0x5a7   : > { %7814 = vmatprep.subr.bf16.mxu0 %v14613_v20  ;;  %7855 = vmatprep.subr.bf16.mxu1 %v14616_v21 }
 0x5aa   : > { %7815 = vmatpush1.bf16.msra.mxu0 %v14611_v22  ;;  %7856 = vmatpush1.bf16.msra.mxu1 %v14614_v24  ;;  %v14677_v24 = vld [vmem:[%s15827_s12 + $0x13c0] ss:$16 sps:$4 sm:$0xff]  }
 0x5ab   : > { %7816 = vmatprep.subr.bf16.mxu0 %v14619_v25  ;;  %7857 = vmatprep.subr.bf16.mxu1 %v14622_v26  ;;  %v14680_v25 = vld [vmem:[%s15827_s12 + $0x13c8] ss:$16 sps:$4 sm:$0xff]  }
 0x5ae   : > { %7817 = vmatpush1.bf16.msra.mxu0 %v14617_v33  ;;  %7858 = vmatpush1.bf16.msra.mxu1 %v14620_v27  ;;  %v14685_v27 = vld [vmem:[%s15827_s12 + $0x13a4] ss:$16 sps:$4 sm:$0xff]  }
 0x5af   : > { %8044 = vmatprep.subr.bf16.mxu0 %v14625_v30  ;;  %8085 = vmatprep.subr.bf16.mxu1 %v14628_v32 }
 0x5b1   : > { %v6384_v53 = vpop.f32.mrf.mxu0  ;;  %v6425_v41 = vpop.f32.mrf.mxu1  ;;  %7835 = vmatmul.mubr.bf16.vlgmr.msra.gmra.mxu0 %v2489_v34  ;;  %7876 = vmatmul.mubr.bf16.vlgmr.msra.gmra.mxu1 %v2489_v34 }
 0x5b2   : > { %v17180_v42 = vadd.f32 %v17133_v56, %v6384_v53  ;;  %v17183_v44 = vadd.f32 %v17136_v58, %v6425_v41  ;;  %8045 = vmatpush1.bf16.msra.mxu0 %v14623_v43  ;;  %8086 = vmatpush1.bf16.msra.mxu1 %v14626_v29  ;;  %v14644_v56 = vld [vmem:[%s15827_s12 + $0x1288] ss:$16 sps:$4 sm:$0xff]   ;;  %v14649_v58 = vld [vmem:[%s15827_s12 + $0x1264] ss:$16 sps:$4 sm:$0xff]   ;;  %v14683_v29 = vld [vmem:[%s15827_s12 + $0x13a0] ss:$16 sps:$4 sm:$0xff]  }
 0x5b3   : > { %v6386_v49 = vpop.f32.mrf.mxu0  ;;  %v6427_v63 = vpop.f32.mrf.mxu1  ;;  %8046 = vmatprep.subr.bf16.mxu0 %v14631_v35  ;;  %8087 = vmatprep.subr.bf16.mxu1 %v14634_v36  ;;  %v14686_v35 = vld [vmem:[%s15827_s12 + $0x13a8] ss:$16 sps:$4 sm:$0xff]   ;;  %v14694_v53 = vld [vmem:[%s15827_s12 + $0x138c] ss:$16 sps:$4 sm:$0xff]   ;;  %v14689_v41 = vld [vmem:[%s15827_s12 + $0x1380] ss:$16 sps:$4 sm:$0xff]  }
 0x5b4   : > { %v17188_v15 = vadd.f32 %v17141_v62, %v6386_v49  ;;  %v17191_v47 = vadd.f32 %v17144_v0, %v6427_v63  ;;  %8076 = vmatprep.mubr.bf16.mxu0 %v15590_v39  ;;  %8117 = vmatprep.mubr.bf16.mxu1 %v15590_v39  ;;  %v14658_v62 = vld [vmem:[%s15827_s12 + $0x124c] ss:$16 sps:$4 sm:$0xff]   ;;  %v14653_v0 = vld [vmem:[%s15827_s12 + $0x1240] ss:$16 sps:$4 sm:$0xff]  }
 0x5b5   : > { %v6388_v59 = vpop.f32.mrf.mxu0  ;;  %v6429_v51 = vpop.f32.mrf.mxu1  ;;  %v14700_v49 = vld [vmem:[%s15827_s12 + $0x136c] ss:$16 sps:$4 sm:$0xff]   ;;  %v14695_v63 = vld [vmem:[%s15827_s12 + $0x1360] ss:$16 sps:$4 sm:$0xff]  }
 0x5b6   : > { %8047 = vmatpush1.bf16.msra.mxu0 %v14629_v37  ;;  %8088 = vmatpush1.bf16.msra.mxu1 %v14632_v38  ;;  %v14691_v38 = vld [vmem:[%s15827_s12 + $0x1384] ss:$16 sps:$4 sm:$0xff]   ;;  %v14712_v59 = vld [vmem:[%s15827_s12 + $0x132c] ss:$16 sps:$4 sm:$0xff]   ;;  %v14707_v51 = vld [vmem:[%s15827_s12 + $0x1320] ss:$16 sps:$4 sm:$0xff]  }
 0x5b7   : > { %v6389_v52 = vpop.f32.mrf.mxu0  ;;  %v6430_v54 = vpop.f32.mrf.mxu1  ;;  %8048 = vmatprep.subr.bf16.mxu0 %v14637_v46  ;;  %8089 = vmatprep.subr.bf16.mxu1 %v14640_v9  ;;  %v14698_v46 = vld [vmem:[%s15827_s12 + $0x1368] ss:$16 sps:$4 sm:$0xff]   ;;  %v14703_v9 = vld [vmem:[%s15827_s12 + $0x1344] ss:$16 sps:$4 sm:$0xff]  }
 0x5b8   : > { %v14710_v52 = vld [vmem:[%s15827_s12 + $0x1328] ss:$16 sps:$4 sm:$0xff]   ;;  %v14715_v54 = vld [vmem:[%s15827_s12 + $0x1304] ss:$16 sps:$4 sm:$0xff]  }
 0x5ba   : > { %8049 = vmatpush1.bf16.msra.mxu0 %v14635_v45  ;;  %8090 = vmatpush1.bf16.msra.mxu1 %v14638_v50  ;;  %v14704_v45 = vld [vmem:[%s15827_s12 + $0x1348] ss:$16 sps:$4 sm:$0xff]   ;;  %v14709_v50 = vld [vmem:[%s15827_s12 + $0x1324] ss:$16 sps:$4 sm:$0xff]  }
 0x5bb   : > { %8050 = vmatprep.subr.bf16.mxu0 %v14643_v31  ;;  %8091 = vmatprep.subr.bf16.mxu1 %v14646_v5  ;;  %v14718_v31 = vld [vmem:[%s15827_s12 + $0x130c] ss:$16 sps:$4 sm:$0xff]   ;;  %v14713_v5 = vld [vmem:[%s15827_s12 + $0x1300] ss:$16 sps:$4 sm:$0xff]  }
 0x5be   : > { %8051 = vmatpush1.bf16.msra.mxu0 %v14641_v55  ;;  %8092 = vmatpush1.bf16.msra.mxu1 %v14644_v56  ;;  %v14716_v55 = vld [vmem:[%s15827_s12 + $0x1308] ss:$16 sps:$4 sm:$0xff]   ;;  %v2459_v56 = vld [vmem:[%s16445_s21 + $0x98] sm:$0xff] }
 0x5bf   : > { %8052 = vmatprep.subr.bf16.mxu0 %v14649_v58  ;;  %8093 = vmatprep.subr.bf16.mxu1 %v14652_v48  ;;  %v14721_v58 = vld [vmem:[%s15827_s12 + $0x14e4] ss:$16 sps:$4 sm:$0xff]   ;;  %v14724_v48 = vld [vmem:[%s15827_s12 + $0x14ec] ss:$16 sps:$4 sm:$0xff]  }
 0x5c2   : > { %8053 = vmatpush1.bf16.msra.mxu0 %v14647_v23  ;;  %8094 = vmatpush1.bf16.msra.mxu1 %v14650_v60  ;;  %v2491_v23 = vpack.c.bf16 %v2459_v56, %v2459_v56  ;;  %v14719_v60 = vld [vmem:[%s15827_s12 + $0x14e0] ss:$16 sps:$4 sm:$0xff]   ;;  %v14784_v56 = vld [vmem:[%s15827_s12 + $0x15ac] ss:$16 sps:$4 sm:$0xff]  }
 0x5c3   : > { %8054 = vmatprep.subr.bf16.mxu0 %v14655_v61  ;;  %8095 = vmatprep.subr.bf16.mxu1 %v14658_v62  ;;  %v14722_v61 = vld [vmem:[%s15827_s12 + $0x14e8] ss:$16 sps:$4 sm:$0xff]   ;;  %v14727_v62 = vld [vmem:[%s15827_s12 + $0x14c4] ss:$16 sps:$4 sm:$0xff]  }
 0x5c6   : > { %8055 = vmatpush1.bf16.msra.mxu0 %v14653_v0  ;;  %8096 = vmatpush1.bf16.msra.mxu1 %v14656_v40  ;;  %v14730_v0 = vld [vmem:[%s15827_s12 + $0x14cc] ss:$16 sps:$4 sm:$0xff]  }
 0x5c7   : > { %8056 = vmatprep.subr.bf16.mxu0 %v14661_v1  ;;  %8097 = vmatprep.subr.bf16.mxu1 %v14664_v2 }
 0x5ca   : > { %8057 = vmatpush1.bf16.msra.mxu0 %v14659_v3  ;;  %8098 = vmatpush1.bf16.msra.mxu1 %v14662_v4  ;;  %v14725_v4 = vld [vmem:[%s15827_s12 + $0x14c0] ss:$16 sps:$4 sm:$0xff]  }
 0x5cb   : > { %8058 = vmatprep.subr.bf16.mxu0 %v14667_v57  ;;  %8099 = vmatprep.subr.bf16.mxu1 %v14670_v6  ;;  %v14728_v57 = vld [vmem:[%s15827_s12 + $0x14c8] ss:$16 sps:$4 sm:$0xff]  }
 0x5ce   : > { %8059 = vmatpush1.bf16.msra.mxu0 %v14665_v7  ;;  %8100 = vmatpush1.bf16.msra.mxu1 %v14668_v8  ;;  %v14733_v8 = vld [vmem:[%s15827_s12 + $0x14a4] ss:$16 sps:$4 sm:$0xff]  }
 0x5cf   : > { %8286 = vmatprep.subr.bf16.mxu0 %v14673_v11  ;;  %8327 = vmatprep.subr.bf16.mxu1 %v14676_v12 }
 0x5d1   : > { %v6626_v19 = vpop.f32.mrf.mxu0  ;;  %v6667_v20 = vpop.f32.mrf.mxu1  ;;  %8077 = vmatmul.mubr.bf16.vlgmr.msra.gmra.mxu0 %v2490_v13  ;;  %8118 = vmatmul.mubr.bf16.vlgmr.msra.gmra.mxu1 %v2490_v13 }
 0x5d2   : > { %v17225_v21 = vadd.f32 %v17180_v42, %v6626_v19  ;;  %v17228_v22 = vadd.f32 %v17183_v44, %v6667_v20  ;;  %8287 = vmatpush1.bf16.msra.mxu0 %v14671_v14  ;;  %8328 = vmatpush1.bf16.msra.mxu1 %v14674_v16  ;;  %v14692_v42 = vld [vmem:[%s15827_s12 + $0x1388] ss:$16 sps:$4 sm:$0xff]   ;;  %v14697_v44 = vld [vmem:[%s15827_s12 + $0x1364] ss:$16 sps:$4 sm:$0xff]   ;;  %v14731_v16 = vld [vmem:[%s15827_s12 + $0x14a0] ss:$16 sps:$4 sm:$0xff]  }
 0x5d3   : > { %v6628_v26 = vpop.f32.mrf.mxu0  ;;  %v6669_v33 = vpop.f32.mrf.mxu1  ;;  %8288 = vmatprep.subr.bf16.mxu0 %v14679_v17  ;;  %8329 = vmatprep.subr.bf16.mxu1 %v14682_v18  ;;  %v14734_v17 = vld [vmem:[%s15827_s12 + $0x14a8] ss:$16 sps:$4 sm:$0xff]   ;;  %v14739_v20 = vld [vmem:[%s15827_s12 + $0x1484] ss:$16 sps:$4 sm:$0xff]  }
 0x5d4   : > { %v17235_v30 = vadd.f32 %v17188_v15, %v6628_v26  ;;  %v17238_v32 = vadd.f32 %v17191_v47, %v6669_v33  ;;  %8318 = vmatprep.mubr.bf16.mxu0 %v15590_v39  ;;  %8359 = vmatprep.mubr.bf16.mxu1 %v15590_v39  ;;  %v14706_v15 = vld [vmem:[%s15827_s12 + $0x134c] ss:$16 sps:$4 sm:$0xff]   ;;  %v14701_v47 = vld [vmem:[%s15827_s12 + $0x1340] ss:$16 sps:$4 sm:$0xff]  }
 0x5d5   : > { %v6630_v43 = vpop.f32.mrf.mxu0  ;;  %v6671_v34 = vpop.f32.mrf.mxu1  ;;  %v14748_v26 = vld [vmem:[%s15827_s12 + $0x146c] ss:$16 sps:$4 sm:$0xff]   ;;  %v14743_v33 = vld [vmem:[%s15827_s12 + $0x1460] ss:$16 sps:$4 sm:$0xff]  }
 0x5d6   : > { %8289 = vmatpush1.bf16.msra.mxu0 %v14677_v24  ;;  %8330 = vmatpush1.bf16.msra.mxu1 %v14680_v25  ;;  %v14740_v24 = vld [vmem:[%s15827_s12 + $0x1488] ss:$16 sps:$4 sm:$0xff]   ;;  %v14745_v25 = vld [vmem:[%s15827_s12 + $0x1464] ss:$16 sps:$4 sm:$0xff]  }
 0x5d7   : > { %v6631_v36 = vpop.f32.mrf.mxu0  ;;  %v6672_v37 = vpop.f32.mrf.mxu1  ;;  %8290 = vmatprep.subr.bf16.mxu0 %v14685_v27  ;;  %8331 = vmatprep.subr.bf16.mxu1 %v14688_v28  ;;  %v14746_v27 = vld [vmem:[%s15827_s12 + $0x1468] ss:$16 sps:$4 sm:$0xff]   ;;  %v14751_v28 = vld [vmem:[%s15827_s12 + $0x1444] ss:$16 sps:$4 sm:$0xff]  }
 0x5d8   : > { %v14752_v43 = vld [vmem:[%s15827_s12 + $0x1448] ss:$16 sps:$4 sm:$0xff]   ;;  %v14757_v34 = vld [vmem:[%s15827_s12 + $0x1424] ss:$16 sps:$4 sm:$0xff]  }
 0x5d9   : > { %v14758_v36 = vld [vmem:[%s15827_s12 + $0x1428] ss:$16 sps:$4 sm:$0xff]   ;;  %v14763_v37 = vld [vmem:[%s15827_s12 + $0x1404] ss:$16 sps:$4 sm:$0xff]  }
 0x5da   : > { %8291 = vmatpush1.bf16.msra.mxu0 %v14683_v29  ;;  %8332 = vmatpush1.bf16.msra.mxu1 %v14686_v35  ;;  %v14760_v29 = vld [vmem:[%s15827_s12 + $0x142c] ss:$16 sps:$4 sm:$0xff]   ;;  %v14755_v35 = vld [vmem:[%s15827_s12 + $0x1420] ss:$16 sps:$4 sm:$0xff]  }
 0x5db   : > { %8292 = vmatprep.subr.bf16.mxu0 %v14691_v38  ;;  %8333 = vmatprep.subr.bf16.mxu1 %v14694_v53  ;;  %v14766_v38 = vld [vmem:[%s15827_s12 + $0x140c] ss:$16 sps:$4 sm:$0xff]   ;;  %v14761_v53 = vld [vmem:[%s15827_s12 + $0x1400] ss:$16 sps:$4 sm:$0xff]  }
 0x5de   : > { %8293 = vmatpush1.bf16.msra.mxu0 %v14689_v41  ;;  %8334 = vmatpush1.bf16.msra.mxu1 %v14692_v42  ;;  %v14764_v41 = vld [vmem:[%s15827_s12 + $0x1408] ss:$16 sps:$4 sm:$0xff]  }
 0x5df   : > { %8294 = vmatprep.subr.bf16.mxu0 %v14697_v44  ;;  %8335 = vmatprep.subr.bf16.mxu1 %v14700_v49  ;;  %v2460_v42 = vld [vmem:[%s16445_s21 + $0xa0] sm:$0xff] }
 0x5e0   : > { %v14769_v44 = vld [vmem:[%s15827_s12 + $0x15e4] ss:$16 sps:$4 sm:$0xff]   ;;  %v14772_v49 = vld [vmem:[%s15827_s12 + $0x15ec] ss:$16 sps:$4 sm:$0xff]  }
 0x5e2   : > { %8295 = vmatpush1.bf16.msra.mxu0 %v14695_v63  ;;  %8336 = vmatpush1.bf16.msra.mxu1 %v14698_v46  ;;  %v2492_v63 = vpack.c.bf16 %v2460_v42, %v2460_v42  ;;  %v14767_v46 = vld [vmem:[%s15827_s12 + $0x15e0] ss:$16 sps:$4 sm:$0xff]   ;;  %v14832_v42 = vld [vmem:[%s15827_s12 + $0x16ac] ss:$16 sps:$4 sm:$0xff]  }
 0x5e3   : > { %8296 = vmatprep.subr.bf16.mxu0 %v14703_v9  ;;  %8337 = vmatprep.subr.bf16.mxu1 %v14706_v15  ;;  %v14770_v9 = vld [vmem:[%s15827_s12 + $0x15e8] ss:$16 sps:$4 sm:$0xff]   ;;  %v14775_v15 = vld [vmem:[%s15827_s12 + $0x15c4] ss:$16 sps:$4 sm:$0xff]  }
 0x5e6   : > { %8297 = vmatpush1.bf16.msra.mxu0 %v14701_v47  ;;  %8338 = vmatpush1.bf16.msra.mxu1 %v14704_v45  ;;  %v14778_v47 = vld [vmem:[%s15827_s12 + $0x15cc] ss:$16 sps:$4 sm:$0xff]  }
 0x5e7   : > { %8298 = vmatprep.subr.bf16.mxu0 %v14709_v50  ;;  %8339 = vmatprep.subr.bf16.mxu1 %v14712_v59 }
 0x5ea   : > { %8299 = vmatpush1.bf16.msra.mxu0 %v14707_v51  ;;  %8340 = vmatpush1.bf16.msra.mxu1 %v14710_v52  ;;  %v14773_v52 = vld [vmem:[%s15827_s12 + $0x15c0] ss:$16 sps:$4 sm:$0xff]  }
 0x5eb   : > { %8300 = vmatprep.subr.bf16.mxu0 %v14715_v54  ;;  %8341 = vmatprep.subr.bf16.mxu1 %v14718_v31  ;;  %v14776_v54 = vld [vmem:[%s15827_s12 + $0x15c8] ss:$16 sps:$4 sm:$0xff]  }
 0x5ee   : > { %8301 = vmatpush1.bf16.msra.mxu0 %v14713_v5  ;;  %8342 = vmatpush1.bf16.msra.mxu1 %v14716_v55  ;;  %v14781_v55 = vld [vmem:[%s15827_s12 + $0x15a4] ss:$16 sps:$4 sm:$0xff]  }
 0x5ef   : > { %8528 = vmatprep.subr.bf16.mxu0 %v14721_v58  ;;  %8569 = vmatprep.subr.bf16.mxu1 %v14724_v48 }
 0x5f1   : > { %v6868_v40 = vpop.f32.mrf.mxu0  ;;  %v6909_v1 = vpop.f32.mrf.mxu1  ;;  %8319 = vmatmul.mubr.bf16.vlgmr.msra.gmra.mxu0 %v2491_v23  ;;  %8360 = vmatmul.mubr.bf16.vlgmr.msra.gmra.mxu1 %v2491_v23 }
 0x5f2   : > { %v17272_v2 = vadd.f32 %v17225_v21, %v6868_v40  ;;  %v17275_v3 = vadd.f32 %v17228_v22, %v6909_v1  ;;  %8529 = vmatpush1.bf16.msra.mxu0 %v14719_v60  ;;  %8570 = vmatpush1.bf16.msra.mxu1 %v14722_v61  ;;  %v14742_v21 = vld [vmem:[%s15827_s12 + $0x148c] ss:$16 sps:$4 sm:$0xff]   ;;  %v14737_v22 = vld [vmem:[%s15827_s12 + $0x1480] ss:$16 sps:$4 sm:$0xff]   ;;  %v14787_v1 = vld [vmem:[%s15827_s12 + $0x1584] ss:$16 sps:$4 sm:$0xff]  }
 0x5f3   : > { %v6870_v6 = vpop.f32.mrf.mxu0  ;;  %v6911_v7 = vpop.f32.mrf.mxu1  ;;  %8530 = vmatprep.subr.bf16.mxu0 %v14727_v62  ;;  %8571 = vmatprep.subr.bf16.mxu1 %v14730_v0  ;;  %v14779_v61 = vld [vmem:[%s15827_s12 + $0x15a0] ss:$16 sps:$4 sm:$0xff]   ;;  %v14782_v62 = vld [vmem:[%s15827_s12 + $0x15a8] ss:$16 sps:$4 sm:$0xff]  }
 0x5f4   : > { %v17282_v11 = vadd.f32 %v17235_v30, %v6870_v6  ;;  %v17285_v12 = vadd.f32 %v17238_v32, %v6911_v7  ;;  %8560 = vmatprep.mubr.bf16.mxu0 %v15590_v39  ;;  %8601 = vmatprep.mubr.bf16.mxu1 %v15590_v39  ;;  %v14754_v30 = vld [vmem:[%s15827_s12 + $0x144c] ss:$16 sps:$4 sm:$0xff]   ;;  %v14749_v32 = vld [vmem:[%s15827_s12 + $0x1440] ss:$16 sps:$4 sm:$0xff]  }
 0x5f5   : > { %v6872_v13 = vpop.f32.mrf.mxu0  ;;  %v6913_v14 = vpop.f32.mrf.mxu1  ;;  %v14796_v6 = vld [vmem:[%s15827_s12 + $0x156c] ss:$16 sps:$4 sm:$0xff]   ;;  %v14791_v7 = vld [vmem:[%s15827_s12 + $0x1560] ss:$16 sps:$4 sm:$0xff]  }
 0x5f6   : > { %8531 = vmatpush1.bf16.msra.mxu0 %v14725_v4  ;;  %8572 = vmatpush1.bf16.msra.mxu1 %v14728_v57  ;;  %v14788_v4 = vld [vmem:[%s15827_s12 + $0x1588] ss:$16 sps:$4 sm:$0xff]   ;;  %v14793_v57 = vld [vmem:[%s15827_s12 + $0x1564] ss:$16 sps:$4 sm:$0xff]  }
 0x5f7   : > { %v6873_v18 = vpop.f32.mrf.mxu0  ;;  %v6914_v19 = vpop.f32.mrf.mxu1  ;;  %8532 = vmatprep.subr.bf16.mxu0 %v14733_v8  ;;  %8573 = vmatprep.subr.bf16.mxu1 %v14736_v10  ;;  %v14794_v8 = vld [vmem:[%s15827_s12 + $0x1568] ss:$16 sps:$4 sm:$0xff]   ;;  %v14799_v10 = vld [vmem:[%s15827_s12 + $0x1544] ss:$16 sps:$4 sm:$0xff]  }
 0x5f8   : > { %v14800_v13 = vld [vmem:[%s15827_s12 + $0x1548] ss:$16 sps:$4 sm:$0xff]   ;;  %v14805_v14 = vld [vmem:[%s15827_s12 + $0x1524] ss:$16 sps:$4 sm:$0xff]  }
 0x5f9   : > { %v14806_v18 = vld [vmem:[%s15827_s12 + $0x1528] ss:$16 sps:$4 sm:$0xff]   ;;  %v14811_v19 = vld [vmem:[%s15827_s12 + $0x1504] ss:$16 sps:$4 sm:$0xff]  }
 0x5fa   : > { %8533 = vmatpush1.bf16.msra.mxu0 %v14731_v16  ;;  %8574 = vmatpush1.bf16.msra.mxu1 %v14734_v17  ;;  %v14808_v16 = vld [vmem:[%s15827_s12 + $0x152c] ss:$16 sps:$4 sm:$0xff]   ;;  %v14803_v17 = vld [vmem:[%s15827_s12 + $0x1520] ss:$16 sps:$4 sm:$0xff]  }
 0x5fb   : > { %8534 = vmatprep.subr.bf16.mxu0 %v14739_v20  ;;  %8575 = vmatprep.subr.bf16.mxu1 %v14742_v21  ;;  %v14814_v20 = vld [vmem:[%s15827_s12 + $0x150c] ss:$16 sps:$4 sm:$0xff]   ;;  %v14809_v21 = vld [vmem:[%s15827_s12 + $0x1500] ss:$16 sps:$4 sm:$0xff]  }
 0x5fe   : > { %8535 = vmatpush1.bf16.msra.mxu0 %v14737_v22  ;;  %8576 = vmatpush1.bf16.msra.mxu1 %v14740_v24  ;;  %v14812_v22 = vld [vmem:[%s15827_s12 + $0x1508] ss:$16 sps:$4 sm:$0xff]   ;;  %v2461_v24 = vld [vmem:[%s16445_s21 + $0xa8] sm:$0xff] }
 0x5ff   : > { %8536 = vmatprep.subr.bf16.mxu0 %v14745_v25  ;;  %8577 = vmatprep.subr.bf16.mxu1 %v14748_v26  ;;  %v14817_v25 = vld [vmem:[%s15827_s12 + $0x16e4] ss:$16 sps:$4 sm:$0xff]   ;;  %v14820_v26 = vld [vmem:[%s15827_s12 + $0x16ec] ss:$16 sps:$4 sm:$0xff]  }
 0x602   : > { %8537 = vmatpush1.bf16.msra.mxu0 %v14743_v33  ;;  %8578 = vmatpush1.bf16.msra.mxu1 %v14746_v27  ;;  %v2493_v33 = vpack.c.bf16 %v2461_v24, %v2461_v24  ;;  %v14815_v27 = vld [vmem:[%s15827_s12 + $0x16e0] ss:$16 sps:$4 sm:$0xff]   ;;  %v14880_v24 = vld [vmem:[%s15827_s12 + $0x17ac] ss:$16 sps:$4 sm:$0xff]  }
 0x603   : > { %8538 = vmatprep.subr.bf16.mxu0 %v14751_v28  ;;  %8579 = vmatprep.subr.bf16.mxu1 %v14754_v30  ;;  %v14818_v28 = vld [vmem:[%s15827_s12 + $0x16e8] ss:$16 sps:$4 sm:$0xff]   ;;  %v14823_v30 = vld [vmem:[%s15827_s12 + $0x16c4] ss:$16 sps:$4 sm:$0xff]  }
 0x606   : > { %8539 = vmatpush1.bf16.msra.mxu0 %v14749_v32  ;;  %8580 = vmatpush1.bf16.msra.mxu1 %v14752_v43  ;;  %v14826_v32 = vld [vmem:[%s15827_s12 + $0x16cc] ss:$16 sps:$4 sm:$0xff]  }
 0x607   : > { %8540 = vmatprep.subr.bf16.mxu0 %v14757_v34  ;;  %8581 = vmatprep.subr.bf16.mxu1 %v14760_v29 }
 0x60a   : > { %8541 = vmatpush1.bf16.msra.mxu0 %v14755_v35  ;;  %8582 = vmatpush1.bf16.msra.mxu1 %v14758_v36  ;;  %v14821_v36 = vld [vmem:[%s15827_s12 + $0x16c0] ss:$16 sps:$4 sm:$0xff]  }
 0x60b   : > { %8542 = vmatprep.subr.bf16.mxu0 %v14763_v37  ;;  %8583 = vmatprep.subr.bf16.mxu1 %v14766_v38  ;;  %v14824_v37 = vld [vmem:[%s15827_s12 + $0x16c8] ss:$16 sps:$4 sm:$0xff]  }
 0x60e   : > { %8543 = vmatpush1.bf16.msra.mxu0 %v14761_v53  ;;  %8584 = vmatpush1.bf16.msra.mxu1 %v14764_v41  ;;  %v14829_v41 = vld [vmem:[%s15827_s12 + $0x16a4] ss:$16 sps:$4 sm:$0xff]  }
 0x60f   : > { %8770 = vmatprep.subr.bf16.mxu0 %v14769_v44  ;;  %8811 = vmatprep.subr.bf16.mxu1 %v14772_v49 }
 0x611   : > { %v7110_v45 = vpop.f32.mrf.mxu0  ;;  %v7151_v50 = vpop.f32.mrf.mxu1  ;;  %8561 = vmatmul.mubr.bf16.vlgmr.msra.gmra.mxu0 %v2492_v63  ;;  %8602 = vmatmul.mubr.bf16.vlgmr.msra.gmra.mxu1 %v2492_v63 }
 0x612   : > { %v17319_v59 = vadd.f32 %v17272_v2, %v7110_v45  ;;  %v17322_v51 = vadd.f32 %v17275_v3, %v7151_v50  ;;  %8771 = vmatpush1.bf16.msra.mxu0 %v14767_v46  ;;  %8812 = vmatpush1.bf16.msra.mxu1 %v14770_v9  ;;  %v14790_v2 = vld [vmem:[%s15827_s12 + $0x158c] ss:$16 sps:$4 sm:$0xff]   ;;  %v14785_v3 = vld [vmem:[%s15827_s12 + $0x1580] ss:$16 sps:$4 sm:$0xff]   ;;  %v14835_v50 = vld [vmem:[%s15827_s12 + $0x1684] ss:$16 sps:$4 sm:$0xff]  }
 0x613   : > { %v7112_v31 = vpop.f32.mrf.mxu0  ;;  %v7153_v5 = vpop.f32.mrf.mxu1  ;;  %8772 = vmatprep.subr.bf16.mxu0 %v14775_v15  ;;  %8813 = vmatprep.subr.bf16.mxu1 %v14778_v47  ;;  %v14827_v9 = vld [vmem:[%s15827_s12 + $0x16a0] ss:$16 sps:$4 sm:$0xff]   ;;  %v14830_v15 = vld [vmem:[%s15827_s12 + $0x16a8] ss:$16 sps:$4 sm:$0xff]  }
 0x614   : > { %v17329_v58 = vadd.f32 %v17282_v11, %v7112_v31  ;;  %v17332_v48 = vadd.f32 %v17285_v12, %v7153_v5  ;;  %8802 = vmatprep.mubr.bf16.mxu0 %v15590_v39  ;;  %8843 = vmatprep.mubr.bf16.mxu1 %v15590_v39  ;;  %v14802_v11 = vld [vmem:[%s15827_s12 + $0x154c] ss:$16 sps:$4 sm:$0xff]   ;;  %v14797_v12 = vld [vmem:[%s15827_s12 + $0x1540] ss:$16 sps:$4 sm:$0xff]  }
 0x615   : > { %v7114_v23 = vpop.f32.mrf.mxu0  ;;  %v7155_v60 = vpop.f32.mrf.mxu1  ;;  %v14844_v31 = vld [vmem:[%s15827_s12 + $0x166c] ss:$16 sps:$4 sm:$0xff]   ;;  %v14839_v5 = vld [vmem:[%s15827_s12 + $0x1660] ss:$16 sps:$4 sm:$0xff]  }
 0x616   : > { %8773 = vmatpush1.bf16.msra.mxu0 %v14773_v52  ;;  %8814 = vmatpush1.bf16.msra.mxu1 %v14776_v54  ;;  %v14836_v52 = vld [vmem:[%s15827_s12 + $0x1688] ss:$16 sps:$4 sm:$0xff]   ;;  %v14841_v54 = vld [vmem:[%s15827_s12 + $0x1664] ss:$16 sps:$4 sm:$0xff]  }
 0x617   : > { %v7115_v0 = vpop.f32.mrf.mxu0  ;;  %v7156_v40 = vpop.f32.mrf.mxu1  ;;  %8774 = vmatprep.subr.bf16.mxu0 %v14781_v55  ;;  %8815 = vmatprep.subr.bf16.mxu1 %v14784_v56  ;;  %v14842_v55 = vld [vmem:[%s15827_s12 + $0x1668] ss:$16 sps:$4 sm:$0xff]   ;;  %v14847_v56 = vld [vmem:[%s15827_s12 + $0x1644] ss:$16 sps:$4 sm:$0xff]  }
 0x618   : > { %v14848_v23 = vld [vmem:[%s15827_s12 + $0x1648] ss:$16 sps:$4 sm:$0xff]   ;;  %v14853_v60 = vld [vmem:[%s15827_s12 + $0x1624] ss:$16 sps:$4 sm:$0xff]  }
 0x619   : > { %v14854_v0 = vld [vmem:[%s15827_s12 + $0x1628] ss:$16 sps:$4 sm:$0xff]   ;;  %v14859_v40 = vld [vmem:[%s15827_s12 + $0x1604] ss:$16 sps:$4 sm:$0xff]  }
 0x61a   : > { %8775 = vmatpush1.bf16.msra.mxu0 %v14779_v61  ;;  %8816 = vmatpush1.bf16.msra.mxu1 %v14782_v62  ;;  %v14856_v61 = vld [vmem:[%s15827_s12 + $0x162c] ss:$16 sps:$4 sm:$0xff]   ;;  %v14851_v62 = vld [vmem:[%s15827_s12 + $0x1620] ss:$16 sps:$4 sm:$0xff]  }
 0x61b   : > { %8776 = vmatprep.subr.bf16.mxu0 %v14787_v1  ;;  %8817 = vmatprep.subr.bf16.mxu1 %v14790_v2  ;;  %v14862_v1 = vld [vmem:[%s15827_s12 + $0x160c] ss:$16 sps:$4 sm:$0xff]   ;;  %v14857_v2 = vld [vmem:[%s15827_s12 + $0x1600] ss:$16 sps:$4 sm:$0xff]  }
 0x61e   : > { %8777 = vmatpush1.bf16.msra.mxu0 %v14785_v3  ;;  %8818 = vmatpush1.bf16.msra.mxu1 %v14788_v4  ;;  %v14860_v3 = vld [vmem:[%s15827_s12 + $0x1608] ss:$16 sps:$4 sm:$0xff]  }
 0x61f   : > { %8778 = vmatprep.subr.bf16.mxu0 %v14793_v57  ;;  %8819 = vmatprep.subr.bf16.mxu1 %v14796_v6  ;;  %v2462_v4 = vld [vmem:[%s16445_s21 + $0xb0] sm:$0xff] }
 0x620   : > { %v14865_v57 = vld [vmem:[%s15827_s12 + $0x17e4] ss:$16 sps:$4 sm:$0xff]   ;;  %v14868_v6 = vld [vmem:[%s15827_s12 + $0x17ec] ss:$16 sps:$4 sm:$0xff]  }
 0x622   : > { %8779 = vmatpush1.bf16.msra.mxu0 %v14791_v7  ;;  %8820 = vmatpush1.bf16.msra.mxu1 %v14794_v8  ;;  %v2494_v7 = vpack.c.bf16 %v2462_v4, %v2462_v4  ;;  %v14863_v8 = vld [vmem:[%s15827_s12 + $0x17e0] ss:$16 sps:$4 sm:$0xff]   ;;  %v14928_v4 = vld [vmem:[%s15827_s12 + $0x18ac] ss:$16 sps:$4 sm:$0xff]  }
 0x623   : > { %8780 = vmatprep.subr.bf16.mxu0 %v14799_v10  ;;  %8821 = vmatprep.subr.bf16.mxu1 %v14802_v11  ;;  %v14866_v10 = vld [vmem:[%s15827_s12 + $0x17e8] ss:$16 sps:$4 sm:$0xff]   ;;  %v14871_v11 = vld [vmem:[%s15827_s12 + $0x17c4] ss:$16 sps:$4 sm:$0xff]  }
 0x626   : > { %8781 = vmatpush1.bf16.msra.mxu0 %v14797_v12  ;;  %8822 = vmatpush1.bf16.msra.mxu1 %v14800_v13  ;;  %v14874_v12 = vld [vmem:[%s15827_s12 + $0x17cc] ss:$16 sps:$4 sm:$0xff]  }
 0x627   : > { %8782 = vmatprep.subr.bf16.mxu0 %v14805_v14  ;;  %8823 = vmatprep.subr.bf16.mxu1 %v14808_v16 }
 0x62a   : > { %8783 = vmatpush1.bf16.msra.mxu0 %v14803_v17  ;;  %8824 = vmatpush1.bf16.msra.mxu1 %v14806_v18  ;;  %v14869_v18 = vld [vmem:[%s15827_s12 + $0x17c0] ss:$16 sps:$4 sm:$0xff]  }
 0x62b   : > { %8784 = vmatprep.subr.bf16.mxu0 %v14811_v19  ;;  %8825 = vmatprep.subr.bf16.mxu1 %v14814_v20  ;;  %v14872_v19 = vld [vmem:[%s15827_s12 + $0x17c8] ss:$16 sps:$4 sm:$0xff]  }
 0x62e   : > { %8785 = vmatpush1.bf16.msra.mxu0 %v14809_v21  ;;  %8826 = vmatpush1.bf16.msra.mxu1 %v14812_v22  ;;  %v14877_v22 = vld [vmem:[%s15827_s12 + $0x17a4] ss:$16 sps:$4 sm:$0xff]  }
 0x62f   : > { %9012 = vmatprep.subr.bf16.mxu0 %v14817_v25  ;;  %9053 = vmatprep.subr.bf16.mxu1 %v14820_v26 }
 0x631   : > { %v7352_v43 = vpop.f32.mrf.mxu0  ;;  %v7393_v34 = vpop.f32.mrf.mxu1  ;;  %8803 = vmatmul.mubr.bf16.vlgmr.msra.gmra.mxu0 %v2493_v33  ;;  %8844 = vmatmul.mubr.bf16.vlgmr.msra.gmra.mxu1 %v2493_v33 }
 0x632   : > { %v17366_v29 = vadd.f32 %v17319_v59, %v7352_v43  ;;  %v17369_v35 = vadd.f32 %v17322_v51, %v7393_v34  ;;  %9013 = vmatpush1.bf16.msra.mxu0 %v14815_v27  ;;  %9054 = vmatpush1.bf16.msra.mxu1 %v14818_v28  ;;  %v14838_v59 = vld [vmem:[%s15827_s12 + $0x168c] ss:$16 sps:$4 sm:$0xff]   ;;  %v14833_v51 = vld [vmem:[%s15827_s12 + $0x1680] ss:$16 sps:$4 sm:$0xff]   ;;  %v14883_v34 = vld [vmem:[%s15827_s12 + $0x1784] ss:$16 sps:$4 sm:$0xff]  }
 0x633   : > { %v7354_v38 = vpop.f32.mrf.mxu0  ;;  %v7395_v53 = vpop.f32.mrf.mxu1  ;;  %9014 = vmatprep.subr.bf16.mxu0 %v14823_v30  ;;  %9055 = vmatprep.subr.bf16.mxu1 %v14826_v32  ;;  %v14875_v28 = vld [vmem:[%s15827_s12 + $0x17a0] ss:$16 sps:$4 sm:$0xff]   ;;  %v14878_v30 = vld [vmem:[%s15827_s12 + $0x17a8] ss:$16 sps:$4 sm:$0xff]  }
 0x634   : > { %v17376_v44 = vadd.f32 %v17329_v58, %v7354_v38  ;;  %v17379_v49 = vadd.f32 %v17332_v48, %v7395_v53  ;;  %9044 = vmatprep.mubr.bf16.mxu0 %v15590_v39  ;;  %9085 = vmatprep.mubr.bf16.mxu1 %v15590_v39  ;;  %v14850_v58 = vld [vmem:[%s15827_s12 + $0x164c] ss:$16 sps:$4 sm:$0xff]   ;;  %v14845_v48 = vld [vmem:[%s15827_s12 + $0x1640] ss:$16 sps:$4 sm:$0xff]  }
 0x635   : > { %v7356_v63 = vpop.f32.mrf.mxu0  ;;  %v7397_v46 = vpop.f32.mrf.mxu1  ;;  %v14892_v38 = vld [vmem:[%s15827_s12 + $0x176c] ss:$16 sps:$4 sm:$0xff]   ;;  %v14887_v53 = vld [vmem:[%s15827_s12 + $0x1760] ss:$16 sps:$4 sm:$0xff]  }
 0x636   : > { %9015 = vmatpush1.bf16.msra.mxu0 %v14821_v36  ;;  %9056 = vmatpush1.bf16.msra.mxu1 %v14824_v37  ;;  %v14884_v36 = vld [vmem:[%s15827_s12 + $0x1788] ss:$16 sps:$4 sm:$0xff]   ;;  %v14889_v37 = vld [vmem:[%s15827_s12 + $0x1764] ss:$16 sps:$4 sm:$0xff]  }
 0x637   : > { %v7357_v47 = vpop.f32.mrf.mxu0  ;;  %v7398_v45 = vpop.f32.mrf.mxu1  ;;  %9016 = vmatprep.subr.bf16.mxu0 %v14829_v41  ;;  %9057 = vmatprep.subr.bf16.mxu1 %v14832_v42  ;;  %v14890_v41 = vld [vmem:[%s15827_s12 + $0x1768] ss:$16 sps:$4 sm:$0xff]   ;;  %v14895_v42 = vld [vmem:[%s15827_s12 + $0x1744] ss:$16 sps:$4 sm:$0xff]  }
 0x638   : > { %v14896_v63 = vld [vmem:[%s15827_s12 + $0x1748] ss:$16 sps:$4 sm:$0xff]   ;;  %v14901_v46 = vld [vmem:[%s15827_s12 + $0x1724] ss:$16 sps:$4 sm:$0xff]  }
 0x639   : > { %v14902_v47 = vld [vmem:[%s15827_s12 + $0x1728] ss:$16 sps:$4 sm:$0xff]   ;;  %v14907_v45 = vld [vmem:[%s15827_s12 + $0x1704] ss:$16 sps:$4 sm:$0xff]  }
 0x63a   : > { %9017 = vmatpush1.bf16.msra.mxu0 %v14827_v9  ;;  %9058 = vmatpush1.bf16.msra.mxu1 %v14830_v15  ;;  %v14904_v9 = vld [vmem:[%s15827_s12 + $0x172c] ss:$16 sps:$4 sm:$0xff]   ;;  %v14899_v15 = vld [vmem:[%s15827_s12 + $0x1720] ss:$16 sps:$4 sm:$0xff]  }
 0x63b   : > { %9018 = vmatprep.subr.bf16.mxu0 %v14835_v50  ;;  %9059 = vmatprep.subr.bf16.mxu1 %v14838_v59  ;;  %v14910_v50 = vld [vmem:[%s15827_s12 + $0x170c] ss:$16 sps:$4 sm:$0xff]   ;;  %v14905_v59 = vld [vmem:[%s15827_s12 + $0x1700] ss:$16 sps:$4 sm:$0xff]  }
 0x63e   : > { %9019 = vmatpush1.bf16.msra.mxu0 %v14833_v51  ;;  %9060 = vmatpush1.bf16.msra.mxu1 %v14836_v52  ;;  %v14908_v51 = vld [vmem:[%s15827_s12 + $0x1708] ss:$16 sps:$4 sm:$0xff]   ;;  %v2463_v52 = vld [vmem:[%s16445_s21 + $0xb8] sm:$0xff] }
 0x63f   : > { %9020 = vmatprep.subr.bf16.mxu0 %v14841_v54  ;;  %9061 = vmatprep.subr.bf16.mxu1 %v14844_v31  ;;  %v14913_v54 = vld [vmem:[%s15827_s12 + $0x18e4] ss:$16 sps:$4 sm:$0xff]   ;;  %v14916_v31 = vld [vmem:[%s15827_s12 + $0x18ec] ss:$16 sps:$4 sm:$0xff]  }
 0x642   : > { %9021 = vmatpush1.bf16.msra.mxu0 %v14839_v5  ;;  %9062 = vmatpush1.bf16.msra.mxu1 %v14842_v55  ;;  %v2495_v5 = vpack.c.bf16 %v2463_v52, %v2463_v52  ;;  %v14911_v55 = vld [vmem:[%s15827_s12 + $0x18e0] ss:$16 sps:$4 sm:$0xff]   ;;  %v14976_v52 = vld [vmem:[%s15827_s12 + $0x19ac] ss:$16 sps:$4 sm:$0xff]  }
 0x643   : > { %9022 = vmatprep.subr.bf16.mxu0 %v14847_v56  ;;  %9063 = vmatprep.subr.bf16.mxu1 %v14850_v58  ;;  %v14914_v56 = vld [vmem:[%s15827_s12 + $0x18e8] ss:$16 sps:$4 sm:$0xff]   ;;  %v14919_v58 = vld [vmem:[%s15827_s12 + $0x18c4] ss:$16 sps:$4 sm:$0xff]  }
 0x646   : > { %9023 = vmatpush1.bf16.msra.mxu0 %v14845_v48  ;;  %9064 = vmatpush1.bf16.msra.mxu1 %v14848_v23  ;;  %v14922_v48 = vld [vmem:[%s15827_s12 + $0x18cc] ss:$16 sps:$4 sm:$0xff]  }
 0x647   : > { %9024 = vmatprep.subr.bf16.mxu0 %v14853_v60  ;;  %9065 = vmatprep.subr.bf16.mxu1 %v14856_v61 }
 0x64a   : > { %9025 = vmatpush1.bf16.msra.mxu0 %v14851_v62  ;;  %9066 = vmatpush1.bf16.msra.mxu1 %v14854_v0  ;;  %v14917_v0 = vld [vmem:[%s15827_s12 + $0x18c0] ss:$16 sps:$4 sm:$0xff]  }
 0x64b   : > { %9026 = vmatprep.subr.bf16.mxu0 %v14859_v40  ;;  %9067 = vmatprep.subr.bf16.mxu1 %v14862_v1  ;;  %v14920_v40 = vld [vmem:[%s15827_s12 + $0x18c8] ss:$16 sps:$4 sm:$0xff]  }
 0x64e   : > { %9027 = vmatpush1.bf16.msra.mxu0 %v14857_v2  ;;  %9068 = vmatpush1.bf16.msra.mxu1 %v14860_v3  ;;  %v14925_v3 = vld [vmem:[%s15827_s12 + $0x18a4] ss:$16 sps:$4 sm:$0xff]  }
 0x64f   : > { %9254 = vmatprep.subr.bf16.mxu0 %v14865_v57  ;;  %9295 = vmatprep.subr.bf16.mxu1 %v14868_v6 }
 0x651   : > { %v7594_v13 = vpop.f32.mrf.mxu0  ;;  %v7635_v14 = vpop.f32.mrf.mxu1  ;;  %9045 = vmatmul.mubr.bf16.vlgmr.msra.gmra.mxu0 %v2494_v7  ;;  %9086 = vmatmul.mubr.bf16.vlgmr.msra.gmra.mxu1 %v2494_v7 }
 0x652   : > { %v17413_v16 = vadd.f32 %v17366_v29, %v7594_v13  ;;  %v17416_v17 = vadd.f32 %v17369_v35, %v7635_v14  ;;  %9255 = vmatpush1.bf16.msra.mxu0 %v14863_v8  ;;  %9296 = vmatpush1.bf16.msra.mxu1 %v14866_v10  ;;  %v14886_v29 = vld [vmem:[%s15827_s12 + $0x178c] ss:$16 sps:$4 sm:$0xff]   ;;  %v14881_v35 = vld [vmem:[%s15827_s12 + $0x1780] ss:$16 sps:$4 sm:$0xff]   ;;  %v14931_v14 = vld [vmem:[%s15827_s12 + $0x1884] ss:$16 sps:$4 sm:$0xff]  }
 0x653   : > { %v7596_v20 = vpop.f32.mrf.mxu0  ;;  %v7637_v21 = vpop.f32.mrf.mxu1  ;;  %9256 = vmatprep.subr.bf16.mxu0 %v14871_v11  ;;  %9297 = vmatprep.subr.bf16.mxu1 %v14874_v12  ;;  %v14923_v10 = vld [vmem:[%s15827_s12 + $0x18a0] ss:$16 sps:$4 sm:$0xff]   ;;  %v14926_v11 = vld [vmem:[%s15827_s12 + $0x18a8] ss:$16 sps:$4 sm:$0xff]  }
 0x654   : > { %v17423_v25 = vadd.f32 %v17376_v44, %v7596_v20  ;;  %v17426_v26 = vadd.f32 %v17379_v49, %v7637_v21  ;;  %9286 = vmatprep.mubr.bf16.mxu0 %v15590_v39  ;;  %9327 = vmatprep.mubr.bf16.mxu1 %v15590_v39  ;;  %v14898_v44 = vld [vmem:[%s15827_s12 + $0x174c] ss:$16 sps:$4 sm:$0xff]   ;;  %v14893_v49 = vld [vmem:[%s15827_s12 + $0x1740] ss:$16 sps:$4 sm:$0xff]  }
 0x655   : > { %v7598_v33 = vpop.f32.mrf.mxu0  ;;  %v7639_v27 = vpop.f32.mrf.mxu1  ;;  %v14940_v20 = vld [vmem:[%s15827_s12 + $0x186c] ss:$16 sps:$4 sm:$0xff]   ;;  %v14935_v21 = vld [vmem:[%s15827_s12 + $0x1860] ss:$16 sps:$4 sm:$0xff]  }
 0x656   : > { %9257 = vmatpush1.bf16.msra.mxu0 %v14869_v18  ;;  %9298 = vmatpush1.bf16.msra.mxu1 %v14872_v19  ;;  %v14932_v18 = vld [vmem:[%s15827_s12 + $0x1888] ss:$16 sps:$4 sm:$0xff]   ;;  %v14937_v19 = vld [vmem:[%s15827_s12 + $0x1864] ss:$16 sps:$4 sm:$0xff]  }
 0x657   : > { %v7599_v32 = vpop.f32.mrf.mxu0  ;;  %v7640_v43 = vpop.f32.mrf.mxu1  ;;  %9258 = vmatprep.subr.bf16.mxu0 %v14877_v22  ;;  %9299 = vmatprep.subr.bf16.mxu1 %v14880_v24  ;;  %v14938_v22 = vld [vmem:[%s15827_s12 + $0x1868] ss:$16 sps:$4 sm:$0xff]   ;;  %v14943_v24 = vld [vmem:[%s15827_s12 + $0x1844] ss:$16 sps:$4 sm:$0xff]  }
 0x658   : > { %v14944_v33 = vld [vmem:[%s15827_s12 + $0x1848] ss:$16 sps:$4 sm:$0xff]   ;;  %v14949_v27 = vld [vmem:[%s15827_s12 + $0x1824] ss:$16 sps:$4 sm:$0xff]  }
 0x659   : > { %v14950_v32 = vld [vmem:[%s15827_s12 + $0x1828] ss:$16 sps:$4 sm:$0xff]   ;;  %v14955_v43 = vld [vmem:[%s15827_s12 + $0x1804] ss:$16 sps:$4 sm:$0xff]  }
 0x65a   : > { %9259 = vmatpush1.bf16.msra.mxu0 %v14875_v28  ;;  %9300 = vmatpush1.bf16.msra.mxu1 %v14878_v30  ;;  %v14952_v28 = vld [vmem:[%s15827_s12 + $0x182c] ss:$16 sps:$4 sm:$0xff]   ;;  %v14947_v30 = vld [vmem:[%s15827_s12 + $0x1820] ss:$16 sps:$4 sm:$0xff]  }
 0x65b   : > { %9260 = vmatprep.subr.bf16.mxu0 %v14883_v34  ;;  %9301 = vmatprep.subr.bf16.mxu1 %v14886_v29  ;;  %v14958_v34 = vld [vmem:[%s15827_s12 + $0x180c] ss:$16 sps:$4 sm:$0xff]   ;;  %v14953_v29 = vld [vmem:[%s15827_s12 + $0x1800] ss:$16 sps:$4 sm:$0xff]  }
 0x65e   : > { %9261 = vmatpush1.bf16.msra.mxu0 %v14881_v35  ;;  %9302 = vmatpush1.bf16.msra.mxu1 %v14884_v36  ;;  %v14956_v35 = vld [vmem:[%s15827_s12 + $0x1808] ss:$16 sps:$4 sm:$0xff]  }
 0x65f   : > { %9262 = vmatprep.subr.bf16.mxu0 %v14889_v37  ;;  %9303 = vmatprep.subr.bf16.mxu1 %v14892_v38  ;;  %v2464_v36 = vld [vmem:[%s16445_s21 + $0xc0] sm:$0xff] }
 0x660   : > { %v14961_v37 = vld [vmem:[%s15827_s12 + $0x19e4] ss:$16 sps:$4 sm:$0xff]   ;;  %v14964_v38 = vld [vmem:[%s15827_s12 + $0x19ec] ss:$16 sps:$4 sm:$0xff]  }
 0x662   : > { %9263 = vmatpush1.bf16.msra.mxu0 %v14887_v53  ;;  %9304 = vmatpush1.bf16.msra.mxu1 %v14890_v41  ;;  %v2496_v53 = vpack.c.bf16 %v2464_v36, %v2464_v36  ;;  %v14959_v41 = vld [vmem:[%s15827_s12 + $0x19e0] ss:$16 sps:$4 sm:$0xff]   ;;  %v15024_v36 = vld [vmem:[%s15827_s12 + $0x1aac] ss:$16 sps:$4 sm:$0xff]  }
 0x663   : > { %9264 = vmatprep.subr.bf16.mxu0 %v14895_v42  ;;  %9305 = vmatprep.subr.bf16.mxu1 %v14898_v44  ;;  %v14962_v42 = vld [vmem:[%s15827_s12 + $0x19e8] ss:$16 sps:$4 sm:$0xff]   ;;  %v14967_v44 = vld [vmem:[%s15827_s12 + $0x19c4] ss:$16 sps:$4 sm:$0xff]  }
 0x666   : > { %9265 = vmatpush1.bf16.msra.mxu0 %v14893_v49  ;;  %9306 = vmatpush1.bf16.msra.mxu1 %v14896_v63  ;;  %v14970_v49 = vld [vmem:[%s15827_s12 + $0x19cc] ss:$16 sps:$4 sm:$0xff]  }
 0x667   : > { %9266 = vmatprep.subr.bf16.mxu0 %v14901_v46  ;;  %9307 = vmatprep.subr.bf16.mxu1 %v14904_v9 }
 0x66a   : > { %9267 = vmatpush1.bf16.msra.mxu0 %v14899_v15  ;;  %9308 = vmatpush1.bf16.msra.mxu1 %v14902_v47  ;;  %v14965_v47 = vld [vmem:[%s15827_s12 + $0x19c0] ss:$16 sps:$4 sm:$0xff]  }
 0x66b   : > { %9268 = vmatprep.subr.bf16.mxu0 %v14907_v45  ;;  %9309 = vmatprep.subr.bf16.mxu1 %v14910_v50  ;;  %v14968_v45 = vld [vmem:[%s15827_s12 + $0x19c8] ss:$16 sps:$4 sm:$0xff]  }
 0x66e   : > { %9269 = vmatpush1.bf16.msra.mxu0 %v14905_v59  ;;  %9310 = vmatpush1.bf16.msra.mxu1 %v14908_v51  ;;  %v14973_v51 = vld [vmem:[%s15827_s12 + $0x19a4] ss:$16 sps:$4 sm:$0xff]  }
 0x66f   : > { %9496 = vmatprep.subr.bf16.mxu0 %v14913_v54  ;;  %9537 = vmatprep.subr.bf16.mxu1 %v14916_v31 }
 0x671   : > { %v7836_v23 = vpop.f32.mrf.mxu0  ;;  %v7877_v60 = vpop.f32.mrf.mxu1  ;;  %9287 = vmatmul.mubr.bf16.vlgmr.msra.gmra.mxu0 %v2495_v5  ;;  %9328 = vmatmul.mubr.bf16.vlgmr.msra.gmra.mxu1 %v2495_v5 }
 0x672   : > { %v17460_v61 = vadd.f32 %v17413_v16, %v7836_v23  ;;  %v17463_v62 = vadd.f32 %v17416_v17, %v7877_v60  ;;  %9497 = vmatpush1.bf16.msra.mxu0 %v14911_v55  ;;  %9538 = vmatpush1.bf16.msra.mxu1 %v14914_v56  ;;  %v14934_v16 = vld [vmem:[%s15827_s12 + $0x188c] ss:$16 sps:$4 sm:$0xff]   ;;  %v14929_v17 = vld [vmem:[%s15827_s12 + $0x1880] ss:$16 sps:$4 sm:$0xff]   ;;  %v14979_v60 = vld [vmem:[%s15827_s12 + $0x1984] ss:$16 sps:$4 sm:$0xff]  }
 0x673   : > { %v7838_v1 = vpop.f32.mrf.mxu0  ;;  %v7879_v2 = vpop.f32.mrf.mxu1  ;;  %9498 = vmatprep.subr.bf16.mxu0 %v14919_v58  ;;  %9539 = vmatprep.subr.bf16.mxu1 %v14922_v48  ;;  %v14971_v56 = vld [vmem:[%s15827_s12 + $0x19a0] ss:$16 sps:$4 sm:$0xff]   ;;  %v14974_v58 = vld [vmem:[%s15827_s12 + $0x19a8] ss:$16 sps:$4 sm:$0xff]  }
 0x674   : > { %v17470_v57 = vadd.f32 %v17423_v25, %v7838_v1  ;;  %v17473_v6 = vadd.f32 %v17426_v26, %v7879_v2  ;;  %9528 = vmatprep.mubr.bf16.mxu0 %v15590_v39  ;;  %9569 = vmatprep.mubr.bf16.mxu1 %v15590_v39  ;;  %v14946_v25 = vld [vmem:[%s15827_s12 + $0x184c] ss:$16 sps:$4 sm:$0xff]   ;;  %v14941_v26 = vld [vmem:[%s15827_s12 + $0x1840] ss:$16 sps:$4 sm:$0xff]  }
 0x675   : > { %v7840_v7 = vpop.f32.mrf.mxu0  ;;  %v7881_v8 = vpop.f32.mrf.mxu1  ;;  %v14988_v1 = vld [vmem:[%s15827_s12 + $0x196c] ss:$16 sps:$4 sm:$0xff]   ;;  %v14983_v2 = vld [vmem:[%s15827_s12 + $0x1960] ss:$16 sps:$4 sm:$0xff]  }
 0x676   : > { %9499 = vmatpush1.bf16.msra.mxu0 %v14917_v0  ;;  %9540 = vmatpush1.bf16.msra.mxu1 %v14920_v40  ;;  %v14980_v0 = vld [vmem:[%s15827_s12 + $0x1988] ss:$16 sps:$4 sm:$0xff]   ;;  %v14985_v40 = vld [vmem:[%s15827_s12 + $0x1964] ss:$16 sps:$4 sm:$0xff]  }
 0x677   : > { %v7841_v12 = vpop.f32.mrf.mxu0  ;;  %v7882_v13 = vpop.f32.mrf.mxu1  ;;  %9500 = vmatprep.subr.bf16.mxu0 %v14925_v3  ;;  %9541 = vmatprep.subr.bf16.mxu1 %v14928_v4  ;;  %v14986_v3 = vld [vmem:[%s15827_s12 + $0x1968] ss:$16 sps:$4 sm:$0xff]   ;;  %v14991_v4 = vld [vmem:[%s15827_s12 + $0x1944] ss:$16 sps:$4 sm:$0xff]  }
 0x678   : > { %v14992_v7 = vld [vmem:[%s15827_s12 + $0x1948] ss:$16 sps:$4 sm:$0xff]   ;;  %v14997_v8 = vld [vmem:[%s15827_s12 + $0x1924] ss:$16 sps:$4 sm:$0xff]  }
 0x679   : > { %v14998_v12 = vld [vmem:[%s15827_s12 + $0x1928] ss:$16 sps:$4 sm:$0xff]   ;;  %v15003_v13 = vld [vmem:[%s15827_s12 + $0x1904] ss:$16 sps:$4 sm:$0xff]  }
 0x67a   : > { %9501 = vmatpush1.bf16.msra.mxu0 %v14923_v10  ;;  %9542 = vmatpush1.bf16.msra.mxu1 %v14926_v11  ;;  %v15000_v10 = vld [vmem:[%s15827_s12 + $0x192c] ss:$16 sps:$4 sm:$0xff]   ;;  %v14995_v11 = vld [vmem:[%s15827_s12 + $0x1920] ss:$16 sps:$4 sm:$0xff]  }
 0x67b   : > { %9502 = vmatprep.subr.bf16.mxu0 %v14931_v14  ;;  %9543 = vmatprep.subr.bf16.mxu1 %v14934_v16  ;;  %v15006_v14 = vld [vmem:[%s15827_s12 + $0x190c] ss:$16 sps:$4 sm:$0xff]   ;;  %v15001_v16 = vld [vmem:[%s15827_s12 + $0x1900] ss:$16 sps:$4 sm:$0xff]  }
 0x67e   : > { %9503 = vmatpush1.bf16.msra.mxu0 %v14929_v17  ;;  %9544 = vmatpush1.bf16.msra.mxu1 %v14932_v18  ;;  %v15004_v17 = vld [vmem:[%s15827_s12 + $0x1908] ss:$16 sps:$4 sm:$0xff]   ;;  %v2465_v18 = vld [vmem:[%s16445_s21 + $0xc8] sm:$0xff] }
 0x67f   : > { %9504 = vmatprep.subr.bf16.mxu0 %v14937_v19  ;;  %9545 = vmatprep.subr.bf16.mxu1 %v14940_v20  ;;  %v15009_v19 = vld [vmem:[%s15827_s12 + $0x1ae4] ss:$16 sps:$4 sm:$0xff]   ;;  %v15012_v20 = vld [vmem:[%s15827_s12 + $0x1aec] ss:$16 sps:$4 sm:$0xff]  }
 0x682   : > { %9505 = vmatpush1.bf16.msra.mxu0 %v14935_v21  ;;  %9546 = vmatpush1.bf16.msra.mxu1 %v14938_v22  ;;  %v2497_v21 = vpack.c.bf16 %v2465_v18, %v2465_v18  ;;  %v15007_v22 = vld [vmem:[%s15827_s12 + $0x1ae0] ss:$16 sps:$4 sm:$0xff]   ;;  %v15072_v18 = vld [vmem:[%s15827_s12 + $0x1bac] ss:$16 sps:$4 sm:$0xff]  }
 0x683   : > { %9506 = vmatprep.subr.bf16.mxu0 %v14943_v24  ;;  %9547 = vmatprep.subr.bf16.mxu1 %v14946_v25  ;;  %v15010_v24 = vld [vmem:[%s15827_s12 + $0x1ae8] ss:$16 sps:$4 sm:$0xff]   ;;  %v15015_v25 = vld [vmem:[%s15827_s12 + $0x1ac4] ss:$16 sps:$4 sm:$0xff]  }
 0x686   : > { %9507 = vmatpush1.bf16.msra.mxu0 %v14941_v26  ;;  %9548 = vmatpush1.bf16.msra.mxu1 %v14944_v33  ;;  %v15018_v26 = vld [vmem:[%s15827_s12 + $0x1acc] ss:$16 sps:$4 sm:$0xff]  }
 0x687   : > { %9508 = vmatprep.subr.bf16.mxu0 %v14949_v27  ;;  %9549 = vmatprep.subr.bf16.mxu1 %v14952_v28 }
 0x68a   : > { %9509 = vmatpush1.bf16.msra.mxu0 %v14947_v30  ;;  %9550 = vmatpush1.bf16.msra.mxu1 %v14950_v32  ;;  %v15013_v32 = vld [vmem:[%s15827_s12 + $0x1ac0] ss:$16 sps:$4 sm:$0xff]  }
 0x68b   : > { %9510 = vmatprep.subr.bf16.mxu0 %v14955_v43  ;;  %9551 = vmatprep.subr.bf16.mxu1 %v14958_v34  ;;  %v15016_v43 = vld [vmem:[%s15827_s12 + $0x1ac8] ss:$16 sps:$4 sm:$0xff]  }
 0x68e   : > { %9511 = vmatpush1.bf16.msra.mxu0 %v14953_v29  ;;  %9552 = vmatpush1.bf16.msra.mxu1 %v14956_v35  ;;  %v15021_v35 = vld [vmem:[%s15827_s12 + $0x1aa4] ss:$16 sps:$4 sm:$0xff]  }
 0x68f   : > { %9738 = vmatprep.subr.bf16.mxu0 %v14961_v37  ;;  %9779 = vmatprep.subr.bf16.mxu1 %v14964_v38 }
 0x691   : > { %v8078_v63 = vpop.f32.mrf.mxu0  ;;  %v8119_v46 = vpop.f32.mrf.mxu1  ;;  %9529 = vmatmul.mubr.bf16.vlgmr.msra.gmra.mxu0 %v2496_v53  ;;  %9570 = vmatmul.mubr.bf16.vlgmr.msra.gmra.mxu1 %v2496_v53 }
 0x692   : > { %v17507_v9 = vadd.f32 %v17460_v61, %v8078_v63  ;;  %v17510_v15 = vadd.f32 %v17463_v62, %v8119_v46  ;;  %9739 = vmatpush1.bf16.msra.mxu0 %v14959_v41  ;;  %9780 = vmatpush1.bf16.msra.mxu1 %v14962_v42  ;;  %v14982_v61 = vld [vmem:[%s15827_s12 + $0x198c] ss:$16 sps:$4 sm:$0xff]   ;;  %v14977_v62 = vld [vmem:[%s15827_s12 + $0x1980] ss:$16 sps:$4 sm:$0xff]   ;;  %v15027_v46 = vld [vmem:[%s15827_s12 + $0x1a84] ss:$16 sps:$4 sm:$0xff]  }
 0x693   : > { %v8080_v50 = vpop.f32.mrf.mxu0  ;;  %v8121_v59 = vpop.f32.mrf.mxu1  ;;  %9740 = vmatprep.subr.bf16.mxu0 %v14967_v44  ;;  %9781 = vmatprep.subr.bf16.mxu1 %v14970_v49  ;;  %v15019_v42 = vld [vmem:[%s15827_s12 + $0x1aa0] ss:$16 sps:$4 sm:$0xff]   ;;  %v15022_v44 = vld [vmem:[%s15827_s12 + $0x1aa8] ss:$16 sps:$4 sm:$0xff]  }
 0x694   : > { %v17517_v54 = vadd.f32 %v17470_v57, %v8080_v50  ;;  %v17520_v31 = vadd.f32 %v17473_v6, %v8121_v59  ;;  %9770 = vmatprep.mubr.bf16.mxu0 %v15590_v39  ;;  %9811 = vmatprep.mubr.bf16.mxu1 %v15590_v39  ;;  %v14994_v57 = vld [vmem:[%s15827_s12 + $0x194c] ss:$16 sps:$4 sm:$0xff]   ;;  %v14989_v6 = vld [vmem:[%s15827_s12 + $0x1940] ss:$16 sps:$4 sm:$0xff]  }
 0x695   : > { %v8082_v5 = vpop.f32.mrf.mxu0  ;;  %v8123_v55 = vpop.f32.mrf.mxu1  ;;  %v15036_v50 = vld [vmem:[%s15827_s12 + $0x1a6c] ss:$16 sps:$4 sm:$0xff]   ;;  %v15031_v59 = vld [vmem:[%s15827_s12 + $0x1a60] ss:$16 sps:$4 sm:$0xff]  }
 0x696   : > { %9741 = vmatpush1.bf16.msra.mxu0 %v14965_v47  ;;  %9782 = vmatpush1.bf16.msra.mxu1 %v14968_v45  ;;  %v15028_v47 = vld [vmem:[%s15827_s12 + $0x1a88] ss:$16 sps:$4 sm:$0xff]   ;;  %v15033_v45 = vld [vmem:[%s15827_s12 + $0x1a64] ss:$16 sps:$4 sm:$0xff]  }
 0x697   : > { %v8083_v48 = vpop.f32.mrf.mxu0  ;;  %v8124_v23 = vpop.f32.mrf.mxu1  ;;  %9742 = vmatprep.subr.bf16.mxu0 %v14973_v51  ;;  %9783 = vmatprep.subr.bf16.mxu1 %v14976_v52  ;;  %v15034_v51 = vld [vmem:[%s15827_s12 + $0x1a68] ss:$16 sps:$4 sm:$0xff]   ;;  %v15039_v52 = vld [vmem:[%s15827_s12 + $0x1a44] ss:$16 sps:$4 sm:$0xff]  }
 0x698   : > { %v15040_v5 = vld [vmem:[%s15827_s12 + $0x1a48] ss:$16 sps:$4 sm:$0xff]   ;;  %v15045_v55 = vld [vmem:[%s15827_s12 + $0x1a24] ss:$16 sps:$4 sm:$0xff]  }
 0x699   : > { %v15046_v48 = vld [vmem:[%s15827_s12 + $0x1a28] ss:$16 sps:$4 sm:$0xff]   ;;  %v15051_v23 = vld [vmem:[%s15827_s12 + $0x1a04] ss:$16 sps:$4 sm:$0xff]  }
 0x69a   : > { %9743 = vmatpush1.bf16.msra.mxu0 %v14971_v56  ;;  %9784 = vmatpush1.bf16.msra.mxu1 %v14974_v58  ;;  %v15048_v56 = vld [vmem:[%s15827_s12 + $0x1a2c] ss:$16 sps:$4 sm:$0xff]   ;;  %v15043_v58 = vld [vmem:[%s15827_s12 + $0x1a20] ss:$16 sps:$4 sm:$0xff]  }
 0x69b   : > { %9744 = vmatprep.subr.bf16.mxu0 %v14979_v60  ;;  %9785 = vmatprep.subr.bf16.mxu1 %v14982_v61  ;;  %v15054_v60 = vld [vmem:[%s15827_s12 + $0x1a0c] ss:$16 sps:$4 sm:$0xff]   ;;  %v15049_v61 = vld [vmem:[%s15827_s12 + $0x1a00] ss:$16 sps:$4 sm:$0xff]  }
 0x69e   : > { %9745 = vmatpush1.bf16.msra.mxu0 %v14977_v62  ;;  %9786 = vmatpush1.bf16.msra.mxu1 %v14980_v0  ;;  %v15052_v62 = vld [vmem:[%s15827_s12 + $0x1a08] ss:$16 sps:$4 sm:$0xff]  }
 0x69f   : > { %9746 = vmatprep.subr.bf16.mxu0 %v14985_v40  ;;  %9787 = vmatprep.subr.bf16.mxu1 %v14988_v1  ;;  %v2466_v0 = vld [vmem:[%s16445_s21 + $0xd0] sm:$0xff] }
 0x6a0   : > { %v15057_v40 = vld [vmem:[%s15827_s12 + $0x1be4] ss:$16 sps:$4 sm:$0xff]   ;;  %v15060_v1 = vld [vmem:[%s15827_s12 + $0x1bec] ss:$16 sps:$4 sm:$0xff]  }
 0x6a2   : > { %9747 = vmatpush1.bf16.msra.mxu0 %v14983_v2  ;;  %9788 = vmatpush1.bf16.msra.mxu1 %v14986_v3  ;;  %v2498_v2 = vpack.c.bf16 %v2466_v0, %v2466_v0  ;;  %v15055_v3 = vld [vmem:[%s15827_s12 + $0x1be0] ss:$16 sps:$4 sm:$0xff]   ;;  %v15120_v0 = vld [vmem:[%s15827_s12 + $0x1cac] ss:$16 sps:$4 sm:$0xff]  }
 0x6a3   : > { %9748 = vmatprep.subr.bf16.mxu0 %v14991_v4  ;;  %9789 = vmatprep.subr.bf16.mxu1 %v14994_v57  ;;  %v15058_v4 = vld [vmem:[%s15827_s12 + $0x1be8] ss:$16 sps:$4 sm:$0xff]   ;;  %v15063_v57 = vld [vmem:[%s15827_s12 + $0x1bc4] ss:$16 sps:$4 sm:$0xff]  }
 0x6a6   : > { %9749 = vmatpush1.bf16.msra.mxu0 %v14989_v6  ;;  %9790 = vmatpush1.bf16.msra.mxu1 %v14992_v7  ;;  %v15066_v6 = vld [vmem:[%s15827_s12 + $0x1bcc] ss:$16 sps:$4 sm:$0xff]  }
 0x6a7   : > { %9750 = vmatprep.subr.bf16.mxu0 %v14997_v8  ;;  %9791 = vmatprep.subr.bf16.mxu1 %v15000_v10 }
 0x6aa   : > { %9751 = vmatpush1.bf16.msra.mxu0 %v14995_v11  ;;  %9792 = vmatpush1.bf16.msra.mxu1 %v14998_v12  ;;  %v15061_v12 = vld [vmem:[%s15827_s12 + $0x1bc0] ss:$16 sps:$4 sm:$0xff]  }
 0x6ab   : > { %9752 = vmatprep.subr.bf16.mxu0 %v15003_v13  ;;  %9793 = vmatprep.subr.bf16.mxu1 %v15006_v14  ;;  %v15064_v13 = vld [vmem:[%s15827_s12 + $0x1bc8] ss:$16 sps:$4 sm:$0xff]  }
 0x6ae   : > { %9753 = vmatpush1.bf16.msra.mxu0 %v15001_v16  ;;  %9794 = vmatpush1.bf16.msra.mxu1 %v15004_v17  ;;  %v15069_v17 = vld [vmem:[%s15827_s12 + $0x1ba4] ss:$16 sps:$4 sm:$0xff]  }
 0x6af   : > { %9980 = vmatprep.subr.bf16.mxu0 %v15009_v19  ;;  %10021 = vmatprep.subr.bf16.mxu1 %v15012_v20 }
 0x6b1   : > { %v8320_v33 = vpop.f32.mrf.mxu0  ;;  %v8361_v27 = vpop.f32.mrf.mxu1  ;;  %9771 = vmatmul.mubr.bf16.vlgmr.msra.gmra.mxu0 %v2497_v21  ;;  %9812 = vmatmul.mubr.bf16.vlgmr.msra.gmra.mxu1 %v2497_v21 }
 0x6b2   : > { %v17554_v28 = vadd.f32 %v17507_v9, %v8320_v33  ;;  %v17557_v30 = vadd.f32 %v17510_v15, %v8361_v27  ;;  %9981 = vmatpush1.bf16.msra.mxu0 %v15007_v22  ;;  %10022 = vmatpush1.bf16.msra.mxu1 %v15010_v24  ;;  %v15030_v9 = vld [vmem:[%s15827_s12 + $0x1a8c] ss:$16 sps:$4 sm:$0xff]   ;;  %v15025_v15 = vld [vmem:[%s15827_s12 + $0x1a80] ss:$16 sps:$4 sm:$0xff]   ;;  %v15075_v27 = vld [vmem:[%s15827_s12 + $0x1b84] ss:$16 sps:$4 sm:$0xff]  }
 0x6b3   : > { %v8322_v34 = vpop.f32.mrf.mxu0  ;;  %v8363_v29 = vpop.f32.mrf.mxu1  ;;  %9982 = vmatprep.subr.bf16.mxu0 %v15015_v25  ;;  %10023 = vmatprep.subr.bf16.mxu1 %v15018_v26  ;;  %v15067_v24 = vld [vmem:[%s15827_s12 + $0x1ba0] ss:$16 sps:$4 sm:$0xff]   ;;  %v15070_v25 = vld [vmem:[%s15827_s12 + $0x1ba8] ss:$16 sps:$4 sm:$0xff]  }
 0x6b4   : > { %v17564_v37 = vadd.f32 %v17517_v54, %v8322_v34  ;;  %v17567_v38 = vadd.f32 %v17520_v31, %v8363_v29  ;;  %10012 = vmatprep.mubr.bf16.mxu0 %v15590_v39  ;;  %10053 = vmatprep.mubr.bf16.mxu1 %v15590_v39  ;;  %v15042_v54 = vld [vmem:[%s15827_s12 + $0x1a4c] ss:$16 sps:$4 sm:$0xff]   ;;  %v15037_v31 = vld [vmem:[%s15827_s12 + $0x1a40] ss:$16 sps:$4 sm:$0xff]  }
 0x6b5   : > { %v8324_v53 = vpop.f32.mrf.mxu0  ;;  %v8365_v41 = vpop.f32.mrf.mxu1  ;;  %v15084_v34 = vld [vmem:[%s15827_s12 + $0x1b6c] ss:$16 sps:$4 sm:$0xff]   ;;  %v15079_v29 = vld [vmem:[%s15827_s12 + $0x1b60] ss:$16 sps:$4 sm:$0xff]  }
 0x6b6   : > { %9983 = vmatpush1.bf16.msra.mxu0 %v15013_v32  ;;  %10024 = vmatpush1.bf16.msra.mxu1 %v15016_v43  ;;  %v15076_v32 = vld [vmem:[%s15827_s12 + $0x1b88] ss:$16 sps:$4 sm:$0xff]   ;;  %v15081_v43 = vld [vmem:[%s15827_s12 + $0x1b64] ss:$16 sps:$4 sm:$0xff]  }
 0x6b7   : > { %v8325_v49 = vpop.f32.mrf.mxu0  ;;  %v8366_v63 = vpop.f32.mrf.mxu1  ;;  %9984 = vmatprep.subr.bf16.mxu0 %v15021_v35  ;;  %10025 = vmatprep.subr.bf16.mxu1 %v15024_v36  ;;  %v15082_v35 = vld [vmem:[%s15827_s12 + $0x1b68] ss:$16 sps:$4 sm:$0xff]   ;;  %v15087_v36 = vld [vmem:[%s15827_s12 + $0x1b44] ss:$16 sps:$4 sm:$0xff]  }
 0x6b8   : > { %v15088_v53 = vld [vmem:[%s15827_s12 + $0x1b48] ss:$16 sps:$4 sm:$0xff]   ;;  %v15093_v41 = vld [vmem:[%s15827_s12 + $0x1b24] ss:$16 sps:$4 sm:$0xff]  }
 0x6b9   : > { %v15094_v49 = vld [vmem:[%s15827_s12 + $0x1b28] ss:$16 sps:$4 sm:$0xff]   ;;  %v15099_v63 = vld [vmem:[%s15827_s12 + $0x1b04] ss:$16 sps:$4 sm:$0xff]  }
 0x6ba   : > { %9985 = vmatpush1.bf16.msra.mxu0 %v15019_v42  ;;  %10026 = vmatpush1.bf16.msra.mxu1 %v15022_v44  ;;  %v15096_v42 = vld [vmem:[%s15827_s12 + $0x1b2c] ss:$16 sps:$4 sm:$0xff]   ;;  %v15091_v44 = vld [vmem:[%s15827_s12 + $0x1b20] ss:$16 sps:$4 sm:$0xff]  }
 0x6bb   : > { %9986 = vmatprep.subr.bf16.mxu0 %v15027_v46  ;;  %10027 = vmatprep.subr.bf16.mxu1 %v15030_v9  ;;  %v15102_v46 = vld [vmem:[%s15827_s12 + $0x1b0c] ss:$16 sps:$4 sm:$0xff]   ;;  %v15097_v9 = vld [vmem:[%s15827_s12 + $0x1b00] ss:$16 sps:$4 sm:$0xff]  }
 0x6be   : > { %9987 = vmatpush1.bf16.msra.mxu0 %v15025_v15  ;;  %10028 = vmatpush1.bf16.msra.mxu1 %v15028_v47  ;;  %v15100_v15 = vld [vmem:[%s15827_s12 + $0x1b08] ss:$16 sps:$4 sm:$0xff]   ;;  %v2467_v47 = vld [vmem:[%s16445_s21 + $0xd8] sm:$0xff] }
 0x6bf   : > { %9988 = vmatprep.subr.bf16.mxu0 %v15033_v45  ;;  %10029 = vmatprep.subr.bf16.mxu1 %v15036_v50  ;;  %v15105_v45 = vld [vmem:[%s15827_s12 + $0x1ce4] ss:$16 sps:$4 sm:$0xff]   ;;  %v15108_v50 = vld [vmem:[%s15827_s12 + $0x1cec] ss:$16 sps:$4 sm:$0xff]  }
 0x6c2   : > { %9989 = vmatpush1.bf16.msra.mxu0 %v15031_v59  ;;  %10030 = vmatpush1.bf16.msra.mxu1 %v15034_v51  ;;  %v2499_v59 = vpack.c.bf16 %v2467_v47, %v2467_v47  ;;  %v15103_v51 = vld [vmem:[%s15827_s12 + $0x1ce0] ss:$16 sps:$4 sm:$0xff]   ;;  %v15168_v47 = vld [vmem:[%s15827_s12 + $0x1dac] ss:$16 sps:$4 sm:$0xff]  }
 0x6c3   : > { %9990 = vmatprep.subr.bf16.mxu0 %v15039_v52  ;;  %10031 = vmatprep.subr.bf16.mxu1 %v15042_v54  ;;  %v15106_v52 = vld [vmem:[%s15827_s12 + $0x1ce8] ss:$16 sps:$4 sm:$0xff]   ;;  %v15111_v54 = vld [vmem:[%s15827_s12 + $0x1cc4] ss:$16 sps:$4 sm:$0xff]  }
 0x6c6   : > { %9991 = vmatpush1.bf16.msra.mxu0 %v15037_v31  ;;  %10032 = vmatpush1.bf16.msra.mxu1 %v15040_v5  ;;  %v15114_v31 = vld [vmem:[%s15827_s12 + $0x1ccc] ss:$16 sps:$4 sm:$0xff]  }
 0x6c7   : > { %9992 = vmatprep.subr.bf16.mxu0 %v15045_v55  ;;  %10033 = vmatprep.subr.bf16.mxu1 %v15048_v56 }
 0x6ca   : > { %9993 = vmatpush1.bf16.msra.mxu0 %v15043_v58  ;;  %10034 = vmatpush1.bf16.msra.mxu1 %v15046_v48  ;;  %v15109_v48 = vld [vmem:[%s15827_s12 + $0x1cc0] ss:$16 sps:$4 sm:$0xff]  }
 0x6cb   : > { %9994 = vmatprep.subr.bf16.mxu0 %v15051_v23  ;;  %10035 = vmatprep.subr.bf16.mxu1 %v15054_v60  ;;  %v15112_v23 = vld [vmem:[%s15827_s12 + $0x1cc8] ss:$16 sps:$4 sm:$0xff]  }
 0x6ce   : > { %9995 = vmatpush1.bf16.msra.mxu0 %v15049_v61  ;;  %10036 = vmatpush1.bf16.msra.mxu1 %v15052_v62  ;;  %v15117_v62 = vld [vmem:[%s15827_s12 + $0x1ca4] ss:$16 sps:$4 sm:$0xff]  }
 0x6cf   : > { %10222 = vmatprep.subr.bf16.mxu0 %v15057_v40  ;;  %10263 = vmatprep.subr.bf16.mxu1 %v15060_v1 }
 0x6d1   : > { %v8562_v7 = vpop.f32.mrf.mxu0  ;;  %v8603_v8 = vpop.f32.mrf.mxu1  ;;  %10013 = vmatmul.mubr.bf16.vlgmr.msra.gmra.mxu0 %v2498_v2  ;;  %10054 = vmatmul.mubr.bf16.vlgmr.msra.gmra.mxu1 %v2498_v2 }
 0x6d2   : > { %v17601_v10 = vadd.f32 %v17554_v28, %v8562_v7  ;;  %v17604_v11 = vadd.f32 %v17557_v30, %v8603_v8  ;;  %10223 = vmatpush1.bf16.msra.mxu0 %v15055_v3  ;;  %10264 = vmatpush1.bf16.msra.mxu1 %v15058_v4  ;;  %v15078_v28 = vld [vmem:[%s15827_s12 + $0x1b8c] ss:$16 sps:$4 sm:$0xff]   ;;  %v15073_v30 = vld [vmem:[%s15827_s12 + $0x1b80] ss:$16 sps:$4 sm:$0xff]   ;;  %v15123_v8 = vld [vmem:[%s15827_s12 + $0x1c84] ss:$16 sps:$4 sm:$0xff]  }
 0x6d3   : > { %v8564_v14 = vpop.f32.mrf.mxu0  ;;  %v8605_v16 = vpop.f32.mrf.mxu1  ;;  %10224 = vmatprep.subr.bf16.mxu0 %v15063_v57  ;;  %10265 = vmatprep.subr.bf16.mxu1 %v15066_v6  ;;  %v15115_v4 = vld [vmem:[%s15827_s12 + $0x1ca0] ss:$16 sps:$4 sm:$0xff]   ;;  %v15118_v57 = vld [vmem:[%s15827_s12 + $0x1ca8] ss:$16 sps:$4 sm:$0xff]  }
 0x6d4   : > { %v17611_v19 = vadd.f32 %v17564_v37, %v8564_v14  ;;  %v17614_v20 = vadd.f32 %v17567_v38, %v8605_v16  ;;  %10254 = vmatprep.mubr.bf16.mxu0 %v15590_v39  ;;  %10295 = vmatprep.mubr.bf16.mxu1 %v15590_v39  ;;  %v15090_v37 = vld [vmem:[%s15827_s12 + $0x1b4c] ss:$16 sps:$4 sm:$0xff]   ;;  %v15085_v38 = vld [vmem:[%s15827_s12 + $0x1b40] ss:$16 sps:$4 sm:$0xff]  }
 0x6d5   : > { %v8566_v21 = vpop.f32.mrf.mxu0  ;;  %v8607_v22 = vpop.f32.mrf.mxu1  ;;  %v15132_v14 = vld [vmem:[%s15827_s12 + $0x1c6c] ss:$16 sps:$4 sm:$0xff]   ;;  %v15127_v16 = vld [vmem:[%s15827_s12 + $0x1c60] ss:$16 sps:$4 sm:$0xff]  }
 0x6d6   : > { %10225 = vmatpush1.bf16.msra.mxu0 %v15061_v12  ;;  %10266 = vmatpush1.bf16.msra.mxu1 %v15064_v13  ;;  %v15124_v12 = vld [vmem:[%s15827_s12 + $0x1c88] ss:$16 sps:$4 sm:$0xff]   ;;  %v15129_v13 = vld [vmem:[%s15827_s12 + $0x1c64] ss:$16 sps:$4 sm:$0xff]  }
 0x6d7   : > { %v8567_v26 = vpop.f32.mrf.mxu0  ;;  %v8608_v33 = vpop.f32.mrf.mxu1  ;;  %10226 = vmatprep.subr.bf16.mxu0 %v15069_v17  ;;  %10267 = vmatprep.subr.bf16.mxu1 %v15072_v18  ;;  %v15130_v17 = vld [vmem:[%s15827_s12 + $0x1c68] ss:$16 sps:$4 sm:$0xff]   ;;  %v15135_v18 = vld [vmem:[%s15827_s12 + $0x1c44] ss:$16 sps:$4 sm:$0xff]  }
 0x6d8   : > { %v15136_v21 = vld [vmem:[%s15827_s12 + $0x1c48] ss:$16 sps:$4 sm:$0xff]   ;;  %v15141_v22 = vld [vmem:[%s15827_s12 + $0x1c24] ss:$16 sps:$4 sm:$0xff]  }
 0x6d9   : > { %v15142_v26 = vld [vmem:[%s15827_s12 + $0x1c28] ss:$16 sps:$4 sm:$0xff]   ;;  %v15147_v33 = vld [vmem:[%s15827_s12 + $0x1c04] ss:$16 sps:$4 sm:$0xff]  }
 0x6da   : > { %10227 = vmatpush1.bf16.msra.mxu0 %v15067_v24  ;;  %10268 = vmatpush1.bf16.msra.mxu1 %v15070_v25  ;;  %v15144_v24 = vld [vmem:[%s15827_s12 + $0x1c2c] ss:$16 sps:$4 sm:$0xff]   ;;  %v15139_v25 = vld [vmem:[%s15827_s12 + $0x1c20] ss:$16 sps:$4 sm:$0xff]  }
 0x6db   : > { %10228 = vmatprep.subr.bf16.mxu0 %v15075_v27  ;;  %10269 = vmatprep.subr.bf16.mxu1 %v15078_v28  ;;  %v15150_v27 = vld [vmem:[%s15827_s12 + $0x1c0c] ss:$16 sps:$4 sm:$0xff]   ;;  %v15145_v28 = vld [vmem:[%s15827_s12 + $0x1c00] ss:$16 sps:$4 sm:$0xff]  }
 0x6de   : > { %10229 = vmatpush1.bf16.msra.mxu0 %v15073_v30  ;;  %10270 = vmatpush1.bf16.msra.mxu1 %v15076_v32  ;;  %v15148_v30 = vld [vmem:[%s15827_s12 + $0x1c08] ss:$16 sps:$4 sm:$0xff]  }
 0x6df   : > { %10230 = vmatprep.subr.bf16.mxu0 %v15081_v43  ;;  %10271 = vmatprep.subr.bf16.mxu1 %v15084_v34  ;;  %v2468_v32 = vld [vmem:[%s16445_s21 + $0xe0] sm:$0xff] }
 0x6e0   : > { %v15153_v43 = vld [vmem:[%s15827_s12 + $0x1de4] ss:$16 sps:$4 sm:$0xff]   ;;  %v15156_v34 = vld [vmem:[%s15827_s12 + $0x1dec] ss:$16 sps:$4 sm:$0xff]  }
 0x6e2   : > { %10231 = vmatpush1.bf16.msra.mxu0 %v15079_v29  ;;  %10272 = vmatpush1.bf16.msra.mxu1 %v15082_v35  ;;  %v2500_v29 = vpack.c.bf16 %v2468_v32, %v2468_v32  ;;  %v15151_v35 = vld [vmem:[%s15827_s12 + $0x1de0] ss:$16 sps:$4 sm:$0xff]   ;;  %v15216_v32 = vld [vmem:[%s15827_s12 + $0x1eac] ss:$16 sps:$4 sm:$0xff]  }
 0x6e3   : > { %10232 = vmatprep.subr.bf16.mxu0 %v15087_v36  ;;  %10273 = vmatprep.subr.bf16.mxu1 %v15090_v37  ;;  %v15154_v36 = vld [vmem:[%s15827_s12 + $0x1de8] ss:$16 sps:$4 sm:$0xff]   ;;  %v15159_v37 = vld [vmem:[%s15827_s12 + $0x1dc4] ss:$16 sps:$4 sm:$0xff]  }
 0x6e6   : > { %10233 = vmatpush1.bf16.msra.mxu0 %v15085_v38  ;;  %10274 = vmatpush1.bf16.msra.mxu1 %v15088_v53  ;;  %v15162_v38 = vld [vmem:[%s15827_s12 + $0x1dcc] ss:$16 sps:$4 sm:$0xff]  }
 0x6e7   : > { %10234 = vmatprep.subr.bf16.mxu0 %v15093_v41  ;;  %10275 = vmatprep.subr.bf16.mxu1 %v15096_v42 }
 0x6ea   : > { %10235 = vmatpush1.bf16.msra.mxu0 %v15091_v44  ;;  %10276 = vmatpush1.bf16.msra.mxu1 %v15094_v49  ;;  %v15157_v49 = vld [vmem:[%s15827_s12 + $0x1dc0] ss:$16 sps:$4 sm:$0xff]  }
 0x6eb   : > { %10236 = vmatprep.subr.bf16.mxu0 %v15099_v63  ;;  %10277 = vmatprep.subr.bf16.mxu1 %v15102_v46  ;;  %v15160_v63 = vld [vmem:[%s15827_s12 + $0x1dc8] ss:$16 sps:$4 sm:$0xff]  }
 0x6ee   : > { %10237 = vmatpush1.bf16.msra.mxu0 %v15097_v9  ;;  %10278 = vmatpush1.bf16.msra.mxu1 %v15100_v15  ;;  %v15165_v15 = vld [vmem:[%s15827_s12 + $0x1da4] ss:$16 sps:$4 sm:$0xff]  }
 0x6ef   : > { %10464 = vmatprep.subr.bf16.mxu0 %v15105_v45  ;;  %10505 = vmatprep.subr.bf16.mxu1 %v15108_v50 }
 0x6f1   : > { %v8804_v5 = vpop.f32.mrf.mxu0  ;;  %v8845_v55 = vpop.f32.mrf.mxu1  ;;  %10255 = vmatmul.mubr.bf16.vlgmr.msra.gmra.mxu0 %v2499_v59  ;;  %10296 = vmatmul.mubr.bf16.vlgmr.msra.gmra.mxu1 %v2499_v59 }
 0x6f2   : > { %v17648_v56 = vadd.f32 %v17601_v10, %v8804_v5  ;;  %v17651_v58 = vadd.f32 %v17604_v11, %v8845_v55  ;;  %10465 = vmatpush1.bf16.msra.mxu0 %v15103_v51  ;;  %10506 = vmatpush1.bf16.msra.mxu1 %v15106_v52  ;;  %v15126_v10 = vld [vmem:[%s15827_s12 + $0x1c8c] ss:$16 sps:$4 sm:$0xff]   ;;  %v15121_v11 = vld [vmem:[%s15827_s12 + $0x1c80] ss:$16 sps:$4 sm:$0xff]   ;;  %v15171_v55 = vld [vmem:[%s15827_s12 + $0x1d84] ss:$16 sps:$4 sm:$0xff]  }
 0x6f3   : > { %v8806_v60 = vpop.f32.mrf.mxu0  ;;  %v8847_v61 = vpop.f32.mrf.mxu1  ;;  %10466 = vmatprep.subr.bf16.mxu0 %v15111_v54  ;;  %10507 = vmatprep.subr.bf16.mxu1 %v15114_v31  ;;  %v15163_v52 = vld [vmem:[%s15827_s12 + $0x1da0] ss:$16 sps:$4 sm:$0xff]   ;;  %v15166_v54 = vld [vmem:[%s15827_s12 + $0x1da8] ss:$16 sps:$4 sm:$0xff]  }
 0x6f4   : > { %v17658_v40 = vadd.f32 %v17611_v19, %v8806_v60  ;;  %v17661_v1 = vadd.f32 %v17614_v20, %v8847_v61  ;;  %10496 = vmatprep.mubr.bf16.mxu0 %v15590_v39  ;;  %10537 = vmatprep.mubr.bf16.mxu1 %v15590_v39  ;;  %v15138_v19 = vld [vmem:[%s15827_s12 + $0x1c4c] ss:$16 sps:$4 sm:$0xff]   ;;  %v15133_v20 = vld [vmem:[%s15827_s12 + $0x1c40] ss:$16 sps:$4 sm:$0xff]  }
 0x6f5   : > { %v8808_v2 = vpop.f32.mrf.mxu0  ;;  %v8849_v3 = vpop.f32.mrf.mxu1  ;;  %v15180_v60 = vld [vmem:[%s15827_s12 + $0x1d6c] ss:$16 sps:$4 sm:$0xff]   ;;  %v15175_v61 = vld [vmem:[%s15827_s12 + $0x1d60] ss:$16 sps:$4 sm:$0xff]  }
 0x6f6   : > { %10467 = vmatpush1.bf16.msra.mxu0 %v15109_v48  ;;  %10508 = vmatpush1.bf16.msra.mxu1 %v15112_v23  ;;  %v15172_v48 = vld [vmem:[%s15827_s12 + $0x1d88] ss:$16 sps:$4 sm:$0xff]   ;;  %v15177_v23 = vld [vmem:[%s15827_s12 + $0x1d64] ss:$16 sps:$4 sm:$0xff]  }
 0x6f7   : > { %v8809_v6 = vpop.f32.mrf.mxu0  ;;  %v8850_v7 = vpop.f32.mrf.mxu1  ;;  %10468 = vmatprep.subr.bf16.mxu0 %v15117_v62  ;;  %10509 = vmatprep.subr.bf16.mxu1 %v15120_v0  ;;  %v15178_v62 = vld [vmem:[%s15827_s12 + $0x1d68] ss:$16 sps:$4 sm:$0xff]   ;;  %v15183_v0 = vld [vmem:[%s15827_s12 + $0x1d44] ss:$16 sps:$4 sm:$0xff]  }
 0x6f8   : > { %v15184_v2 = vld [vmem:[%s15827_s12 + $0x1d48] ss:$16 sps:$4 sm:$0xff]   ;;  %v15189_v3 = vld [vmem:[%s15827_s12 + $0x1d24] ss:$16 sps:$4 sm:$0xff]  }
 0x6f9   : > { %v15190_v6 = vld [vmem:[%s15827_s12 + $0x1d28] ss:$16 sps:$4 sm:$0xff]   ;;  %v15195_v7 = vld [vmem:[%s15827_s12 + $0x1d04] ss:$16 sps:$4 sm:$0xff]  }
 0x6fa   : > { %10469 = vmatpush1.bf16.msra.mxu0 %v15115_v4  ;;  %10510 = vmatpush1.bf16.msra.mxu1 %v15118_v57  ;;  %v15192_v4 = vld [vmem:[%s15827_s12 + $0x1d2c] ss:$16 sps:$4 sm:$0xff]   ;;  %v15187_v57 = vld [vmem:[%s15827_s12 + $0x1d20] ss:$16 sps:$4 sm:$0xff]  }
 0x6fb   : > { %10470 = vmatprep.subr.bf16.mxu0 %v15123_v8  ;;  %10511 = vmatprep.subr.bf16.mxu1 %v15126_v10  ;;  %v15198_v8 = vld [vmem:[%s15827_s12 + $0x1d0c] ss:$16 sps:$4 sm:$0xff]   ;;  %v15193_v10 = vld [vmem:[%s15827_s12 + $0x1d00] ss:$16 sps:$4 sm:$0xff]  }
 0x6fe   : > { %10471 = vmatpush1.bf16.msra.mxu0 %v15121_v11  ;;  %10512 = vmatpush1.bf16.msra.mxu1 %v15124_v12  ;;  %v15196_v11 = vld [vmem:[%s15827_s12 + $0x1d08] ss:$16 sps:$4 sm:$0xff]   ;;  %v2469_v12 = vld [vmem:[%s16445_s21 + $0xe8] sm:$0xff] }
 0x6ff   : > { %10472 = vmatprep.subr.bf16.mxu0 %v15129_v13  ;;  %10513 = vmatprep.subr.bf16.mxu1 %v15132_v14  ;;  %v15201_v13 = vld [vmem:[%s15827_s12 + $0x1ee4] ss:$16 sps:$4 sm:$0xff]   ;;  %v15204_v14 = vld [vmem:[%s15827_s12 + $0x1eec] ss:$16 sps:$4 sm:$0xff]  }
 0x702   : > { %10473 = vmatpush1.bf16.msra.mxu0 %v15127_v16  ;;  %10514 = vmatpush1.bf16.msra.mxu1 %v15130_v17  ;;  %v2501_v16 = vpack.c.bf16 %v2469_v12, %v2469_v12  ;;  %v15199_v17 = vld [vmem:[%s15827_s12 + $0x1ee0] ss:$16 sps:$4 sm:$0xff]   ;;  %v15264_v12 = vld [vmem:[%s15827_s12 + $0x1fac] ss:$16 sps:$4 sm:$0xff]  }
 0x703   : > { %10474 = vmatprep.subr.bf16.mxu0 %v15135_v18  ;;  %10515 = vmatprep.subr.bf16.mxu1 %v15138_v19  ;;  %v15202_v18 = vld [vmem:[%s15827_s12 + $0x1ee8] ss:$16 sps:$4 sm:$0xff]   ;;  %v15207_v19 = vld [vmem:[%s15827_s12 + $0x1ec4] ss:$16 sps:$4 sm:$0xff]  }
 0x706   : > { %10475 = vmatpush1.bf16.msra.mxu0 %v15133_v20  ;;  %10516 = vmatpush1.bf16.msra.mxu1 %v15136_v21  ;;  %v15210_v20 = vld [vmem:[%s15827_s12 + $0x1ecc] ss:$16 sps:$4 sm:$0xff]  }
 0x707   : > { %10476 = vmatprep.subr.bf16.mxu0 %v15141_v22  ;;  %10517 = vmatprep.subr.bf16.mxu1 %v15144_v24 }
 0x70a   : > { %10477 = vmatpush1.bf16.msra.mxu0 %v15139_v25  ;;  %10518 = vmatpush1.bf16.msra.mxu1 %v15142_v26  ;;  %v15205_v26 = vld [vmem:[%s15827_s12 + $0x1ec0] ss:$16 sps:$4 sm:$0xff]  }
 0x70b   : > { %10478 = vmatprep.subr.bf16.mxu0 %v15147_v33  ;;  %10519 = vmatprep.subr.bf16.mxu1 %v15150_v27  ;;  %v15208_v33 = vld [vmem:[%s15827_s12 + $0x1ec8] ss:$16 sps:$4 sm:$0xff]  }
 0x70e   : > { %10479 = vmatpush1.bf16.msra.mxu0 %v15145_v28  ;;  %10520 = vmatpush1.bf16.msra.mxu1 %v15148_v30  ;;  %v15213_v30 = vld [vmem:[%s15827_s12 + $0x1ea4] ss:$16 sps:$4 sm:$0xff]  }
 0x70f   : > { %10706 = vmatprep.subr.bf16.mxu0 %v15153_v43  ;;  %10747 = vmatprep.subr.bf16.mxu1 %v15156_v34 }
 0x711   : > { %v9046_v53 = vpop.f32.mrf.mxu0  ;;  %v9087_v41 = vpop.f32.mrf.mxu1  ;;  %10497 = vmatmul.mubr.bf16.vlgmr.msra.gmra.mxu0 %v2500_v29  ;;  %10538 = vmatmul.mubr.bf16.vlgmr.msra.gmra.mxu1 %v2500_v29 }
 0x712   : > { %v17695_v42 = vadd.f32 %v17648_v56, %v9046_v53  ;;  %v17698_v44 = vadd.f32 %v17651_v58, %v9087_v41  ;;  %10707 = vmatpush1.bf16.msra.mxu0 %v15151_v35  ;;  %10748 = vmatpush1.bf16.msra.mxu1 %v15154_v36  ;;  %v15174_v56 = vld [vmem:[%s15827_s12 + $0x1d8c] ss:$16 sps:$4 sm:$0xff]   ;;  %v15169_v58 = vld [vmem:[%s15827_s12 + $0x1d80] ss:$16 sps:$4 sm:$0xff]   ;;  %v15219_v41 = vld [vmem:[%s15827_s12 + $0x1e84] ss:$16 sps:$4 sm:$0xff]  }
 0x713   : > { %v9048_v46 = vpop.f32.mrf.mxu0  ;;  %v9089_v9 = vpop.f32.mrf.mxu1  ;;  %10708 = vmatprep.subr.bf16.mxu0 %v15159_v37  ;;  %10749 = vmatprep.subr.bf16.mxu1 %v15162_v38  ;;  %v15211_v36 = vld [vmem:[%s15827_s12 + $0x1ea0] ss:$16 sps:$4 sm:$0xff]   ;;  %v15214_v37 = vld [vmem:[%s15827_s12 + $0x1ea8] ss:$16 sps:$4 sm:$0xff]  }
 0x714   : > { %v17705_v45 = vadd.f32 %v17658_v40, %v9048_v46  ;;  %v17708_v50 = vadd.f32 %v17661_v1, %v9089_v9  ;;  %10738 = vmatprep.mubr.bf16.mxu0 %v15590_v39  ;;  %10779 = vmatprep.mubr.bf16.mxu1 %v15590_v39  ;;  %v15186_v40 = vld [vmem:[%s15827_s12 + $0x1d4c] ss:$16 sps:$4 sm:$0xff]   ;;  %v15181_v1 = vld [vmem:[%s15827_s12 + $0x1d40] ss:$16 sps:$4 sm:$0xff]  }
 0x715   : > { %v9050_v59 = vpop.f32.mrf.mxu0  ;;  %v9091_v51 = vpop.f32.mrf.mxu1  ;;  %v15228_v46 = vld [vmem:[%s15827_s12 + $0x1e6c] ss:$16 sps:$4 sm:$0xff]   ;;  %v15223_v9 = vld [vmem:[%s15827_s12 + $0x1e60] ss:$16 sps:$4 sm:$0xff]  }
 0x716   : > { %10709 = vmatpush1.bf16.msra.mxu0 %v15157_v49  ;;  %10750 = vmatpush1.bf16.msra.mxu1 %v15160_v63  ;;  %v15220_v49 = vld [vmem:[%s15827_s12 + $0x1e88] ss:$16 sps:$4 sm:$0xff]   ;;  %v15225_v63 = vld [vmem:[%s15827_s12 + $0x1e64] ss:$16 sps:$4 sm:$0xff]  }
 0x717   : > { %v9051_v31 = vpop.f32.mrf.mxu0  ;;  %v9092_v5 = vpop.f32.mrf.mxu1  ;;  %10710 = vmatprep.subr.bf16.mxu0 %v15165_v15  ;;  %10751 = vmatprep.subr.bf16.mxu1 %v15168_v47  ;;  %v15226_v15 = vld [vmem:[%s15827_s12 + $0x1e68] ss:$16 sps:$4 sm:$0xff]   ;;  %v15231_v47 = vld [vmem:[%s15827_s12 + $0x1e44] ss:$16 sps:$4 sm:$0xff]  }
 0x718   : > { %v15232_v59 = vld [vmem:[%s15827_s12 + $0x1e48] ss:$16 sps:$4 sm:$0xff]   ;;  %v15237_v51 = vld [vmem:[%s15827_s12 + $0x1e24] ss:$16 sps:$4 sm:$0xff]  }
 0x719   : > { %v15238_v31 = vld [vmem:[%s15827_s12 + $0x1e28] ss:$16 sps:$4 sm:$0xff]   ;;  %v15243_v5 = vld [vmem:[%s15827_s12 + $0x1e04] ss:$16 sps:$4 sm:$0xff]  }
 0x71a   : > { %10711 = vmatpush1.bf16.msra.mxu0 %v15163_v52  ;;  %10752 = vmatpush1.bf16.msra.mxu1 %v15166_v54  ;;  %v15240_v52 = vld [vmem:[%s15827_s12 + $0x1e2c] ss:$16 sps:$4 sm:$0xff]   ;;  %v15235_v54 = vld [vmem:[%s15827_s12 + $0x1e20] ss:$16 sps:$4 sm:$0xff]  }
 0x71b   : > { %10712 = vmatprep.subr.bf16.mxu0 %v15171_v55  ;;  %10753 = vmatprep.subr.bf16.mxu1 %v15174_v56  ;;  %v15246_v55 = vld [vmem:[%s15827_s12 + $0x1e0c] ss:$16 sps:$4 sm:$0xff]   ;;  %v15241_v56 = vld [vmem:[%s15827_s12 + $0x1e00] ss:$16 sps:$4 sm:$0xff]  }
 0x71e   : > { %10713 = vmatpush1.bf16.msra.mxu0 %v15169_v58  ;;  %10754 = vmatpush1.bf16.msra.mxu1 %v15172_v48  ;;  %v15244_v58 = vld [vmem:[%s15827_s12 + $0x1e08] ss:$16 sps:$4 sm:$0xff]  }
 0x71f   : > { %10714 = vmatprep.subr.bf16.mxu0 %v15177_v23  ;;  %10755 = vmatprep.subr.bf16.mxu1 %v15180_v60  ;;  %v2470_v48 = vld [vmem:[%s16445_s21 + $0xf0] sm:$0xff] }
 0x720   : > { %v15249_v23 = vld [vmem:[%s15827_s12 + $0x1fe4] ss:$16 sps:$4 sm:$0xff]   ;;  %v15252_v60 = vld [vmem:[%s15827_s12 + $0x1fec] ss:$16 sps:$4 sm:$0xff]  }
 0x722   : > { %10715 = vmatpush1.bf16.msra.mxu0 %v15175_v61  ;;  %10756 = vmatpush1.bf16.msra.mxu1 %v15178_v62  ;;  %v2502_v61 = vpack.c.bf16 %v2470_v48, %v2470_v48  ;;  %v15247_v62 = vld [vmem:[%s15827_s12 + $0x1fe0] ss:$16 sps:$4 sm:$0xff]  }
 0x723   : > { %10716 = vmatprep.subr.bf16.mxu0 %v15183_v0  ;;  %10757 = vmatprep.subr.bf16.mxu1 %v15186_v40  ;;  %v15250_v0 = vld [vmem:[%s15827_s12 + $0x1fe8] ss:$16 sps:$4 sm:$0xff]   ;;  %v15255_v40 = vld [vmem:[%s15827_s12 + $0x1fc4] ss:$16 sps:$4 sm:$0xff]  }
 0x726   : > { %10717 = vmatpush1.bf16.msra.mxu0 %v15181_v1  ;;  %10758 = vmatpush1.bf16.msra.mxu1 %v15184_v2  ;;  %v15258_v1 = vld [vmem:[%s15827_s12 + $0x1fcc] ss:$16 sps:$4 sm:$0xff]  }
 0x727   : > { %10718 = vmatprep.subr.bf16.mxu0 %v15189_v3  ;;  %10759 = vmatprep.subr.bf16.mxu1 %v15192_v4 }
 0x72a   : > { %10719 = vmatpush1.bf16.msra.mxu0 %v15187_v57  ;;  %10760 = vmatpush1.bf16.msra.mxu1 %v15190_v6  ;;  %v15253_v6 = vld [vmem:[%s15827_s12 + $0x1fc0] ss:$16 sps:$4 sm:$0xff]  }
 0x72b   : > { %10720 = vmatprep.subr.bf16.mxu0 %v15195_v7  ;;  %10761 = vmatprep.subr.bf16.mxu1 %v15198_v8  ;;  %v15256_v7 = vld [vmem:[%s15827_s12 + $0x1fc8] ss:$16 sps:$4 sm:$0xff]  }
 0x72e   : > { %10721 = vmatpush1.bf16.msra.mxu0 %v15193_v10  ;;  %10762 = vmatpush1.bf16.msra.mxu1 %v15196_v11  ;;  %v15261_v11 = vld [vmem:[%s15827_s12 + $0x1fa4] ss:$16 sps:$4 sm:$0xff]  }
 0x72f   : > { %10948 = vmatprep.subr.bf16.mxu0 %v15201_v13  ;;  %10989 = vmatprep.subr.bf16.mxu1 %v15204_v14 }
 0x731   : > { %v9288_v21 = vpop.f32.mrf.mxu0  ;;  %v9329_v22 = vpop.f32.mrf.mxu1  ;;  %10739 = vmatmul.mubr.bf16.vlgmr.msra.gmra.mxu0 %v2501_v16  ;;  %10780 = vmatmul.mubr.bf16.vlgmr.msra.gmra.mxu1 %v2501_v16 }
 0x732   : > { %v17742_v24 = vadd.f32 %v17695_v42, %v9288_v21  ;;  %v17745_v25 = vadd.f32 %v17698_v44, %v9329_v22  ;;  %10949 = vmatpush1.bf16.msra.mxu0 %v15199_v17  ;;  %10990 = vmatpush1.bf16.msra.mxu1 %v15202_v18  ;;  %v15222_v42 = vld [vmem:[%s15827_s12 + $0x1e8c] ss:$16 sps:$4 sm:$0xff]   ;;  %v15217_v44 = vld [vmem:[%s15827_s12 + $0x1e80] ss:$16 sps:$4 sm:$0xff]   ;;  %v15267_v22 = vld [vmem:[%s15827_s12 + $0x1f84] ss:$16 sps:$4 sm:$0xff]  }
 0x733   : > { %v9290_v27 = vpop.f32.mrf.mxu0  ;;  %v9331_v28 = vpop.f32.mrf.mxu1  ;;  %10950 = vmatprep.subr.bf16.mxu0 %v15207_v19  ;;  %10991 = vmatprep.subr.bf16.mxu1 %v15210_v20  ;;  %v15259_v18 = vld [vmem:[%s15827_s12 + $0x1fa0] ss:$16 sps:$4 sm:$0xff]   ;;  %v15262_v19 = vld [vmem:[%s15827_s12 + $0x1fa8] ss:$16 sps:$4 sm:$0xff]  }
 0x734   : > { %v17752_v43 = vadd.f32 %v17705_v45, %v9290_v27  ;;  %v17755_v34 = vadd.f32 %v17708_v50, %v9331_v28  ;;  %10980 = vmatprep.mubr.bf16.mxu0 %v15590_v39  ;;  %11021 = vmatprep.mubr.bf16.mxu1 %v15590_v39  ;;  %v15234_v45 = vld [vmem:[%s15827_s12 + $0x1e4c] ss:$16 sps:$4 sm:$0xff]   ;;  %v15229_v50 = vld [vmem:[%s15827_s12 + $0x1e40] ss:$16 sps:$4 sm:$0xff]   ;;  %v15274_v28 = vld [vmem:[%s15827_s12 + $0x1f68] ss:$16 sps:$4 sm:$0xff]  }
 0x735   : > { %v9292_v29 = vpop.f32.mrf.mxu0  ;;  %v9333_v35 = vpop.f32.mrf.mxu1  ;;  %v15271_v27 = vld [vmem:[%s15827_s12 + $0x1f60] ss:$16 sps:$4 sm:$0xff]  }
 0x736   : > { %10951 = vmatpush1.bf16.msra.mxu0 %v15205_v26  ;;  %10992 = vmatpush1.bf16.msra.mxu1 %v15208_v33  ;;  %v15273_v26 = vld [vmem:[%s15827_s12 + $0x1f64] ss:$16 sps:$4 sm:$0xff]   ;;  %v15276_v33 = vld [vmem:[%s15827_s12 + $0x1f6c] ss:$16 sps:$4 sm:$0xff]  }
 0x737   : > { %v9293_v38 = vpop.f32.mrf.mxu0  ;;  %v9334_v53 = vpop.f32.mrf.mxu1  ;;  %10952 = vmatprep.subr.bf16.mxu0 %v15213_v30  ;;  %10993 = vmatprep.subr.bf16.mxu1 %v15216_v32  ;;  %v15279_v30 = vld [vmem:[%s15827_s12 + $0x1f44] ss:$16 sps:$4 sm:$0xff]   ;;  %v15282_v32 = vld [vmem:[%s15827_s12 + $0x1f4c] ss:$16 sps:$4 sm:$0xff]  }
 0x738   : > { %v15285_v29 = vld [vmem:[%s15827_s12 + $0x1f24] ss:$16 sps:$4 sm:$0xff]   ;;  %v15288_v35 = vld [vmem:[%s15827_s12 + $0x1f2c] ss:$16 sps:$4 sm:$0xff]  }
 0x739   : > { %v15291_v38 = vld [vmem:[%s15827_s12 + $0x1f04] ss:$16 sps:$4 sm:$0xff]   ;;  %v15294_v53 = vld [vmem:[%s15827_s12 + $0x1f0c] ss:$16 sps:$4 sm:$0xff]  }
 0x73a   : > { %10953 = vmatpush1.bf16.msra.mxu0 %v15211_v36  ;;  %10994 = vmatpush1.bf16.msra.mxu1 %v15214_v37  ;;  %v15283_v36 = vld [vmem:[%s15827_s12 + $0x1f20] ss:$16 sps:$4 sm:$0xff]   ;;  %v15286_v37 = vld [vmem:[%s15827_s12 + $0x1f28] ss:$16 sps:$4 sm:$0xff]  }
 0x73b   : > { %10954 = vmatprep.subr.bf16.mxu0 %v15219_v41  ;;  %10995 = vmatprep.subr.bf16.mxu1 %v15222_v42  ;;  %v15289_v41 = vld [vmem:[%s15827_s12 + $0x1f00] ss:$16 sps:$4 sm:$0xff]   ;;  %v15292_v42 = vld [vmem:[%s15827_s12 + $0x1f08] ss:$16 sps:$4 sm:$0xff]  }
 0x73e   : > { %10955 = vmatpush1.bf16.msra.mxu0 %v15217_v44  ;;  %10996 = vmatpush1.bf16.msra.mxu1 %v15220_v49  ;;  %v2471_v44 = vld [vmem:[%s16445_s21 + $0xf8] sm:$0xff] }
 0x73f   : > { %10956 = vmatprep.subr.bf16.mxu0 %v15225_v63  ;;  %10997 = vmatprep.subr.bf16.mxu1 %v15228_v46  ;;  %v2503_v49 = vpack.c.bf16 %v2471_v44, %v2471_v44 }
 0x742   : > { %10957 = vmatpush1.bf16.msra.mxu0 %v15223_v9  ;;  %10998 = vmatpush1.bf16.msra.mxu1 %v15226_v15 }
 0x743   : > { %10958 = vmatprep.subr.bf16.mxu0 %v15231_v47  ;;  %10999 = vmatprep.subr.bf16.mxu1 %v15234_v45 }
 0x746   : > { %10959 = vmatpush1.bf16.msra.mxu0 %v15229_v50  ;;  %11000 = vmatpush1.bf16.msra.mxu1 %v15232_v59 }
 0x747   : > { %10960 = vmatprep.subr.bf16.mxu0 %v15237_v51  ;;  %11001 = vmatprep.subr.bf16.mxu1 %v15240_v52 }
 0x74a   : > { %10961 = vmatpush1.bf16.msra.mxu0 %v15235_v54  ;;  %11002 = vmatpush1.bf16.msra.mxu1 %v15238_v31 }
 0x74b   : > { %10962 = vmatprep.subr.bf16.mxu0 %v15243_v5  ;;  %11003 = vmatprep.subr.bf16.mxu1 %v15246_v55 }
 0x74e   : > { %10963 = vmatpush1.bf16.msra.mxu0 %v15241_v56  ;;  %11004 = vmatpush1.bf16.msra.mxu1 %v15244_v58 }
 0x74f   : > { %11190 = vmatprep.subr.bf16.mxu0 %v15249_v23  ;;  %11231 = vmatprep.subr.bf16.mxu1 %v15252_v60 }
 0x751   : > { %v9530_v2 = vpop.f32.mrf.mxu0  ;;  %v9571_v3 = vpop.f32.mrf.mxu1  ;;  %10981 = vmatmul.mubr.bf16.vlgmr.msra.gmra.mxu0 %v2502_v61  ;;  %11022 = vmatmul.mubr.bf16.vlgmr.msra.gmra.mxu1 %v2502_v61 }
 0x752   : > { %v17789_v4 = vadd.f32 %v17742_v24, %v9530_v2  ;;  %v17792_v57 = vadd.f32 %v17745_v25, %v9571_v3  ;;  %11191 = vmatpush1.bf16.msra.mxu0 %v15247_v62  ;;  %11232 = vmatpush1.bf16.msra.mxu1 %v15250_v0  ;;  %v15270_v24 = vld [vmem:[%s15827_s12 + $0x1f8c] ss:$16 sps:$4 sm:$0xff]   ;;  %v15268_v25 = vld [vmem:[%s15827_s12 + $0x1f88] ss:$16 sps:$4 sm:$0xff]  }
 0x753   : > { %v9532_v8 = vpop.f32.mrf.mxu0  ;;  %v9573_v10 = vpop.f32.mrf.mxu1  ;;  %11192 = vmatprep.subr.bf16.mxu0 %v15255_v40  ;;  %11233 = vmatprep.subr.bf16.mxu1 %v15258_v1 }
 0x754   : > { %v17799_v13 = vadd.f32 %v17752_v43, %v9532_v8  ;;  %v17802_v14 = vadd.f32 %v17755_v34, %v9573_v10  ;;  %11222 = vmatprep.mubr.bf16.mxu0 %v15590_v39  ;;  %11263 = vmatprep.mubr.bf16.mxu1 %v15590_v39  ;;  %v15265_v39 = vld [vmem:[%s15827_s12 + $0x1f80] ss:$16 sps:$4 sm:$0xff]   ;;  %v15280_v34 = vld [vmem:[%s15827_s12 + $0x1f48] ss:$16 sps:$4 sm:$0xff]  }
 0x755   : > { %v9534_v16 = vpop.f32.mrf.mxu0  ;;  %v9575_v17 = vpop.f32.mrf.mxu1  ;;  %v15277_v43 = vld [vmem:[%s15827_s12 + $0x1f40] ss:$16 sps:$4 sm:$0xff]  }
 0x756   : > { %11193 = vmatpush1.bf16.msra.mxu0 %v15253_v6  ;;  %11234 = vmatpush1.bf16.msra.mxu1 %v15256_v7 }
 0x757   : > { %v9535_v20 = vpop.f32.mrf.mxu0  ;;  %v9576_v21 = vpop.f32.mrf.mxu1  ;;  %11194 = vmatprep.subr.bf16.mxu0 %v15261_v11  ;;  %11235 = vmatprep.subr.bf16.mxu1 %v15264_v12 }
 0x75a   : > { %11195 = vmatpush1.bf16.msra.mxu0 %v15259_v18  ;;  %11236 = vmatpush1.bf16.msra.mxu1 %v15262_v19 }
 0x75b   : > { %11196 = vmatprep.subr.bf16.mxu0 %v15267_v22  ;;  %11237 = vmatprep.subr.bf16.mxu1 %v15270_v24 }
 0x75e   : > { %11197 = vmatpush1.bf16.msra.mxu0 %v15265_v39  ;;  %11238 = vmatpush1.bf16.msra.mxu1 %v15268_v25 }
 0x75f   : > { %11198 = vmatprep.subr.bf16.mxu0 %v15273_v26  ;;  %11239 = vmatprep.subr.bf16.mxu1 %v15276_v33 }
 0x762   : > { %11199 = vmatpush1.bf16.msra.mxu0 %v15271_v27  ;;  %11240 = vmatpush1.bf16.msra.mxu1 %v15274_v28 }
 0x763   : > { %11200 = vmatprep.subr.bf16.mxu0 %v15279_v30  ;;  %11241 = vmatprep.subr.bf16.mxu1 %v15282_v32 }
 0x766   : > { %11201 = vmatpush1.bf16.msra.mxu0 %v15277_v43  ;;  %11242 = vmatpush1.bf16.msra.mxu1 %v15280_v34 }
 0x767   : > { %11202 = vmatprep.subr.bf16.mxu0 %v15285_v29  ;;  %11243 = vmatprep.subr.bf16.mxu1 %v15288_v35 }
 0x76a   : > { %11203 = vmatpush1.bf16.msra.mxu0 %v15283_v36  ;;  %11244 = vmatpush1.bf16.msra.mxu1 %v15286_v37 }
 0x76b   : > { %11204 = vmatprep.subr.bf16.mxu0 %v15291_v38  ;;  %11245 = vmatprep.subr.bf16.mxu1 %v15294_v53 }
 0x76e   : > { %11205 = vmatpush1.bf16.msra.mxu0 %v15289_v41  ;;  %11246 = vmatpush1.bf16.msra.mxu1 %v15292_v42 }
 0x771   : > { %v9772_v63 = vpop.f32.mrf.mxu0  ;;  %v9813_v46 = vpop.f32.mrf.mxu1  ;;  %11223 = vmatmul.mubr.bf16.vlgmr.msra.gmra.mxu0 %v2503_v49  ;;  %11264 = vmatmul.mubr.bf16.vlgmr.msra.gmra.mxu1 %v2503_v49 }
 0x772   : > { %v11300_v9 = vadd.f32 %v17789_v4, %v9772_v63  ;;  %v11362_v15 = vadd.f32 %v17792_v57, %v9813_v46 }
 0x773   : > { %v9774_v47 = vpop.f32.mrf.mxu0  ;;  %v9815_v45 = vpop.f32.mrf.mxu1 }
 0x774   : > { %v11331_v50 = vadd.f32 %v17799_v13, %v9774_v47  ;;  %v11393_v59 = vadd.f32 %v17802_v14, %v9815_v45 }
 0x775   : > { %v9776_v51 = vpop.f32.mrf.mxu0  ;;  %v9817_v52 = vpop.f32.mrf.mxu1 }
 0x776   : > { %v11274_v52 = vld [vmem:[#allocation3 + $0x18] sm:$0xff] }
 0x777   : > { %v9777_v54 = vpop.f32.mrf.mxu0  ;;  %v9818_v31 = vpop.f32.mrf.mxu1 }
 0x791   : > { %v10014_v5 = vpop.f32.mrf.mxu0  ;;  %v10055_v55 = vpop.f32.mrf.mxu1 }
 0x792   : > { %v11301_v56 = vadd.f32 %v11300_v9, %v10014_v5  ;;  %v11363_v58 = vadd.f32 %v11362_v15, %v10055_v55 }
 0x793   : > { %v10016_v48 = vpop.f32.mrf.mxu0  ;;  %v10057_v23 = vpop.f32.mrf.mxu1 }
 0x794   : > { %v11332_v60 = vadd.f32 %v11331_v50, %v10016_v48  ;;  %v11394_v61 = vadd.f32 %v11393_v59, %v10057_v23  ;;  %v11272_v59 = vld [vmem:[#allocation3 + $0x10] sm:$0xff]  ;;  %v11275_v23 = vld [vmem:[#allocation3 + $0x8] sm:$0xff] }
 0x795   : > { %v10018_v62 = vpop.f32.mrf.mxu0  ;;  %v10059_v0 = vpop.f32.mrf.mxu1 }
 0x797   : > { %v10019_v40 = vpop.f32.mrf.mxu0  ;;  %v10060_v1 = vpop.f32.mrf.mxu1 }
 0x7b1   : > { %v10256_v2 = vpop.f32.mrf.mxu0  ;;  %v10297_v3 = vpop.f32.mrf.mxu1 }
 0x7b2   : > { %v11302_v4 = vadd.f32 %v11301_v56, %v10256_v2  ;;  %v11364_v57 = vadd.f32 %v11363_v58, %v10297_v3  ;;  %v11273_v58 = vld [vmem:[#allocation3] sm:$0xff] }
 0x7b3   : > { %v10258_v6 = vpop.f32.mrf.mxu0  ;;  %v10299_v7 = vpop.f32.mrf.mxu1 }
 0x7b4   : > { %v11333_v8 = vadd.f32 %v11332_v60, %v10258_v6  ;;  %v11395_v10 = vadd.f32 %v11394_v61, %v10299_v7 }
 0x7b5   : > { %v10260_v11 = vpop.f32.mrf.mxu0  ;;  %v10301_v12 = vpop.f32.mrf.mxu1 }
 0x7b7   : > { %v10261_v13 = vpop.f32.mrf.mxu0  ;;  %v10302_v14 = vpop.f32.mrf.mxu1 }
 0x7d1   : > { %v10498_v16 = vpop.f32.mrf.mxu0  ;;  %v10539_v17 = vpop.f32.mrf.mxu1 }
 0x7d2   : > { %v11303_v18 = vadd.f32 %v11302_v4, %v10498_v16  ;;  %v11365_v19 = vadd.f32 %v11364_v57, %v10539_v17 }
 0x7d3   : > { %v10500_v20 = vpop.f32.mrf.mxu0  ;;  %v10541_v21 = vpop.f32.mrf.mxu1 }
 0x7d4   : > { %v11334_v22 = vadd.f32 %v11333_v8, %v10500_v20  ;;  %v11396_v24 = vadd.f32 %v11395_v10, %v10541_v21 }
 0x7d5   : > { %v10502_v39 = vpop.f32.mrf.mxu0  ;;  %v10543_v25 = vpop.f32.mrf.mxu1 }
 0x7d7   : > { %v10503_v26 = vpop.f32.mrf.mxu0  ;;  %v10544_v33 = vpop.f32.mrf.mxu1 }
 0x7f1   : > { %v10740_v27 = vpop.f32.mrf.mxu0  ;;  %v10781_v28 = vpop.f32.mrf.mxu1 }
 0x7f2   : > { %v11304_v63 = vadd.f32 %v11303_v18, %v10740_v27  ;;  %v11366_v46 = vadd.f32 %v11365_v19, %v10781_v28 }
 0x7f3   : > { %v10742_v30 = vpop.f32.mrf.mxu0  ;;  %v10783_v32 = vpop.f32.mrf.mxu1 }
 0x7f4   : > { %v11335_v9 = vadd.f32 %v11334_v22, %v10742_v30  ;;  %v11397_v15 = vadd.f32 %v11396_v24, %v10783_v32 }
 0x7f5   : > { %v10744_v43 = vpop.f32.mrf.mxu0  ;;  %v10785_v34 = vpop.f32.mrf.mxu1 }
 0x7f7   : > { %v10745_v29 = vpop.f32.mrf.mxu0  ;;  %v10786_v35 = vpop.f32.mrf.mxu1 }
 0x811   : > { %v10982_v36 = vpop.f32.mrf.mxu0  ;;  %v11023_v37 = vpop.f32.mrf.mxu1 }
 0x812   : > { %v11305_v47 = vadd.f32 %v11304_v63, %v10982_v36  ;;  %v11367_v45 = vadd.f32 %v11366_v46, %v11023_v37 }
 0x813   : > { %v10984_v38 = vpop.f32.mrf.mxu0  ;;  %v11025_v53 = vpop.f32.mrf.mxu1 }
 0x814   : > { %v11336_v54 = vadd.f32 %v11335_v9, %v10984_v38  ;;  %v11398_v31 = vadd.f32 %v11397_v15, %v11025_v53 }
 0x815   : > { %v10986_v41 = vpop.f32.mrf.mxu0  ;;  %v11027_v42 = vpop.f32.mrf.mxu1 }
 0x817   : > { %v10987_v44 = vpop.f32.mrf.mxu0  ;;  %v11028_v49 = vpop.f32.mrf.mxu1 }
 0x831   : > { %v11224_v50 = vpop.f32.mrf.mxu0  ;;  %v11265_v51 = vpop.f32.mrf.mxu1 }
 0x832   : > { %v11306_v5 = vadd.f32 %v11305_v47, %v11224_v50  ;;  %v11368_v55 = vadd.f32 %v11367_v45, %v11265_v51 }
 0x833   : > { %v11226_v56 = vpop.f32.mrf.mxu0  ;;  %v11267_v48 = vpop.f32.mrf.mxu1 }
 0x834   : > { %v11400_v60 = vadd.f32 %v11306_v5, %v11272_v59  ;;  %v11402_v61 = vadd.f32 %v11368_v55, %v11274_v52  ;;  %v11337_v62 = vadd.f32 %v11336_v54, %v11226_v56  ;;  %v11399_v0 = vadd.f32 %v11398_v31, %v11267_v48  ;;  %11411 = sbr.rel (%p12993_p3) target bundleno = 2341 (0x925), region = 100 }
 0x835   : > { %v11228_v40 = vpop.f32.mrf.mxu0  ;;  %v11269_v1 = vpop.f32.mrf.mxu1 }
 0x836   : > { %11404 = vst [vmem:[#allocation3 + $0x10] sm:$0xff] %v11400_v60  ;;  %11406 = vst [vmem:[#allocation3 + $0x18] sm:$0xff] %v11402_v61  ;;  %v11401_v2 = vadd.f32 %v11337_v62, %v11273_v58  ;;  %v11403_v3 = vadd.f32 %v11399_v0, %v11275_v23 }
 0x837   : > { %v11229_v4 = vpop.f32.mrf.mxu0  ;;  %v11270_v57 = vpop.f32.mrf.mxu1 }
 0x838   : > { %11405 = vst [vmem:[#allocation3] sm:$0xff] %v11401_v2  ;;  %11407 = vst [vmem:[#allocation3 + $0x8] sm:$0xff] %v11403_v3 }
 0x839   : > { %v11477_v6 = vld [vmem:[%s18056_s9 + $0xf8] sm:$0xff]  ;;  %v11476_v11 = vld [vmem:[%s18056_s9 + $0xf0] sm:$0xff]  ;;  %v11475_v16 = vld [vmem:[%s18056_s9 + $0xe8] sm:$0xff]  ;;  %v11418_v29 = vlaneseq  ;;  %vm11650_vm3 = vcmask 31744  }
 0x83a   : > { %v11509_v7 = vld [vmem:[%s18056_s9 + $0x1f8] sm:$0xff]  ;;  %13217 = vmatprep.subr.mxu0 %v11477_v6  ;;  %v11508_v12 = vld [vmem:[%s18056_s9 + $0x1f0] sm:$0xff]  ;;  %v11507_v17 = vld [vmem:[%s18056_s9 + $0x1e8] sm:$0xff] }
 0x83b   : > { %v11461_v8 = vld [vmem:[%s18056_s9 + $0x78] sm:$0xff]  ;;  %13252 = vmatprep.subr.mxu1 %v11509_v7  ;;  %v11460_v13 = vld [vmem:[%s18056_s9 + $0x70] sm:$0xff]  ;;  %v11459_v18 = vld [vmem:[%s18056_s9 + $0x68] sm:$0xff]  ;;  %v11419_v49 = vshrl.u32 %v11418_v29, 7 }
 0x83c   : > { %v11493_v10 = vld [vmem:[%s18056_s9 + $0x178] sm:$0xff]  ;;  %13218 = vmatpush3.msra.mxu0 %v11461_v8  ;;  %v11492_v14 = vld [vmem:[%s18056_s9 + $0x170] sm:$0xff]  ;;  %v11491_v19 = vld [vmem:[%s18056_s9 + $0x168] sm:$0xff] }
 0x83d   : > { %13253 = vmatpush3.msra.mxu1 %v11493_v10  ;;  %13219 = vmatprep.subr.mxu0 %v11476_v11  ;;  %v11474_v20 = vld [vmem:[%s18056_s9 + $0xe0] sm:$0xff]  ;;  %v11473_v39 = vld [vmem:[%s18056_s9 + $0xd8] sm:$0xff]  ;;  %v11472_v27 = vld [vmem:[%s18056_s9 + $0xd0] sm:$0xff]  ;;  %v11424_v51 = vsub.s32 1, %v11419_v49  ;;  %v11432_v52 = vsub.s32 3, %v11419_v49  ;;  %v11420_v54 = vsub.s32 0, %v11419_v49 }
 0x83e   : > { %13254 = vmatprep.subr.mxu1 %v11508_v12  ;;  %13220 = vmatpush3.msra.mxu0 %v11460_v13  ;;  %v11506_v21 = vld [vmem:[%s18056_s9 + $0x1e0] sm:$0xff]  ;;  %v11505_v25 = vld [vmem:[%s18056_s9 + $0x1d8] sm:$0xff]  ;;  %v11504_v28 = vld [vmem:[%s18056_s9 + $0x1d0] sm:$0xff]  ;;  %v11428_v56 = vsub.s32 2, %v11419_v49 }
 0x83f   : > { %13255 = vmatpush3.msra.mxu1 %v11492_v14  ;;  %13221 = vmatprep.subr.mxu0 %v11475_v16  ;;  %v11458_v22 = vld [vmem:[%s18056_s9 + $0x60] sm:$0xff]  ;;  %v11457_v26 = vld [vmem:[%s18056_s9 + $0x58] sm:$0xff]  ;;  %v11456_v30 = vld [vmem:[%s18056_s9 + $0x50] sm:$0xff] }
 0x840   : > { %13256 = vmatprep.subr.mxu1 %v11507_v17  ;;  %v11490_v24 = vld [vmem:[%s18056_s9 + $0x160] sm:$0xff]  ;;  %13222 = vmatpush3.msra.mxu0 %v11459_v18  ;;  %v11489_v33 = vld [vmem:[%s18056_s9 + $0x158] sm:$0xff]  ;;  %v11488_v32 = vld [vmem:[%s18056_s9 + $0x150] sm:$0xff] }
 0x841   : > { %13257 = vmatpush3.msra.mxu1 %v11491_v19  ;;  %13223 = vmatprep.subr.mxu0 %v11474_v20  ;;  %v11471_v43 = vld [vmem:[%s18056_s9 + $0xc8] sm:$0xff]  ;;  %v11470_v37 = vld [vmem:[%s18056_s9 + $0xc0] sm:$0xff]  ;;  %v11469_v42 = vld [vmem:[%s18056_s9 + $0xb8] sm:$0xff] }
 0x842   : > { %13258 = vmatprep.subr.mxu1 %v11506_v21  ;;  %13224 = vmatpush3.msra.mxu0 %v11458_v22  ;;  %v11503_v34 = vld [vmem:[%s18056_s9 + $0x1c8] sm:$0xff]  ;;  %v11502_v38 = vld [vmem:[%s18056_s9 + $0x1c0] sm:$0xff]  ;;  %v11501_v44 = vld [vmem:[%s18056_s9 + $0x1b8] sm:$0xff] }
 0x843   : > { %13259 = vmatpush3.msra.mxu1 %v11490_v24  ;;  %13225 = vmatprep.subr.mxu0 %v11473_v39  ;;  %v11455_v35 = vld [vmem:[%s18056_s9 + $0x48] sm:$0xff]  ;;  %v11454_v53 = vld [vmem:[%s18056_s9 + $0x40] sm:$0xff]  ;;  %v11453_v63 = vld [vmem:[%s18056_s9 + $0x38] sm:$0xff] }
 0x844   : > { %13260 = vmatprep.subr.mxu1 %v11505_v25  ;;  %13226 = vmatpush3.msra.mxu0 %v11457_v26  ;;  %v11487_v36 = vld [vmem:[%s18056_s9 + $0x148] sm:$0xff]  ;;  %v11486_v41 = vld [vmem:[%s18056_s9 + $0x140] sm:$0xff]  ;;  %v11485_v46 = vld [vmem:[%s18056_s9 + $0x138] sm:$0xff] }
 0x845   : > { %13261 = vmatpush3.msra.mxu1 %v11489_v33  ;;  %13227 = vmatprep.subr.mxu0 %v11472_v27  ;;  %v11468_v9 = vld [vmem:[%s18056_s9 + $0xb0] sm:$0xff]  ;;  %v11467_v50 = vld [vmem:[%s18056_s9 + $0xa8] sm:$0xff]  ;;  %v11466_v55 = vld [vmem:[%s18056_s9 + $0xa0] sm:$0xff] }
 0x846   : > { %13262 = vmatprep.subr.mxu1 %v11504_v28  ;;  %13228 = vmatpush3.msra.mxu0 %v11456_v30  ;;  %v11500_v15 = vld [vmem:[%s18056_s9 + $0x1b0] sm:$0xff]  ;;  %v11499_v59 = vld [vmem:[%s18056_s9 + $0x1a8] sm:$0xff]  ;;  %v11498_v58 = vld [vmem:[%s18056_s9 + $0x1a0] sm:$0xff] }
 0x847   : > { %13263 = vmatpush3.msra.mxu1 %v11488_v32  ;;  %13229 = vmatprep.subr.mxu0 %v11471_v43  ;;  %v11452_v47 = vld [vmem:[%s18056_s9 + $0x30] sm:$0xff]  ;;  %v11451_v31 = vld [vmem:[%s18056_s9 + $0x28] sm:$0xff]  ;;  %v11450_v48 = vld [vmem:[%s18056_s9 + $0x20] sm:$0xff] }
 0x848   : > { %13264 = vmatprep.subr.mxu1 %v11503_v34  ;;  %13230 = vmatpush3.msra.mxu0 %v11455_v35  ;;  %v11484_v45 = vld [vmem:[%s18056_s9 + $0x130] sm:$0xff]  ;;  %v11483_v5 = vld [vmem:[%s18056_s9 + $0x128] sm:$0xff]  ;;  %v11482_v23 = vld [vmem:[%s18056_s9 + $0x120] sm:$0xff] }
 0x849   : > { %13265 = vmatpush3.msra.mxu1 %v11487_v36  ;;  %13231 = vmatprep.subr.mxu0 %v11470_v37  ;;  %v11465_v60 = vld [vmem:[%s18056_s9 + $0x98] sm:$0xff]  ;;  %v11413_v61 = vld [vmem:[#allocation3] sm:$0xff]  ;;  %v11416_v62 = vld [vmem:[#allocation15] sm:$0xf] }
 0x84a   : > { %13266 = vmatprep.subr.mxu1 %v11502_v38  ;;  %13232 = vmatpush3.msra.mxu0 %v11454_v53  ;;  %v11497_v0 = vld [vmem:[%s18056_s9 + $0x198] sm:$0xff]  ;;  %v11425_v1 = vrot.slane %v11416_v62, %v11424_v51  ;;  %v11415_v2 = vld [vmem:[#allocation3 + $0x8] sm:$0xff]  ;;  %v11433_v3 = vrot.slane %v11416_v62, %v11432_v52  ;;  %v11421_v4 = vrot.slane %v11416_v62, %v11420_v54  ;;  %v11412_v6 = vld [vmem:[#allocation3 + $0x10] sm:$0xff] }
 0x84b   : > { %13267 = vmatpush3.msra.mxu1 %v11486_v41  ;;  %13233 = vmatprep.subr.mxu0 %v11469_v42  ;;  %v11449_v40 = vld [vmem:[%s18056_s9 + $0x18] sm:$0xff]  ;;  %v11429_v8 = vrot.slane %v11416_v62, %v11428_v56  ;;  %v11464_v10 = vld [vmem:[%s18056_s9 + $0x90] sm:$0xff]  ;;  %v11463_v17 = vld [vmem:[%s18056_s9 + $0x88] sm:$0xff] }
 0x84c   : > { %13268 = vmatprep.subr.mxu1 %v11501_v44  ;;  %13234 = vmatpush3.msra.mxu0 %v11453_v63  ;;  %v11481_v57 = vld [vmem:[%s18056_s9 + $0x118] sm:$0xff]  ;;  %v11496_v11 = vld [vmem:[%s18056_s9 + $0x190] sm:$0xff]  ;;  %v11439_v12 = vadd.f32 %v11425_v1, %v11413_v61  ;;  %v11441_v16 = vadd.f32 %v11433_v3, %v11415_v2  ;;  %v11495_v18 = vld [vmem:[%s18056_s9 + $0x188] sm:$0xff]  ;;  %v11438_v19 = vadd.f32 %v11421_v4, %v11412_v6 }
 0x84d   : > { %13269 = vmatpush3.msra.mxu1 %v11485_v46  ;;  %13235 = vmatprep.subr.mxu0 %v11468_v9  ;;  %v11414_v7 = vld [vmem:[#allocation3 + $0x18] sm:$0xff]  ;;  %v11448_v13 = vld [vmem:[%s18056_s9 + $0x10] sm:$0xff]  ;;  %v11447_v21 = vld [vmem:[%s18056_s9 + $0x8] sm:$0xff] }
 0x84e   : > { %13270 = vmatprep.subr.mxu1 %v11500_v15  ;;  %13236 = vmatpush3.msra.mxu0 %v11452_v47  ;;  %v11480_v14 = vld [vmem:[%s18056_s9 + $0x110] sm:$0xff]  ;;  %v11440_v20 = vadd.f32 %v11429_v8, %v11414_v7  ;;  %v11479_v22 = vld [vmem:[%s18056_s9 + $0x108] sm:$0xff]  ;;  %v11462_v24 = vld [vmem:[%s18056_s9 + $0x80] sm:$0xff]  ;;  %v11443_v25 = vmax.f32 %v11439_v12, 0.0  ;;  %v11445_v33 = vmax.f32 %v11441_v16, 0.0  ;;  %v11442_v28 = vmax.f32 %v11438_v19, 0.0 }
 0x84f   : > { %13271 = vmatpush3.msra.mxu1 %v11484_v45  ;;  %13237 = vmatprep.subr.mxu0 %v11467_v50  ;;  %v11494_v39 = vld [vmem:[%s18056_s9 + $0x180] sm:$0xff] }
 0x850   : > { %13272 = vmatprep.subr.mxu1 %v11499_v59  ;;  %13238 = vmatpush3.msra.mxu0 %v11451_v31  ;;  %v11446_v26 = vld [vmem:[%s18056_s9] sm:$0xff]  ;;  %v11444_v30 = vmax.f32 %v11440_v20, 0.0 }
 0x851   : > { %13273 = vmatpush3.msra.mxu1 %v11483_v5  ;;  %13239 = vmatprep.subr.mxu0 %v11466_v55  ;;  %v11478_v27 = vld [vmem:[%s18056_s9 + $0x100] sm:$0xff] }
 0x852   : > { %13274 = vmatprep.subr.mxu1 %v11498_v58  ;;  %13240 = vmatpush3.msra.mxu0 %v11450_v48 }
 0x853   : > { %13275 = vmatpush3.msra.mxu1 %v11482_v23  ;;  %13241 = vmatprep.subr.mxu0 %v11465_v60 }
 0x854   : > { %13276 = vmatprep.subr.mxu1 %v11497_v0  ;;  %13242 = vmatpush3.msra.mxu0 %v11449_v40 }
 0x855   : > { %13277 = vmatpush3.msra.mxu1 %v11481_v57  ;;  %13243 = vmatprep.subr.mxu0 %v11464_v10 }
 0x856   : > { %13278 = vmatprep.subr.mxu1 %v11496_v11  ;;  %13244 = vmatpush3.msra.mxu0 %v11448_v13 }
 0x857   : > { %13279 = vmatpush3.msra.mxu1 %v11480_v14  ;;  %13245 = vmatprep.subr.mxu0 %v11463_v17 }
 0x858   : > { %13280 = vmatprep.subr.mxu1 %v11495_v18  ;;  %13246 = vmatpush3.msra.mxu0 %v11447_v21 }
 0x859   : > { %13281 = vmatpush3.msra.mxu1 %v11479_v22  ;;  %13247 = vmatprep.subr.mxu0 %v11462_v24 }
 0x85a   : > { %13282 = vmatprep.subr.mxu1 %v11494_v39  ;;  %13248 = vmatpush3.msra.mxu0 %v11446_v26 }
 0x85b   : > { %11574 = vmatprep.mubr.f32.mxu0 %v11443_v25  ;;  %13283 = vmatpush3.msra.mxu1 %v11478_v27 }
 0x85c   : > { %11644 = vmatprep.mubr.f32.mxu1 %v11445_v33  ;;  %11575 = vmatmul.mubr.f32.vlgmr.msra.gmra.mxu0 %v11442_v28 }
 0x85d   : > { %11645 = vmatmul.mubr.f32.vlgmr.msra.gmra.mxu1 %v11444_v30 }
 0x91c   : > { %v13249_v32 = vpop.f32.mrf.mxu0 }
 0x91d   : > { %v13284_v43 = vpop.f32.mrf.mxu1 }
 0x91e   : > { %v13250_v34 = vpop.f32.mrf.mxu0 }
 0x91f   : > { %v13285_v29 = vpop.f32.mrf.mxu1  ;;  %v13251_v35 = vadd.f32 %v13250_v34, %v13249_v32 }
 0x920   : > { %v13286_v36 = vadd.f32 %v13285_v29, %v13284_v43 }
 0x922   : > { %v11647_v37 = vadd.f32 %v13286_v36, %v13251_v35 }
 0x924   : > { %11651 = vst.msk [vmem:[%s18057_s10] sm:$0xff] %vm11650_vm3, %v11647_v37 }
 0x925 PF: > { %s24_s18 = sadd.s32 1, %s15575_s18   ;;  %s18081_s13 = smov %s15559_s14 }
 0x926   : > { %p21_p5 = scmp.ge.s32.totalorder %s24_s18, 4   ;;  %s18082_s14 = smov %s15563_s15 }
 0x927   : > { %s18083_s15 = smov %s15790_s19  ;;  %s18084_s16 = smov %s15571_s17 }
 0x928   : > { %s18085_s17 = smov %s18087_s29  ;;  %23 = sbr.rel (!%p21_p5) target bundleno = 11 (0xb), region = 140 }
 0x92d   :  { %11671 = vsyncpa [#allocation5], 1 }
 0x92e   :  { %11673 = vsyncpa [#allocation5 + $0x1], 1 }
 0x92f   :  { %11674 = vsyncpa [#allocation7], 1 }
 0x930   :  { %11675 = vsyncpa [#allocation10], 1 }
 0x931   :  { %11676 = vsyncpa [#allocation13], 1 }

</bundles_post_ra>
